<compile_context>
chip_gen: v7x
topology: tpu7x:2x2x1
jax: 0.10.0
libtpu: 0.0.40
codegen_flags: <defaults>
</compile_context>

<pallas_src>
import math

import jax
import jax.numpy as jnp
import numpy as np
from jax import lax
from jax.experimental import pallas as pl
from jax.experimental.pallas import tpu as pltpu  # noqa: F401  (TPU backend, memory spaces)

_LANE = 128
_SUBLANE = 8


def _round_up(x, m):
    return ((x + m - 1) // m) * m


# ---------------------------------------------------------------------------
# Fused kernel
# ---------------------------------------------------------------------------
def _make_dis_lstmae_kernel(T, Bp, H2, L_enc, L_dec):
    """Fused DIS_LSTMAE forward.  All shapes already lane/sublane padded:
       Bp : batch padded to a multiple of 8 (sublane tile)
       H2 : 2*Hp fused [gl|lo] hidden width, a multiple of 128 (lane tile)
    """
    TBp = T * Bp
    G = 4 * H2  # fused gate width: [i | f | g | o], each H2 lanes wide

    def kernel(*refs):
        it = iter(refs)
        # ---- inputs ----
        x_ref = next(it)                                          # (TBp, Fp) f32
        enc_w = [(next(it), next(it), next(it)) for _ in range(L_enc)]
        dec_w = [(next(it), next(it), next(it)) for _ in range(L_dec)]
        wq_ref, wk_ref, wv_ref = next(it), next(it), next(it)     # (H2, H2) bf16
        wo_ref, bo_ref = next(it), next(it)                       # (H2, Fp) bf16, (1, Fp) f32
        # ---- outputs ----
        enc_ref, dec_ref, out_ref, rec_ref = next(it), next(it), next(it), next(it)

        x = x_ref[...]                                            # (TBp, Fp) f32

        def run_fused_stack(y, layers):
            """Fused gl+lo LSTM stack over the whole sequence (time-major rows)."""
            for (wih_ref, whh_ref, b_ref) in layers:
                # Whole-sequence input projection + fused bias: one big MXU op,
                # off the serial path (bf16 inputs, f32 accumulation).
                gx = jnp.dot(y.astype(jnp.bfloat16), wih_ref[...],
                             preferred_element_type=jnp.float32) + b_ref[...]   # (TBp, G)
                whh = whh_ref[...]                                               # (H2, G) bf16
                h = jnp.zeros((Bp, H2), jnp.float32)
                c = jnp.zeros((Bp, H2), jnp.float32)
                hs = []
                # T is small & static -> fully unrolled; exactly ONE dependent
                # (Bp, H2)@(H2, G) matmul per step drives BOTH gl and lo streams.
                for t in range(T):
                    g = gx[t * Bp:(t + 1) * Bp, :] + jnp.dot(
                        h.astype(jnp.bfloat16), whh,
                        preferred_element_type=jnp.float32)                      # (Bp, G)
                    # gate slices are whole 128-lane multiples (H2 each); PyTorch order i|f|g|o
                    i_g = jax.nn.sigmoid(g[:, 0 * H2:1 * H2])
                    f_g = jax.nn.sigmoid(g[:, 1 * H2:2 * H2])
                    g_g = jnp.tanh(g[:, 2 * H2:3 * H2])
                    o_g = jax.nn.sigmoid(g[:, 3 * H2:4 * H2])
                    c = f_g * c + i_g * g_g
                    h = o_g * jnp.tanh(c)
                    hs.append(h)
                # One dense (TBp, H2) value per layer; no per-step masked stores.
                # TODO(synk): inter-layer dropout is training-only; dropout=0.0 -> identity.
                y = jnp.concatenate(hs, axis=0)
            return y

        enc = run_fused_stack(x, enc_w)                           # (TBp, H2)
        enc_ref[...] = enc
        dec = run_fused_stack(enc, dec_w)
        dec_ref[...] = dec

        # ---- self-attention over hidden = [gl_dec+gl_enc | lo_dec+lo_enc] ----
        s = (enc + dec).astype(jnp.bfloat16)                      # padded fused layout
        q = jnp.dot(s, wq_ref[...], preferred_element_type=jnp.float32)  # 1/sqrt(2H) folded in
        k = jnp.dot(s, wk_ref[...], preferred_element_type=jnp.float32)
        v = jnp.dot(s, wv_ref[...], preferred_element_type=jnp.float32)
        scores = lax.dot_general(q, k, (((1,), (1,)), ((), ())),
                                 preferred_element_type=jnp.float32)     # (TBp, TBp)

        # Block-diagonal same-batch mask, generated in-kernel (no HBM bias matrix).
        ri = lax.broadcasted_iota(jnp.int32, (TBp, TBp), 0)
        ci = lax.broadcasted_iota(jnp.int32, (TBp, TBp), 1)
        if Bp & (Bp - 1) == 0:
            rb, cb = ri & (Bp - 1), ci & (Bp - 1)
        else:
            rb, cb = ri % Bp, ci % Bp
        scores = jnp.where(rb == cb, scores, jnp.float32(-1e30))

        m = jnp.max(scores, axis=-1, keepdims=True)
        e = jnp.exp(scores - m)
        p = e * pl.reciprocal(jnp.sum(e, axis=-1, keepdims=True), approx=True)
        att = jnp.dot(p, v, preferred_element_type=jnp.float32)           # (TBp, H2)

        out = jnp.dot(att.astype(jnp.bfloat16), wo_ref[...],
                      preferred_element_type=jnp.float32) + bo_ref[...]   # (TBp, Fp)
        out_ref[...] = out                                                # lane-dense store

        # ---- rec_err: per-batch sum_{t,f} |out^2 - x^2| ----
        d = jnp.abs(out * out - x * x)                                    # (TBp, Fp)
        bi = lax.broadcasted_iota(jnp.int32, (Bp, TBp), 0)
        cj = lax.broadcasted_iota(jnp.int32, (Bp, TBp), 1)
        cjb = (cj & (Bp - 1)) if Bp & (Bp - 1) == 0 else (cj % Bp)
        onehot = (bi == cjb).astype(jnp.float32)                          # (Bp, TBp)
        per_b = jnp.dot(onehot, d, preferred_element_type=jnp.float32)    # (Bp, Fp)
        rec = jnp.sum(per_b, axis=-1, keepdims=True)                      # (Bp, 1)
        rec_ref[...] = jnp.broadcast_to(rec, rec_ref.shape)               # lane-dense store

    return kernel


# ---------------------------------------------------------------------------
# Host-side weight packing (gl/lo fusion + lane/sublane padding, bf16 cast)
# ---------------------------------------------------------------------------
def _fuse_lstm_stack(gl_layers, lo_layers, H, Hp, first_input_shared, in0_pad):
    """Fuse the gl and lo LSTM stacks of one role (encoder or decoder).

    Fused gate columns (width 8*Hp): [ i_gl i_lo | f_gl f_lo | g_gl g_lo | o_gl o_lo ],
    each sub-block Hp wide (first H real, rest zero).  Hidden-carrying inputs use the
    fused row layout [ h_gl | h_lo ] of width 2*Hp.  For a shared first layer (the
    encoders) both streams read the same raw input at rows [0:F] of the padded input.
    """
    fused = []
    G = 8 * Hp
    for li, (gl, lo) in enumerate(zip(gl_layers, lo_layers)):
        shared = first_input_shared and li == 0
        in_pad = in0_pad if shared else 2 * Hp
        wih = jnp.zeros((in_pad, G), jnp.float32)
        whh = jnp.zeros((2 * Hp, G), jnp.float32)
        b = jnp.zeros((1, G), jnp.float32)
        for s, (w_ih, w_hh, b_ih, b_hh) in enumerate((gl, lo)):
            w_ih_t = jnp.asarray(w_ih, jnp.float32).T              # (in, 4H)
            w_hh_t = jnp.asarray(w_hh, jnp.float32).T              # (H, 4H)
            bias = jnp.asarray(b_ih, jnp.float32) + jnp.asarray(b_hh, jnp.float32)
            n_in = w_ih_t.shape[0]
            row0 = 0 if shared else s * Hp
            for k in range(4):                                      # PyTorch order i|f|g|o
                col0 = k * 2 * Hp + s * Hp
                wih = wih.at[row0:row0 + n_in, col0:col0 + H].set(w_ih_t[:, k * H:(k + 1) * H])
                whh = whh.at[s * Hp:s * Hp + H, col0:col0 + H].set(w_hh_t[:, k * H:(k + 1) * H])
                b = b.at[0, col0:col0 + H].set(bias[k * H:(k + 1) * H])
        fused.append((wih.astype(jnp.bfloat16), whh.astype(jnp.bfloat16), b))
    return fused


def _pad_attn_weight(w, H, Hp, scale=1.0):
    """nn.Linear weight (2H, 2H) -> (2Hp, 2Hp) operating on the padded fused hidden
    layout [gl(0:H) 0 | lo(Hp:Hp+H) 0]; projection output lives in columns [0:2H]."""
    wt = jnp.asarray(w, jnp.float32).T * scale                      # (2H, 2H)
    wp = jnp.zeros((2 * Hp, 2 * Hp), jnp.float32)
    wp = wp.at[0:H, 0:2 * H].set(wt[0:H, :])
    wp = wp.at[Hp:Hp + H, 0:2 * H].set(wt[H:2 * H, :])
    return wp.astype(jnp.bfloat16)


# ---------------------------------------------------------------------------
# Wrapper
# ---------------------------------------------------------------------------
def dis_lstmae_forward(ts_batch, params):
    """Pallas equivalent of DIS_LSTMAE.forward(ts_batch) (de_batch=None path).

    Returns ((gl_enc_feat, gl_dec_feat), (lo_enc_feat, lo_dec_feat), rec_err, output),
    all batch-first like PyTorch.
    """
    # TODO(synk): the optional de_batch branch (extra gl_AE pass) is not implemented.
    B, T, F = ts_batch.shape
    H = params["gl_enc"][0][1].shape[1]          # w_hh: (4H, H)
    L_enc = len(params["gl_enc"])
    L_dec = len(params["gl_dec"])

    Hp = _round_up(H, 64)                        # per-stream pad so 2*Hp is lane aligned
    H2 = 2 * Hp
    Fp = _round_up(F, _LANE)
    Bp = _round_up(B, _SUBLANE)                  # sublane-tile aligned batch
    TBp = T * Bp

    # time-major, batch & feature padded input: row = t*Bp + b
    x_tm = jnp.transpose(ts_batch.astype(jnp.float32), (1, 0, 2))         # (T, B, F)
    x_pad = jnp.zeros((T, Bp, Fp), jnp.float32).at[:, :B, :F].set(x_tm).reshape(TBp, Fp)

    enc_layers = _fuse_lstm_stack(params["gl_enc"], params["lo_enc"], H, Hp,
                                  first_input_shared=True, in0_pad=Fp)
    dec_layers = _fuse_lstm_stack(params["gl_dec"], params["lo_dec"], H, Hp,
                                  first_input_shared=False, in0_pad=H2)

    wq, wk, wv = params["att"]
    norm = 1.0 / math.sqrt(2 * H)                # SelfAttention dim_k = 2H
    wq_p = _pad_attn_weight(wq, H, Hp, scale=norm)   # fold norm into W_q
    wk_p = _pad_attn_weight(wk, H, Hp)
    wv_p = _pad_attn_weight(wv, H, Hp)

    w_out, b_out = params["head"]
    wo_t = jnp.asarray(w_out, jnp.float32).T                              # (2H, F)
    wo_p = jnp.zeros((H2, Fp), jnp.float32).at[0:2 * H, 0:F].set(wo_t).astype(jnp.bfloat16)
    bo_p = jnp.zeros((1, Fp), jnp.float32).at[0, 0:F].set(jnp.asarray(b_out, jnp.float32))

    inputs = [x_pad]
    for layer in enc_layers + dec_layers:
        inputs += list(layer)
    inputs += [wq_p, wk_p, wv_p, wo_p, bo_p]

    kernel = _make_dis_lstmae_kernel(T, Bp, H2, L_enc, L_dec)

    out_shapes = (
        jax.ShapeDtypeStruct((TBp, H2), jnp.float32),    # fused encoder features
        jax.ShapeDtypeStruct((TBp, H2), jnp.float32),    # fused decoder features
        jax.ShapeDtypeStruct((TBp, Fp), jnp.float32),    # head output (lane padded)
        jax.ShapeDtypeStruct((Bp, _LANE), jnp.float32),  # rec_err (lane broadcast)
    )

    # Single launch, no grid: whole working set (~1.5 MiB) lives in VMEM.
    enc_f, dec_f, out_p, rec_p = pl.pallas_call(kernel, out_shape=out_shapes)(*inputs)

    def unpad_stream(fused, s):
        blk = fused.reshape(T, Bp, H2)[:, :B, s * Hp:s * Hp + H]          # (T, B, H)
        return jnp.transpose(blk, (1, 0, 2))                              # (B, T, H)

    gl_enc, lo_enc = unpad_stream(enc_f, 0), unpad_stream(enc_f, 1)
    gl_dec, lo_dec = unpad_stream(dec_f, 0), unpad_stream(dec_f, 1)
    output = jnp.transpose(out_p.reshape(T, Bp, Fp)[:, :B, :F], (1, 0, 2))
    rec_err = rec_p[:B, 0]
    return ((gl_enc, gl_dec), (lo_enc, lo_dec), rec_err, output)


# ---------------------------------------------------------------------------
# Deterministic parameter init (matches PyTorch default init distributions)
# ---------------------------------------------------------------------------
def init_lstm_stack(key, n_layers, input_size, hidden_size):
    k = 1.0 / math.sqrt(hidden_size)
    layers = []
    for layer in range(n_layers):
        in_sz = input_size if layer == 0 else hidden_size
        key, k1, k2, k3, k4 = jax.random.split(key, 5)
        w_ih = jax.random.uniform(k1, (4 * hidden_size, in_sz), minval=-k, maxval=k,
                                  dtype=jnp.float32)
        w_hh = jax.random.uniform(k2, (4 * hidden_size, hidden_size), minval=-k, maxval=k,
                                  dtype=jnp.float32)
        b_ih = jax.random.uniform(k3, (4 * hidden_size,), minval=-k, maxval=k,
                                  dtype=jnp.float32)
        b_hh = jax.random.uniform(k4, (4 * hidden_size,), minval=-k, maxval=k,
                                  dtype=jnp.float32)
        layers.append((w_ih, w_hh, b_ih, b_hh))
    return layers, key


def init_dis_lstmae_params(key, n_features, hidden_size, n_layers):
    params = {}
    params["gl_enc"], key = init_lstm_stack(key, n_layers[0], n_features, hidden_size)
    params["gl_dec"], key = init_lstm_stack(key, n_layers[1], hidden_size, hidden_size)
    params["lo_enc"], key = init_lstm_stack(key, n_layers[0], n_features, hidden_size)
    params["lo_dec"], key = init_lstm_stack(key, n_layers[1], hidden_size, hidden_size)
    d = 2 * hidden_size
    ka = 1.0 / math.sqrt(d)
    key, kq, kk, kv, kw, kb = jax.random.split(key, 6)
    params["att"] = tuple(
        jax.random.uniform(kx, (d, d), minval=-ka, maxval=ka, dtype=jnp.float32)
        for kx in (kq, kk, kv))
    params["head"] = (
        jax.random.uniform(kw, (n_features, d), minval=-ka, maxval=ka, dtype=jnp.float32),
        jax.random.uniform(kb, (n_features,), minval=-ka, maxval=ka, dtype=jnp.float32))
    return params, key


# ---------------------------------------------------------------------------
# Pure-JAX reference (for numerical validation)
# ---------------------------------------------------------------------------
def _lstm_stack_ref(x_bf, layers):
    y = x_bf
    for (w_ih, w_hh, b_ih, b_hh) in layers:
        Bb, _, _ = y.shape
        Hh = w_hh.shape[1]

        def step(carry, x_t, w_ih=w_ih, w_hh=w_hh, b_ih=b_ih, b_hh=b_hh, Hh=Hh):
            h, c = carry
            g = x_t @ w_ih.T + h @ w_hh.T + b_ih + b_hh
            i = jax.nn.sigmoid(g[:, :Hh])
            f = jax.nn.sigmoid(g[:, Hh:2 * Hh])
            gg = jnp.tanh(g[:, 2 * Hh:3 * Hh])
            o = jax.nn.sigmoid(g[:, 3 * Hh:])
            c = f * c + i * gg
            h = o * jnp.tanh(c)
            return (h, c), h

        h0 = jnp.zeros((Bb, Hh), jnp.float32)
        (_, _), ys = jax.lax.scan(step, (h0, h0), jnp.transpose(y, (1, 0, 2)))
        y = jnp.transpose(ys, (1, 0, 2))
    return y


def dis_lstmae_reference(ts_batch, params):
    x = ts_batch.astype(jnp.float32)
    gl_enc = _lstm_stack_ref(x, params["gl_enc"])
    gl_dec = _lstm_stack_ref(gl_enc, params["gl_dec"])
    lo_enc = _lstm_stack_ref(x, params["lo_enc"])
    lo_dec = _lstm_stack_ref(lo_enc, params["lo_dec"])
    hidden = jnp.concatenate([gl_dec + gl_enc, lo_dec + lo_enc], axis=2)
    wq, wk, wv = params["att"]
    q = hidden @ wq.T
    k = hidden @ wk.T
    v = hidden @ wv.T
    norm = 1.0 / math.sqrt(wq.shape[0])
    dist = jax.nn.softmax(jnp.einsum("bqd,bkd->bqk", q, k) * norm, axis=-1)
    att = jnp.einsum("bqk,bkd->bqd", dist, v)
    w_out, b_out = params["head"]
    out = att @ w_out.T + b_out
    Bb = x.shape[0]
    rec = jnp.sum(jnp.abs(out.reshape(Bb, -1) ** 2 - x.reshape(Bb, -1) ** 2), axis=1)
    return (gl_enc, gl_dec), (lo_enc, lo_dec), rec, out


# ---------------------------------------------------------------------------
if __name__ == "__main__":
    # DIS_LSTMAE(n_features=4, hidden_size=32, n_layers=(2, 2), dropout=(0.0, 0.0))
    n_features = 4
    hidden_size = 32
    n_layers = (2, 2)

    batch = 2
    seq = 8

    key = jax.random.PRNGKey(0)
    key, xkey = jax.random.split(key)
    ts_batch = jax.random.normal(xkey, (batch, seq, n_features), dtype=jnp.float32)

    params, key = init_dis_lstmae_params(key, n_features, hidden_size, n_layers)

    fwd = jax.jit(dis_lstmae_forward)
    ((gl_enc_f, gl_dec_f), (lo_enc_f, lo_dec_f), rec_err, output) = fwd(ts_batch, params)
    jax.block_until_ready((gl_enc_f, gl_dec_f, lo_enc_f, lo_dec_f, rec_err, output))

    assert gl_enc_f.shape == (batch, seq, hidden_size)
    assert gl_dec_f.shape == (batch, seq, hidden_size)
    assert lo_enc_f.shape == (batch, seq, hidden_size)
    assert lo_dec_f.shape == (batch, seq, hidden_size)
    assert rec_err.shape == (batch,)
    assert output.shape == (batch, seq, n_features)

    # Numerical sanity check vs pure-f32 JAX reference.  Tolerance accounts for
    # bf16 matmul inputs (f32 accumulation) and the approx softmax reciprocal.
    (r_gl_e, r_gl_d), (r_lo_e, r_lo_d), r_rec, r_out = dis_lstmae_reference(ts_batch, params)
    for got, want in ((gl_enc_f, r_gl_e), (gl_dec_f, r_gl_d),
                      (lo_enc_f, r_lo_e), (lo_dec_f, r_lo_d),
                      (rec_err, r_rec), (output, r_out)):
        np.testing.assert_allclose(np.asarray(got), np.asarray(want), rtol=3e-2, atol=3e-2)

    print("KERNEL_OK")
</pallas_src>

<mosaic_0001>
module attributes {stable_mosaic.version = 11 : i64} {
  func.func @kernel(%arg0: memref<64x128xf32, #tpu.memory_space<vmem>>, %arg1: memref<128x512xbf16, #tpu.memory_space<vmem>>, %arg2: memref<128x512xbf16, #tpu.memory_space<vmem>>, %arg3: memref<1x512xf32, #tpu.memory_space<vmem>>, %arg4: memref<128x512xbf16, #tpu.memory_space<vmem>>, %arg5: memref<128x512xbf16, #tpu.memory_space<vmem>>, %arg6: memref<1x512xf32, #tpu.memory_space<vmem>>, %arg7: memref<128x512xbf16, #tpu.memory_space<vmem>>, %arg8: memref<128x512xbf16, #tpu.memory_space<vmem>>, %arg9: memref<1x512xf32, #tpu.memory_space<vmem>>, %arg10: memref<128x512xbf16, #tpu.memory_space<vmem>>, %arg11: memref<128x512xbf16, #tpu.memory_space<vmem>>, %arg12: memref<1x512xf32, #tpu.memory_space<vmem>>, %arg13: memref<128x128xbf16, #tpu.memory_space<vmem>>, %arg14: memref<128x128xbf16, #tpu.memory_space<vmem>>, %arg15: memref<128x128xbf16, #tpu.memory_space<vmem>>, %arg16: memref<128x128xbf16, #tpu.memory_space<vmem>>, %arg17: memref<1x128xf32, #tpu.memory_space<vmem>>, %arg18: memref<64x128xf32, #tpu.memory_space<vmem>>, %arg19: memref<64x128xf32, #tpu.memory_space<vmem>>, %arg20: memref<64x128xf32, #tpu.memory_space<vmem>>, %arg21: memref<8x128xf32, #tpu.memory_space<vmem>>) attributes {dimension_semantics = [], scalar_prefetch = 0 : i64, scratch_operands = 0 : i64, tpu.core_type = #tpu.core_type<tc>} {
    %c0 = arith.constant 0 : index
    %c0_0 = arith.constant 0 : index
    %0 = vector.load %arg0[%c0, %c0_0] : memref<64x128xf32, #tpu.memory_space<vmem>>, vector<64x128xf32>
    %1 = arith.truncf %0 : vector<64x128xf32> to vector<64x128xbf16>
    %c0_1 = arith.constant 0 : index
    %c0_2 = arith.constant 0 : index
    %2 = vector.load %arg1[%c0_1, %c0_2] : memref<128x512xbf16, #tpu.memory_space<vmem>>, vector<128x512xbf16>
    %cst = arith.constant dense<0.000000e+00> : vector<64x512xf32>
    %3 = tpu.matmul %1, %2, %cst {dimension_numbers = #tpu.dot_dimension_numbers<[1], [0], [0], [1], [0, 0, 1, 1], [], []>} : vector<64x128xbf16>, vector<128x512xbf16>, vector<64x512xf32> -> vector<64x512xf32>
    %c0_3 = arith.constant 0 : index
    %c0_4 = arith.constant 0 : index
    %4 = vector.load %arg3[%c0_3, %c0_4] : memref<1x512xf32, #tpu.memory_space<vmem>>, vector<1x512xf32>
    %5 = vector.broadcast %4 : vector<1x512xf32> to vector<64x512xf32>
    %6 = arith.addf %3, %5 : vector<64x512xf32>
    %c0_5 = arith.constant 0 : index
    %c0_6 = arith.constant 0 : index
    %7 = vector.load %arg2[%c0_5, %c0_6] : memref<128x512xbf16, #tpu.memory_space<vmem>>, vector<128x512xbf16>
    %cst_7 = arith.constant 0.000000e+00 : f32
    %8 = vector.broadcast %cst_7 : f32 to vector<8x128xf32>
    %cst_8 = arith.constant 0.000000e+00 : f32
    %9 = vector.broadcast %cst_8 : f32 to vector<8x128xf32>
    %10 = vector.extract_strided_slice %6 {offsets = [0, 0], sizes = [8, 512], strides = [1, 1]} : vector<64x512xf32> to vector<8x512xf32>
    %11 = arith.truncf %8 : vector<8x128xf32> to vector<8x128xbf16>
    %cst_9 = arith.constant dense<0.000000e+00> : vector<8x512xf32>
    %12 = tpu.matmul %11, %7, %cst_9 {dimension_numbers = #tpu.dot_dimension_numbers<[1], [0], [0], [1], [0, 0, 1, 1], [], []>} : vector<8x128xbf16>, vector<128x512xbf16>, vector<8x512xf32> -> vector<8x512xf32>
    %13 = arith.addf %10, %12 : vector<8x512xf32>
    %14 = vector.extract_strided_slice %13 {offsets = [0, 0], sizes = [8, 128], strides = [1, 1]} : vector<8x512xf32> to vector<8x128xf32>
    %15 = arith.negf %14 : vector<8x128xf32>
    %16 = math.exp %15 : vector<8x128xf32>
    %cst_10 = arith.constant 1.000000e+00 : f32
    %17 = vector.broadcast %cst_10 : f32 to vector<8x128xf32>
    %18 = arith.addf %17, %16 : vector<8x128xf32>
    %19 = arith.divf %17, %18 : vector<8x128xf32>
    %20 = vector.extract_strided_slice %13 {offsets = [0, 128], sizes = [8, 128], strides = [1, 1]} : vector<8x512xf32> to vector<8x128xf32>
    %21 = arith.negf %20 : vector<8x128xf32>
    %22 = math.exp %21 : vector<8x128xf32>
    %cst_11 = arith.constant 1.000000e+00 : f32
    %23 = vector.broadcast %cst_11 : f32 to vector<8x128xf32>
    %24 = arith.addf %23, %22 : vector<8x128xf32>
    %25 = arith.divf %23, %24 : vector<8x128xf32>
    %26 = vector.extract_strided_slice %13 {offsets = [0, 256], sizes = [8, 128], strides = [1, 1]} : vector<8x512xf32> to vector<8x128xf32>
    %27 = math.tanh %26 : vector<8x128xf32>
    %28 = vector.extract_strided_slice %13 {offsets = [0, 384], sizes = [8, 128], strides = [1, 1]} : vector<8x512xf32> to vector<8x128xf32>
    %29 = arith.negf %28 : vector<8x128xf32>
    %30 = math.exp %29 : vector<8x128xf32>
    %cst_12 = arith.constant 1.000000e+00 : f32
    %31 = vector.broadcast %cst_12 : f32 to vector<8x128xf32>
    %32 = arith.addf %31, %30 : vector<8x128xf32>
    %33 = arith.divf %31, %32 : vector<8x128xf32>
    %34 = arith.mulf %25, %9 : vector<8x128xf32>
    %35 = arith.mulf %19, %27 : vector<8x128xf32>
    %36 = arith.addf %34, %35 : vector<8x128xf32>
    %37 = math.tanh %36 : vector<8x128xf32>
    %38 = arith.mulf %33, %37 : vector<8x128xf32>
    %39 = vector.extract_strided_slice %6 {offsets = [8, 0], sizes = [8, 512], strides = [1, 1]} : vector<64x512xf32> to vector<8x512xf32>
    %40 = arith.truncf %38 : vector<8x128xf32> to vector<8x128xbf16>
    %cst_13 = arith.constant dense<0.000000e+00> : vector<8x512xf32>
    %41 = tpu.matmul %40, %7, %cst_13 {dimension_numbers = #tpu.dot_dimension_numbers<[1], [0], [0], [1], [0, 0, 1, 1], [], []>} : vector<8x128xbf16>, vector<128x512xbf16>, vector<8x512xf32> -> vector<8x512xf32>
    %42 = arith.addf %39, %41 : vector<8x512xf32>
    %43 = vector.extract_strided_slice %42 {offsets = [0, 0], sizes = [8, 128], strides = [1, 1]} : vector<8x512xf32> to vector<8x128xf32>
    %44 = arith.negf %43 : vector<8x128xf32>
    %45 = math.exp %44 : vector<8x128xf32>
    %cst_14 = arith.constant 1.000000e+00 : f32
    %46 = vector.broadcast %cst_14 : f32 to vector<8x128xf32>
    %47 = arith.addf %46, %45 : vector<8x128xf32>
    %48 = arith.divf %46, %47 : vector<8x128xf32>
    %49 = vector.extract_strided_slice %42 {offsets = [0, 128], sizes = [8, 128], strides = [1, 1]} : vector<8x512xf32> to vector<8x128xf32>
    %50 = arith.negf %49 : vector<8x128xf32>
    %51 = math.exp %50 : vector<8x128xf32>
    %cst_15 = arith.constant 1.000000e+00 : f32
    %52 = vector.broadcast %cst_15 : f32 to vector<8x128xf32>
    %53 = arith.addf %52, %51 : vector<8x128xf32>
    %54 = arith.divf %52, %53 : vector<8x128xf32>
    %55 = vector.extract_strided_slice %42 {offsets = [0, 256], sizes = [8, 128], strides = [1, 1]} : vector<8x512xf32> to vector<8x128xf32>
    %56 = math.tanh %55 : vector<8x128xf32>
    %57 = vector.extract_strided_slice %42 {offsets = [0, 384], sizes = [8, 128], strides = [1, 1]} : vector<8x512xf32> to vector<8x128xf32>
    %58 = arith.negf %57 : vector<8x128xf32>
    %59 = math.exp %58 : vector<8x128xf32>
    %cst_16 = arith.constant 1.000000e+00 : f32
    %60 = vector.broadcast %cst_16 : f32 to vector<8x128xf32>
    %61 = arith.addf %60, %59 : vector<8x128xf32>
    %62 = arith.divf %60, %61 : vector<8x128xf32>
    %63 = arith.mulf %54, %36 : vector<8x128xf32>
    %64 = arith.mulf %48, %56 : vector<8x128xf32>
    %65 = arith.addf %63, %64 : vector<8x128xf32>
    %66 = math.tanh %65 : vector<8x128xf32>
    %67 = arith.mulf %62, %66 : vector<8x128xf32>
    %68 = vector.extract_strided_slice %6 {offsets = [16, 0], sizes = [8, 512], strides = [1, 1]} : vector<64x512xf32> to vector<8x512xf32>
    %69 = arith.truncf %67 : vector<8x128xf32> to vector<8x128xbf16>
    %cst_17 = arith.constant dense<0.000000e+00> : vector<8x512xf32>
    %70 = tpu.matmul %69, %7, %cst_17 {dimension_numbers = #tpu.dot_dimension_numbers<[1], [0], [0], [1], [0, 0, 1, 1], [], []>} : vector<8x128xbf16>, vector<128x512xbf16>, vector<8x512xf32> -> vector<8x512xf32>
    %71 = arith.addf %68, %70 : vector<8x512xf32>
    %72 = vector.extract_strided_slice %71 {offsets = [0, 0], sizes = [8, 128], strides = [1, 1]} : vector<8x512xf32> to vector<8x128xf32>
    %73 = arith.negf %72 : vector<8x128xf32>
    %74 = math.exp %73 : vector<8x128xf32>
    %cst_18 = arith.constant 1.000000e+00 : f32
    %75 = vector.broadcast %cst_18 : f32 to vector<8x128xf32>
    %76 = arith.addf %75, %74 : vector<8x128xf32>
    %77 = arith.divf %75, %76 : vector<8x128xf32>
    %78 = vector.extract_strided_slice %71 {offsets = [0, 128], sizes = [8, 128], strides = [1, 1]} : vector<8x512xf32> to vector<8x128xf32>
    %79 = arith.negf %78 : vector<8x128xf32>
    %80 = math.exp %79 : vector<8x128xf32>
    %cst_19 = arith.constant 1.000000e+00 : f32
    %81 = vector.broadcast %cst_19 : f32 to vector<8x128xf32>
    %82 = arith.addf %81, %80 : vector<8x128xf32>
    %83 = arith.divf %81, %82 : vector<8x128xf32>
    %84 = vector.extract_strided_slice %71 {offsets = [0, 256], sizes = [8, 128], strides = [1, 1]} : vector<8x512xf32> to vector<8x128xf32>
    %85 = math.tanh %84 : vector<8x128xf32>
    %86 = vector.extract_strided_slice %71 {offsets = [0, 384], sizes = [8, 128], strides = [1, 1]} : vector<8x512xf32> to vector<8x128xf32>
    %87 = arith.negf %86 : vector<8x128xf32>
    %88 = math.exp %87 : vector<8x128xf32>
    %cst_20 = arith.constant 1.000000e+00 : f32
    %89 = vector.broadcast %cst_20 : f32 to vector<8x128xf32>
    %90 = arith.addf %89, %88 : vector<8x128xf32>
    %91 = arith.divf %89, %90 : vector<8x128xf32>
    %92 = arith.mulf %83, %65 : vector<8x128xf32>
    %93 = arith.mulf %77, %85 : vector<8x128xf32>
    %94 = arith.addf %92, %93 : vector<8x128xf32>
    %95 = math.tanh %94 : vector<8x128xf32>
    %96 = arith.mulf %91, %95 : vector<8x128xf32>
    %97 = vector.extract_strided_slice %6 {offsets = [24, 0], sizes = [8, 512], strides = [1, 1]} : vector<64x512xf32> to vector<8x512xf32>
    %98 = arith.truncf %96 : vector<8x128xf32> to vector<8x128xbf16>
    %cst_21 = arith.constant dense<0.000000e+00> : vector<8x512xf32>
    %99 = tpu.matmul %98, %7, %cst_21 {dimension_numbers = #tpu.dot_dimension_numbers<[1], [0], [0], [1], [0, 0, 1, 1], [], []>} : vector<8x128xbf16>, vector<128x512xbf16>, vector<8x512xf32> -> vector<8x512xf32>
    %100 = arith.addf %97, %99 : vector<8x512xf32>
    %101 = vector.extract_strided_slice %100 {offsets = [0, 0], sizes = [8, 128], strides = [1, 1]} : vector<8x512xf32> to vector<8x128xf32>
    %102 = arith.negf %101 : vector<8x128xf32>
    %103 = math.exp %102 : vector<8x128xf32>
    %cst_22 = arith.constant 1.000000e+00 : f32
    %104 = vector.broadcast %cst_22 : f32 to vector<8x128xf32>
    %105 = arith.addf %104, %103 : vector<8x128xf32>
    %106 = arith.divf %104, %105 : vector<8x128xf32>
    %107 = vector.extract_strided_slice %100 {offsets = [0, 128], sizes = [8, 128], strides = [1, 1]} : vector<8x512xf32> to vector<8x128xf32>
    %108 = arith.negf %107 : vector<8x128xf32>
    %109 = math.exp %108 : vector<8x128xf32>
    %cst_23 = arith.constant 1.000000e+00 : f32
    %110 = vector.broadcast %cst_23 : f32 to vector<8x128xf32>
    %111 = arith.addf %110, %109 : vector<8x128xf32>
    %112 = arith.divf %110, %111 : vector<8x128xf32>
    %113 = vector.extract_strided_slice %100 {offsets = [0, 256], sizes = [8, 128], strides = [1, 1]} : vector<8x512xf32> to vector<8x128xf32>
    %114 = math.tanh %113 : vector<8x128xf32>
    %115 = vector.extract_strided_slice %100 {offsets = [0, 384], sizes = [8, 128], strides = [1, 1]} : vector<8x512xf32> to vector<8x128xf32>
    %116 = arith.negf %115 : vector<8x128xf32>
    %117 = math.exp %116 : vector<8x128xf32>
    %cst_24 = arith.constant 1.000000e+00 : f32
    %118 = vector.broadcast %cst_24 : f32 to vector<8x128xf32>
    %119 = arith.addf %118, %117 : vector<8x128xf32>
    %120 = arith.divf %118, %119 : vector<8x128xf32>
    %121 = arith.mulf %112, %94 : vector<8x128xf32>
    %122 = arith.mulf %106, %114 : vector<8x128xf32>
    %123 = arith.addf %121, %122 : vector<8x128xf32>
    %124 = math.tanh %123 : vector<8x128xf32>
    %125 = arith.mulf %120, %124 : vector<8x128xf32>
    %126 = vector.extract_strided_slice %6 {offsets = [32, 0], sizes = [8, 512], strides = [1, 1]} : vector<64x512xf32> to vector<8x512xf32>
    %127 = arith.truncf %125 : vector<8x128xf32> to vector<8x128xbf16>
    %cst_25 = arith.constant dense<0.000000e+00> : vector<8x512xf32>
    %128 = tpu.matmul %127, %7, %cst_25 {dimension_numbers = #tpu.dot_dimension_numbers<[1], [0], [0], [1], [0, 0, 1, 1], [], []>} : vector<8x128xbf16>, vector<128x512xbf16>, vector<8x512xf32> -> vector<8x512xf32>
    %129 = arith.addf %126, %128 : vector<8x512xf32>
    %130 = vector.extract_strided_slice %129 {offsets = [0, 0], sizes = [8, 128], strides = [1, 1]} : vector<8x512xf32> to vector<8x128xf32>
    %131 = arith.negf %130 : vector<8x128xf32>
    %132 = math.exp %131 : vector<8x128xf32>
    %cst_26 = arith.constant 1.000000e+00 : f32
    %133 = vector.broadcast %cst_26 : f32 to vector<8x128xf32>
    %134 = arith.addf %133, %132 : vector<8x128xf32>
    %135 = arith.divf %133, %134 : vector<8x128xf32>
    %136 = vector.extract_strided_slice %129 {offsets = [0, 128], sizes = [8, 128], strides = [1, 1]} : vector<8x512xf32> to vector<8x128xf32>
    %137 = arith.negf %136 : vector<8x128xf32>
    %138 = math.exp %137 : vector<8x128xf32>
    %cst_27 = arith.constant 1.000000e+00 : f32
    %139 = vector.broadcast %cst_27 : f32 to vector<8x128xf32>
    %140 = arith.addf %139, %138 : vector<8x128xf32>
    %141 = arith.divf %139, %140 : vector<8x128xf32>
    %142 = vector.extract_strided_slice %129 {offsets = [0, 256], sizes = [8, 128], strides = [1, 1]} : vector<8x512xf32> to vector<8x128xf32>
    %143 = math.tanh %142 : vector<8x128xf32>
    %144 = vector.extract_strided_slice %129 {offsets = [0, 384], sizes = [8, 128], strides = [1, 1]} : vector<8x512xf32> to vector<8x128xf32>
    %145 = arith.negf %144 : vector<8x128xf32>
    %146 = math.exp %145 : vector<8x128xf32>
    %cst_28 = arith.constant 1.000000e+00 : f32
    %147 = vector.broadcast %cst_28 : f32 to vector<8x128xf32>
    %148 = arith.addf %147, %146 : vector<8x128xf32>
    %149 = arith.divf %147, %148 : vector<8x128xf32>
    %150 = arith.mulf %141, %123 : vector<8x128xf32>
    %151 = arith.mulf %135, %143 : vector<8x128xf32>
    %152 = arith.addf %150, %151 : vector<8x128xf32>
    %153 = math.tanh %152 : vector<8x128xf32>
    %154 = arith.mulf %149, %153 : vector<8x128xf32>
    %155 = vector.extract_strided_slice %6 {offsets = [40, 0], sizes = [8, 512], strides = [1, 1]} : vector<64x512xf32> to vector<8x512xf32>
    %156 = arith.truncf %154 : vector<8x128xf32> to vector<8x128xbf16>
    %cst_29 = arith.constant dense<0.000000e+00> : vector<8x512xf32>
    %157 = tpu.matmul %156, %7, %cst_29 {dimension_numbers = #tpu.dot_dimension_numbers<[1], [0], [0], [1], [0, 0, 1, 1], [], []>} : vector<8x128xbf16>, vector<128x512xbf16>, vector<8x512xf32> -> vector<8x512xf32>
    %158 = arith.addf %155, %157 : vector<8x512xf32>
    %159 = vector.extract_strided_slice %158 {offsets = [0, 0], sizes = [8, 128], strides = [1, 1]} : vector<8x512xf32> to vector<8x128xf32>
    %160 = arith.negf %159 : vector<8x128xf32>
    %161 = math.exp %160 : vector<8x128xf32>
    %cst_30 = arith.constant 1.000000e+00 : f32
    %162 = vector.broadcast %cst_30 : f32 to vector<8x128xf32>
    %163 = arith.addf %162, %161 : vector<8x128xf32>
    %164 = arith.divf %162, %163 : vector<8x128xf32>
    %165 = vector.extract_strided_slice %158 {offsets = [0, 128], sizes = [8, 128], strides = [1, 1]} : vector<8x512xf32> to vector<8x128xf32>
    %166 = arith.negf %165 : vector<8x128xf32>
    %167 = math.exp %166 : vector<8x128xf32>
    %cst_31 = arith.constant 1.000000e+00 : f32
    %168 = vector.broadcast %cst_31 : f32 to vector<8x128xf32>
    %169 = arith.addf %168, %167 : vector<8x128xf32>
    %170 = arith.divf %168, %169 : vector<8x128xf32>
    %171 = vector.extract_strided_slice %158 {offsets = [0, 256], sizes = [8, 128], strides = [1, 1]} : vector<8x512xf32> to vector<8x128xf32>
    %172 = math.tanh %171 : vector<8x128xf32>
    %173 = vector.extract_strided_slice %158 {offsets = [0, 384], sizes = [8, 128], strides = [1, 1]} : vector<8x512xf32> to vector<8x128xf32>
    %174 = arith.negf %173 : vector<8x128xf32>
    %175 = math.exp %174 : vector<8x128xf32>
    %cst_32 = arith.constant 1.000000e+00 : f32
    %176 = vector.broadcast %cst_32 : f32 to vector<8x128xf32>
    %177 = arith.addf %176, %175 : vector<8x128xf32>
    %178 = arith.divf %176, %177 : vector<8x128xf32>
    %179 = arith.mulf %170, %152 : vector<8x128xf32>
    %180 = arith.mulf %164, %172 : vector<8x128xf32>
    %181 = arith.addf %179, %180 : vector<8x128xf32>
    %182 = math.tanh %181 : vector<8x128xf32>
    %183 = arith.mulf %178, %182 : vector<8x128xf32>
    %184 = vector.extract_strided_slice %6 {offsets = [48, 0], sizes = [8, 512], strides = [1, 1]} : vector<64x512xf32> to vector<8x512xf32>
    %185 = arith.truncf %183 : vector<8x128xf32> to vector<8x128xbf16>
    %cst_33 = arith.constant dense<0.000000e+00> : vector<8x512xf32>
    %186 = tpu.matmul %185, %7, %cst_33 {dimension_numbers = #tpu.dot_dimension_numbers<[1], [0], [0], [1], [0, 0, 1, 1], [], []>} : vector<8x128xbf16>, vector<128x512xbf16>, vector<8x512xf32> -> vector<8x512xf32>
    %187 = arith.addf %184, %186 : vector<8x512xf32>
    %188 = vector.extract_strided_slice %187 {offsets = [0, 0], sizes = [8, 128], strides = [1, 1]} : vector<8x512xf32> to vector<8x128xf32>
    %189 = arith.negf %188 : vector<8x128xf32>
    %190 = math.exp %189 : vector<8x128xf32>
    %cst_34 = arith.constant 1.000000e+00 : f32
    %191 = vector.broadcast %cst_34 : f32 to vector<8x128xf32>
    %192 = arith.addf %191, %190 : vector<8x128xf32>
    %193 = arith.divf %191, %192 : vector<8x128xf32>
    %194 = vector.extract_strided_slice %187 {offsets = [0, 128], sizes = [8, 128], strides = [1, 1]} : vector<8x512xf32> to vector<8x128xf32>
    %195 = arith.negf %194 : vector<8x128xf32>
    %196 = math.exp %195 : vector<8x128xf32>
    %cst_35 = arith.constant 1.000000e+00 : f32
    %197 = vector.broadcast %cst_35 : f32 to vector<8x128xf32>
    %198 = arith.addf %197, %196 : vector<8x128xf32>
    %199 = arith.divf %197, %198 : vector<8x128xf32>
    %200 = vector.extract_strided_slice %187 {offsets = [0, 256], sizes = [8, 128], strides = [1, 1]} : vector<8x512xf32> to vector<8x128xf32>
    %201 = math.tanh %200 : vector<8x128xf32>
    %202 = vector.extract_strided_slice %187 {offsets = [0, 384], sizes = [8, 128], strides = [1, 1]} : vector<8x512xf32> to vector<8x128xf32>
    %203 = arith.negf %202 : vector<8x128xf32>
    %204 = math.exp %203 : vector<8x128xf32>
    %cst_36 = arith.constant 1.000000e+00 : f32
    %205 = vector.broadcast %cst_36 : f32 to vector<8x128xf32>
    %206 = arith.addf %205, %204 : vector<8x128xf32>
    %207 = arith.divf %205, %206 : vector<8x128xf32>
    %208 = arith.mulf %199, %181 : vector<8x128xf32>
    %209 = arith.mulf %193, %201 : vector<8x128xf32>
    %210 = arith.addf %208, %209 : vector<8x128xf32>
    %211 = math.tanh %210 : vector<8x128xf32>
    %212 = arith.mulf %207, %211 : vector<8x128xf32>
    %213 = vector.extract_strided_slice %6 {offsets = [56, 0], sizes = [8, 512], strides = [1, 1]} : vector<64x512xf32> to vector<8x512xf32>
    %214 = arith.truncf %212 : vector<8x128xf32> to vector<8x128xbf16>
    %cst_37 = arith.constant dense<0.000000e+00> : vector<8x512xf32>
    %215 = tpu.matmul %214, %7, %cst_37 {dimension_numbers = #tpu.dot_dimension_numbers<[1], [0], [0], [1], [0, 0, 1, 1], [], []>} : vector<8x128xbf16>, vector<128x512xbf16>, vector<8x512xf32> -> vector<8x512xf32>
    %216 = arith.addf %213, %215 : vector<8x512xf32>
    %217 = vector.extract_strided_slice %216 {offsets = [0, 0], sizes = [8, 128], strides = [1, 1]} : vector<8x512xf32> to vector<8x128xf32>
    %218 = arith.negf %217 : vector<8x128xf32>
    %219 = math.exp %218 : vector<8x128xf32>
    %cst_38 = arith.constant 1.000000e+00 : f32
    %220 = vector.broadcast %cst_38 : f32 to vector<8x128xf32>
    %221 = arith.addf %220, %219 : vector<8x128xf32>
    %222 = arith.divf %220, %221 : vector<8x128xf32>
    %223 = vector.extract_strided_slice %216 {offsets = [0, 128], sizes = [8, 128], strides = [1, 1]} : vector<8x512xf32> to vector<8x128xf32>
    %224 = arith.negf %223 : vector<8x128xf32>
    %225 = math.exp %224 : vector<8x128xf32>
    %cst_39 = arith.constant 1.000000e+00 : f32
    %226 = vector.broadcast %cst_39 : f32 to vector<8x128xf32>
    %227 = arith.addf %226, %225 : vector<8x128xf32>
    %228 = arith.divf %226, %227 : vector<8x128xf32>
    %229 = vector.extract_strided_slice %216 {offsets = [0, 256], sizes = [8, 128], strides = [1, 1]} : vector<8x512xf32> to vector<8x128xf32>
    %230 = math.tanh %229 : vector<8x128xf32>
    %231 = vector.extract_strided_slice %216 {offsets = [0, 384], sizes = [8, 128], strides = [1, 1]} : vector<8x512xf32> to vector<8x128xf32>
    %232 = arith.negf %231 : vector<8x128xf32>
    %233 = math.exp %232 : vector<8x128xf32>
    %cst_40 = arith.constant 1.000000e+00 : f32
    %234 = vector.broadcast %cst_40 : f32 to vector<8x128xf32>
    %235 = arith.addf %234, %233 : vector<8x128xf32>
    %236 = arith.divf %234, %235 : vector<8x128xf32>
    %237 = arith.mulf %228, %210 : vector<8x128xf32>
    %238 = arith.mulf %222, %230 : vector<8x128xf32>
    %239 = arith.addf %237, %238 : vector<8x128xf32>
    %240 = math.tanh %239 : vector<8x128xf32>
    %241 = arith.mulf %236, %240 : vector<8x128xf32>
    %242 = tpu.concatenate %38, %67, %96, %125, %154, %183, %212, %241 in 0 : vector<8x128xf32>, vector<8x128xf32>, vector<8x128xf32>, vector<8x128xf32>, vector<8x128xf32>, vector<8x128xf32>, vector<8x128xf32>, vector<8x128xf32> -> vector<64x128xf32>
    %243 = arith.truncf %242 : vector<64x128xf32> to vector<64x128xbf16>
    %c0_41 = arith.constant 0 : index
    %c0_42 = arith.constant 0 : index
    %244 = vector.load %arg4[%c0_41, %c0_42] : memref<128x512xbf16, #tpu.memory_space<vmem>>, vector<128x512xbf16>
    %cst_43 = arith.constant dense<0.000000e+00> : vector<64x512xf32>
    %245 = tpu.matmul %243, %244, %cst_43 {dimension_numbers = #tpu.dot_dimension_numbers<[1], [0], [0], [1], [0, 0, 1, 1], [], []>} : vector<64x128xbf16>, vector<128x512xbf16>, vector<64x512xf32> -> vector<64x512xf32>
    %c0_44 = arith.constant 0 : index
    %c0_45 = arith.constant 0 : index
    %246 = vector.load %arg6[%c0_44, %c0_45] : memref<1x512xf32, #tpu.memory_space<vmem>>, vector<1x512xf32>
    %247 = vector.broadcast %246 : vector<1x512xf32> to vector<64x512xf32>
    %248 = arith.addf %245, %247 : vector<64x512xf32>
    %c0_46 = arith.constant 0 : index
    %c0_47 = arith.constant 0 : index
    %249 = vector.load %arg5[%c0_46, %c0_47] : memref<128x512xbf16, #tpu.memory_space<vmem>>, vector<128x512xbf16>
    %cst_48 = arith.constant 0.000000e+00 : f32
    %250 = vector.broadcast %cst_48 : f32 to vector<8x128xf32>
    %cst_49 = arith.constant 0.000000e+00 : f32
    %251 = vector.broadcast %cst_49 : f32 to vector<8x128xf32>
    %252 = vector.extract_strided_slice %248 {offsets = [0, 0], sizes = [8, 512], strides = [1, 1]} : vector<64x512xf32> to vector<8x512xf32>
    %253 = arith.truncf %250 : vector<8x128xf32> to vector<8x128xbf16>
    %cst_50 = arith.constant dense<0.000000e+00> : vector<8x512xf32>
    %254 = tpu.matmul %253, %249, %cst_50 {dimension_numbers = #tpu.dot_dimension_numbers<[1], [0], [0], [1], [0, 0, 1, 1], [], []>} : vector<8x128xbf16>, vector<128x512xbf16>, vector<8x512xf32> -> vector<8x512xf32>
    %255 = arith.addf %252, %254 : vector<8x512xf32>
    %256 = vector.extract_strided_slice %255 {offsets = [0, 0], sizes = [8, 128], strides = [1, 1]} : vector<8x512xf32> to vector<8x128xf32>
    %257 = arith.negf %256 : vector<8x128xf32>
    %258 = math.exp %257 : vector<8x128xf32>
    %cst_51 = arith.constant 1.000000e+00 : f32
    %259 = vector.broadcast %cst_51 : f32 to vector<8x128xf32>
    %260 = arith.addf %259, %258 : vector<8x128xf32>
    %261 = arith.divf %259, %260 : vector<8x128xf32>
    %262 = vector.extract_strided_slice %255 {offsets = [0, 128], sizes = [8, 128], strides = [1, 1]} : vector<8x512xf32> to vector<8x128xf32>
    %263 = arith.negf %262 : vector<8x128xf32>
    %264 = math.exp %263 : vector<8x128xf32>
    %cst_52 = arith.constant 1.000000e+00 : f32
    %265 = vector.broadcast %cst_52 : f32 to vector<8x128xf32>
    %266 = arith.addf %265, %264 : vector<8x128xf32>
    %267 = arith.divf %265, %266 : vector<8x128xf32>
    %268 = vector.extract_strided_slice %255 {offsets = [0, 256], sizes = [8, 128], strides = [1, 1]} : vector<8x512xf32> to vector<8x128xf32>
    %269 = math.tanh %268 : vector<8x128xf32>
    %270 = vector.extract_strided_slice %255 {offsets = [0, 384], sizes = [8, 128], strides = [1, 1]} : vector<8x512xf32> to vector<8x128xf32>
    %271 = arith.negf %270 : vector<8x128xf32>
    %272 = math.exp %271 : vector<8x128xf32>
    %cst_53 = arith.constant 1.000000e+00 : f32
    %273 = vector.broadcast %cst_53 : f32 to vector<8x128xf32>
    %274 = arith.addf %273, %272 : vector<8x128xf32>
    %275 = arith.divf %273, %274 : vector<8x128xf32>
    %276 = arith.mulf %267, %251 : vector<8x128xf32>
    %277 = arith.mulf %261, %269 : vector<8x128xf32>
    %278 = arith.addf %276, %277 : vector<8x128xf32>
    %279 = math.tanh %278 : vector<8x128xf32>
    %280 = arith.mulf %275, %279 : vector<8x128xf32>
    %281 = vector.extract_strided_slice %248 {offsets = [8, 0], sizes = [8, 512], strides = [1, 1]} : vector<64x512xf32> to vector<8x512xf32>
    %282 = arith.truncf %280 : vector<8x128xf32> to vector<8x128xbf16>
    %cst_54 = arith.constant dense<0.000000e+00> : vector<8x512xf32>
    %283 = tpu.matmul %282, %249, %cst_54 {dimension_numbers = #tpu.dot_dimension_numbers<[1], [0], [0], [1], [0, 0, 1, 1], [], []>} : vector<8x128xbf16>, vector<128x512xbf16>, vector<8x512xf32> -> vector<8x512xf32>
    %284 = arith.addf %281, %283 : vector<8x512xf32>
    %285 = vector.extract_strided_slice %284 {offsets = [0, 0], sizes = [8, 128], strides = [1, 1]} : vector<8x512xf32> to vector<8x128xf32>
    %286 = arith.negf %285 : vector<8x128xf32>
    %287 = math.exp %286 : vector<8x128xf32>
    %cst_55 = arith.constant 1.000000e+00 : f32
    %288 = vector.broadcast %cst_55 : f32 to vector<8x128xf32>
    %289 = arith.addf %288, %287 : vector<8x128xf32>
    %290 = arith.divf %288, %289 : vector<8x128xf32>
    %291 = vector.extract_strided_slice %284 {offsets = [0, 128], sizes = [8, 128], strides = [1, 1]} : vector<8x512xf32> to vector<8x128xf32>
    %292 = arith.negf %291 : vector<8x128xf32>
    %293 = math.exp %292 : vector<8x128xf32>
    %cst_56 = arith.constant 1.000000e+00 : f32
    %294 = vector.broadcast %cst_56 : f32 to vector<8x128xf32>
    %295 = arith.addf %294, %293 : vector<8x128xf32>
    %296 = arith.divf %294, %295 : vector<8x128xf32>
    %297 = vector.extract_strided_slice %284 {offsets = [0, 256], sizes = [8, 128], strides = [1, 1]} : vector<8x512xf32> to vector<8x128xf32>
    %298 = math.tanh %297 : vector<8x128xf32>
    %299 = vector.extract_strided_slice %284 {offsets = [0, 384], sizes = [8, 128], strides = [1, 1]} : vector<8x512xf32> to vector<8x128xf32>
    %300 = arith.negf %299 : vector<8x128xf32>
    %301 = math.exp %300 : vector<8x128xf32>
    %cst_57 = arith.constant 1.000000e+00 : f32
    %302 = vector.broadcast %cst_57 : f32 to vector<8x128xf32>
    %303 = arith.addf %302, %301 : vector<8x128xf32>
    %304 = arith.divf %302, %303 : vector<8x128xf32>
    %305 = arith.mulf %296, %278 : vector<8x128xf32>
    %306 = arith.mulf %290, %298 : vector<8x128xf32>
    %307 = arith.addf %305, %306 : vector<8x128xf32>
    %308 = math.tanh %307 : vector<8x128xf32>
    %309 = arith.mulf %304, %308 : vector<8x128xf32>
    %310 = vector.extract_strided_slice %248 {offsets = [16, 0], sizes = [8, 512], strides = [1, 1]} : vector<64x512xf32> to vector<8x512xf32>
    %311 = arith.truncf %309 : vector<8x128xf32> to vector<8x128xbf16>
    %cst_58 = arith.constant dense<0.000000e+00> : vector<8x512xf32>
    %312 = tpu.matmul %311, %249, %cst_58 {dimension_numbers = #tpu.dot_dimension_numbers<[1], [0], [0], [1], [0, 0, 1, 1], [], []>} : vector<8x128xbf16>, vector<128x512xbf16>, vector<8x512xf32> -> vector<8x512xf32>
    %313 = arith.addf %310, %312 : vector<8x512xf32>
    %314 = vector.extract_strided_slice %313 {offsets = [0, 0], sizes = [8, 128], strides = [1, 1]} : vector<8x512xf32> to vector<8x128xf32>
    %315 = arith.negf %314 : vector<8x128xf32>
    %316 = math.exp %315 : vector<8x128xf32>
    %cst_59 = arith.constant 1.000000e+00 : f32
    %317 = vector.broadcast %cst_59 : f32 to vector<8x128xf32>
    %318 = arith.addf %317, %316 : vector<8x128xf32>
    %319 = arith.divf %317, %318 : vector<8x128xf32>
    %320 = vector.extract_strided_slice %313 {offsets = [0, 128], sizes = [8, 128], strides = [1, 1]} : vector<8x512xf32> to vector<8x128xf32>
    %321 = arith.negf %320 : vector<8x128xf32>
    %322 = math.exp %321 : vector<8x128xf32>
    %cst_60 = arith.constant 1.000000e+00 : f32
    %323 = vector.broadcast %cst_60 : f32 to vector<8x128xf32>
    %324 = arith.addf %323, %322 : vector<8x128xf32>
    %325 = arith.divf %323, %324 : vector<8x128xf32>
    %326 = vector.extract_strided_slice %313 {offsets = [0, 256], sizes = [8, 128], strides = [1, 1]} : vector<8x512xf32> to vector<8x128xf32>
    %327 = math.tanh %326 : vector<8x128xf32>
    %328 = vector.extract_strided_slice %313 {offsets = [0, 384], sizes = [8, 128], strides = [1, 1]} : vector<8x512xf32> to vector<8x128xf32>
    %329 = arith.negf %328 : vector<8x128xf32>
    %330 = math.exp %329 : vector<8x128xf32>
    %cst_61 = arith.constant 1.000000e+00 : f32
    %331 = vector.broadcast %cst_61 : f32 to vector<8x128xf32>
    %332 = arith.addf %331, %330 : vector<8x128xf32>
    %333 = arith.divf %331, %332 : vector<8x128xf32>
    %334 = arith.mulf %325, %307 : vector<8x128xf32>
    %335 = arith.mulf %319, %327 : vector<8x128xf32>
    %336 = arith.addf %334, %335 : vector<8x128xf32>
    %337 = math.tanh %336 : vector<8x128xf32>
    %338 = arith.mulf %333, %337 : vector<8x128xf32>
    %339 = vector.extract_strided_slice %248 {offsets = [24, 0], sizes = [8, 512], strides = [1, 1]} : vector<64x512xf32> to vector<8x512xf32>
    %340 = arith.truncf %338 : vector<8x128xf32> to vector<8x128xbf16>
    %cst_62 = arith.constant dense<0.000000e+00> : vector<8x512xf32>
    %341 = tpu.matmul %340, %249, %cst_62 {dimension_numbers = #tpu.dot_dimension_numbers<[1], [0], [0], [1], [0, 0, 1, 1], [], []>} : vector<8x128xbf16>, vector<128x512xbf16>, vector<8x512xf32> -> vector<8x512xf32>
    %342 = arith.addf %339, %341 : vector<8x512xf32>
    %343 = vector.extract_strided_slice %342 {offsets = [0, 0], sizes = [8, 128], strides = [1, 1]} : vector<8x512xf32> to vector<8x128xf32>
    %344 = arith.negf %343 : vector<8x128xf32>
    %345 = math.exp %344 : vector<8x128xf32>
    %cst_63 = arith.constant 1.000000e+00 : f32
    %346 = vector.broadcast %cst_63 : f32 to vector<8x128xf32>
    %347 = arith.addf %346, %345 : vector<8x128xf32>
    %348 = arith.divf %346, %347 : vector<8x128xf32>
    %349 = vector.extract_strided_slice %342 {offsets = [0, 128], sizes = [8, 128], strides = [1, 1]} : vector<8x512xf32> to vector<8x128xf32>
    %350 = arith.negf %349 : vector<8x128xf32>
    %351 = math.exp %350 : vector<8x128xf32>
    %cst_64 = arith.constant 1.000000e+00 : f32
    %352 = vector.broadcast %cst_64 : f32 to vector<8x128xf32>
    %353 = arith.addf %352, %351 : vector<8x128xf32>
    %354 = arith.divf %352, %353 : vector<8x128xf32>
    %355 = vector.extract_strided_slice %342 {offsets = [0, 256], sizes = [8, 128], strides = [1, 1]} : vector<8x512xf32> to vector<8x128xf32>
    %356 = math.tanh %355 : vector<8x128xf32>
    %357 = vector.extract_strided_slice %342 {offsets = [0, 384], sizes = [8, 128], strides = [1, 1]} : vector<8x512xf32> to vector<8x128xf32>
    %358 = arith.negf %357 : vector<8x128xf32>
    %359 = math.exp %358 : vector<8x128xf32>
    %cst_65 = arith.constant 1.000000e+00 : f32
    %360 = vector.broadcast %cst_65 : f32 to vector<8x128xf32>
    %361 = arith.addf %360, %359 : vector<8x128xf32>
    %362 = arith.divf %360, %361 : vector<8x128xf32>
    %363 = arith.mulf %354, %336 : vector<8x128xf32>
    %364 = arith.mulf %348, %356 : vector<8x128xf32>
    %365 = arith.addf %363, %364 : vector<8x128xf32>
    %366 = math.tanh %365 : vector<8x128xf32>
    %367 = arith.mulf %362, %366 : vector<8x128xf32>
    %368 = vector.extract_strided_slice %248 {offsets = [32, 0], sizes = [8, 512], strides = [1, 1]} : vector<64x512xf32> to vector<8x512xf32>
    %369 = arith.truncf %367 : vector<8x128xf32> to vector<8x128xbf16>
    %cst_66 = arith.constant dense<0.000000e+00> : vector<8x512xf32>
    %370 = tpu.matmul %369, %249, %cst_66 {dimension_numbers = #tpu.dot_dimension_numbers<[1], [0], [0], [1], [0, 0, 1, 1], [], []>} : vector<8x128xbf16>, vector<128x512xbf16>, vector<8x512xf32> -> vector<8x512xf32>
    %371 = arith.addf %368, %370 : vector<8x512xf32>
    %372 = vector.extract_strided_slice %371 {offsets = [0, 0], sizes = [8, 128], strides = [1, 1]} : vector<8x512xf32> to vector<8x128xf32>
    %373 = arith.negf %372 : vector<8x128xf32>
    %374 = math.exp %373 : vector<8x128xf32>
    %cst_67 = arith.constant 1.000000e+00 : f32
    %375 = vector.broadcast %cst_67 : f32 to vector<8x128xf32>
    %376 = arith.addf %375, %374 : vector<8x128xf32>
    %377 = arith.divf %375, %376 : vector<8x128xf32>
    %378 = vector.extract_strided_slice %371 {offsets = [0, 128], sizes = [8, 128], strides = [1, 1]} : vector<8x512xf32> to vector<8x128xf32>
    %379 = arith.negf %378 : vector<8x128xf32>
    %380 = math.exp %379 : vector<8x128xf32>
    %cst_68 = arith.constant 1.000000e+00 : f32
    %381 = vector.broadcast %cst_68 : f32 to vector<8x128xf32>
    %382 = arith.addf %381, %380 : vector<8x128xf32>
    %383 = arith.divf %381, %382 : vector<8x128xf32>
    %384 = vector.extract_strided_slice %371 {offsets = [0, 256], sizes = [8, 128], strides = [1, 1]} : vector<8x512xf32> to vector<8x128xf32>
    %385 = math.tanh %384 : vector<8x128xf32>
    %386 = vector.extract_strided_slice %371 {offsets = [0, 384], sizes = [8, 128], strides = [1, 1]} : vector<8x512xf32> to vector<8x128xf32>
    %387 = arith.negf %386 : vector<8x128xf32>
    %388 = math.exp %387 : vector<8x128xf32>
    %cst_69 = arith.constant 1.000000e+00 : f32
    %389 = vector.broadcast %cst_69 : f32 to vector<8x128xf32>
    %390 = arith.addf %389, %388 : vector<8x128xf32>
    %391 = arith.divf %389, %390 : vector<8x128xf32>
    %392 = arith.mulf %383, %365 : vector<8x128xf32>
    %393 = arith.mulf %377, %385 : vector<8x128xf32>
    %394 = arith.addf %392, %393 : vector<8x128xf32>
    %395 = math.tanh %394 : vector<8x128xf32>
    %396 = arith.mulf %391, %395 : vector<8x128xf32>
    %397 = vector.extract_strided_slice %248 {offsets = [40, 0], sizes = [8, 512], strides = [1, 1]} : vector<64x512xf32> to vector<8x512xf32>
    %398 = arith.truncf %396 : vector<8x128xf32> to vector<8x128xbf16>
    %cst_70 = arith.constant dense<0.000000e+00> : vector<8x512xf32>
    %399 = tpu.matmul %398, %249, %cst_70 {dimension_numbers = #tpu.dot_dimension_numbers<[1], [0], [0], [1], [0, 0, 1, 1], [], []>} : vector<8x128xbf16>, vector<128x512xbf16>, vector<8x512xf32> -> vector<8x512xf32>
    %400 = arith.addf %397, %399 : vector<8x512xf32>
    %401 = vector.extract_strided_slice %400 {offsets = [0, 0], sizes = [8, 128], strides = [1, 1]} : vector<8x512xf32> to vector<8x128xf32>
    %402 = arith.negf %401 : vector<8x128xf32>
    %403 = math.exp %402 : vector<8x128xf32>
    %cst_71 = arith.constant 1.000000e+00 : f32
    %404 = vector.broadcast %cst_71 : f32 to vector<8x128xf32>
    %405 = arith.addf %404, %403 : vector<8x128xf32>
    %406 = arith.divf %404, %405 : vector<8x128xf32>
    %407 = vector.extract_strided_slice %400 {offsets = [0, 128], sizes = [8, 128], strides = [1, 1]} : vector<8x512xf32> to vector<8x128xf32>
    %408 = arith.negf %407 : vector<8x128xf32>
    %409 = math.exp %408 : vector<8x128xf32>
    %cst_72 = arith.constant 1.000000e+00 : f32
    %410 = vector.broadcast %cst_72 : f32 to vector<8x128xf32>
    %411 = arith.addf %410, %409 : vector<8x128xf32>
    %412 = arith.divf %410, %411 : vector<8x128xf32>
    %413 = vector.extract_strided_slice %400 {offsets = [0, 256], sizes = [8, 128], strides = [1, 1]} : vector<8x512xf32> to vector<8x128xf32>
    %414 = math.tanh %413 : vector<8x128xf32>
    %415 = vector.extract_strided_slice %400 {offsets = [0, 384], sizes = [8, 128], strides = [1, 1]} : vector<8x512xf32> to vector<8x128xf32>
    %416 = arith.negf %415 : vector<8x128xf32>
    %417 = math.exp %416 : vector<8x128xf32>
    %cst_73 = arith.constant 1.000000e+00 : f32
    %418 = vector.broadcast %cst_73 : f32 to vector<8x128xf32>
    %419 = arith.addf %418, %417 : vector<8x128xf32>
    %420 = arith.divf %418, %419 : vector<8x128xf32>
    %421 = arith.mulf %412, %394 : vector<8x128xf32>
    %422 = arith.mulf %406, %414 : vector<8x128xf32>
    %423 = arith.addf %421, %422 : vector<8x128xf32>
    %424 = math.tanh %423 : vector<8x128xf32>
    %425 = arith.mulf %420, %424 : vector<8x128xf32>
    %426 = vector.extract_strided_slice %248 {offsets = [48, 0], sizes = [8, 512], strides = [1, 1]} : vector<64x512xf32> to vector<8x512xf32>
    %427 = arith.truncf %425 : vector<8x128xf32> to vector<8x128xbf16>
    %cst_74 = arith.constant dense<0.000000e+00> : vector<8x512xf32>
    %428 = tpu.matmul %427, %249, %cst_74 {dimension_numbers = #tpu.dot_dimension_numbers<[1], [0], [0], [1], [0, 0, 1, 1], [], []>} : vector<8x128xbf16>, vector<128x512xbf16>, vector<8x512xf32> -> vector<8x512xf32>
    %429 = arith.addf %426, %428 : vector<8x512xf32>
    %430 = vector.extract_strided_slice %429 {offsets = [0, 0], sizes = [8, 128], strides = [1, 1]} : vector<8x512xf32> to vector<8x128xf32>
    %431 = arith.negf %430 : vector<8x128xf32>
    %432 = math.exp %431 : vector<8x128xf32>
    %cst_75 = arith.constant 1.000000e+00 : f32
    %433 = vector.broadcast %cst_75 : f32 to vector<8x128xf32>
    %434 = arith.addf %433, %432 : vector<8x128xf32>
    %435 = arith.divf %433, %434 : vector<8x128xf32>
    %436 = vector.extract_strided_slice %429 {offsets = [0, 128], sizes = [8, 128], strides = [1, 1]} : vector<8x512xf32> to vector<8x128xf32>
    %437 = arith.negf %436 : vector<8x128xf32>
    %438 = math.exp %437 : vector<8x128xf32>
    %cst_76 = arith.constant 1.000000e+00 : f32
    %439 = vector.broadcast %cst_76 : f32 to vector<8x128xf32>
    %440 = arith.addf %439, %438 : vector<8x128xf32>
    %441 = arith.divf %439, %440 : vector<8x128xf32>
    %442 = vector.extract_strided_slice %429 {offsets = [0, 256], sizes = [8, 128], strides = [1, 1]} : vector<8x512xf32> to vector<8x128xf32>
    %443 = math.tanh %442 : vector<8x128xf32>
    %444 = vector.extract_strided_slice %429 {offsets = [0, 384], sizes = [8, 128], strides = [1, 1]} : vector<8x512xf32> to vector<8x128xf32>
    %445 = arith.negf %444 : vector<8x128xf32>
    %446 = math.exp %445 : vector<8x128xf32>
    %cst_77 = arith.constant 1.000000e+00 : f32
    %447 = vector.broadcast %cst_77 : f32 to vector<8x128xf32>
    %448 = arith.addf %447, %446 : vector<8x128xf32>
    %449 = arith.divf %447, %448 : vector<8x128xf32>
    %450 = arith.mulf %441, %423 : vector<8x128xf32>
    %451 = arith.mulf %435, %443 : vector<8x128xf32>
    %452 = arith.addf %450, %451 : vector<8x128xf32>
    %453 = math.tanh %452 : vector<8x128xf32>
    %454 = arith.mulf %449, %453 : vector<8x128xf32>
    %455 = vector.extract_strided_slice %248 {offsets = [56, 0], sizes = [8, 512], strides = [1, 1]} : vector<64x512xf32> to vector<8x512xf32>
    %456 = arith.truncf %454 : vector<8x128xf32> to vector<8x128xbf16>
    %cst_78 = arith.constant dense<0.000000e+00> : vector<8x512xf32>
    %457 = tpu.matmul %456, %249, %cst_78 {dimension_numbers = #tpu.dot_dimension_numbers<[1], [0], [0], [1], [0, 0, 1, 1], [], []>} : vector<8x128xbf16>, vector<128x512xbf16>, vector<8x512xf32> -> vector<8x512xf32>
    %458 = arith.addf %455, %457 : vector<8x512xf32>
    %459 = vector.extract_strided_slice %458 {offsets = [0, 0], sizes = [8, 128], strides = [1, 1]} : vector<8x512xf32> to vector<8x128xf32>
    %460 = arith.negf %459 : vector<8x128xf32>
    %461 = math.exp %460 : vector<8x128xf32>
    %cst_79 = arith.constant 1.000000e+00 : f32
    %462 = vector.broadcast %cst_79 : f32 to vector<8x128xf32>
    %463 = arith.addf %462, %461 : vector<8x128xf32>
    %464 = arith.divf %462, %463 : vector<8x128xf32>
    %465 = vector.extract_strided_slice %458 {offsets = [0, 128], sizes = [8, 128], strides = [1, 1]} : vector<8x512xf32> to vector<8x128xf32>
    %466 = arith.negf %465 : vector<8x128xf32>
    %467 = math.exp %466 : vector<8x128xf32>
    %cst_80 = arith.constant 1.000000e+00 : f32
    %468 = vector.broadcast %cst_80 : f32 to vector<8x128xf32>
    %469 = arith.addf %468, %467 : vector<8x128xf32>
    %470 = arith.divf %468, %469 : vector<8x128xf32>
    %471 = vector.extract_strided_slice %458 {offsets = [0, 256], sizes = [8, 128], strides = [1, 1]} : vector<8x512xf32> to vector<8x128xf32>
    %472 = math.tanh %471 : vector<8x128xf32>
    %473 = vector.extract_strided_slice %458 {offsets = [0, 384], sizes = [8, 128], strides = [1, 1]} : vector<8x512xf32> to vector<8x128xf32>
    %474 = arith.negf %473 : vector<8x128xf32>
    %475 = math.exp %474 : vector<8x128xf32>
    %cst_81 = arith.constant 1.000000e+00 : f32
    %476 = vector.broadcast %cst_81 : f32 to vector<8x128xf32>
    %477 = arith.addf %476, %475 : vector<8x128xf32>
    %478 = arith.divf %476, %477 : vector<8x128xf32>
    %479 = arith.mulf %470, %452 : vector<8x128xf32>
    %480 = arith.mulf %464, %472 : vector<8x128xf32>
    %481 = arith.addf %479, %480 : vector<8x128xf32>
    %482 = math.tanh %481 : vector<8x128xf32>
    %483 = arith.mulf %478, %482 : vector<8x128xf32>
    %484 = tpu.concatenate %280, %309, %338, %367, %396, %425, %454, %483 in 0 : vector<8x128xf32>, vector<8x128xf32>, vector<8x128xf32>, vector<8x128xf32>, vector<8x128xf32>, vector<8x128xf32>, vector<8x128xf32>, vector<8x128xf32> -> vector<64x128xf32>
    %c0_82 = arith.constant 0 : index
    %c0_83 = arith.constant 0 : index
    %485 = vector.load %arg18[%c0_82, %c0_83] : memref<64x128xf32, #tpu.memory_space<vmem>>, vector<64x128xf32>
    tpu.vector_store %arg18[%c0_82, %c0_83], %484 {strides = array<i32>} : memref<64x128xf32, #tpu.memory_space<vmem>>, vector<64x128xf32>,
    %486 = arith.truncf %484 : vector<64x128xf32> to vector<64x128xbf16>
    %c0_84 = arith.constant 0 : index
    %c0_85 = arith.constant 0 : index
    %487 = vector.load %arg7[%c0_84, %c0_85] : memref<128x512xbf16, #tpu.memory_space<vmem>>, vector<128x512xbf16>
    %cst_86 = arith.constant dense<0.000000e+00> : vector<64x512xf32>
    %488 = tpu.matmul %486, %487, %cst_86 {dimension_numbers = #tpu.dot_dimension_numbers<[1], [0], [0], [1], [0, 0, 1, 1], [], []>} : vector<64x128xbf16>, vector<128x512xbf16>, vector<64x512xf32> -> vector<64x512xf32>
    %c0_87 = arith.constant 0 : index
    %c0_88 = arith.constant 0 : index
    %489 = vector.load %arg9[%c0_87, %c0_88] : memref<1x512xf32, #tpu.memory_space<vmem>>, vector<1x512xf32>
    %490 = vector.broadcast %489 : vector<1x512xf32> to vector<64x512xf32>
    %491 = arith.addf %488, %490 : vector<64x512xf32>
    %c0_89 = arith.constant 0 : index
    %c0_90 = arith.constant 0 : index
    %492 = vector.load %arg8[%c0_89, %c0_90] : memref<128x512xbf16, #tpu.memory_space<vmem>>, vector<128x512xbf16>
    %cst_91 = arith.constant 0.000000e+00 : f32
    %493 = vector.broadcast %cst_91 : f32 to vector<8x128xf32>
    %cst_92 = arith.constant 0.000000e+00 : f32
    %494 = vector.broadcast %cst_92 : f32 to vector<8x128xf32>
    %495 = vector.extract_strided_slice %491 {offsets = [0, 0], sizes = [8, 512], strides = [1, 1]} : vector<64x512xf32> to vector<8x512xf32>
    %496 = arith.truncf %493 : vector<8x128xf32> to vector<8x128xbf16>
    %cst_93 = arith.constant dense<0.000000e+00> : vector<8x512xf32>
    %497 = tpu.matmul %496, %492, %cst_93 {dimension_numbers = #tpu.dot_dimension_numbers<[1], [0], [0], [1], [0, 0, 1, 1], [], []>} : vector<8x128xbf16>, vector<128x512xbf16>, vector<8x512xf32> -> vector<8x512xf32>
    %498 = arith.addf %495, %497 : vector<8x512xf32>
    %499 = vector.extract_strided_slice %498 {offsets = [0, 0], sizes = [8, 128], strides = [1, 1]} : vector<8x512xf32> to vector<8x128xf32>
    %500 = arith.negf %499 : vector<8x128xf32>
    %501 = math.exp %500 : vector<8x128xf32>
    %cst_94 = arith.constant 1.000000e+00 : f32
    %502 = vector.broadcast %cst_94 : f32 to vector<8x128xf32>
    %503 = arith.addf %502, %501 : vector<8x128xf32>
    %504 = arith.divf %502, %503 : vector<8x128xf32>
    %505 = vector.extract_strided_slice %498 {offsets = [0, 128], sizes = [8, 128], strides = [1, 1]} : vector<8x512xf32> to vector<8x128xf32>
    %506 = arith.negf %505 : vector<8x128xf32>
    %507 = math.exp %506 : vector<8x128xf32>
    %cst_95 = arith.constant 1.000000e+00 : f32
    %508 = vector.broadcast %cst_95 : f32 to vector<8x128xf32>
    %509 = arith.addf %508, %507 : vector<8x128xf32>
    %510 = arith.divf %508, %509 : vector<8x128xf32>
    %511 = vector.extract_strided_slice %498 {offsets = [0, 256], sizes = [8, 128], strides = [1, 1]} : vector<8x512xf32> to vector<8x128xf32>
    %512 = math.tanh %511 : vector<8x128xf32>
    %513 = vector.extract_strided_slice %498 {offsets = [0, 384], sizes = [8, 128], strides = [1, 1]} : vector<8x512xf32> to vector<8x128xf32>
    %514 = arith.negf %513 : vector<8x128xf32>
    %515 = math.exp %514 : vector<8x128xf32>
    %cst_96 = arith.constant 1.000000e+00 : f32
    %516 = vector.broadcast %cst_96 : f32 to vector<8x128xf32>
    %517 = arith.addf %516, %515 : vector<8x128xf32>
    %518 = arith.divf %516, %517 : vector<8x128xf32>
    %519 = arith.mulf %510, %494 : vector<8x128xf32>
    %520 = arith.mulf %504, %512 : vector<8x128xf32>
    %521 = arith.addf %519, %520 : vector<8x128xf32>
    %522 = math.tanh %521 : vector<8x128xf32>
    %523 = arith.mulf %518, %522 : vector<8x128xf32>
    %524 = vector.extract_strided_slice %491 {offsets = [8, 0], sizes = [8, 512], strides = [1, 1]} : vector<64x512xf32> to vector<8x512xf32>
    %525 = arith.truncf %523 : vector<8x128xf32> to vector<8x128xbf16>
    %cst_97 = arith.constant dense<0.000000e+00> : vector<8x512xf32>
    %526 = tpu.matmul %525, %492, %cst_97 {dimension_numbers = #tpu.dot_dimension_numbers<[1], [0], [0], [1], [0, 0, 1, 1], [], []>} : vector<8x128xbf16>, vector<128x512xbf16>, vector<8x512xf32> -> vector<8x512xf32>
    %527 = arith.addf %524, %526 : vector<8x512xf32>
    %528 = vector.extract_strided_slice %527 {offsets = [0, 0], sizes = [8, 128], strides = [1, 1]} : vector<8x512xf32> to vector<8x128xf32>
    %529 = arith.negf %528 : vector<8x128xf32>
    %530 = math.exp %529 : vector<8x128xf32>
    %cst_98 = arith.constant 1.000000e+00 : f32
    %531 = vector.broadcast %cst_98 : f32 to vector<8x128xf32>
    %532 = arith.addf %531, %530 : vector<8x128xf32>
    %533 = arith.divf %531, %532 : vector<8x128xf32>
    %534 = vector.extract_strided_slice %527 {offsets = [0, 128], sizes = [8, 128], strides = [1, 1]} : vector<8x512xf32> to vector<8x128xf32>
    %535 = arith.negf %534 : vector<8x128xf32>
    %536 = math.exp %535 : vector<8x128xf32>
    %cst_99 = arith.constant 1.000000e+00 : f32
    %537 = vector.broadcast %cst_99 : f32 to vector<8x128xf32>
    %538 = arith.addf %537, %536 : vector<8x128xf32>
    %539 = arith.divf %537, %538 : vector<8x128xf32>
    %540 = vector.extract_strided_slice %527 {offsets = [0, 256], sizes = [8, 128], strides = [1, 1]} : vector<8x512xf32> to vector<8x128xf32>
    %541 = math.tanh %540 : vector<8x128xf32>
    %542 = vector.extract_strided_slice %527 {offsets = [0, 384], sizes = [8, 128], strides = [1, 1]} : vector<8x512xf32> to vector<8x128xf32>
    %543 = arith.negf %542 : vector<8x128xf32>
    %544 = math.exp %543 : vector<8x128xf32>
    %cst_100 = arith.constant 1.000000e+00 : f32
    %545 = vector.broadcast %cst_100 : f32 to vector<8x128xf32>
    %546 = arith.addf %545, %544 : vector<8x128xf32>
    %547 = arith.divf %545, %546 : vector<8x128xf32>
    %548 = arith.mulf %539, %521 : vector<8x128xf32>
    %549 = arith.mulf %533, %541 : vector<8x128xf32>
    %550 = arith.addf %548, %549 : vector<8x128xf32>
    %551 = math.tanh %550 : vector<8x128xf32>
    %552 = arith.mulf %547, %551 : vector<8x128xf32>
    %553 = vector.extract_strided_slice %491 {offsets = [16, 0], sizes = [8, 512], strides = [1, 1]} : vector<64x512xf32> to vector<8x512xf32>
    %554 = arith.truncf %552 : vector<8x128xf32> to vector<8x128xbf16>
    %cst_101 = arith.constant dense<0.000000e+00> : vector<8x512xf32>
    %555 = tpu.matmul %554, %492, %cst_101 {dimension_numbers = #tpu.dot_dimension_numbers<[1], [0], [0], [1], [0, 0, 1, 1], [], []>} : vector<8x128xbf16>, vector<128x512xbf16>, vector<8x512xf32> -> vector<8x512xf32>
    %556 = arith.addf %553, %555 : vector<8x512xf32>
    %557 = vector.extract_strided_slice %556 {offsets = [0, 0], sizes = [8, 128], strides = [1, 1]} : vector<8x512xf32> to vector<8x128xf32>
    %558 = arith.negf %557 : vector<8x128xf32>
    %559 = math.exp %558 : vector<8x128xf32>
    %cst_102 = arith.constant 1.000000e+00 : f32
    %560 = vector.broadcast %cst_102 : f32 to vector<8x128xf32>
    %561 = arith.addf %560, %559 : vector<8x128xf32>
    %562 = arith.divf %560, %561 : vector<8x128xf32>
    %563 = vector.extract_strided_slice %556 {offsets = [0, 128], sizes = [8, 128], strides = [1, 1]} : vector<8x512xf32> to vector<8x128xf32>
    %564 = arith.negf %563 : vector<8x128xf32>
    %565 = math.exp %564 : vector<8x128xf32>
    %cst_103 = arith.constant 1.000000e+00 : f32
    %566 = vector.broadcast %cst_103 : f32 to vector<8x128xf32>
    %567 = arith.addf %566, %565 : vector<8x128xf32>
    %568 = arith.divf %566, %567 : vector<8x128xf32>
    %569 = vector.extract_strided_slice %556 {offsets = [0, 256], sizes = [8, 128], strides = [1, 1]} : vector<8x512xf32> to vector<8x128xf32>
    %570 = math.tanh %569 : vector<8x128xf32>
    %571 = vector.extract_strided_slice %556 {offsets = [0, 384], sizes = [8, 128], strides = [1, 1]} : vector<8x512xf32> to vector<8x128xf32>
    %572 = arith.negf %571 : vector<8x128xf32>
    %573 = math.exp %572 : vector<8x128xf32>
    %cst_104 = arith.constant 1.000000e+00 : f32
    %574 = vector.broadcast %cst_104 : f32 to vector<8x128xf32>
    %575 = arith.addf %574, %573 : vector<8x128xf32>
    %576 = arith.divf %574, %575 : vector<8x128xf32>
    %577 = arith.mulf %568, %550 : vector<8x128xf32>
    %578 = arith.mulf %562, %570 : vector<8x128xf32>
    %579 = arith.addf %577, %578 : vector<8x128xf32>
    %580 = math.tanh %579 : vector<8x128xf32>
    %581 = arith.mulf %576, %580 : vector<8x128xf32>
    %582 = vector.extract_strided_slice %491 {offsets = [24, 0], sizes = [8, 512], strides = [1, 1]} : vector<64x512xf32> to vector<8x512xf32>
    %583 = arith.truncf %581 : vector<8x128xf32> to vector<8x128xbf16>
    %cst_105 = arith.constant dense<0.000000e+00> : vector<8x512xf32>
    %584 = tpu.matmul %583, %492, %cst_105 {dimension_numbers = #tpu.dot_dimension_numbers<[1], [0], [0], [1], [0, 0, 1, 1], [], []>} : vector<8x128xbf16>, vector<128x512xbf16>, vector<8x512xf32> -> vector<8x512xf32>
    %585 = arith.addf %582, %584 : vector<8x512xf32>
    %586 = vector.extract_strided_slice %585 {offsets = [0, 0], sizes = [8, 128], strides = [1, 1]} : vector<8x512xf32> to vector<8x128xf32>
    %587 = arith.negf %586 : vector<8x128xf32>
    %588 = math.exp %587 : vector<8x128xf32>
    %cst_106 = arith.constant 1.000000e+00 : f32
    %589 = vector.broadcast %cst_106 : f32 to vector<8x128xf32>
    %590 = arith.addf %589, %588 : vector<8x128xf32>
    %591 = arith.divf %589, %590 : vector<8x128xf32>
    %592 = vector.extract_strided_slice %585 {offsets = [0, 128], sizes = [8, 128], strides = [1, 1]} : vector<8x512xf32> to vector<8x128xf32>
    %593 = arith.negf %592 : vector<8x128xf32>
    %594 = math.exp %593 : vector<8x128xf32>
    %cst_107 = arith.constant 1.000000e+00 : f32
    %595 = vector.broadcast %cst_107 : f32 to vector<8x128xf32>
    %596 = arith.addf %595, %594 : vector<8x128xf32>
    %597 = arith.divf %595, %596 : vector<8x128xf32>
    %598 = vector.extract_strided_slice %585 {offsets = [0, 256], sizes = [8, 128], strides = [1, 1]} : vector<8x512xf32> to vector<8x128xf32>
    %599 = math.tanh %598 : vector<8x128xf32>
    %600 = vector.extract_strided_slice %585 {offsets = [0, 384], sizes = [8, 128], strides = [1, 1]} : vector<8x512xf32> to vector<8x128xf32>
    %601 = arith.negf %600 : vector<8x128xf32>
    %602 = math.exp %601 : vector<8x128xf32>
    %cst_108 = arith.constant 1.000000e+00 : f32
    %603 = vector.broadcast %cst_108 : f32 to vector<8x128xf32>
    %604 = arith.addf %603, %602 : vector<8x128xf32>
    %605 = arith.divf %603, %604 : vector<8x128xf32>
    %606 = arith.mulf %597, %579 : vector<8x128xf32>
    %607 = arith.mulf %591, %599 : vector<8x128xf32>
    %608 = arith.addf %606, %607 : vector<8x128xf32>
    %609 = math.tanh %608 : vector<8x128xf32>
    %610 = arith.mulf %605, %609 : vector<8x128xf32>
    %611 = vector.extract_strided_slice %491 {offsets = [32, 0], sizes = [8, 512], strides = [1, 1]} : vector<64x512xf32> to vector<8x512xf32>
    %612 = arith.truncf %610 : vector<8x128xf32> to vector<8x128xbf16>
    %cst_109 = arith.constant dense<0.000000e+00> : vector<8x512xf32>
    %613 = tpu.matmul %612, %492, %cst_109 {dimension_numbers = #tpu.dot_dimension_numbers<[1], [0], [0], [1], [0, 0, 1, 1], [], []>} : vector<8x128xbf16>, vector<128x512xbf16>, vector<8x512xf32> -> vector<8x512xf32>
    %614 = arith.addf %611, %613 : vector<8x512xf32>
    %615 = vector.extract_strided_slice %614 {offsets = [0, 0], sizes = [8, 128], strides = [1, 1]} : vector<8x512xf32> to vector<8x128xf32>
    %616 = arith.negf %615 : vector<8x128xf32>
    %617 = math.exp %616 : vector<8x128xf32>
    %cst_110 = arith.constant 1.000000e+00 : f32
    %618 = vector.broadcast %cst_110 : f32 to vector<8x128xf32>
    %619 = arith.addf %618, %617 : vector<8x128xf32>
    %620 = arith.divf %618, %619 : vector<8x128xf32>
    %621 = vector.extract_strided_slice %614 {offsets = [0, 128], sizes = [8, 128], strides = [1, 1]} : vector<8x512xf32> to vector<8x128xf32>
    %622 = arith.negf %621 : vector<8x128xf32>
    %623 = math.exp %622 : vector<8x128xf32>
    %cst_111 = arith.constant 1.000000e+00 : f32
    %624 = vector.broadcast %cst_111 : f32 to vector<8x128xf32>
    %625 = arith.addf %624, %623 : vector<8x128xf32>
    %626 = arith.divf %624, %625 : vector<8x128xf32>
    %627 = vector.extract_strided_slice %614 {offsets = [0, 256], sizes = [8, 128], strides = [1, 1]} : vector<8x512xf32> to vector<8x128xf32>
    %628 = math.tanh %627 : vector<8x128xf32>
    %629 = vector.extract_strided_slice %614 {offsets = [0, 384], sizes = [8, 128], strides = [1, 1]} : vector<8x512xf32> to vector<8x128xf32>
    %630 = arith.negf %629 : vector<8x128xf32>
    %631 = math.exp %630 : vector<8x128xf32>
    %cst_112 = arith.constant 1.000000e+00 : f32
    %632 = vector.broadcast %cst_112 : f32 to vector<8x128xf32>
    %633 = arith.addf %632, %631 : vector<8x128xf32>
    %634 = arith.divf %632, %633 : vector<8x128xf32>
    %635 = arith.mulf %626, %608 : vector<8x128xf32>
    %636 = arith.mulf %620, %628 : vector<8x128xf32>
    %637 = arith.addf %635, %636 : vector<8x128xf32>
    %638 = math.tanh %637 : vector<8x128xf32>
    %639 = arith.mulf %634, %638 : vector<8x128xf32>
    %640 = vector.extract_strided_slice %491 {offsets = [40, 0], sizes = [8, 512], strides = [1, 1]} : vector<64x512xf32> to vector<8x512xf32>
    %641 = arith.truncf %639 : vector<8x128xf32> to vector<8x128xbf16>
    %cst_113 = arith.constant dense<0.000000e+00> : vector<8x512xf32>
    %642 = tpu.matmul %641, %492, %cst_113 {dimension_numbers = #tpu.dot_dimension_numbers<[1], [0], [0], [1], [0, 0, 1, 1], [], []>} : vector<8x128xbf16>, vector<128x512xbf16>, vector<8x512xf32> -> vector<8x512xf32>
    %643 = arith.addf %640, %642 : vector<8x512xf32>
    %644 = vector.extract_strided_slice %643 {offsets = [0, 0], sizes = [8, 128], strides = [1, 1]} : vector<8x512xf32> to vector<8x128xf32>
    %645 = arith.negf %644 : vector<8x128xf32>
    %646 = math.exp %645 : vector<8x128xf32>
    %cst_114 = arith.constant 1.000000e+00 : f32
    %647 = vector.broadcast %cst_114 : f32 to vector<8x128xf32>
    %648 = arith.addf %647, %646 : vector<8x128xf32>
    %649 = arith.divf %647, %648 : vector<8x128xf32>
    %650 = vector.extract_strided_slice %643 {offsets = [0, 128], sizes = [8, 128], strides = [1, 1]} : vector<8x512xf32> to vector<8x128xf32>
    %651 = arith.negf %650 : vector<8x128xf32>
    %652 = math.exp %651 : vector<8x128xf32>
    %cst_115 = arith.constant 1.000000e+00 : f32
    %653 = vector.broadcast %cst_115 : f32 to vector<8x128xf32>
    %654 = arith.addf %653, %652 : vector<8x128xf32>
    %655 = arith.divf %653, %654 : vector<8x128xf32>
    %656 = vector.extract_strided_slice %643 {offsets = [0, 256], sizes = [8, 128], strides = [1, 1]} : vector<8x512xf32> to vector<8x128xf32>
    %657 = math.tanh %656 : vector<8x128xf32>
    %658 = vector.extract_strided_slice %643 {offsets = [0, 384], sizes = [8, 128], strides = [1, 1]} : vector<8x512xf32> to vector<8x128xf32>
    %659 = arith.negf %658 : vector<8x128xf32>
    %660 = math.exp %659 : vector<8x128xf32>
    %cst_116 = arith.constant 1.000000e+00 : f32
    %661 = vector.broadcast %cst_116 : f32 to vector<8x128xf32>
    %662 = arith.addf %661, %660 : vector<8x128xf32>
    %663 = arith.divf %661, %662 : vector<8x128xf32>
    %664 = arith.mulf %655, %637 : vector<8x128xf32>
    %665 = arith.mulf %649, %657 : vector<8x128xf32>
    %666 = arith.addf %664, %665 : vector<8x128xf32>
    %667 = math.tanh %666 : vector<8x128xf32>
    %668 = arith.mulf %663, %667 : vector<8x128xf32>
    %669 = vector.extract_strided_slice %491 {offsets = [48, 0], sizes = [8, 512], strides = [1, 1]} : vector<64x512xf32> to vector<8x512xf32>
    %670 = arith.truncf %668 : vector<8x128xf32> to vector<8x128xbf16>
    %cst_117 = arith.constant dense<0.000000e+00> : vector<8x512xf32>
    %671 = tpu.matmul %670, %492, %cst_117 {dimension_numbers = #tpu.dot_dimension_numbers<[1], [0], [0], [1], [0, 0, 1, 1], [], []>} : vector<8x128xbf16>, vector<128x512xbf16>, vector<8x512xf32> -> vector<8x512xf32>
    %672 = arith.addf %669, %671 : vector<8x512xf32>
    %673 = vector.extract_strided_slice %672 {offsets = [0, 0], sizes = [8, 128], strides = [1, 1]} : vector<8x512xf32> to vector<8x128xf32>
    %674 = arith.negf %673 : vector<8x128xf32>
    %675 = math.exp %674 : vector<8x128xf32>
    %cst_118 = arith.constant 1.000000e+00 : f32
    %676 = vector.broadcast %cst_118 : f32 to vector<8x128xf32>
    %677 = arith.addf %676, %675 : vector<8x128xf32>
    %678 = arith.divf %676, %677 : vector<8x128xf32>
    %679 = vector.extract_strided_slice %672 {offsets = [0, 128], sizes = [8, 128], strides = [1, 1]} : vector<8x512xf32> to vector<8x128xf32>
    %680 = arith.negf %679 : vector<8x128xf32>
    %681 = math.exp %680 : vector<8x128xf32>
    %cst_119 = arith.constant 1.000000e+00 : f32
    %682 = vector.broadcast %cst_119 : f32 to vector<8x128xf32>
    %683 = arith.addf %682, %681 : vector<8x128xf32>
    %684 = arith.divf %682, %683 : vector<8x128xf32>
    %685 = vector.extract_strided_slice %672 {offsets = [0, 256], sizes = [8, 128], strides = [1, 1]} : vector<8x512xf32> to vector<8x128xf32>
    %686 = math.tanh %685 : vector<8x128xf32>
    %687 = vector.extract_strided_slice %672 {offsets = [0, 384], sizes = [8, 128], strides = [1, 1]} : vector<8x512xf32> to vector<8x128xf32>
    %688 = arith.negf %687 : vector<8x128xf32>
    %689 = math.exp %688 : vector<8x128xf32>
    %cst_120 = arith.constant 1.000000e+00 : f32
    %690 = vector.broadcast %cst_120 : f32 to vector<8x128xf32>
    %691 = arith.addf %690, %689 : vector<8x128xf32>
    %692 = arith.divf %690, %691 : vector<8x128xf32>
    %693 = arith.mulf %684, %666 : vector<8x128xf32>
    %694 = arith.mulf %678, %686 : vector<8x128xf32>
    %695 = arith.addf %693, %694 : vector<8x128xf32>
    %696 = math.tanh %695 : vector<8x128xf32>
    %697 = arith.mulf %692, %696 : vector<8x128xf32>
    %698 = vector.extract_strided_slice %491 {offsets = [56, 0], sizes = [8, 512], strides = [1, 1]} : vector<64x512xf32> to vector<8x512xf32>
    %699 = arith.truncf %697 : vector<8x128xf32> to vector<8x128xbf16>
    %cst_121 = arith.constant dense<0.000000e+00> : vector<8x512xf32>
    %700 = tpu.matmul %699, %492, %cst_121 {dimension_numbers = #tpu.dot_dimension_numbers<[1], [0], [0], [1], [0, 0, 1, 1], [], []>} : vector<8x128xbf16>, vector<128x512xbf16>, vector<8x512xf32> -> vector<8x512xf32>
    %701 = arith.addf %698, %700 : vector<8x512xf32>
    %702 = vector.extract_strided_slice %701 {offsets = [0, 0], sizes = [8, 128], strides = [1, 1]} : vector<8x512xf32> to vector<8x128xf32>
    %703 = arith.negf %702 : vector<8x128xf32>
    %704 = math.exp %703 : vector<8x128xf32>
    %cst_122 = arith.constant 1.000000e+00 : f32
    %705 = vector.broadcast %cst_122 : f32 to vector<8x128xf32>
    %706 = arith.addf %705, %704 : vector<8x128xf32>
    %707 = arith.divf %705, %706 : vector<8x128xf32>
    %708 = vector.extract_strided_slice %701 {offsets = [0, 128], sizes = [8, 128], strides = [1, 1]} : vector<8x512xf32> to vector<8x128xf32>
    %709 = arith.negf %708 : vector<8x128xf32>
    %710 = math.exp %709 : vector<8x128xf32>
    %cst_123 = arith.constant 1.000000e+00 : f32
    %711 = vector.broadcast %cst_123 : f32 to vector<8x128xf32>
    %712 = arith.addf %711, %710 : vector<8x128xf32>
    %713 = arith.divf %711, %712 : vector<8x128xf32>
    %714 = vector.extract_strided_slice %701 {offsets = [0, 256], sizes = [8, 128], strides = [1, 1]} : vector<8x512xf32> to vector<8x128xf32>
    %715 = math.tanh %714 : vector<8x128xf32>
    %716 = vector.extract_strided_slice %701 {offsets = [0, 384], sizes = [8, 128], strides = [1, 1]} : vector<8x512xf32> to vector<8x128xf32>
    %717 = arith.negf %716 : vector<8x128xf32>
    %718 = math.exp %717 : vector<8x128xf32>
    %cst_124 = arith.constant 1.000000e+00 : f32
    %719 = vector.broadcast %cst_124 : f32 to vector<8x128xf32>
    %720 = arith.addf %719, %718 : vector<8x128xf32>
    %721 = arith.divf %719, %720 : vector<8x128xf32>
    %722 = arith.mulf %713, %695 : vector<8x128xf32>
    %723 = arith.mulf %707, %715 : vector<8x128xf32>
    %724 = arith.addf %722, %723 : vector<8x128xf32>
    %725 = math.tanh %724 : vector<8x128xf32>
    %726 = arith.mulf %721, %725 : vector<8x128xf32>
    %727 = tpu.concatenate %523, %552, %581, %610, %639, %668, %697, %726 in 0 : vector<8x128xf32>, vector<8x128xf32>, vector<8x128xf32>, vector<8x128xf32>, vector<8x128xf32>, vector<8x128xf32>, vector<8x128xf32>, vector<8x128xf32> -> vector<64x128xf32>
    %728 = arith.truncf %727 : vector<64x128xf32> to vector<64x128xbf16>
    %c0_125 = arith.constant 0 : index
    %c0_126 = arith.constant 0 : index
    %729 = vector.load %arg10[%c0_125, %c0_126] : memref<128x512xbf16, #tpu.memory_space<vmem>>, vector<128x512xbf16>
    %cst_127 = arith.constant dense<0.000000e+00> : vector<64x512xf32>
    %730 = tpu.matmul %728, %729, %cst_127 {dimension_numbers = #tpu.dot_dimension_numbers<[1], [0], [0], [1], [0, 0, 1, 1], [], []>} : vector<64x128xbf16>, vector<128x512xbf16>, vector<64x512xf32> -> vector<64x512xf32>
    %c0_128 = arith.constant 0 : index
    %c0_129 = arith.constant 0 : index
    %731 = vector.load %arg12[%c0_128, %c0_129] : memref<1x512xf32, #tpu.memory_space<vmem>>, vector<1x512xf32>
    %732 = vector.broadcast %731 : vector<1x512xf32> to vector<64x512xf32>
    %733 = arith.addf %730, %732 : vector<64x512xf32>
    %c0_130 = arith.constant 0 : index
    %c0_131 = arith.constant 0 : index
    %734 = vector.load %arg11[%c0_130, %c0_131] : memref<128x512xbf16, #tpu.memory_space<vmem>>, vector<128x512xbf16>
    %cst_132 = arith.constant 0.000000e+00 : f32
    %735 = vector.broadcast %cst_132 : f32 to vector<8x128xf32>
    %cst_133 = arith.constant 0.000000e+00 : f32
    %736 = vector.broadcast %cst_133 : f32 to vector<8x128xf32>
    %737 = vector.extract_strided_slice %733 {offsets = [0, 0], sizes = [8, 512], strides = [1, 1]} : vector<64x512xf32> to vector<8x512xf32>
    %738 = arith.truncf %735 : vector<8x128xf32> to vector<8x128xbf16>
    %cst_134 = arith.constant dense<0.000000e+00> : vector<8x512xf32>
    %739 = tpu.matmul %738, %734, %cst_134 {dimension_numbers = #tpu.dot_dimension_numbers<[1], [0], [0], [1], [0, 0, 1, 1], [], []>} : vector<8x128xbf16>, vector<128x512xbf16>, vector<8x512xf32> -> vector<8x512xf32>
    %740 = arith.addf %737, %739 : vector<8x512xf32>
    %741 = vector.extract_strided_slice %740 {offsets = [0, 0], sizes = [8, 128], strides = [1, 1]} : vector<8x512xf32> to vector<8x128xf32>
    %742 = arith.negf %741 : vector<8x128xf32>
    %743 = math.exp %742 : vector<8x128xf32>
    %cst_135 = arith.constant 1.000000e+00 : f32
    %744 = vector.broadcast %cst_135 : f32 to vector<8x128xf32>
    %745 = arith.addf %744, %743 : vector<8x128xf32>
    %746 = arith.divf %744, %745 : vector<8x128xf32>
    %747 = vector.extract_strided_slice %740 {offsets = [0, 128], sizes = [8, 128], strides = [1, 1]} : vector<8x512xf32> to vector<8x128xf32>
    %748 = arith.negf %747 : vector<8x128xf32>
    %749 = math.exp %748 : vector<8x128xf32>
    %cst_136 = arith.constant 1.000000e+00 : f32
    %750 = vector.broadcast %cst_136 : f32 to vector<8x128xf32>
    %751 = arith.addf %750, %749 : vector<8x128xf32>
    %752 = arith.divf %750, %751 : vector<8x128xf32>
    %753 = vector.extract_strided_slice %740 {offsets = [0, 256], sizes = [8, 128], strides = [1, 1]} : vector<8x512xf32> to vector<8x128xf32>
    %754 = math.tanh %753 : vector<8x128xf32>
    %755 = vector.extract_strided_slice %740 {offsets = [0, 384], sizes = [8, 128], strides = [1, 1]} : vector<8x512xf32> to vector<8x128xf32>
    %756 = arith.negf %755 : vector<8x128xf32>
    %757 = math.exp %756 : vector<8x128xf32>
    %cst_137 = arith.constant 1.000000e+00 : f32
    %758 = vector.broadcast %cst_137 : f32 to vector<8x128xf32>
    %759 = arith.addf %758, %757 : vector<8x128xf32>
    %760 = arith.divf %758, %759 : vector<8x128xf32>
    %761 = arith.mulf %752, %736 : vector<8x128xf32>
    %762 = arith.mulf %746, %754 : vector<8x128xf32>
    %763 = arith.addf %761, %762 : vector<8x128xf32>
    %764 = math.tanh %763 : vector<8x128xf32>
    %765 = arith.mulf %760, %764 : vector<8x128xf32>
    %766 = vector.extract_strided_slice %733 {offsets = [8, 0], sizes = [8, 512], strides = [1, 1]} : vector<64x512xf32> to vector<8x512xf32>
    %767 = arith.truncf %765 : vector<8x128xf32> to vector<8x128xbf16>
    %cst_138 = arith.constant dense<0.000000e+00> : vector<8x512xf32>
    %768 = tpu.matmul %767, %734, %cst_138 {dimension_numbers = #tpu.dot_dimension_numbers<[1], [0], [0], [1], [0, 0, 1, 1], [], []>} : vector<8x128xbf16>, vector<128x512xbf16>, vector<8x512xf32> -> vector<8x512xf32>
    %769 = arith.addf %766, %768 : vector<8x512xf32>
    %770 = vector.extract_strided_slice %769 {offsets = [0, 0], sizes = [8, 128], strides = [1, 1]} : vector<8x512xf32> to vector<8x128xf32>
    %771 = arith.negf %770 : vector<8x128xf32>
    %772 = math.exp %771 : vector<8x128xf32>
    %cst_139 = arith.constant 1.000000e+00 : f32
    %773 = vector.broadcast %cst_139 : f32 to vector<8x128xf32>
    %774 = arith.addf %773, %772 : vector<8x128xf32>
    %775 = arith.divf %773, %774 : vector<8x128xf32>
    %776 = vector.extract_strided_slice %769 {offsets = [0, 128], sizes = [8, 128], strides = [1, 1]} : vector<8x512xf32> to vector<8x128xf32>
    %777 = arith.negf %776 : vector<8x128xf32>
    %778 = math.exp %777 : vector<8x128xf32>
    %cst_140 = arith.constant 1.000000e+00 : f32
    %779 = vector.broadcast %cst_140 : f32 to vector<8x128xf32>
    %780 = arith.addf %779, %778 : vector<8x128xf32>
    %781 = arith.divf %779, %780 : vector<8x128xf32>
    %782 = vector.extract_strided_slice %769 {offsets = [0, 256], sizes = [8, 128], strides = [1, 1]} : vector<8x512xf32> to vector<8x128xf32>
    %783 = math.tanh %782 : vector<8x128xf32>
    %784 = vector.extract_strided_slice %769 {offsets = [0, 384], sizes = [8, 128], strides = [1, 1]} : vector<8x512xf32> to vector<8x128xf32>
    %785 = arith.negf %784 : vector<8x128xf32>
    %786 = math.exp %785 : vector<8x128xf32>
    %cst_141 = arith.constant 1.000000e+00 : f32
    %787 = vector.broadcast %cst_141 : f32 to vector<8x128xf32>
    %788 = arith.addf %787, %786 : vector<8x128xf32>
    %789 = arith.divf %787, %788 : vector<8x128xf32>
    %790 = arith.mulf %781, %763 : vector<8x128xf32>
    %791 = arith.mulf %775, %783 : vector<8x128xf32>
    %792 = arith.addf %790, %791 : vector<8x128xf32>
    %793 = math.tanh %792 : vector<8x128xf32>
    %794 = arith.mulf %789, %793 : vector<8x128xf32>
    %795 = vector.extract_strided_slice %733 {offsets = [16, 0], sizes = [8, 512], strides = [1, 1]} : vector<64x512xf32> to vector<8x512xf32>
    %796 = arith.truncf %794 : vector<8x128xf32> to vector<8x128xbf16>
    %cst_142 = arith.constant dense<0.000000e+00> : vector<8x512xf32>
    %797 = tpu.matmul %796, %734, %cst_142 {dimension_numbers = #tpu.dot_dimension_numbers<[1], [0], [0], [1], [0, 0, 1, 1], [], []>} : vector<8x128xbf16>, vector<128x512xbf16>, vector<8x512xf32> -> vector<8x512xf32>
    %798 = arith.addf %795, %797 : vector<8x512xf32>
    %799 = vector.extract_strided_slice %798 {offsets = [0, 0], sizes = [8, 128], strides = [1, 1]} : vector<8x512xf32> to vector<8x128xf32>
    %800 = arith.negf %799 : vector<8x128xf32>
    %801 = math.exp %800 : vector<8x128xf32>
    %cst_143 = arith.constant 1.000000e+00 : f32
    %802 = vector.broadcast %cst_143 : f32 to vector<8x128xf32>
    %803 = arith.addf %802, %801 : vector<8x128xf32>
    %804 = arith.divf %802, %803 : vector<8x128xf32>
    %805 = vector.extract_strided_slice %798 {offsets = [0, 128], sizes = [8, 128], strides = [1, 1]} : vector<8x512xf32> to vector<8x128xf32>
    %806 = arith.negf %805 : vector<8x128xf32>
    %807 = math.exp %806 : vector<8x128xf32>
    %cst_144 = arith.constant 1.000000e+00 : f32
    %808 = vector.broadcast %cst_144 : f32 to vector<8x128xf32>
    %809 = arith.addf %808, %807 : vector<8x128xf32>
    %810 = arith.divf %808, %809 : vector<8x128xf32>
    %811 = vector.extract_strided_slice %798 {offsets = [0, 256], sizes = [8, 128], strides = [1, 1]} : vector<8x512xf32> to vector<8x128xf32>
    %812 = math.tanh %811 : vector<8x128xf32>
    %813 = vector.extract_strided_slice %798 {offsets = [0, 384], sizes = [8, 128], strides = [1, 1]} : vector<8x512xf32> to vector<8x128xf32>
    %814 = arith.negf %813 : vector<8x128xf32>
    %815 = math.exp %814 : vector<8x128xf32>
    %cst_145 = arith.constant 1.000000e+00 : f32
    %816 = vector.broadcast %cst_145 : f32 to vector<8x128xf32>
    %817 = arith.addf %816, %815 : vector<8x128xf32>
    %818 = arith.divf %816, %817 : vector<8x128xf32>
    %819 = arith.mulf %810, %792 : vector<8x128xf32>
    %820 = arith.mulf %804, %812 : vector<8x128xf32>
    %821 = arith.addf %819, %820 : vector<8x128xf32>
    %822 = math.tanh %821 : vector<8x128xf32>
    %823 = arith.mulf %818, %822 : vector<8x128xf32>
    %824 = vector.extract_strided_slice %733 {offsets = [24, 0], sizes = [8, 512], strides = [1, 1]} : vector<64x512xf32> to vector<8x512xf32>
    %825 = arith.truncf %823 : vector<8x128xf32> to vector<8x128xbf16>
    %cst_146 = arith.constant dense<0.000000e+00> : vector<8x512xf32>
    %826 = tpu.matmul %825, %734, %cst_146 {dimension_numbers = #tpu.dot_dimension_numbers<[1], [0], [0], [1], [0, 0, 1, 1], [], []>} : vector<8x128xbf16>, vector<128x512xbf16>, vector<8x512xf32> -> vector<8x512xf32>
    %827 = arith.addf %824, %826 : vector<8x512xf32>
    %828 = vector.extract_strided_slice %827 {offsets = [0, 0], sizes = [8, 128], strides = [1, 1]} : vector<8x512xf32> to vector<8x128xf32>
    %829 = arith.negf %828 : vector<8x128xf32>
    %830 = math.exp %829 : vector<8x128xf32>
    %cst_147 = arith.constant 1.000000e+00 : f32
    %831 = vector.broadcast %cst_147 : f32 to vector<8x128xf32>
    %832 = arith.addf %831, %830 : vector<8x128xf32>
    %833 = arith.divf %831, %832 : vector<8x128xf32>
    %834 = vector.extract_strided_slice %827 {offsets = [0, 128], sizes = [8, 128], strides = [1, 1]} : vector<8x512xf32> to vector<8x128xf32>
    %835 = arith.negf %834 : vector<8x128xf32>
    %836 = math.exp %835 : vector<8x128xf32>
    %cst_148 = arith.constant 1.000000e+00 : f32
    %837 = vector.broadcast %cst_148 : f32 to vector<8x128xf32>
    %838 = arith.addf %837, %836 : vector<8x128xf32>
    %839 = arith.divf %837, %838 : vector<8x128xf32>
    %840 = vector.extract_strided_slice %827 {offsets = [0, 256], sizes = [8, 128], strides = [1, 1]} : vector<8x512xf32> to vector<8x128xf32>
    %841 = math.tanh %840 : vector<8x128xf32>
    %842 = vector.extract_strided_slice %827 {offsets = [0, 384], sizes = [8, 128], strides = [1, 1]} : vector<8x512xf32> to vector<8x128xf32>
    %843 = arith.negf %842 : vector<8x128xf32>
    %844 = math.exp %843 : vector<8x128xf32>
    %cst_149 = arith.constant 1.000000e+00 : f32
    %845 = vector.broadcast %cst_149 : f32 to vector<8x128xf32>
    %846 = arith.addf %845, %844 : vector<8x128xf32>
    %847 = arith.divf %845, %846 : vector<8x128xf32>
    %848 = arith.mulf %839, %821 : vector<8x128xf32>
    %849 = arith.mulf %833, %841 : vector<8x128xf32>
    %850 = arith.addf %848, %849 : vector<8x128xf32>
    %851 = math.tanh %850 : vector<8x128xf32>
    %852 = arith.mulf %847, %851 : vector<8x128xf32>
    %853 = vector.extract_strided_slice %733 {offsets = [32, 0], sizes = [8, 512], strides = [1, 1]} : vector<64x512xf32> to vector<8x512xf32>
    %854 = arith.truncf %852 : vector<8x128xf32> to vector<8x128xbf16>
    %cst_150 = arith.constant dense<0.000000e+00> : vector<8x512xf32>
    %855 = tpu.matmul %854, %734, %cst_150 {dimension_numbers = #tpu.dot_dimension_numbers<[1], [0], [0], [1], [0, 0, 1, 1], [], []>} : vector<8x128xbf16>, vector<128x512xbf16>, vector<8x512xf32> -> vector<8x512xf32>
    %856 = arith.addf %853, %855 : vector<8x512xf32>
    %857 = vector.extract_strided_slice %856 {offsets = [0, 0], sizes = [8, 128], strides = [1, 1]} : vector<8x512xf32> to vector<8x128xf32>
    %858 = arith.negf %857 : vector<8x128xf32>
    %859 = math.exp %858 : vector<8x128xf32>
    %cst_151 = arith.constant 1.000000e+00 : f32
    %860 = vector.broadcast %cst_151 : f32 to vector<8x128xf32>
    %861 = arith.addf %860, %859 : vector<8x128xf32>
    %862 = arith.divf %860, %861 : vector<8x128xf32>
    %863 = vector.extract_strided_slice %856 {offsets = [0, 128], sizes = [8, 128], strides = [1, 1]} : vector<8x512xf32> to vector<8x128xf32>
    %864 = arith.negf %863 : vector<8x128xf32>
    %865 = math.exp %864 : vector<8x128xf32>
    %cst_152 = arith.constant 1.000000e+00 : f32
    %866 = vector.broadcast %cst_152 : f32 to vector<8x128xf32>
    %867 = arith.addf %866, %865 : vector<8x128xf32>
    %868 = arith.divf %866, %867 : vector<8x128xf32>
    %869 = vector.extract_strided_slice %856 {offsets = [0, 256], sizes = [8, 128], strides = [1, 1]} : vector<8x512xf32> to vector<8x128xf32>
    %870 = math.tanh %869 : vector<8x128xf32>
    %871 = vector.extract_strided_slice %856 {offsets = [0, 384], sizes = [8, 128], strides = [1, 1]} : vector<8x512xf32> to vector<8x128xf32>
    %872 = arith.negf %871 : vector<8x128xf32>
    %873 = math.exp %872 : vector<8x128xf32>
    %cst_153 = arith.constant 1.000000e+00 : f32
    %874 = vector.broadcast %cst_153 : f32 to vector<8x128xf32>
    %875 = arith.addf %874, %873 : vector<8x128xf32>
    %876 = arith.divf %874, %875 : vector<8x128xf32>
    %877 = arith.mulf %868, %850 : vector<8x128xf32>
    %878 = arith.mulf %862, %870 : vector<8x128xf32>
    %879 = arith.addf %877, %878 : vector<8x128xf32>
    %880 = math.tanh %879 : vector<8x128xf32>
    %881 = arith.mulf %876, %880 : vector<8x128xf32>
    %882 = vector.extract_strided_slice %733 {offsets = [40, 0], sizes = [8, 512], strides = [1, 1]} : vector<64x512xf32> to vector<8x512xf32>
    %883 = arith.truncf %881 : vector<8x128xf32> to vector<8x128xbf16>
    %cst_154 = arith.constant dense<0.000000e+00> : vector<8x512xf32>
    %884 = tpu.matmul %883, %734, %cst_154 {dimension_numbers = #tpu.dot_dimension_numbers<[1], [0], [0], [1], [0, 0, 1, 1], [], []>} : vector<8x128xbf16>, vector<128x512xbf16>, vector<8x512xf32> -> vector<8x512xf32>
    %885 = arith.addf %882, %884 : vector<8x512xf32>
    %886 = vector.extract_strided_slice %885 {offsets = [0, 0], sizes = [8, 128], strides = [1, 1]} : vector<8x512xf32> to vector<8x128xf32>
    %887 = arith.negf %886 : vector<8x128xf32>
    %888 = math.exp %887 : vector<8x128xf32>
    %cst_155 = arith.constant 1.000000e+00 : f32
    %889 = vector.broadcast %cst_155 : f32 to vector<8x128xf32>
    %890 = arith.addf %889, %888 : vector<8x128xf32>
    %891 = arith.divf %889, %890 : vector<8x128xf32>
    %892 = vector.extract_strided_slice %885 {offsets = [0, 128], sizes = [8, 128], strides = [1, 1]} : vector<8x512xf32> to vector<8x128xf32>
    %893 = arith.negf %892 : vector<8x128xf32>
    %894 = math.exp %893 : vector<8x128xf32>
    %cst_156 = arith.constant 1.000000e+00 : f32
    %895 = vector.broadcast %cst_156 : f32 to vector<8x128xf32>
    %896 = arith.addf %895, %894 : vector<8x128xf32>
    %897 = arith.divf %895, %896 : vector<8x128xf32>
    %898 = vector.extract_strided_slice %885 {offsets = [0, 256], sizes = [8, 128], strides = [1, 1]} : vector<8x512xf32> to vector<8x128xf32>
    %899 = math.tanh %898 : vector<8x128xf32>
    %900 = vector.extract_strided_slice %885 {offsets = [0, 384], sizes = [8, 128], strides = [1, 1]} : vector<8x512xf32> to vector<8x128xf32>
    %901 = arith.negf %900 : vector<8x128xf32>
    %902 = math.exp %901 : vector<8x128xf32>
    %cst_157 = arith.constant 1.000000e+00 : f32
    %903 = vector.broadcast %cst_157 : f32 to vector<8x128xf32>
    %904 = arith.addf %903, %902 : vector<8x128xf32>
    %905 = arith.divf %903, %904 : vector<8x128xf32>
    %906 = arith.mulf %897, %879 : vector<8x128xf32>
    %907 = arith.mulf %891, %899 : vector<8x128xf32>
    %908 = arith.addf %906, %907 : vector<8x128xf32>
    %909 = math.tanh %908 : vector<8x128xf32>
    %910 = arith.mulf %905, %909 : vector<8x128xf32>
    %911 = vector.extract_strided_slice %733 {offsets = [48, 0], sizes = [8, 512], strides = [1, 1]} : vector<64x512xf32> to vector<8x512xf32>
    %912 = arith.truncf %910 : vector<8x128xf32> to vector<8x128xbf16>
    %cst_158 = arith.constant dense<0.000000e+00> : vector<8x512xf32>
    %913 = tpu.matmul %912, %734, %cst_158 {dimension_numbers = #tpu.dot_dimension_numbers<[1], [0], [0], [1], [0, 0, 1, 1], [], []>} : vector<8x128xbf16>, vector<128x512xbf16>, vector<8x512xf32> -> vector<8x512xf32>
    %914 = arith.addf %911, %913 : vector<8x512xf32>
    %915 = vector.extract_strided_slice %914 {offsets = [0, 0], sizes = [8, 128], strides = [1, 1]} : vector<8x512xf32> to vector<8x128xf32>
    %916 = arith.negf %915 : vector<8x128xf32>
    %917 = math.exp %916 : vector<8x128xf32>
    %cst_159 = arith.constant 1.000000e+00 : f32
    %918 = vector.broadcast %cst_159 : f32 to vector<8x128xf32>
    %919 = arith.addf %918, %917 : vector<8x128xf32>
    %920 = arith.divf %918, %919 : vector<8x128xf32>
    %921 = vector.extract_strided_slice %914 {offsets = [0, 128], sizes = [8, 128], strides = [1, 1]} : vector<8x512xf32> to vector<8x128xf32>
    %922 = arith.negf %921 : vector<8x128xf32>
    %923 = math.exp %922 : vector<8x128xf32>
    %cst_160 = arith.constant 1.000000e+00 : f32
    %924 = vector.broadcast %cst_160 : f32 to vector<8x128xf32>
    %925 = arith.addf %924, %923 : vector<8x128xf32>
    %926 = arith.divf %924, %925 : vector<8x128xf32>
    %927 = vector.extract_strided_slice %914 {offsets = [0, 256], sizes = [8, 128], strides = [1, 1]} : vector<8x512xf32> to vector<8x128xf32>
    %928 = math.tanh %927 : vector<8x128xf32>
    %929 = vector.extract_strided_slice %914 {offsets = [0, 384], sizes = [8, 128], strides = [1, 1]} : vector<8x512xf32> to vector<8x128xf32>
    %930 = arith.negf %929 : vector<8x128xf32>
    %931 = math.exp %930 : vector<8x128xf32>
    %cst_161 = arith.constant 1.000000e+00 : f32
    %932 = vector.broadcast %cst_161 : f32 to vector<8x128xf32>
    %933 = arith.addf %932, %931 : vector<8x128xf32>
    %934 = arith.divf %932, %933 : vector<8x128xf32>
    %935 = arith.mulf %926, %908 : vector<8x128xf32>
    %936 = arith.mulf %920, %928 : vector<8x128xf32>
    %937 = arith.addf %935, %936 : vector<8x128xf32>
    %938 = math.tanh %937 : vector<8x128xf32>
    %939 = arith.mulf %934, %938 : vector<8x128xf32>
    %940 = vector.extract_strided_slice %733 {offsets = [56, 0], sizes = [8, 512], strides = [1, 1]} : vector<64x512xf32> to vector<8x512xf32>
    %941 = arith.truncf %939 : vector<8x128xf32> to vector<8x128xbf16>
    %cst_162 = arith.constant dense<0.000000e+00> : vector<8x512xf32>
    %942 = tpu.matmul %941, %734, %cst_162 {dimension_numbers = #tpu.dot_dimension_numbers<[1], [0], [0], [1], [0, 0, 1, 1], [], []>} : vector<8x128xbf16>, vector<128x512xbf16>, vector<8x512xf32> -> vector<8x512xf32>
    %943 = arith.addf %940, %942 : vector<8x512xf32>
    %944 = vector.extract_strided_slice %943 {offsets = [0, 0], sizes = [8, 128], strides = [1, 1]} : vector<8x512xf32> to vector<8x128xf32>
    %945 = arith.negf %944 : vector<8x128xf32>
    %946 = math.exp %945 : vector<8x128xf32>
    %cst_163 = arith.constant 1.000000e+00 : f32
    %947 = vector.broadcast %cst_163 : f32 to vector<8x128xf32>
    %948 = arith.addf %947, %946 : vector<8x128xf32>
    %949 = arith.divf %947, %948 : vector<8x128xf32>
    %950 = vector.extract_strided_slice %943 {offsets = [0, 128], sizes = [8, 128], strides = [1, 1]} : vector<8x512xf32> to vector<8x128xf32>
    %951 = arith.negf %950 : vector<8x128xf32>
    %952 = math.exp %951 : vector<8x128xf32>
    %cst_164 = arith.constant 1.000000e+00 : f32
    %953 = vector.broadcast %cst_164 : f32 to vector<8x128xf32>
    %954 = arith.addf %953, %952 : vector<8x128xf32>
    %955 = arith.divf %953, %954 : vector<8x128xf32>
    %956 = vector.extract_strided_slice %943 {offsets = [0, 256], sizes = [8, 128], strides = [1, 1]} : vector<8x512xf32> to vector<8x128xf32>
    %957 = math.tanh %956 : vector<8x128xf32>
    %958 = vector.extract_strided_slice %943 {offsets = [0, 384], sizes = [8, 128], strides = [1, 1]} : vector<8x512xf32> to vector<8x128xf32>
    %959 = arith.negf %958 : vector<8x128xf32>
    %960 = math.exp %959 : vector<8x128xf32>
    %cst_165 = arith.constant 1.000000e+00 : f32
    %961 = vector.broadcast %cst_165 : f32 to vector<8x128xf32>
    %962 = arith.addf %961, %960 : vector<8x128xf32>
    %963 = arith.divf %961, %962 : vector<8x128xf32>
    %964 = arith.mulf %955, %937 : vector<8x128xf32>
    %965 = arith.mulf %949, %957 : vector<8x128xf32>
    %966 = arith.addf %964, %965 : vector<8x128xf32>
    %967 = math.tanh %966 : vector<8x128xf32>
    %968 = arith.mulf %963, %967 : vector<8x128xf32>
    %969 = tpu.concatenate %765, %794, %823, %852, %881, %910, %939, %968 in 0 : vector<8x128xf32>, vector<8x128xf32>, vector<8x128xf32>, vector<8x128xf32>, vector<8x128xf32>, vector<8x128xf32>, vector<8x128xf32>, vector<8x128xf32> -> vector<64x128xf32>
    %c0_166 = arith.constant 0 : index
    %c0_167 = arith.constant 0 : index
    %970 = vector.load %arg19[%c0_166, %c0_167] : memref<64x128xf32, #tpu.memory_space<vmem>>, vector<64x128xf32>
    tpu.vector_store %arg19[%c0_166, %c0_167], %969 {strides = array<i32>} : memref<64x128xf32, #tpu.memory_space<vmem>>, vector<64x128xf32>,
    %971 = arith.addf %484, %969 : vector<64x128xf32>
    %972 = arith.truncf %971 : vector<64x128xf32> to vector<64x128xbf16>
    %c0_168 = arith.constant 0 : index
    %c0_169 = arith.constant 0 : index
    %973 = vector.load %arg13[%c0_168, %c0_169] : memref<128x128xbf16, #tpu.memory_space<vmem>>, vector<128x128xbf16>
    %cst_170 = arith.constant dense<0.000000e+00> : vector<64x128xf32>
    %974 = tpu.matmul %972, %973, %cst_170 {dimension_numbers = #tpu.dot_dimension_numbers<[1], [0], [0], [1], [0, 0, 1, 1], [], []>} : vector<64x128xbf16>, vector<128x128xbf16>, vector<64x128xf32> -> vector<64x128xf32>
    %c0_171 = arith.constant 0 : index
    %c0_172 = arith.constant 0 : index
    %975 = vector.load %arg14[%c0_171, %c0_172] : memref<128x128xbf16, #tpu.memory_space<vmem>>, vector<128x128xbf16>
    %cst_173 = arith.constant dense<0.000000e+00> : vector<64x128xf32>
    %976 = tpu.matmul %972, %975, %cst_173 {dimension_numbers = #tpu.dot_dimension_numbers<[1], [0], [0], [1], [0, 0, 1, 1], [], []>} : vector<64x128xbf16>, vector<128x128xbf16>, vector<64x128xf32> -> vector<64x128xf32>
    %c0_174 = arith.constant 0 : index
    %c0_175 = arith.constant 0 : index
    %977 = vector.load %arg15[%c0_174, %c0_175] : memref<128x128xbf16, #tpu.memory_space<vmem>>, vector<128x128xbf16>
    %cst_176 = arith.constant dense<0.000000e+00> : vector<64x128xf32>
    %978 = tpu.matmul %972, %977, %cst_176 {dimension_numbers = #tpu.dot_dimension_numbers<[1], [0], [0], [1], [0, 0, 1, 1], [], []>} : vector<64x128xbf16>, vector<128x128xbf16>, vector<64x128xf32> -> vector<64x128xf32>
    %cst_177 = arith.constant dense<0.000000e+00> : vector<64x64xf32>
    %979 = tpu.matmul %974, %976, %cst_177 {dimension_numbers = #tpu.dot_dimension_numbers<[1], [1], [0], [0], [0, 0, 1, 0], [], []>} : vector<64x128xf32>, vector<64x128xf32>, vector<64x64xf32> -> vector<64x64xf32>
    %980 = tpu.iota {dimensions = array<i32: 0>} : vector<64x64xi32>
    %981 = tpu.iota {dimensions = array<i32: 1>} : vector<64x64xi32>
    %c7_i32 = arith.constant 7 : i32
    %982 = vector.broadcast %c7_i32 : i32 to vector<64x64xi32>
    %983 = arith.andi %980, %982 : vector<64x64xi32>
    %c7_i32_178 = arith.constant 7 : i32
    %984 = vector.broadcast %c7_i32_178 : i32 to vector<64x64xi32>
    %985 = arith.andi %981, %984 : vector<64x64xi32>
    %986 = arith.cmpi eq, %983, %985 : vector<64x64xi32>
    %cst_179 = arith.constant -1.000000e+30 : f32
    %987 = vector.broadcast %cst_179 : f32 to vector<64x64xf32>
    %988 = arith.select %986, %979, %987 : vector<64x64xi1>, vector<64x64xf32>
    %cst_180 = arith.constant dense<0xFF800000> : vector<64xf32>
    %989 = vector.multi_reduction <maximumf>, %988, %cst_180 [1] : vector<64x64xf32> to vector<64xf32>
    %990 = vector.shape_cast %989 : vector<64xf32> to vector<64x1xf32>
    %991 = vector.broadcast %990 : vector<64x1xf32> to vector<64x64xf32>
    %992 = arith.subf %988, %991 : vector<64x64xf32>
    %993 = math.exp %992 : vector<64x64xf32>
    %cst_181 = arith.constant dense<0.000000e+00> : vector<64xf32>
    %994 = vector.multi_reduction <add>, %993, %cst_181 [1] : vector<64x64xf32> to vector<64xf32>
    %995 = vector.shape_cast %994 : vector<64xf32> to vector<64x1xf32>
    %996 = tpu.reciprocal %995 {approx = true} : vector<64x1xf32> -> vector<64x1xf32>
    %997 = vector.broadcast %996 : vector<64x1xf32> to vector<64x64xf32>
    %998 = arith.mulf %993, %997 : vector<64x64xf32>
    %cst_182 = arith.constant dense<0.000000e+00> : vector<64x128xf32>
    %999 = tpu.matmul %998, %978, %cst_182 {dimension_numbers = #tpu.dot_dimension_numbers<[1], [0], [0], [1], [0, 0, 1, 1], [], []>} : vector<64x64xf32>, vector<64x128xf32>, vector<64x128xf32> -> vector<64x128xf32>
    %1000 = arith.truncf %999 : vector<64x128xf32> to vector<64x128xbf16>
    %c0_183 = arith.constant 0 : index
    %c0_184 = arith.constant 0 : index
    %1001 = vector.load %arg16[%c0_183, %c0_184] : memref<128x128xbf16, #tpu.memory_space<vmem>>, vector<128x128xbf16>
    %cst_185 = arith.constant dense<0.000000e+00> : vector<64x128xf32>
    %1002 = tpu.matmul %1000, %1001, %cst_185 {dimension_numbers = #tpu.dot_dimension_numbers<[1], [0], [0], [1], [0, 0, 1, 1], [], []>} : vector<64x128xbf16>, vector<128x128xbf16>, vector<64x128xf32> -> vector<64x128xf32>
    %c0_186 = arith.constant 0 : index
    %c0_187 = arith.constant 0 : index
    %1003 = vector.load %arg17[%c0_186, %c0_187] : memref<1x128xf32, #tpu.memory_space<vmem>>, vector<1x128xf32>
    %1004 = vector.broadcast %1003 : vector<1x128xf32> to vector<64x128xf32>
    %1005 = arith.addf %1002, %1004 : vector<64x128xf32>
    %c0_188 = arith.constant 0 : index
    %c0_189 = arith.constant 0 : index
    %1006 = vector.load %arg20[%c0_188, %c0_189] : memref<64x128xf32, #tpu.memory_space<vmem>>, vector<64x128xf32>
    tpu.vector_store %arg20[%c0_188, %c0_189], %1005 {strides = array<i32>} : memref<64x128xf32, #tpu.memory_space<vmem>>, vector<64x128xf32>,
    %1007 = arith.mulf %1005, %1005 : vector<64x128xf32>
    %1008 = arith.mulf %0, %0 : vector<64x128xf32>
    %1009 = arith.subf %1007, %1008 : vector<64x128xf32>
    %1010 = math.absf %1009 : vector<64x128xf32>
    %1011 = tpu.iota {dimensions = array<i32: 0>} : vector<8x64xi32>
    %1012 = tpu.iota {dimensions = array<i32: 1>} : vector<8x64xi32>
    %c7_i32_190 = arith.constant 7 : i32
    %1013 = vector.broadcast %c7_i32_190 : i32 to vector<8x64xi32>
    %1014 = arith.andi %1012, %1013 : vector<8x64xi32>
    %1015 = arith.cmpi eq, %1011, %1014 : vector<8x64xi32>
    %1016 = arith.extui %1015 : vector<8x64xi1> to vector<8x64xi32>
    %1017 = arith.sitofp %1016 : vector<8x64xi32> to vector<8x64xf32>
    %cst_191 = arith.constant dense<0.000000e+00> : vector<8x128xf32>
    %1018 = tpu.matmul %1017, %1010, %cst_191 {dimension_numbers = #tpu.dot_dimension_numbers<[1], [0], [0], [1], [0, 0, 1, 1], [], []>} : vector<8x64xf32>, vector<64x128xf32>, vector<8x128xf32> -> vector<8x128xf32>
    %cst_192 = arith.constant dense<0.000000e+00> : vector<8xf32>
    %1019 = vector.multi_reduction <add>, %1018, %cst_192 [1] : vector<8x128xf32> to vector<8xf32>
    %1020 = vector.shape_cast %1019 : vector<8xf32> to vector<8x1xf32>
    %1021 = vector.shape_cast %1020 : vector<8x1xf32> to vector<8x1xf32>
    %1022 = vector.broadcast %1021 : vector<8x1xf32> to vector<8x128xf32>
    %c0_193 = arith.constant 0 : index
    %c0_194 = arith.constant 0 : index
    %1023 = vector.load %arg21[%c0_193, %c0_194] : memref<8x128xf32, #tpu.memory_space<vmem>>, vector<8x128xf32>
    tpu.vector_store %arg21[%c0_193, %c0_194], %1022 {strides = array<i32>} : memref<8x128xf32, #tpu.memory_space<vmem>>, vector<8x128xf32>,
    return
  }
}

</mosaic_0001>

<bundles_post_ra>
// kernel: dis_lstmae_forward.1
= control target key start
LH: loop header
LB: loop body
LE: loop exit
PB: predicated region body
PF: predicated region fallthrough
CT: control target
= control target key end

     0   :  { %v12731_v1 = vmov 0   ;;  %vm6400_vm1 = vcmask 523264   ;;  %vm8703_vm9 = vmmov 0   ;;  %s12703_s1 = inlined_call_operand.vmem [shape: bf16[128,512], index: 1, kind: input, shape index: {}]   ;;  %s12704_s2 = inlined_call_operand.vmem [shape: bf16[128,512], index: 2, kind: input, shape index: {}]   ;;  %s12705_s0 = inlined_call_operand.vmem [shape: f32[64,128], index: 0, kind: input, shape index: {}]   ;;  %s12706_s3 = inlined_call_operand.vmem [shape: f32[1,512], index: 3, kind: input, shape index: {}]   ;;  %s12707_s4 = inlined_call_operand.vmem [shape: bf16[128,512], index: 4, kind: input, shape index: {}]   ;;  %s12708_s5 = inlined_call_operand.vmem [shape: bf16[128,512], index: 5, kind: input, shape index: {}]   ;;  %s12709_s6 = inlined_call_operand.vmem [shape: f32[1,512], index: 6, kind: input, shape index: {}]   ;;  %s12710_s18 = inlined_call_operand.vmem [shape: f32[64,128], index: 18, kind: output, shape index: {0}]   ;;  %s12711_s7 = inlined_call_operand.vmem [shape: bf16[128,512], index: 7, kind: input, shape index: {}]   ;;  %s12712_s8 = inlined_call_operand.vmem [shape: bf16[128,512], index: 8, kind: input, shape index: {}]   ;;  %s12713_s9 = inlined_call_operand.vmem [shape: f32[1,512], index: 9, kind: input, shape index: {}]   ;;  %s12714_s10 = inlined_call_operand.vmem [shape: bf16[128,512], index: 10, kind: input, shape index: {}]   ;;  %s12715_s11 = inlined_call_operand.vmem [shape: bf16[128,512], index: 11, kind: input, shape index: {}]   ;;  %s12716_s12 = inlined_call_operand.vmem [shape: f32[1,512], index: 12, kind: input, shape index: {}]   ;;  %s12717_s19 = inlined_call_operand.vmem [shape: f32[64,128], index: 19, kind: output, shape index: {1}]   ;;  %s12718_s13 = inlined_call_operand.vmem [shape: bf16[128,128], index: 13, kind: input, shape index: {}]   ;;  %s12719_s14 = inlined_call_operand.vmem [shape: bf16[128,128], index: 14, kind: input, shape index: {}]   ;;  %s12720_s15 = inlined_call_operand.vmem [shape: bf16[128,128], index: 15, kind: input, shape index: {}]   ;;  %s12721_s16 = inlined_call_operand.vmem [shape: bf16[128,128], index: 16, kind: input, shape index: {}]   ;;  %s12722_s17 = inlined_call_operand.vmem [shape: f32[1,128], index: 17, kind: input, shape index: {}]   ;;  %s12723_s20 = inlined_call_operand.vmem [shape: f32[64,128], index: 20, kind: output, shape index: {2}]   ;;  %s12724_s21 = inlined_call_operand.vmem [shape: f32[8,128], index: 21, kind: output, shape index: {3}]  }
   0x1   :  { %12743 = sst [smem:[#allocation30_spill]] %s12703_s1  ;;  %322 = vmatprep.mubr.bf16.mxu0 %v12731_v1  ;;  %395 = vmatprep.mubr.bf16.mxu1 %v12731_v1 }
   0x2   :  { %12744 = sst [smem:[#allocation31_spill]] %s12704_s2  ;;  %s12749_s26 = sld [smem:[#allocation30_spill]] }
   0x3   :  { %12745 = sst [smem:[#allocation32_spill]] %s12705_s0  ;;  %s12751_s25 = sld [smem:[#allocation31_spill]] }
   0x4   :  { %12746 = sst [smem:[#allocation33_spill]] %s12706_s3  ;;  %s12750_s22 = sld [smem:[#allocation32_spill]] }
   0x5   :  { %12747 = sst [smem:[#allocation34_spill]] %s12707_s4  ;;  %s12756_s24 = sld [smem:[#allocation33_spill]] }
   0x6   :  { %12748 = sst [smem:[#allocation35_spill]] %s12708_s5  ;;  %s12793_s27 = sld [smem:[#allocation34_spill]] }
   0x8   :  { %v7596_v0 = vld [vmem:[%s12749_s26 + $0x4] ss:$16 sps:$4 sm:$0xff]   ;;  %v7598_v2 = vld [vmem:[%s12749_s26 + $0xc] ss:$16 sps:$4 sm:$0xff]   ;;  %v7600_v3 = vld [vmem:[%s12749_s26] ss:$16 sps:$4 sm:$0xff]  }
   0x9   :  { %290 = vmatprep.subr.bf16.mxu0 %v7596_v0  ;;  %v7601_v4 = vld [vmem:[%s12749_s26 + $0x8] ss:$16 sps:$4 sm:$0xff]   ;;  %363 = vmatprep.subr.bf16.mxu1 %v7598_v2  ;;  %v7602_v5 = vld [vmem:[%s12749_s26 + $0x24] ss:$16 sps:$4 sm:$0xff]   ;;  %v7604_v6 = vld [vmem:[%s12749_s26 + $0x2c] ss:$16 sps:$4 sm:$0xff]  }
   0xa   :  { %291 = vmatpush1.bf16.msra.mxu0 %v7600_v3  ;;  %364 = vmatpush1.bf16.msra.mxu1 %v7601_v4  ;;  %v7606_v7 = vld [vmem:[%s12749_s26 + $0x20] ss:$16 sps:$4 sm:$0xff]   ;;  %v7607_v8 = vld [vmem:[%s12749_s26 + $0x28] ss:$16 sps:$4 sm:$0xff]   ;;  %v7608_v9 = vld [vmem:[%s12749_s26 + $0x44] ss:$16 sps:$4 sm:$0xff]  }
   0xb   :  { %292 = vmatprep.subr.bf16.mxu0 %v7602_v5  ;;  %365 = vmatprep.subr.bf16.mxu1 %v7604_v6  ;;  %v7610_v10 = vld [vmem:[%s12749_s26 + $0x4c] ss:$16 sps:$4 sm:$0xff]   ;;  %v7612_v11 = vld [vmem:[%s12749_s26 + $0x40] ss:$16 sps:$4 sm:$0xff]   ;;  %v7613_v12 = vld [vmem:[%s12749_s26 + $0x48] ss:$16 sps:$4 sm:$0xff]  }
   0xc   :  { %v7614_v13 = vld [vmem:[%s12749_s26 + $0x64] ss:$16 sps:$4 sm:$0xff]   ;;  %v7616_v14 = vld [vmem:[%s12749_s26 + $0x6c] ss:$16 sps:$4 sm:$0xff]   ;;  %v7618_v15 = vld [vmem:[%s12749_s26 + $0x60] ss:$16 sps:$4 sm:$0xff]  }
   0xd   :  { %v7619_v16 = vld [vmem:[%s12749_s26 + $0x68] ss:$16 sps:$4 sm:$0xff]   ;;  %v7620_v17 = vld [vmem:[%s12749_s26 + $0x84] ss:$16 sps:$4 sm:$0xff]   ;;  %v7622_v18 = vld [vmem:[%s12749_s26 + $0x8c] ss:$16 sps:$4 sm:$0xff]  }
   0xe   :  { %293 = vmatpush1.bf16.msra.mxu0 %v7606_v7  ;;  %366 = vmatpush1.bf16.msra.mxu1 %v7607_v8  ;;  %v7624_v19 = vld [vmem:[%s12749_s26 + $0x80] ss:$16 sps:$4 sm:$0xff]   ;;  %v7625_v20 = vld [vmem:[%s12749_s26 + $0x88] ss:$16 sps:$4 sm:$0xff]   ;;  %v7626_v21 = vld [vmem:[%s12749_s26 + $0xa4] ss:$16 sps:$4 sm:$0xff]  }
   0xf   :  { %294 = vmatprep.subr.bf16.mxu0 %v7608_v9  ;;  %367 = vmatprep.subr.bf16.mxu1 %v7610_v10  ;;  %v7628_v22 = vld [vmem:[%s12749_s26 + $0xac] ss:$16 sps:$4 sm:$0xff]   ;;  %v7630_v23 = vld [vmem:[%s12749_s26 + $0xa0] ss:$16 sps:$4 sm:$0xff]   ;;  %v7631_v24 = vld [vmem:[%s12749_s26 + $0xa8] ss:$16 sps:$4 sm:$0xff]  }
  0x10   :  { %v7632_v25 = vld [vmem:[%s12749_s26 + $0xc4] ss:$16 sps:$4 sm:$0xff]   ;;  %v7634_v26 = vld [vmem:[%s12749_s26 + $0xcc] ss:$16 sps:$4 sm:$0xff]   ;;  %v7636_v27 = vld [vmem:[%s12749_s26 + $0xc0] ss:$16 sps:$4 sm:$0xff]  }
  0x11   :  { %v7637_v28 = vld [vmem:[%s12749_s26 + $0xc8] ss:$16 sps:$4 sm:$0xff]   ;;  %v7638_v29 = vld [vmem:[%s12749_s26 + $0xe4] ss:$16 sps:$4 sm:$0xff]   ;;  %v7640_v30 = vld [vmem:[%s12749_s26 + $0xec] ss:$16 sps:$4 sm:$0xff]  }
  0x12   :  { %295 = vmatpush1.bf16.msra.mxu0 %v7612_v11  ;;  %368 = vmatpush1.bf16.msra.mxu1 %v7613_v12  ;;  %v7642_v31 = vld [vmem:[%s12749_s26 + $0xe0] ss:$16 sps:$4 sm:$0xff]   ;;  %v7643_v32 = vld [vmem:[%s12749_s26 + $0xe8] ss:$16 sps:$4 sm:$0xff]   ;;  %v8922_v35 = vld [vmem:[%s12751_s25 + $0x4] ss:$16 sps:$4 sm:$0xff]  }
  0x13   :  { %296 = vmatprep.subr.bf16.mxu0 %v7614_v13  ;;  %369 = vmatprep.subr.bf16.mxu1 %v7616_v14  ;;  %v64_v33 = vld [vmem:[%s12750_s22] sm:$0xff]  ;;  %v65_v34 = vld [vmem:[%s12750_s22 + $0x8] sm:$0xff]  ;;  %v66_v44 = vld [vmem:[%s12750_s22 + $0x10] sm:$0xff]  ;;  %v12730_v14 = vlaneseq }
  0x14   :  { %v8927_v36 = vld [vmem:[%s12751_s25 + $0xc] ss:$16 sps:$4 sm:$0xff]   ;;  %v72_v37 = vpack.c.bf16 %v65_v34, %v64_v33  ;;  %v8932_v38 = vld [vmem:[%s12751_s25] ss:$16 sps:$4 sm:$0xff]   ;;  %v8937_v39 = vld [vmem:[%s12751_s25 + $0x8] ss:$16 sps:$4 sm:$0xff]  }
  0x15   :  { %v8944_v40 = vld [vmem:[%s12751_s25 + $0x24] ss:$16 sps:$4 sm:$0xff]   ;;  %v8949_v41 = vld [vmem:[%s12751_s25 + $0x2c] ss:$16 sps:$4 sm:$0xff]   ;;  %v8954_v42 = vld [vmem:[%s12751_s25 + $0x20] ss:$16 sps:$4 sm:$0xff]  }
  0x16   :  { %297 = vmatpush1.bf16.msra.mxu0 %v7618_v15  ;;  %370 = vmatpush1.bf16.msra.mxu1 %v7619_v16  ;;  %v8959_v43 = vld [vmem:[%s12751_s25 + $0x28] ss:$16 sps:$4 sm:$0xff]   ;;  %v8972_v46 = vld [vmem:[%s12751_s25 + $0x44] ss:$16 sps:$4 sm:$0xff]   ;;  %v8979_v47 = vld [vmem:[%s12751_s25 + $0x4c] ss:$16 sps:$4 sm:$0xff]  }
  0x17   :  { %298 = vmatprep.subr.bf16.mxu0 %v7620_v17  ;;  %371 = vmatprep.subr.bf16.mxu1 %v7622_v18  ;;  %v67_v45 = vld [vmem:[%s12750_s22 + $0x18] sm:$0xff]  ;;  %v8986_v49 = vld [vmem:[%s12751_s25 + $0x40] ss:$16 sps:$4 sm:$0xff]   ;;  %v8998_v51 = vld [vmem:[%s12751_s25 + $0x64] ss:$16 sps:$4 sm:$0xff]   ;;  %v9176_v15 = vshrl.u32 %v12730_v14, 7 }
  0x18   :  { %v73_v48 = vpack.c.bf16 %v67_v45, %v66_v44  ;;  %v8991_v50 = vld [vmem:[%s12751_s25 + $0x48] ss:$16 sps:$4 sm:$0xff]   ;;  %v9005_v52 = vld [vmem:[%s12751_s25 + $0x6c] ss:$16 sps:$4 sm:$0xff]   ;;  %v9010_v53 = vld [vmem:[%s12751_s25 + $0x60] ss:$16 sps:$4 sm:$0xff]  }
  0x19   :  { %v9015_v54 = vld [vmem:[%s12751_s25 + $0x68] ss:$16 sps:$4 sm:$0xff]   ;;  %v68_v55 = vld [vmem:[%s12750_s22 + $0x20] sm:$0xff]  ;;  %v9035_v58 = vld [vmem:[%s12751_s25 + $0x8c] ss:$16 sps:$4 sm:$0xff]   ;;  %12752 = vst [vmem:[#allocation2_spill] sm:$0xff] %v9176_v15 }
  0x1a   :  { %299 = vmatpush1.bf16.msra.mxu0 %v7624_v19  ;;  %372 = vmatpush1.bf16.msra.mxu1 %v7625_v20  ;;  %v69_v56 = vld [vmem:[%s12750_s22 + $0x28] sm:$0xff]  ;;  %v9030_v57 = vld [vmem:[%s12751_s25 + $0x84] ss:$16 sps:$4 sm:$0xff]   ;;  %v9044_v60 = vld [vmem:[%s12751_s25 + $0x80] ss:$16 sps:$4 sm:$0xff]   ;;  %v9179_v16 = vsub.s32 2, %v9176_v15 }
  0x1b   :  { %300 = vmatprep.subr.bf16.mxu0 %v7626_v21  ;;  %373 = vmatprep.subr.bf16.mxu1 %v7628_v22  ;;  %v74_v59 = vpack.c.bf16 %v69_v56, %v68_v55  ;;  %v9049_v61 = vld [vmem:[%s12751_s25 + $0x88] ss:$16 sps:$4 sm:$0xff]   ;;  %v9056_v62 = vld [vmem:[%s12751_s25 + $0xa4] ss:$16 sps:$4 sm:$0xff]   ;;  %v9061_v63 = vld [vmem:[%s12751_s25 + $0xac] ss:$16 sps:$4 sm:$0xff]  }
  0x1c   :  { %v9066_v0 = vld [vmem:[%s12751_s25 + $0xa0] ss:$16 sps:$4 sm:$0xff]   ;;  %v9073_v2 = vld [vmem:[%s12751_s25 + $0xa8] ss:$16 sps:$4 sm:$0xff]   ;;  %v9086_v5 = vld [vmem:[%s12751_s25 + $0xc4] ss:$16 sps:$4 sm:$0xff]  }
  0x1d   :  { %v70_v3 = vld [vmem:[%s12750_s22 + $0x30] sm:$0xff]  ;;  %v71_v4 = vld [vmem:[%s12750_s22 + $0x38] sm:$0xff]  ;;  %12753 = vst [vmem:[#allocation3_spill] sm:$0xff] %v9179_v16  ;;  %v9182_v17 = vsub.s32 3, %v9176_v15  ;;  %v9185_v18 = vsub.s32 0, %v9176_v15  ;;  %v9191_v20 = vsub.s32 1, %v9176_v15 }
  0x1e   :  { %301 = vmatpush1.bf16.msra.mxu0 %v7630_v23  ;;  %374 = vmatpush1.bf16.msra.mxu1 %v7631_v24  ;;  %v9091_v6 = vld [vmem:[%s12751_s25 + $0xcc] ss:$16 sps:$4 sm:$0xff]   ;;  %v75_v7 = vpack.c.bf16 %v71_v4, %v70_v3  ;;  %v9100_v8 = vld [vmem:[%s12751_s25 + $0xc0] ss:$16 sps:$4 sm:$0xff]   ;;  %v9105_v9 = vld [vmem:[%s12751_s25 + $0xc8] ss:$16 sps:$4 sm:$0xff]  }
  0x1f   :  { %302 = vmatprep.subr.bf16.mxu0 %v7632_v25  ;;  %375 = vmatprep.subr.bf16.mxu1 %v7634_v26  ;;  %v9112_v10 = vld [vmem:[%s12751_s25 + $0xe4] ss:$16 sps:$4 sm:$0xff]   ;;  %v9117_v11 = vld [vmem:[%s12751_s25 + $0xec] ss:$16 sps:$4 sm:$0xff]   ;;  %v9124_v12 = vld [vmem:[%s12751_s25 + $0xe0] ss:$16 sps:$4 sm:$0xff]  }
  0x20   :  { %v9129_v13 = vld [vmem:[%s12751_s25 + $0xe8] ss:$16 sps:$4 sm:$0xff]   ;;  %12754 = vst [vmem:[#allocation4_spill] sm:$0xff] %v9182_v17  ;;  %12755 = vst [vmem:[#allocation5_spill] sm:$0xff] %v9185_v18  ;;  %v108_v19 = vld [vmem:[%s12756_s24] sm:$0xf] }
  0x21   :  { %12757 = vst [vmem:[#allocation6_spill] sm:$0xff] %v9191_v20  ;;  %v9194_v21 = vrot.slane %v108_v19, %v9179_v16  ;;  %v9201_v24 = vrot.slane %v108_v19, %v9182_v17  ;;  %v113_v25 = vrot.slane %v108_v19, %v9185_v18  ;;  %s12798_s24 = sld [smem:[#allocation35_spill]] }
  0x22   :  { %303 = vmatpush1.bf16.msra.mxu0 %v7636_v27  ;;  %376 = vmatpush1.bf16.msra.mxu1 %v7637_v28  ;;  %v117_v28 = vrot.slane %v108_v19, %v9191_v20 }
  0x23   :  { %304 = vmatprep.subr.bf16.mxu0 %v7638_v29  ;;  %377 = vmatprep.subr.bf16.mxu1 %v7640_v30 }
  0x26   :  { %305 = vmatpush1.bf16.msra.mxu0 %v7642_v31  ;;  %378 = vmatpush1.bf16.msra.mxu1 %v7643_v32 }
  0x27   :  { %628 = vmatprep.subr.bf16.mxu0 %v8922_v35  ;;  %669 = vmatprep.subr.bf16.mxu1 %v8927_v36 }
  0x29   :  { %323 = vmatmul.mubr.bf16.vlgmr.msra.gmra.mrb[0].mxu0 %v72_v37  ;;  %396 = vmatmul.mubr.bf16.vlgmr.msra.gmra.mrb[0].mxu1 %v72_v37 }
  0x2a   :  { %629 = vmatpush1.bf16.msra.mxu0 %v8932_v38  ;;  %670 = vmatpush1.bf16.msra.mxu1 %v8937_v39 }
  0x2b   :  { %630 = vmatprep.subr.bf16.mxu0 %v8944_v40  ;;  %671 = vmatprep.subr.bf16.mxu1 %v8949_v41 }
  0x2c   :  { %332 = vmatprep.mubr.bf16.mxu0 %v12731_v1  ;;  %405 = vmatprep.mubr.bf16.mxu1 %v12731_v1 }
  0x2e   :  { %631 = vmatpush1.bf16.msra.mxu0 %v8954_v42  ;;  %672 = vmatpush1.bf16.msra.mxu1 %v8959_v43 }
  0x2f   :  { %632 = vmatprep.subr.bf16.mxu0 %v8972_v46  ;;  %673 = vmatprep.subr.bf16.mxu1 %v8979_v47 }
  0x31   :  { %333 = vmatmul.mubr.bf16.gmra.mrb[4].mxu0 %v73_v48  ;;  %406 = vmatmul.mubr.bf16.gmra.mrb[4].mxu1 %v73_v48 }
  0x32   :  { %633 = vmatpush1.bf16.msra.mxu0 %v8986_v49  ;;  %674 = vmatpush1.bf16.msra.mxu1 %v8991_v50 }
  0x33   :  { %634 = vmatprep.subr.bf16.mxu0 %v8998_v51  ;;  %675 = vmatprep.subr.bf16.mxu1 %v9005_v52 }
  0x34   :  { %342 = vmatprep.mubr.bf16.mxu0 %v12731_v1  ;;  %415 = vmatprep.mubr.bf16.mxu1 %v12731_v1 }
  0x36   :  { %635 = vmatpush1.bf16.msra.mxu0 %v9010_v53  ;;  %676 = vmatpush1.bf16.msra.mxu1 %v9015_v54 }
  0x37   :  { %636 = vmatprep.subr.bf16.mxu0 %v9030_v57  ;;  %677 = vmatprep.subr.bf16.mxu1 %v9035_v58 }
  0x39   :  { %343 = vmatmul.mubr.bf16.gmra.mrb[8].mxu0 %v74_v59  ;;  %416 = vmatmul.mubr.bf16.gmra.mrb[8].mxu1 %v74_v59 }
  0x3a   :  { %637 = vmatpush1.bf16.msra.mxu0 %v9044_v60  ;;  %678 = vmatpush1.bf16.msra.mxu1 %v9049_v61 }
  0x3b   :  { %638 = vmatprep.subr.bf16.mxu0 %v9056_v62  ;;  %679 = vmatprep.subr.bf16.mxu1 %v9061_v63 }
  0x3c   :  { %352 = vmatprep.mubr.bf16.mxu0 %v12731_v1  ;;  %425 = vmatprep.mubr.bf16.mxu1 %v12731_v1 }
  0x3e   :  { %639 = vmatpush1.bf16.msra.mxu0 %v9066_v0  ;;  %680 = vmatpush1.bf16.msra.mxu1 %v9073_v2 }
  0x3f   :  { %640 = vmatprep.subr.bf16.mxu0 %v9086_v5  ;;  %681 = vmatprep.subr.bf16.mxu1 %v9091_v6 }
  0x41   :  { %353 = vmatmul.mubr.bf16.gmra.mrb[12].mxu0 %v75_v7  ;;  %426 = vmatmul.mubr.bf16.gmra.mrb[12].mxu1 %v75_v7 }
  0x42   :  { %641 = vmatpush1.bf16.msra.mxu0 %v9100_v8  ;;  %682 = vmatpush1.bf16.msra.mxu1 %v9105_v9 }
  0x43   :  { %642 = vmatprep.subr.bf16.mxu0 %v9112_v10  ;;  %683 = vmatprep.subr.bf16.mxu1 %v9117_v11 }
  0x44   :  { %660 = vmatprep.mubr.bf16.mxu0 %v12731_v1  ;;  %701 = vmatprep.mubr.bf16.mxu1 %v12731_v1 }
  0x46   :  { %643 = vmatpush1.bf16.msra.mxu0 %v9124_v12  ;;  %684 = vmatpush1.bf16.msra.mxu1 %v9129_v13 }
  0x47   :  { %739 = vmatprep.subr.bf16.mxu0 %v8922_v35  ;;  %780 = vmatprep.subr.bf16.mxu1 %v8927_v36 }
  0x49   :  { %661 = vmatmul.mubr.bf16.vlgmr.msra.gmra.mrb[16].mxu0 %v12731_v1  ;;  %702 = vmatmul.mubr.bf16.vlgmr.msra.gmra.mrb[16].mxu1 %v12731_v1 }
  0x4a   :  { %740 = vmatpush1.bf16.msra.mxu0 %v8932_v38  ;;  %781 = vmatpush1.bf16.msra.mxu1 %v8937_v39 }
  0x4b   :  { %741 = vmatprep.subr.bf16.mxu0 %v8944_v40  ;;  %782 = vmatprep.subr.bf16.mxu1 %v8949_v41 }
  0x4c   :  { %771 = vmatprep.mubr.bf16.mxu0 %v12731_v1  ;;  %812 = vmatprep.mubr.bf16.mxu1 %v12731_v1 }
  0x4e   :  { %742 = vmatpush1.bf16.msra.mxu0 %v8954_v42  ;;  %783 = vmatpush1.bf16.msra.mxu1 %v8959_v43 }
  0x4f   :  { %743 = vmatprep.subr.bf16.mxu0 %v8972_v46  ;;  %784 = vmatprep.subr.bf16.mxu1 %v8979_v47 }
  0x52   :  { %744 = vmatpush1.bf16.msra.mxu0 %v8986_v49  ;;  %785 = vmatpush1.bf16.msra.mxu1 %v8991_v50 }
  0x53   :  { %745 = vmatprep.subr.bf16.mxu0 %v8998_v51  ;;  %786 = vmatprep.subr.bf16.mxu1 %v9005_v52 }
  0x56   :  { %746 = vmatpush1.bf16.msra.mxu0 %v9010_v53  ;;  %787 = vmatpush1.bf16.msra.mxu1 %v9015_v54 }
  0x57   :  { %747 = vmatprep.subr.bf16.mxu0 %v9030_v57  ;;  %788 = vmatprep.subr.bf16.mxu1 %v9035_v58 }
  0x5a   :  { %748 = vmatpush1.bf16.msra.mxu0 %v9044_v60  ;;  %789 = vmatpush1.bf16.msra.mxu1 %v9049_v61 }
  0x5b   :  { %749 = vmatprep.subr.bf16.mxu0 %v9056_v62  ;;  %790 = vmatprep.subr.bf16.mxu1 %v9061_v63 }
  0x5e   :  { %750 = vmatpush1.bf16.msra.mxu0 %v9066_v0  ;;  %791 = vmatpush1.bf16.msra.mxu1 %v9073_v2 }
  0x5f   :  { %751 = vmatprep.subr.bf16.mxu0 %v9086_v5  ;;  %792 = vmatprep.subr.bf16.mxu1 %v9091_v6 }
  0x62   :  { %752 = vmatpush1.bf16.msra.mxu0 %v9100_v8  ;;  %793 = vmatpush1.bf16.msra.mxu1 %v9105_v9 }
  0x63   :  { %753 = vmatprep.subr.bf16.mxu0 %v9112_v10  ;;  %794 = vmatprep.subr.bf16.mxu1 %v9117_v11 }
  0x66   :  { %754 = vmatpush1.bf16.msra.mxu0 %v9124_v12  ;;  %795 = vmatpush1.bf16.msra.mxu1 %v9129_v13 }
  0x67   :  { %850 = vmatprep.subr.bf16.mxu0 %v8922_v35  ;;  %891 = vmatprep.subr.bf16.mxu1 %v8927_v36 }
  0xfc   :  { %v9196_v22 = vpop.f32.mrb[0].mxu0  ;;  %v9198_v23 = vpop.f32.mrb[0].mxu1 }
  0xfd   :  { %v326_v26 = vpop.f32.mrb[1].mxu0  ;;  %v399_v27 = vpop.f32.mrb[1].mxu1 }
  0xfe   :  { %v328_v29 = vpop.f32.mrb[2].mxu0  ;;  %v401_v30 = vpop.f32.mrb[2].mxu1 }
  0xff   :  { %v9205_v31 = vadd.f32 %v328_v29, %v113_v25  ;;  %v330_v32 = vpop.f32.mrb[3].mxu0  ;;  %v9208_v33 = vadd.f32 %v401_v30, %v9194_v21  ;;  %v403_v34 = vpop.f32.mrb[3].mxu1 }
 0x100   :  { %v9210_v37 = vadd.f32 %v330_v32, %v117_v28  ;;  %v9213_v44 = vadd.f32 %v403_v34, %v9201_v24 }
 0x104   :  { %v334_v45 = vpop.f32.mrb[4].mxu0  ;;  %v407_v48 = vpop.f32.mrb[4].mxu1 }
 0x105   :  { %v9215_v55 = vadd.f32 %v334_v45, %v113_v25  ;;  %v336_v56 = vpop.f32.mrb[5].mxu0  ;;  %v9218_v59 = vadd.f32 %v407_v48, %v9194_v21  ;;  %v409_v3 = vpop.f32.mrb[5].mxu1 }
 0x106   :  { %v9220_v4 = vadd.f32 %v336_v56, %v117_v28  ;;  %v338_v7 = vpop.f32.mrb[6].mxu0  ;;  %v9223_v19 = vadd.f32 %v409_v3, %v9201_v24  ;;  %v411_v29 = vpop.f32.mrb[6].mxu1 }
 0x107   :  { %v9225_v30 = vadd.f32 %v338_v7, %v113_v25  ;;  %v340_v32 = vpop.f32.mrb[7].mxu0  ;;  %v9228_v34 = vadd.f32 %v411_v29, %v9194_v21  ;;  %v413_v45 = vpop.f32.mrb[7].mxu1 }
 0x108   :  { %12758 = vst [vmem:[#allocation7_spill] sm:$0xff] %v9223_v19  ;;  %v9230_v14 = vadd.f32 %v340_v32, %v117_v28  ;;  %v9233_v48 = vadd.f32 %v413_v45, %v9201_v24 }
 0x109   :  { %12759 = vst [vmem:[#allocation8_spill] sm:$0xff] %v9225_v30  ;;  %12760 = vst [vmem:[#allocation9_spill] sm:$0xff] %v9228_v34 }
 0x10a   :  { %12761 = vst [vmem:[#allocation10_spill] sm:$0xff] %v9230_v14  ;;  %12762 = vst [vmem:[#allocation11_spill] sm:$0xff] %v9233_v48 }
 0x10c   :  { %v344_v1 = vpop.f32.mrb[8].mxu0  ;;  %v417_v56 = vpop.f32.mrb[8].mxu1 }
 0x10d   :  { %v9235_v15 = vadd.f32 %v344_v1, %v113_v25  ;;  %v346_v17 = vpop.f32.mrb[9].mxu0  ;;  %v9238_v3 = vadd.f32 %v417_v56, %v9194_v21  ;;  %v419_v7 = vpop.f32.mrb[9].mxu1 }
 0x10e   :  { %v9240_v20 = vadd.f32 %v346_v17, %v117_v28  ;;  %v348_v16 = vpop.f32.mrb[10].mxu0  ;;  %v9243_v29 = vadd.f32 %v419_v7, %v9201_v24  ;;  %v421_v32 = vpop.f32.mrb[10].mxu1 }
 0x10f   :  { %12763 = vst [vmem:[#allocation12_spill] sm:$0xff] %v9235_v15  ;;  %12764 = vst [vmem:[#allocation13_spill] sm:$0xff] %v9238_v3  ;;  %v9245_v18 = vadd.f32 %v348_v16, %v113_v25  ;;  %v350_v45 = vpop.f32.mrb[11].mxu0  ;;  %v9248_v48 = vadd.f32 %v421_v32, %v9194_v21  ;;  %v423_v1 = vpop.f32.mrb[11].mxu1 }
 0x110   :  { %12765 = vst [vmem:[#allocation14_spill] sm:$0xff] %v9240_v20  ;;  %12766 = vst [vmem:[#allocation15_spill] sm:$0xff] %v9243_v29  ;;  %v9250_v15 = vadd.f32 %v350_v45, %v117_v28  ;;  %v9253_v56 = vadd.f32 %v423_v1, %v9201_v24 }
 0x111   :  { %12767 = vst [vmem:[#allocation16_spill] sm:$0xff] %v9245_v18  ;;  %12768 = vst [vmem:[#allocation17_spill] sm:$0xff] %v9248_v48 }
 0x112   :  { %12769 = vst [vmem:[#allocation18_spill] sm:$0xff] %v9250_v15  ;;  %12770 = vst [vmem:[#allocation19_spill] sm:$0xff] %v9253_v56 }
 0x114   :  { %v354_v3 = vpop.f32.mrb[12].mxu0  ;;  %v427_v17 = vpop.f32.mrb[12].mxu1 }
 0x115   :  { %v9255_v20 = vadd.f32 %v354_v3, %v113_v25  ;;  %v356_v14 = vpop.f32.mrb[13].mxu0  ;;  %v9258_v7 = vadd.f32 %v427_v17, %v9194_v21  ;;  %v429_v16 = vpop.f32.mrb[13].mxu1 }
 0x116   :  { %v9260_v18 = vadd.f32 %v356_v14, %v117_v28  ;;  %v358_v29 = vpop.f32.mrb[14].mxu0  ;;  %v9263_v32 = vadd.f32 %v429_v16, %v9201_v24  ;;  %v431_v45 = vpop.f32.mrb[14].mxu1  ;;  %v325_v14 = vadd.f32 %v9196_v22, %v113_v25  ;;  %v327_v16 = vadd.f32 %v326_v26, %v117_v28 }
 0x117   :  { %12771 = vst [vmem:[#allocation20_spill] sm:$0xff] %v9255_v20  ;;  %12772 = vst [vmem:[#allocation21_spill] sm:$0xff] %v9258_v7  ;;  %v9265_v15 = vadd.f32 %v358_v29, %v113_v25  ;;  %v360_v1 = vpop.f32.mrb[15].mxu0  ;;  %v9268_v56 = vadd.f32 %v431_v45, %v9194_v21  ;;  %v433_v3 = vpop.f32.mrb[15].mxu1 }
 0x118   :  { %12773 = vst [vmem:[#allocation22_spill] sm:$0xff] %v9260_v18  ;;  %12774 = vst [vmem:[#allocation23_spill] sm:$0xff] %v9263_v32  ;;  %v9270_v20 = vadd.f32 %v360_v1, %v117_v28  ;;  %v9273_v17 = vadd.f32 %v433_v3, %v9201_v24  ;;  %v398_v18 = vadd.f32 %v9198_v23, %v9194_v21 }
 0x119   :  { %12775 = vst [vmem:[#allocation24_spill] sm:$0xff] %v9265_v15  ;;  %12776 = vst [vmem:[#allocation25_spill] sm:$0xff] %v9268_v56  ;;  %v400_v32 = vadd.f32 %v399_v27, %v9201_v24 }
 0x11a   :  { %12777 = vst [vmem:[#allocation26_spill] sm:$0xff] %v9270_v20  ;;  %12778 = vst [vmem:[#allocation27_spill] sm:$0xff] %v9273_v17 }
 0x11c   :  { %v662_v29 = vpop.f32.mrb[16].mxu0  ;;  %v703_v15 = vpop.f32.mrb[16].mxu1 }
 0x11d   :  { %v710_v7 = vadd.f32 %v662_v29, %v325_v14  ;;  %v712_v48 = vadd.f32 %v703_v15, %v398_v18  ;;  %v664_v45 = vpop.f32.mrb[17].mxu0  ;;  %v705_v56 = vpop.f32.mrb[17].mxu1 }
 0x11e   :  { %v711_v34 = vadd.f32 %v664_v45, %v327_v16  ;;  %v713_v1 = vadd.f32 %v705_v56, %v400_v32  ;;  %v666_v20 = vpop.f32.mrb[18].mxu0  ;;  %v707_v30 = vpop.f32.mrb[18].mxu1 }
 0x11f   :  { %v6957_v3 = vmul.f32 -1.442695, %v710_v7  ;;  %v667_v17 = vpop.f32.mrb[19].mxu0  ;;  %v708_v19 = vpop.f32.mrb[19].mxu1 }
 0x120   :  { %v6958_v22 = vmul.f32 -1.442695, %v711_v34  ;;  %v6959_v21 = vmul.f32 -1.442695, %v713_v1  ;;  %v12779_v17 = vmov 0  }
 0x121   :  { %8012 = vpow2.f32 %v6957_v3 }
 0x122   :  { %8014 = vpow2.f32 %v6958_v22 }
 0x123   :  { %8016 = vpow2.f32 %v6959_v21 }
 0x124   :  { %8018 = vtanh.f32 %v712_v48 }
 0x12b   :  { %v8013_v23 = vpop.eup %8012 }
 0x12c   :  { %v8015_v25 = vpop.eup %8014  ;;  %v717_v24 = vadd.f32 1.0, %v8013_v23 }
 0x12d   :  { %v723_v26 = vadd.f32 1.0, %v8015_v25  ;;  %v8017_v15 = vpop.eup %8016 }
 0x12e   :  { %8020 = vrcp.f32 %v717_v24  ;;  %v8019_v18 = vpop.eup %8018  ;;  %v730_v30 = vadd.f32 1.0, %v8017_v15 }
 0x12f   :  { %8022 = vrcp.f32 %v723_v26 }
 0x130   :  { %8024 = vrcp.f32 %v730_v30 }
 0x138   :  { %v8021_v27 = vpop.eup %8020 }
 0x139   :  { %v8023_v20 = vpop.eup %8022  ;;  %v734_v28 = vmul.f32 %v8021_v27, %v8019_v18 }
 0x13a   :  { %v733_v56 = vmul.f32 0.0, %v8023_v20  ;;  %v8025_v34 = vpop.eup %8024 }
 0x13c   :  { %v9279_v19 = vadd.f32 %v734_v28, %v733_v56 }
 0x13e   :  { %8026 = vtanh.f32 %v9279_v19 }
 0x148   :  { %v8027_v7 = vpop.eup %8026 }
 0x149   :  { %v9282_v32 = vmul.f32 %v8027_v7, %v8025_v34 }
 0x14b   :  { %v738_v48 = vpack.c.bf16 %v9282_v32, %v9282_v32 }
 0x14d   :  { %772 = vmatmul.mubr.bf16.vlgmr.msra.gmra.mrb[20].mxu0 %v738_v48  ;;  %813 = vmatmul.mubr.bf16.vlgmr.msra.gmra.mrb[20].mxu1 %v738_v48 }
 0x14e   :  { %851 = vmatpush1.bf16.msra.mxu0 %v8932_v38  ;;  %892 = vmatpush1.bf16.msra.mxu1 %v8937_v39 }
 0x14f   :  { %852 = vmatprep.subr.bf16.mxu0 %v8944_v40  ;;  %893 = vmatprep.subr.bf16.mxu1 %v8949_v41 }
 0x150   :  { %882 = vmatprep.mubr.bf16.mxu0 %v12779_v17  ;;  %923 = vmatprep.mubr.bf16.mxu1 %v12779_v17 }
 0x152   :  { %853 = vmatpush1.bf16.msra.mxu0 %v8954_v42  ;;  %894 = vmatpush1.bf16.msra.mxu1 %v8959_v43 }
 0x153   :  { %854 = vmatprep.subr.bf16.mxu0 %v8972_v46  ;;  %895 = vmatprep.subr.bf16.mxu1 %v8979_v47 }
 0x156   :  { %855 = vmatpush1.bf16.msra.mxu0 %v8986_v49  ;;  %896 = vmatpush1.bf16.msra.mxu1 %v8991_v50 }
 0x157   :  { %856 = vmatprep.subr.bf16.mxu0 %v8998_v51  ;;  %897 = vmatprep.subr.bf16.mxu1 %v9005_v52 }
 0x15a   :  { %857 = vmatpush1.bf16.msra.mxu0 %v9010_v53  ;;  %898 = vmatpush1.bf16.msra.mxu1 %v9015_v54 }
 0x15b   :  { %858 = vmatprep.subr.bf16.mxu0 %v9030_v57  ;;  %899 = vmatprep.subr.bf16.mxu1 %v9035_v58 }
 0x15e   :  { %859 = vmatpush1.bf16.msra.mxu0 %v9044_v60  ;;  %900 = vmatpush1.bf16.msra.mxu1 %v9049_v61 }
 0x15f   :  { %860 = vmatprep.subr.bf16.mxu0 %v9056_v62  ;;  %901 = vmatprep.subr.bf16.mxu1 %v9061_v63 }
 0x162   :  { %861 = vmatpush1.bf16.msra.mxu0 %v9066_v0  ;;  %902 = vmatpush1.bf16.msra.mxu1 %v9073_v2 }
 0x163   :  { %862 = vmatprep.subr.bf16.mxu0 %v9086_v5  ;;  %903 = vmatprep.subr.bf16.mxu1 %v9091_v6 }
 0x166   :  { %863 = vmatpush1.bf16.msra.mxu0 %v9100_v8  ;;  %904 = vmatpush1.bf16.msra.mxu1 %v9105_v9 }
 0x167   :  { %864 = vmatprep.subr.bf16.mxu0 %v9112_v10  ;;  %905 = vmatprep.subr.bf16.mxu1 %v9117_v11 }
 0x16a   :  { %865 = vmatpush1.bf16.msra.mxu0 %v9124_v12  ;;  %906 = vmatpush1.bf16.msra.mxu1 %v9129_v13 }
 0x16b   :  { %961 = vmatprep.subr.bf16.mxu0 %v8922_v35  ;;  %1002 = vmatprep.subr.bf16.mxu1 %v8927_v36 }
 0x220   :  { %v773_v14 = vpop.f32.mrb[20].mxu0  ;;  %v814_v16 = vpop.f32.mrb[20].mxu1 }
 0x221   :  { %v821_v29 = vadd.f32 %v773_v14, %v9205_v31  ;;  %v823_v45 = vadd.f32 %v814_v16, %v9208_v33  ;;  %v775_v1 = vpop.f32.mrb[21].mxu0  ;;  %v816_v3 = vpop.f32.mrb[21].mxu1 }
 0x222   :  { %v822_v22 = vadd.f32 %v775_v1, %v9210_v37  ;;  %v824_v21 = vadd.f32 %v816_v3, %v9213_v44  ;;  %v777_v23 = vpop.f32.mrb[22].mxu0  ;;  %v818_v25 = vpop.f32.mrb[22].mxu1 }
 0x223   :  { %v6960_v24 = vmul.f32 -1.442695, %v821_v29  ;;  %v778_v26 = vpop.f32.mrb[23].mxu0  ;;  %v819_v15 = vpop.f32.mrb[23].mxu1 }
 0x224   :  { %v6961_v18 = vmul.f32 -1.442695, %v822_v22  ;;  %v6962_v27 = vmul.f32 -1.442695, %v824_v21  ;;  %v12780_v26 = vld [vmem:[#allocation7_spill] sm:$0xff] }
 0x225   :  { %8028 = vpow2.f32 %v6960_v24 }
 0x226   :  { %8030 = vpow2.f32 %v6961_v18 }
 0x227   :  { %8032 = vpow2.f32 %v6962_v27 }
 0x228   :  { %8034 = vtanh.f32 %v823_v45 }
 0x22f   :  { %v8029_v20 = vpop.eup %8028 }
 0x230   :  { %v8031_v28 = vpop.eup %8030  ;;  %v828_v31 = vadd.f32 1.0, %v8029_v20 }
 0x231   :  { %v834_v33 = vadd.f32 1.0, %v8031_v28  ;;  %v8033_v37 = vpop.eup %8032 }
 0x232   :  { %8036 = vrcp.f32 %v828_v31  ;;  %v8035_v30 = vpop.eup %8034  ;;  %v841_v7 = vadd.f32 1.0, %v8033_v37 }
 0x233   :  { %8038 = vrcp.f32 %v834_v33 }
 0x234   :  { %8040 = vrcp.f32 %v841_v7 }
 0x23c   :  { %v8037_v44 = vpop.eup %8036 }
 0x23d   :  { %v8039_v56 = vpop.eup %8038  ;;  %v845_v34 = vmul.f32 %v8037_v44, %v8035_v30 }
 0x23e   :  { %v844_v48 = vmul.f32 %v8039_v56, %v9279_v19  ;;  %v8041_v16 = vpop.eup %8040 }
 0x240   :  { %v9325_v14 = vadd.f32 %v845_v34, %v844_v48 }
 0x242   :  { %8042 = vtanh.f32 %v9325_v14 }
 0x24c   :  { %v8043_v29 = vpop.eup %8042 }
 0x24d   :  { %v9328_v1 = vmul.f32 %v8043_v29, %v8041_v16 }
 0x24f   :  { %v849_v45 = vpack.c.bf16 %v9328_v1, %v9328_v1 }
 0x251   :  { %883 = vmatmul.mubr.bf16.vlgmr.msra.gmra.mrb[24].mxu0 %v849_v45  ;;  %924 = vmatmul.mubr.bf16.vlgmr.msra.gmra.mrb[24].mxu1 %v849_v45 }
 0x252   :  { %962 = vmatpush1.bf16.msra.mxu0 %v8932_v38  ;;  %1003 = vmatpush1.bf16.msra.mxu1 %v8937_v39 }
 0x253   :  { %963 = vmatprep.subr.bf16.mxu0 %v8944_v40  ;;  %1004 = vmatprep.subr.bf16.mxu1 %v8949_v41 }
 0x254   :  { %993 = vmatprep.mubr.bf16.mxu0 %v12779_v17  ;;  %1034 = vmatprep.mubr.bf16.mxu1 %v12779_v17 }
 0x256   :  { %964 = vmatpush1.bf16.msra.mxu0 %v8954_v42  ;;  %1005 = vmatpush1.bf16.msra.mxu1 %v8959_v43 }
 0x257   :  { %965 = vmatprep.subr.bf16.mxu0 %v8972_v46  ;;  %1006 = vmatprep.subr.bf16.mxu1 %v8979_v47 }
 0x25a   :  { %966 = vmatpush1.bf16.msra.mxu0 %v8986_v49  ;;  %1007 = vmatpush1.bf16.msra.mxu1 %v8991_v50 }
 0x25b   :  { %967 = vmatprep.subr.bf16.mxu0 %v8998_v51  ;;  %1008 = vmatprep.subr.bf16.mxu1 %v9005_v52 }
 0x25e   :  { %968 = vmatpush1.bf16.msra.mxu0 %v9010_v53  ;;  %1009 = vmatpush1.bf16.msra.mxu1 %v9015_v54 }
 0x25f   :  { %969 = vmatprep.subr.bf16.mxu0 %v9030_v57  ;;  %1010 = vmatprep.subr.bf16.mxu1 %v9035_v58 }
 0x262   :  { %970 = vmatpush1.bf16.msra.mxu0 %v9044_v60  ;;  %1011 = vmatpush1.bf16.msra.mxu1 %v9049_v61 }
 0x263   :  { %971 = vmatprep.subr.bf16.mxu0 %v9056_v62  ;;  %1012 = vmatprep.subr.bf16.mxu1 %v9061_v63 }
 0x266   :  { %972 = vmatpush1.bf16.msra.mxu0 %v9066_v0  ;;  %1013 = vmatpush1.bf16.msra.mxu1 %v9073_v2 }
 0x267   :  { %973 = vmatprep.subr.bf16.mxu0 %v9086_v5  ;;  %1014 = vmatprep.subr.bf16.mxu1 %v9091_v6 }
 0x26a   :  { %974 = vmatpush1.bf16.msra.mxu0 %v9100_v8  ;;  %1015 = vmatpush1.bf16.msra.mxu1 %v9105_v9 }
 0x26b   :  { %975 = vmatprep.subr.bf16.mxu0 %v9112_v10  ;;  %1016 = vmatprep.subr.bf16.mxu1 %v9117_v11 }
 0x26e   :  { %976 = vmatpush1.bf16.msra.mxu0 %v9124_v12  ;;  %1017 = vmatpush1.bf16.msra.mxu1 %v9129_v13 }
 0x26f   :  { %1072 = vmatprep.subr.bf16.mxu0 %v8922_v35  ;;  %1113 = vmatprep.subr.bf16.mxu1 %v8927_v36 }
 0x324   :  { %v884_v19 = vpop.f32.mrb[24].mxu0  ;;  %v925_v3 = vpop.f32.mrb[24].mxu1 }
 0x325   :  { %v932_v22 = vadd.f32 %v884_v19, %v9215_v55  ;;  %v934_v21 = vadd.f32 %v925_v3, %v9218_v59  ;;  %v886_v23 = vpop.f32.mrb[25].mxu0  ;;  %v927_v25 = vpop.f32.mrb[25].mxu1 }
 0x326   :  { %v933_v24 = vadd.f32 %v886_v23, %v9220_v4  ;;  %v935_v15 = vadd.f32 %v927_v25, %v12780_v26  ;;  %v888_v18 = vpop.f32.mrb[26].mxu0  ;;  %v929_v27 = vpop.f32.mrb[26].mxu1  ;;  %v12781_v25 = vld [vmem:[#allocation8_spill] sm:$0xff]  ;;  %v12782_v26 = vld [vmem:[#allocation9_spill] sm:$0xff] }
 0x327   :  { %v6963_v20 = vmul.f32 -1.442695, %v932_v22  ;;  %v889_v28 = vpop.f32.mrb[27].mxu0  ;;  %v930_v31 = vpop.f32.mrb[27].mxu1 }
 0x328   :  { %v6964_v33 = vmul.f32 -1.442695, %v933_v24  ;;  %v6965_v37 = vmul.f32 -1.442695, %v935_v15  ;;  %v12784_v31 = vld [vmem:[#allocation11_spill] sm:$0xff] }
 0x329   :  { %8044 = vpow2.f32 %v6963_v20  ;;  %v12783_v20 = vld [vmem:[#allocation10_spill] sm:$0xff] }
 0x32a   :  { %8046 = vpow2.f32 %v6964_v33 }
 0x32b   :  { %8048 = vpow2.f32 %v6965_v37 }
 0x32c   :  { %8050 = vtanh.f32 %v934_v21 }
 0x333   :  { %v8045_v30 = vpop.eup %8044 }
 0x334   :  { %v8047_v44 = vpop.eup %8046  ;;  %v939_v55 = vadd.f32 1.0, %v8045_v30 }
 0x335   :  { %v945_v59 = vadd.f32 1.0, %v8047_v44  ;;  %v8049_v4 = vpop.eup %8048 }
 0x336   :  { %8052 = vrcp.f32 %v939_v55  ;;  %v8051_v56 = vpop.eup %8050  ;;  %v952_v16 = vadd.f32 1.0, %v8049_v4 }
 0x337   :  { %8054 = vrcp.f32 %v945_v59 }
 0x338   :  { %8056 = vrcp.f32 %v952_v16 }
 0x340   :  { %v8053_v34 = vpop.eup %8052 }
 0x341   :  { %v8055_v7 = vpop.eup %8054  ;;  %v956_v48 = vmul.f32 %v8053_v34, %v8051_v56 }
 0x342   :  { %v955_v29 = vmul.f32 %v8055_v7, %v9325_v14  ;;  %v8057_v19 = vpop.eup %8056 }
 0x344   :  { %v9371_v45 = vadd.f32 %v956_v48, %v955_v29 }
 0x346   :  { %8058 = vtanh.f32 %v9371_v45 }
 0x350   :  { %v8059_v3 = vpop.eup %8058 }
 0x351   :  { %v9374_v22 = vmul.f32 %v8059_v3, %v8057_v19 }
 0x353   :  { %v960_v21 = vpack.c.bf16 %v9374_v22, %v9374_v22 }
 0x355   :  { %994 = vmatmul.mubr.bf16.vlgmr.msra.gmra.mrb[28].mxu0 %v960_v21  ;;  %1035 = vmatmul.mubr.bf16.vlgmr.msra.gmra.mrb[28].mxu1 %v960_v21 }
 0x356   :  { %1073 = vmatpush1.bf16.msra.mxu0 %v8932_v38  ;;  %1114 = vmatpush1.bf16.msra.mxu1 %v8937_v39 }
 0x357   :  { %1074 = vmatprep.subr.bf16.mxu0 %v8944_v40  ;;  %1115 = vmatprep.subr.bf16.mxu1 %v8949_v41 }
 0x358   :  { %1104 = vmatprep.mubr.bf16.mxu0 %v12779_v17  ;;  %1145 = vmatprep.mubr.bf16.mxu1 %v12779_v17 }
 0x35a   :  { %1075 = vmatpush1.bf16.msra.mxu0 %v8954_v42  ;;  %1116 = vmatpush1.bf16.msra.mxu1 %v8959_v43 }
 0x35b   :  { %1076 = vmatprep.subr.bf16.mxu0 %v8972_v46  ;;  %1117 = vmatprep.subr.bf16.mxu1 %v8979_v47 }
 0x35e   :  { %1077 = vmatpush1.bf16.msra.mxu0 %v8986_v49  ;;  %1118 = vmatpush1.bf16.msra.mxu1 %v8991_v50 }
 0x35f   :  { %1078 = vmatprep.subr.bf16.mxu0 %v8998_v51  ;;  %1119 = vmatprep.subr.bf16.mxu1 %v9005_v52 }
 0x362   :  { %1079 = vmatpush1.bf16.msra.mxu0 %v9010_v53  ;;  %1120 = vmatpush1.bf16.msra.mxu1 %v9015_v54 }
 0x363   :  { %1080 = vmatprep.subr.bf16.mxu0 %v9030_v57  ;;  %1121 = vmatprep.subr.bf16.mxu1 %v9035_v58 }
 0x366   :  { %1081 = vmatpush1.bf16.msra.mxu0 %v9044_v60  ;;  %1122 = vmatpush1.bf16.msra.mxu1 %v9049_v61 }
 0x367   :  { %1082 = vmatprep.subr.bf16.mxu0 %v9056_v62  ;;  %1123 = vmatprep.subr.bf16.mxu1 %v9061_v63 }
 0x36a   :  { %1083 = vmatpush1.bf16.msra.mxu0 %v9066_v0  ;;  %1124 = vmatpush1.bf16.msra.mxu1 %v9073_v2 }
 0x36b   :  { %1084 = vmatprep.subr.bf16.mxu0 %v9086_v5  ;;  %1125 = vmatprep.subr.bf16.mxu1 %v9091_v6 }
 0x36e   :  { %1085 = vmatpush1.bf16.msra.mxu0 %v9100_v8  ;;  %1126 = vmatpush1.bf16.msra.mxu1 %v9105_v9 }
 0x36f   :  { %1086 = vmatprep.subr.bf16.mxu0 %v9112_v10  ;;  %1127 = vmatprep.subr.bf16.mxu1 %v9117_v11 }
 0x372   :  { %1087 = vmatpush1.bf16.msra.mxu0 %v9124_v12  ;;  %1128 = vmatpush1.bf16.msra.mxu1 %v9129_v13 }
 0x373   :  { %1183 = vmatprep.subr.bf16.mxu0 %v8922_v35  ;;  %1224 = vmatprep.subr.bf16.mxu1 %v8927_v36 }
 0x428   :  { %v995_v14 = vpop.f32.mrb[28].mxu0  ;;  %v1036_v23 = vpop.f32.mrb[28].mxu1 }
 0x429   :  { %v1043_v24 = vadd.f32 %v995_v14, %v12781_v25  ;;  %v1045_v15 = vadd.f32 %v1036_v23, %v12782_v26  ;;  %v997_v18 = vpop.f32.mrb[29].mxu0  ;;  %v1038_v27 = vpop.f32.mrb[29].mxu1 }
 0x42a   :  { %v1044_v28 = vadd.f32 %v997_v18, %v12783_v20  ;;  %v1046_v33 = vadd.f32 %v1038_v27, %v12784_v31  ;;  %v999_v37 = vpop.f32.mrb[30].mxu0  ;;  %v1040_v30 = vpop.f32.mrb[30].mxu1 }
 0x42b   :  { %v6966_v44 = vmul.f32 -1.442695, %v1043_v24  ;;  %v1000_v55 = vpop.f32.mrb[31].mxu0  ;;  %v1041_v59 = vpop.f32.mrb[31].mxu1 }
 0x42c   :  { %v6967_v35 = vmul.f32 -1.442695, %v1044_v28  ;;  %v6968_v36 = vmul.f32 -1.442695, %v1046_v33 }
 0x42d   :  { %8060 = vpow2.f32 %v6966_v44 }
 0x42e   :  { %8062 = vpow2.f32 %v6967_v35 }
 0x42f   :  { %8064 = vpow2.f32 %v6968_v36 }
 0x430   :  { %8066 = vtanh.f32 %v1045_v15 }
 0x437   :  { %v8061_v4 = vpop.eup %8060 }
 0x438   :  { %v8063_v56 = vpop.eup %8062  ;;  %v1050_v34 = vadd.f32 1.0, %v8061_v4 }
 0x439   :  { %v1056_v7 = vadd.f32 1.0, %v8063_v56  ;;  %v8065_v48 = vpop.eup %8064 }
 0x43a   :  { %8068 = vrcp.f32 %v1050_v34  ;;  %v8067_v16 = vpop.eup %8066  ;;  %v1063_v21 = vadd.f32 1.0, %v8065_v48  ;;  %v9489_v48 = vld [vmem:[%s12751_s25 + $0x8] ss:$16 sps:$4 sm:$0xff]  }
 0x43b   :  { %8070 = vrcp.f32 %v1056_v7  ;;  %v9483_v7 = vld [vmem:[%s12751_s25] ss:$16 sps:$4 sm:$0xff]  }
 0x43c   :  { %8072 = vrcp.f32 %v1063_v21  ;;  %v9521_v21 = vld [vmem:[%s12751_s25 + $0x44] ss:$16 sps:$4 sm:$0xff]  }
 0x444   :  { %v8069_v29 = vpop.eup %8068 }
 0x445   :  { %v8071_v19 = vpop.eup %8070  ;;  %v1067_v3 = vmul.f32 %v8069_v29, %v8067_v16  ;;  %v9495_v16 = vld [vmem:[%s12751_s25 + $0x24] ss:$16 sps:$4 sm:$0xff]   ;;  %v9501_v29 = vld [vmem:[%s12751_s25 + $0x2c] ss:$16 sps:$4 sm:$0xff]  }
 0x446   :  { %v1066_v14 = vmul.f32 %v8071_v19, %v9371_v45  ;;  %v8073_v25 = vpop.eup %8072  ;;  %v9509_v19 = vld [vmem:[%s12751_s25 + $0x20] ss:$16 sps:$4 sm:$0xff]  }
 0x448   :  { %v9417_v23 = vadd.f32 %v1067_v3, %v1066_v14  ;;  %v9515_v3 = vld [vmem:[%s12751_s25 + $0x28] ss:$16 sps:$4 sm:$0xff]   ;;  %v9527_v14 = vld [vmem:[%s12751_s25 + $0x4c] ss:$16 sps:$4 sm:$0xff]  }
 0x44a   :  { %8074 = vtanh.f32 %v9417_v23 }
 0x454   :  { %v8075_v24 = vpop.eup %8074 }
 0x455   :  { %v9420_v26 = vmul.f32 %v8075_v24, %v8073_v25  ;;  %v9539_v25 = vld [vmem:[%s12751_s25 + $0x48] ss:$16 sps:$4 sm:$0xff]   ;;  %v9545_v24 = vld [vmem:[%s12751_s25 + $0x64] ss:$16 sps:$4 sm:$0xff]  }
 0x457   :  { %v1071_v15 = vpack.c.bf16 %v9420_v26, %v9420_v26 }
 0x459   :  { %1105 = vmatmul.mubr.bf16.vlgmr.msra.gmra.mrb[32].mxu0 %v1071_v15  ;;  %1146 = vmatmul.mubr.bf16.vlgmr.msra.gmra.mrb[32].mxu1 %v1071_v15  ;;  %v9551_v15 = vld [vmem:[%s12751_s25 + $0x6c] ss:$16 sps:$4 sm:$0xff]  }
 0x45a   :  { %1184 = vmatpush1.bf16.msra.mxu0 %v8932_v38  ;;  %1225 = vmatpush1.bf16.msra.mxu1 %v8937_v39  ;;  %v9459_v38 = vld [vmem:[%s12751_s25 + $0x4] ss:$16 sps:$4 sm:$0xff]   ;;  %v9465_v39 = vld [vmem:[%s12751_s25 + $0xc] ss:$16 sps:$4 sm:$0xff]  }
 0x45b   :  { %1185 = vmatprep.subr.bf16.mxu0 %v8944_v40  ;;  %1226 = vmatprep.subr.bf16.mxu1 %v8949_v41 }
 0x45c   :  { %1215 = vmatprep.mubr.bf16.mxu0 %v12779_v17  ;;  %1256 = vmatprep.mubr.bf16.mxu1 %v12779_v17 }
 0x45e   :  { %1186 = vmatpush1.bf16.msra.mxu0 %v8954_v42  ;;  %1227 = vmatpush1.bf16.msra.mxu1 %v8959_v43  ;;  %v12785_v42 = vld [vmem:[#allocation12_spill] sm:$0xff] }
 0x45f   :  { %1187 = vmatprep.subr.bf16.mxu0 %v8972_v46  ;;  %1228 = vmatprep.subr.bf16.mxu1 %v8979_v47  ;;  %v12786_v46 = vld [vmem:[#allocation13_spill] sm:$0xff] }
 0x462   :  { %1188 = vmatpush1.bf16.msra.mxu0 %v8986_v49  ;;  %1229 = vmatpush1.bf16.msra.mxu1 %v8991_v50 }
 0x463   :  { %1189 = vmatprep.subr.bf16.mxu0 %v8998_v51  ;;  %1230 = vmatprep.subr.bf16.mxu1 %v9005_v52  ;;  %v12787_v51 = vld [vmem:[#allocation14_spill] sm:$0xff] }
 0x466   :  { %1190 = vmatpush1.bf16.msra.mxu0 %v9010_v53  ;;  %1231 = vmatpush1.bf16.msra.mxu1 %v9015_v54  ;;  %v12788_v53 = vld [vmem:[#allocation15_spill] sm:$0xff] }
 0x467   :  { %1191 = vmatprep.subr.bf16.mxu0 %v9030_v57  ;;  %1232 = vmatprep.subr.bf16.mxu1 %v9035_v58 }
 0x46a   :  { %1192 = vmatpush1.bf16.msra.mxu0 %v9044_v60  ;;  %1233 = vmatpush1.bf16.msra.mxu1 %v9049_v61 }
 0x46b   :  { %1193 = vmatprep.subr.bf16.mxu0 %v9056_v62  ;;  %1234 = vmatprep.subr.bf16.mxu1 %v9061_v63 }
 0x46e   :  { %1194 = vmatpush1.bf16.msra.mxu0 %v9066_v0  ;;  %1235 = vmatpush1.bf16.msra.mxu1 %v9073_v2 }
 0x46f   :  { %1195 = vmatprep.subr.bf16.mxu0 %v9086_v5  ;;  %1236 = vmatprep.subr.bf16.mxu1 %v9091_v6 }
 0x472   :  { %1196 = vmatpush1.bf16.msra.mxu0 %v9100_v8  ;;  %1237 = vmatpush1.bf16.msra.mxu1 %v9105_v9 }
 0x473   :  { %1197 = vmatprep.subr.bf16.mxu0 %v9112_v10  ;;  %1238 = vmatprep.subr.bf16.mxu1 %v9117_v11 }
 0x476   :  { %1198 = vmatpush1.bf16.msra.mxu0 %v9124_v12  ;;  %1239 = vmatpush1.bf16.msra.mxu1 %v9129_v13 }
 0x477   :  { %1294 = vmatprep.subr.bf16.mxu0 %v9459_v38  ;;  %1335 = vmatprep.subr.bf16.mxu1 %v9465_v39 }
 0x52c   :  { %v1106_v40 = vpop.f32.mrb[32].mxu0  ;;  %v1147_v41 = vpop.f32.mrb[32].mxu1 }
 0x52d   :  { %v1154_v43 = vadd.f32 %v1106_v40, %v12785_v42  ;;  %v1156_v47 = vadd.f32 %v1147_v41, %v12786_v46  ;;  %v1108_v49 = vpop.f32.mrb[33].mxu0  ;;  %v1149_v50 = vpop.f32.mrb[33].mxu1  ;;  %v9557_v40 = vld [vmem:[%s12751_s25 + $0x60] ss:$16 sps:$4 sm:$0xff]   ;;  %v9563_v41 = vld [vmem:[%s12751_s25 + $0x68] ss:$16 sps:$4 sm:$0xff]  }
 0x52e   :  { %v1155_v52 = vadd.f32 %v1108_v49, %v12787_v51  ;;  %v1157_v54 = vadd.f32 %v1149_v50, %v12788_v53  ;;  %v1110_v57 = vpop.f32.mrb[34].mxu0  ;;  %v1151_v58 = vpop.f32.mrb[34].mxu1  ;;  %v9569_v42 = vld [vmem:[%s12751_s25 + $0x84] ss:$16 sps:$4 sm:$0xff]   ;;  %v9581_v46 = vld [vmem:[%s12751_s25 + $0x80] ss:$16 sps:$4 sm:$0xff]  }
 0x52f   :  { %v6969_v60 = vmul.f32 -1.442695, %v1154_v43  ;;  %v1111_v61 = vpop.f32.mrb[35].mxu0  ;;  %v1152_v62 = vpop.f32.mrb[35].mxu1  ;;  %v9575_v43 = vld [vmem:[%s12751_s25 + $0x8c] ss:$16 sps:$4 sm:$0xff]  }
 0x530   :  { %v6970_v63 = vmul.f32 -1.442695, %v1155_v52  ;;  %v6971_v45 = vmul.f32 -1.442695, %v1157_v54  ;;  %v9593_v49 = vld [vmem:[%s12751_s25 + $0xa4] ss:$16 sps:$4 sm:$0xff]  }
 0x531   :  { %8076 = vpow2.f32 %v6969_v60  ;;  %v9599_v50 = vld [vmem:[%s12751_s25 + $0xac] ss:$16 sps:$4 sm:$0xff]   ;;  %v12791_v53 = vld [vmem:[#allocation18_spill] sm:$0xff] }
 0x532   :  { %8078 = vpow2.f32 %v6970_v63  ;;  %v12790_v51 = vld [vmem:[#allocation17_spill] sm:$0xff]  ;;  %v12792_v54 = vld [vmem:[#allocation19_spill] sm:$0xff] }
 0x533   :  { %8080 = vpow2.f32 %v6971_v45 }
 0x534   :  { %8082 = vtanh.f32 %v1156_v47  ;;  %v9587_v47 = vld [vmem:[%s12751_s25 + $0x88] ss:$16 sps:$4 sm:$0xff]  }
 0x53b   :  { %v8077_v18 = vpop.eup %8076 }
 0x53c   :  { %v8079_v27 = vpop.eup %8078  ;;  %v1161_v20 = vadd.f32 1.0, %v8077_v18 }
 0x53d   :  { %v1167_v28 = vadd.f32 1.0, %v8079_v27  ;;  %v8081_v31 = vpop.eup %8080 }
 0x53e   :  { %8084 = vrcp.f32 %v1161_v20  ;;  %v8083_v33 = vpop.eup %8082  ;;  %v1174_v55 = vadd.f32 1.0, %v8081_v31 }
 0x53f   :  { %8086 = vrcp.f32 %v1167_v28 }
 0x540   :  { %8088 = vrcp.f32 %v1174_v55 }
 0x548   :  { %v8085_v37 = vpop.eup %8084 }
 0x549   :  { %v8087_v30 = vpop.eup %8086  ;;  %v1178_v44 = vmul.f32 %v8085_v37, %v8083_v33 }
 0x54a   :  { %v1177_v59 = vmul.f32 %v8087_v30, %v9417_v23  ;;  %v8089_v36 = vpop.eup %8088  ;;  %v9533_v23 = vld [vmem:[%s12751_s25 + $0x40] ss:$16 sps:$4 sm:$0xff]  }
 0x54c   :  { %v9473_v35 = vadd.f32 %v1178_v44, %v1177_v59 }
 0x54e   :  { %8090 = vtanh.f32 %v9473_v35 }
 0x558   :  { %v8091_v4 = vpop.eup %8090 }
 0x559   :  { %v9476_v56 = vmul.f32 %v8091_v4, %v8089_v36  ;;  %v8579_v4 = vld [vmem:[%s12751_s25 + $0xa8] ss:$16 sps:$4 sm:$0xff]  }
 0x55b   :  { %v1182_v34 = vpack.c.bf16 %v9476_v56, %v9476_v56 }
 0x55d   :  { %1216 = vmatmul.mubr.bf16.vlgmr.msra.gmra.mrb[36].mxu0 %v1182_v34  ;;  %1257 = vmatmul.mubr.bf16.vlgmr.msra.gmra.mrb[36].mxu1 %v1182_v34  ;;  %v8580_v34 = vld [vmem:[%s12751_s25 + $0xc4] ss:$16 sps:$4 sm:$0xff]  }
 0x55e   :  { %1295 = vmatpush1.bf16.msra.mxu0 %v9483_v7  ;;  %1336 = vmatpush1.bf16.msra.mxu1 %v9489_v48 }
 0x55f   :  { %1296 = vmatprep.subr.bf16.mxu0 %v9495_v16  ;;  %1337 = vmatprep.subr.bf16.mxu1 %v9501_v29 }
 0x560   :  { %1326 = vmatprep.mubr.bf16.mxu0 %v12779_v17  ;;  %1367 = vmatprep.mubr.bf16.mxu1 %v12779_v17 }
 0x562   :  { %1297 = vmatpush1.bf16.msra.mxu0 %v9509_v19  ;;  %1338 = vmatpush1.bf16.msra.mxu1 %v9515_v3 }
 0x563   :  { %1298 = vmatprep.subr.bf16.mxu0 %v9521_v21  ;;  %1339 = vmatprep.subr.bf16.mxu1 %v9527_v14 }
 0x566   :  { %1299 = vmatpush1.bf16.msra.mxu0 %v9533_v23  ;;  %1340 = vmatpush1.bf16.msra.mxu1 %v9539_v25 }
 0x567   :  { %1300 = vmatprep.subr.bf16.mxu0 %v9545_v24  ;;  %1341 = vmatprep.subr.bf16.mxu1 %v9551_v15 }
 0x56a   :  { %1301 = vmatpush1.bf16.msra.mxu0 %v9557_v40  ;;  %1342 = vmatpush1.bf16.msra.mxu1 %v9563_v41 }
 0x56b   :  { %1302 = vmatprep.subr.bf16.mxu0 %v9569_v42  ;;  %1343 = vmatprep.subr.bf16.mxu1 %v9575_v43 }
 0x56e   :  { %1303 = vmatpush1.bf16.msra.mxu0 %v9581_v46  ;;  %1344 = vmatpush1.bf16.msra.mxu1 %v9587_v47 }
 0x56f   :  { %1304 = vmatprep.subr.bf16.mxu0 %v9593_v49  ;;  %1345 = vmatprep.subr.bf16.mxu1 %v9599_v50 }
 0x572   :  { %1305 = vmatpush1.bf16.msra.mxu0 %v9066_v0  ;;  %1346 = vmatpush1.bf16.msra.mxu1 %v9073_v2 }
 0x573   :  { %1306 = vmatprep.subr.bf16.mxu0 %v9086_v5  ;;  %1347 = vmatprep.subr.bf16.mxu1 %v9091_v6  ;;  %v12789_v5 = vld [vmem:[#allocation16_spill] sm:$0xff] }
 0x576   :  { %1307 = vmatpush1.bf16.msra.mxu0 %v9100_v8  ;;  %1348 = vmatpush1.bf16.msra.mxu1 %v9105_v9 }
 0x577   :  { %1308 = vmatprep.subr.bf16.mxu0 %v9112_v10  ;;  %1349 = vmatprep.subr.bf16.mxu1 %v9117_v11 }
 0x57a   :  { %1309 = vmatpush1.bf16.msra.mxu0 %v9124_v12  ;;  %1350 = vmatpush1.bf16.msra.mxu1 %v9129_v13 }
 0x57b   :  { %1405 = vmatprep.subr.bf16.mxu0 %v9459_v38  ;;  %1446 = vmatprep.subr.bf16.mxu1 %v9465_v39 }
 0x630   :  { %v1217_v0 = vpop.f32.mrb[36].mxu0  ;;  %v1258_v2 = vpop.f32.mrb[36].mxu1 }
 0x631   :  { %v1265_v6 = vadd.f32 %v1217_v0, %v12789_v5  ;;  %v1267_v8 = vadd.f32 %v1258_v2, %v12790_v51  ;;  %v1219_v52 = vpop.f32.mrb[37].mxu0  ;;  %v1260_v9 = vpop.f32.mrb[37].mxu1 }
 0x632   :  { %v1266_v10 = vadd.f32 %v1219_v52, %v12791_v53  ;;  %v1268_v11 = vadd.f32 %v1260_v9, %v12792_v54  ;;  %v1221_v57 = vpop.f32.mrb[38].mxu0  ;;  %v1262_v12 = vpop.f32.mrb[38].mxu1 }
 0x633   :  { %v6972_v58 = vmul.f32 -1.442695, %v1265_v6  ;;  %v1222_v13 = vpop.f32.mrb[39].mxu0  ;;  %v1263_v60 = vpop.f32.mrb[39].mxu1 }
 0x634   :  { %v6973_v38 = vmul.f32 -1.442695, %v1266_v10  ;;  %v6974_v39 = vmul.f32 -1.442695, %v1268_v11 }
 0x635   :  { %8092 = vpow2.f32 %v6972_v58 }
 0x636   :  { %8094 = vpow2.f32 %v6973_v38 }
 0x637   :  { %8096 = vpow2.f32 %v6974_v39 }
 0x638   :  { %8098 = vtanh.f32 %v1267_v8 }
 0x63f   :  { %v8093_v61 = vpop.eup %8092 }
 0x640   :  { %v8095_v62 = vpop.eup %8094  ;;  %v1272_v63 = vadd.f32 1.0, %v8093_v61 }
 0x641   :  { %v1278_v45 = vadd.f32 1.0, %v8095_v62  ;;  %v8097_v18 = vpop.eup %8096 }
 0x642   :  { %8100 = vrcp.f32 %v1272_v63  ;;  %v8099_v27 = vpop.eup %8098  ;;  %v1285_v33 = vadd.f32 1.0, %v8097_v18  ;;  %v7692_v18 = vld [vmem:[%s12793_s27] ss:$16 sps:$4 sm:$0xff]  }
 0x643   :  { %8102 = vrcp.f32 %v1278_v45 }
 0x644   :  { %8104 = vrcp.f32 %v1285_v33  ;;  %v7698_v33 = vld [vmem:[%s12793_s27 + $0x20] ss:$16 sps:$4 sm:$0xff]  }
 0x64c   :  { %v8101_v20 = vpop.eup %8100 }
 0x64d   :  { %v8103_v28 = vpop.eup %8102  ;;  %v1289_v31 = vmul.f32 %v8101_v20, %v8099_v27  ;;  %v7695_v27 = vld [vmem:[%s12793_s27 + $0x8] ss:$16 sps:$4 sm:$0xff]  }
 0x64e   :  { %v1288_v37 = vmul.f32 %v8103_v28, %v9473_v35  ;;  %v8105_v44 = vpop.eup %8104  ;;  %v8578_v35 = vld [vmem:[%s12751_s25 + $0xa0] ss:$16 sps:$4 sm:$0xff]   ;;  %v7700_v28 = vld [vmem:[%s12793_s27 + $0x24] ss:$16 sps:$4 sm:$0xff]  }
 0x650   :  { %v9619_v30 = vadd.f32 %v1289_v31, %v1288_v37  ;;  %v7703_v31 = vld [vmem:[%s12793_s27 + $0x2c] ss:$16 sps:$4 sm:$0xff]   ;;  %v7701_v37 = vld [vmem:[%s12793_s27 + $0x28] ss:$16 sps:$4 sm:$0xff]  }
 0x652   :  { %8106 = vtanh.f32 %v9619_v30 }
 0x65c   :  { %v8107_v55 = vpop.eup %8106 }
 0x65d   :  { %v9622_v59 = vmul.f32 %v8107_v55, %v8105_v44  ;;  %v7709_v44 = vld [vmem:[%s12793_s27 + $0x4c] ss:$16 sps:$4 sm:$0xff]   ;;  %v7704_v55 = vld [vmem:[%s12793_s27 + $0x40] ss:$16 sps:$4 sm:$0xff]  }
 0x65f   :  { %v1293_v36 = vpack.c.bf16 %v9622_v59, %v9622_v59 }
 0x661   :  { %1327 = vmatmul.mubr.bf16.vlgmr.msra.gmra.mrb[40].mxu0 %v1293_v36  ;;  %1368 = vmatmul.mubr.bf16.vlgmr.msra.gmra.mrb[40].mxu1 %v1293_v36  ;;  %v7707_v36 = vld [vmem:[%s12793_s27 + $0x48] ss:$16 sps:$4 sm:$0xff]  }
 0x662   :  { %1406 = vmatpush1.bf16.msra.mxu0 %v9483_v7  ;;  %1447 = vmatpush1.bf16.msra.mxu1 %v9489_v48  ;;  %v8581_v7 = vld [vmem:[%s12751_s25 + $0xcc] ss:$16 sps:$4 sm:$0xff]   ;;  %v8582_v48 = vld [vmem:[%s12751_s25 + $0xc0] ss:$16 sps:$4 sm:$0xff]  }
 0x663   :  { %1407 = vmatprep.subr.bf16.mxu0 %v9495_v16  ;;  %1448 = vmatprep.subr.bf16.mxu1 %v9501_v29  ;;  %v8583_v16 = vld [vmem:[%s12751_s25 + $0xc8] ss:$16 sps:$4 sm:$0xff]   ;;  %v8584_v29 = vld [vmem:[%s12751_s25 + $0xe4] ss:$16 sps:$4 sm:$0xff]  }
 0x664   :  { %1437 = vmatprep.mubr.bf16.mxu0 %v12779_v17  ;;  %1478 = vmatprep.mubr.bf16.mxu1 %v12779_v17 }
 0x666   :  { %1408 = vmatpush1.bf16.msra.mxu0 %v9509_v19  ;;  %1449 = vmatpush1.bf16.msra.mxu1 %v9515_v3  ;;  %v8585_v19 = vld [vmem:[%s12751_s25 + $0xec] ss:$16 sps:$4 sm:$0xff]   ;;  %v8586_v3 = vld [vmem:[%s12751_s25 + $0xe0] ss:$16 sps:$4 sm:$0xff]  }
 0x667   :  { %1409 = vmatprep.subr.bf16.mxu0 %v9521_v21  ;;  %1450 = vmatprep.subr.bf16.mxu1 %v9527_v14  ;;  %v8587_v21 = vld [vmem:[%s12751_s25 + $0xe8] ss:$16 sps:$4 sm:$0xff]   ;;  %v7694_v14 = vld [vmem:[%s12793_s27 + $0x4] ss:$16 sps:$4 sm:$0xff]  }
 0x66a   :  { %1410 = vmatpush1.bf16.msra.mxu0 %v9533_v23  ;;  %1451 = vmatpush1.bf16.msra.mxu1 %v9539_v25  ;;  %v7697_v23 = vld [vmem:[%s12793_s27 + $0xc] ss:$16 sps:$4 sm:$0xff]  }
 0x66b   :  { %1411 = vmatprep.subr.bf16.mxu0 %v9545_v24  ;;  %1452 = vmatprep.subr.bf16.mxu1 %v9551_v15  ;;  %v12794_v15 = vld [vmem:[#allocation20_spill] sm:$0xff] }
 0x66e   :  { %1412 = vmatpush1.bf16.msra.mxu0 %v9557_v40  ;;  %1453 = vmatpush1.bf16.msra.mxu1 %v9563_v41  ;;  %v12795_v41 = vld [vmem:[#allocation21_spill] sm:$0xff] }
 0x66f   :  { %1413 = vmatprep.subr.bf16.mxu0 %v9569_v42  ;;  %1454 = vmatprep.subr.bf16.mxu1 %v9575_v43 }
 0x672   :  { %1414 = vmatpush1.bf16.msra.mxu0 %v9581_v46  ;;  %1455 = vmatpush1.bf16.msra.mxu1 %v9587_v47  ;;  %v12796_v47 = vld [vmem:[#allocation22_spill] sm:$0xff] }
 0x673   :  { %1415 = vmatprep.subr.bf16.mxu0 %v9593_v49  ;;  %1456 = vmatprep.subr.bf16.mxu1 %v9599_v50  ;;  %v12797_v50 = vld [vmem:[#allocation23_spill] sm:$0xff] }
 0x676   :  { %1416 = vmatpush1.bf16.msra.mxu0 %v8578_v35  ;;  %1457 = vmatpush1.bf16.msra.mxu1 %v8579_v4  ;;  %v7712_v35 = vld [vmem:[%s12793_s27 + $0x64] ss:$16 sps:$4 sm:$0xff]   ;;  %v7715_v4 = vld [vmem:[%s12793_s27 + $0x6c] ss:$16 sps:$4 sm:$0xff]  }
 0x677   :  { %1417 = vmatprep.subr.bf16.mxu0 %v8580_v34  ;;  %1458 = vmatprep.subr.bf16.mxu1 %v8581_v7  ;;  %v7710_v34 = vld [vmem:[%s12793_s27 + $0x60] ss:$16 sps:$4 sm:$0xff]   ;;  %v7713_v7 = vld [vmem:[%s12793_s27 + $0x68] ss:$16 sps:$4 sm:$0xff]  }
 0x67a   :  { %1418 = vmatpush1.bf16.msra.mxu0 %v8582_v48  ;;  %1459 = vmatpush1.bf16.msra.mxu1 %v8583_v16  ;;  %v7718_v48 = vld [vmem:[%s12793_s27 + $0x84] ss:$16 sps:$4 sm:$0xff]   ;;  %v7721_v16 = vld [vmem:[%s12793_s27 + $0x8c] ss:$16 sps:$4 sm:$0xff]  }
 0x67b   :  { %1419 = vmatprep.subr.bf16.mxu0 %v8584_v29  ;;  %1460 = vmatprep.subr.bf16.mxu1 %v8585_v19  ;;  %v7716_v29 = vld [vmem:[%s12793_s27 + $0x80] ss:$16 sps:$4 sm:$0xff]   ;;  %v7719_v19 = vld [vmem:[%s12793_s27 + $0x88] ss:$16 sps:$4 sm:$0xff]  }
 0x67e   :  { %1420 = vmatpush1.bf16.msra.mxu0 %v8586_v3  ;;  %1461 = vmatpush1.bf16.msra.mxu1 %v8587_v21  ;;  %v7724_v3 = vld [vmem:[%s12793_s27 + $0xa4] ss:$16 sps:$4 sm:$0xff]   ;;  %v7727_v21 = vld [vmem:[%s12793_s27 + $0xac] ss:$16 sps:$4 sm:$0xff]  }
 0x67f   :  { %1733 = vmatprep.subr.bf16.mxu0 %v7694_v14  ;;  %1806 = vmatprep.subr.bf16.mxu1 %v7697_v23  ;;  %v7722_v14 = vld [vmem:[%s12793_s27 + $0xa0] ss:$16 sps:$4 sm:$0xff]   ;;  %v7725_v23 = vld [vmem:[%s12793_s27 + $0xa8] ss:$16 sps:$4 sm:$0xff]  }
 0x734   :  { %v1328_v25 = vpop.f32.mrb[40].mxu0  ;;  %v1369_v24 = vpop.f32.mrb[40].mxu1 }
 0x735   :  { %v1376_v40 = vadd.f32 %v1328_v25, %v12794_v15  ;;  %v1378_v42 = vadd.f32 %v1369_v24, %v12795_v41  ;;  %v1330_v43 = vpop.f32.mrb[41].mxu0  ;;  %v1371_v46 = vpop.f32.mrb[41].mxu1  ;;  %v7730_v25 = vld [vmem:[%s12793_s27 + $0xc4] ss:$16 sps:$4 sm:$0xff]   ;;  %v7733_v24 = vld [vmem:[%s12793_s27 + $0xcc] ss:$16 sps:$4 sm:$0xff]  }
 0x736   :  { %v1377_v49 = vadd.f32 %v1330_v43, %v12796_v47  ;;  %v1379_v0 = vadd.f32 %v1371_v46, %v12797_v50  ;;  %v1332_v2 = vpop.f32.mrb[42].mxu0  ;;  %v1373_v5 = vpop.f32.mrb[42].mxu1  ;;  %v7728_v15 = vld [vmem:[%s12793_s27 + $0xc0] ss:$16 sps:$4 sm:$0xff]   ;;  %v7736_v41 = vld [vmem:[%s12793_s27 + $0xe4] ss:$16 sps:$4 sm:$0xff]   ;;  %v1515_v47 = vpack.c.bf16 %v9328_v1, %v9282_v32  ;;  %v1517_v50 = vpack.c.bf16 %v9622_v59, %v9476_v56 }
 0x737   :  { %v6975_v6 = vmul.f32 -1.442695, %v1376_v40  ;;  %v1333_v51 = vpop.f32.mrb[43].mxu0  ;;  %v1374_v8 = vpop.f32.mrb[43].mxu1  ;;  %v7731_v40 = vld [vmem:[%s12793_s27 + $0xc8] ss:$16 sps:$4 sm:$0xff]  }
 0x738   :  { %v6976_v52 = vmul.f32 -1.442695, %v1377_v49  ;;  %v6977_v9 = vmul.f32 -1.442695, %v1379_v0  ;;  %v7734_v43 = vld [vmem:[%s12793_s27 + $0xe0] ss:$16 sps:$4 sm:$0xff]   ;;  %v1516_v49 = vpack.c.bf16 %v9420_v26, %v9374_v22 }
 0x739   :  { %8108 = vpow2.f32 %v6975_v6  ;;  %v7737_v46 = vld [vmem:[%s12793_s27 + $0xe8] ss:$16 sps:$4 sm:$0xff]   ;;  %v9803_v32 = vld [vmem:[%s12798_s24 + $0x4] ss:$16 sps:$4 sm:$0xff]   ;;  %v9808_v1 = vld [vmem:[%s12798_s24 + $0xc] ss:$16 sps:$4 sm:$0xff]  }
 0x73a   :  { %8110 = vpow2.f32 %v6976_v52  ;;  %v9814_v22 = vld [vmem:[%s12798_s24] ss:$16 sps:$4 sm:$0xff]   ;;  %v9819_v26 = vld [vmem:[%s12798_s24 + $0x8] ss:$16 sps:$4 sm:$0xff]   ;;  %v9827_v56 = vld [vmem:[%s12798_s24 + $0x24] ss:$16 sps:$4 sm:$0xff]  }
 0x73b   :  { %8112 = vpow2.f32 %v6977_v9  ;;  %v9832_v59 = vld [vmem:[%s12798_s24 + $0x2c] ss:$16 sps:$4 sm:$0xff]   ;;  %v9837_v0 = vld [vmem:[%s12798_s24 + $0x20] ss:$16 sps:$4 sm:$0xff]   ;;  %v9842_v2 = vld [vmem:[%s12798_s24 + $0x28] ss:$16 sps:$4 sm:$0xff]  }
 0x73c   :  { %8114 = vtanh.f32 %v1378_v42  ;;  %v7739_v42 = vld [vmem:[%s12793_s27 + $0xec] ss:$16 sps:$4 sm:$0xff]   ;;  %v9851_v5 = vld [vmem:[%s12798_s24 + $0x44] ss:$16 sps:$4 sm:$0xff]   ;;  %v9861_v51 = vld [vmem:[%s12798_s24 + $0x40] ss:$16 sps:$4 sm:$0xff]  }
 0x73d   :  { %v9856_v6 = vld [vmem:[%s12798_s24 + $0x4c] ss:$16 sps:$4 sm:$0xff]   ;;  %v9866_v8 = vld [vmem:[%s12798_s24 + $0x48] ss:$16 sps:$4 sm:$0xff]   ;;  %v9875_v52 = vld [vmem:[%s12798_s24 + $0x64] ss:$16 sps:$4 sm:$0xff]  }
 0x73e   :  { %v9880_v9 = vld [vmem:[%s12798_s24 + $0x6c] ss:$16 sps:$4 sm:$0xff]  }
 0x743   :  { %v8109_v53 = vpop.eup %8108 }
 0x744   :  { %v8111_v10 = vpop.eup %8110  ;;  %v1383_v54 = vadd.f32 1.0, %v8109_v53  ;;  %v9885_v53 = vld [vmem:[%s12798_s24 + $0x60] ss:$16 sps:$4 sm:$0xff]  }
 0x745   :  { %v1389_v11 = vadd.f32 1.0, %v8111_v10  ;;  %v8113_v57 = vpop.eup %8112  ;;  %v9890_v10 = vld [vmem:[%s12798_s24 + $0x68] ss:$16 sps:$4 sm:$0xff]  }
 0x746   :  { %8116 = vrcp.f32 %v1383_v54  ;;  %v8115_v12 = vpop.eup %8114  ;;  %v1396_v38 = vadd.f32 1.0, %v8113_v57  ;;  %v9899_v54 = vld [vmem:[%s12798_s24 + $0x84] ss:$16 sps:$4 sm:$0xff]   ;;  %v9909_v57 = vld [vmem:[%s12798_s24 + $0x80] ss:$16 sps:$4 sm:$0xff]  }
 0x747   :  { %8118 = vrcp.f32 %v1389_v11  ;;  %v9904_v11 = vld [vmem:[%s12798_s24 + $0x8c] ss:$16 sps:$4 sm:$0xff]  }
 0x748   :  { %8120 = vrcp.f32 %v1396_v38  ;;  %v9938_v38 = vld [vmem:[%s12798_s24 + $0xa8] ss:$16 sps:$4 sm:$0xff]  }
 0x750   :  { %v8117_v58 = vpop.eup %8116 }
 0x751   :  { %v8119_v13 = vpop.eup %8118  ;;  %v1400_v60 = vmul.f32 %v8117_v58, %v8115_v12  ;;  %v9914_v12 = vld [vmem:[%s12798_s24 + $0x88] ss:$16 sps:$4 sm:$0xff]   ;;  %v9923_v58 = vld [vmem:[%s12798_s24 + $0xa4] ss:$16 sps:$4 sm:$0xff]  }
 0x752   :  { %v1399_v39 = vmul.f32 %v8119_v13, %v9619_v30  ;;  %v8121_v62 = vpop.eup %8120  ;;  %v7706_v30 = vld [vmem:[%s12793_s27 + $0x44] ss:$16 sps:$4 sm:$0xff]   ;;  %v9928_v13 = vld [vmem:[%s12798_s24 + $0xac] ss:$16 sps:$4 sm:$0xff]  }
 0x754   :  { %v9689_v61 = vadd.f32 %v1400_v60, %v1399_v39  ;;  %v9933_v60 = vld [vmem:[%s12798_s24 + $0xa0] ss:$16 sps:$4 sm:$0xff]   ;;  %v9947_v39 = vld [vmem:[%s12798_s24 + $0xc4] ss:$16 sps:$4 sm:$0xff]  }
 0x756   :  { %8122 = vtanh.f32 %v9689_v61 }
 0x760   :  { %v8123_v63 = vpop.eup %8122 }
 0x761   :  { %v9692_v45 = vmul.f32 %v8123_v63, %v8121_v62  ;;  %v9952_v62 = vld [vmem:[%s12798_s24 + $0xcc] ss:$16 sps:$4 sm:$0xff]   ;;  %v9957_v63 = vld [vmem:[%s12798_s24 + $0xc0] ss:$16 sps:$4 sm:$0xff]  }
 0x763   :  { %v1404_v20 = vpack.c.bf16 %v9692_v45, %v9692_v45 }
 0x765   :  { %1438 = vmatmul.mubr.bf16.vlgmr.msra.gmra.mrb[44].mxu0 %v1404_v20  ;;  %1479 = vmatmul.mubr.bf16.vlgmr.msra.gmra.mrb[44].mxu1 %v1404_v20  ;;  %v9976_v20 = vld [vmem:[%s12798_s24 + $0xec] ss:$16 sps:$4 sm:$0xff]  }
 0x766   :  { %1734 = vmatpush1.bf16.msra.mxu0 %v7692_v18  ;;  %1807 = vmatpush1.bf16.msra.mxu1 %v7695_v27  ;;  %v9962_v18 = vld [vmem:[%s12798_s24 + $0xc8] ss:$16 sps:$4 sm:$0xff]   ;;  %v9971_v27 = vld [vmem:[%s12798_s24 + $0xe4] ss:$16 sps:$4 sm:$0xff]  }
 0x767   :  { %1735 = vmatprep.subr.bf16.mxu0 %v7700_v28  ;;  %1808 = vmatprep.subr.bf16.mxu1 %v7703_v31  ;;  %v9981_v28 = vld [vmem:[%s12798_s24 + $0xe0] ss:$16 sps:$4 sm:$0xff]   ;;  %v9986_v31 = vld [vmem:[%s12798_s24 + $0xe8] ss:$16 sps:$4 sm:$0xff]  }
 0x768   :  { %1765 = vmatprep.mubr.bf16.mxu0 %v12779_v17  ;;  %1838 = vmatprep.mubr.bf16.mxu1 %v12779_v17 }
 0x76a   :  { %1736 = vmatpush1.bf16.msra.mxu0 %v7698_v33  ;;  %1809 = vmatpush1.bf16.msra.mxu1 %v7701_v37 }
 0x76b   :  { %1737 = vmatprep.subr.bf16.mxu0 %v7706_v30  ;;  %1810 = vmatprep.subr.bf16.mxu1 %v7709_v44  ;;  %v12799_v30 = vld [vmem:[#allocation24_spill] sm:$0xff] }
 0x76e   :  { %1738 = vmatpush1.bf16.msra.mxu0 %v7704_v55  ;;  %1811 = vmatpush1.bf16.msra.mxu1 %v7707_v36  ;;  %v12800_v55 = vld [vmem:[#allocation25_spill] sm:$0xff] }
 0x76f   :  { %1739 = vmatprep.subr.bf16.mxu0 %v7712_v35  ;;  %1812 = vmatprep.subr.bf16.mxu1 %v7715_v4 }
 0x772   :  { %1740 = vmatpush1.bf16.msra.mxu0 %v7710_v34  ;;  %1813 = vmatpush1.bf16.msra.mxu1 %v7713_v7  ;;  %v12801_v34 = vld [vmem:[#allocation26_spill] sm:$0xff] }
 0x773   :  { %1741 = vmatprep.subr.bf16.mxu0 %v7718_v48  ;;  %1814 = vmatprep.subr.bf16.mxu1 %v7721_v16  ;;  %v12802_v48 = vld [vmem:[#allocation27_spill] sm:$0xff] }
 0x776   :  { %1742 = vmatpush1.bf16.msra.mxu0 %v7716_v29  ;;  %1815 = vmatpush1.bf16.msra.mxu1 %v7719_v19 }
 0x777   :  { %1743 = vmatprep.subr.bf16.mxu0 %v7724_v3  ;;  %1816 = vmatprep.subr.bf16.mxu1 %v7727_v21 }
 0x77a   :  { %1744 = vmatpush1.bf16.msra.mxu0 %v7722_v14  ;;  %1817 = vmatpush1.bf16.msra.mxu1 %v7725_v23 }
 0x77b   :  { %1745 = vmatprep.subr.bf16.mxu0 %v7730_v25  ;;  %1818 = vmatprep.subr.bf16.mxu1 %v7733_v24 }
 0x77e   :  { %1746 = vmatpush1.bf16.msra.mxu0 %v7728_v15  ;;  %1819 = vmatpush1.bf16.msra.mxu1 %v7731_v40 }
 0x77f   :  { %1747 = vmatprep.subr.bf16.mxu0 %v7736_v41  ;;  %1820 = vmatprep.subr.bf16.mxu1 %v7739_v42 }
 0x782   :  { %1748 = vmatpush1.bf16.msra.mxu0 %v7734_v43  ;;  %1821 = vmatpush1.bf16.msra.mxu1 %v7737_v46 }
 0x783   :  { %2071 = vmatprep.subr.bf16.mxu0 %v9803_v32  ;;  %2112 = vmatprep.subr.bf16.mxu1 %v9808_v1 }
 0x785   :  { %1766 = vmatmul.mubr.bf16.vlgmr.msra.gmra.mrb[48].mxu0 %v1515_v47  ;;  %1839 = vmatmul.mubr.bf16.vlgmr.msra.gmra.mrb[48].mxu1 %v1515_v47 }
 0x786   :  { %1775 = vmatprep.mubr.bf16.mxu0 %v12779_v17  ;;  %1848 = vmatprep.mubr.bf16.mxu1 %v12779_v17 }
 0x787   :  { %2072 = vmatpush1.bf16.msra.mxu0 %v9814_v22  ;;  %2113 = vmatpush1.bf16.msra.mxu1 %v9819_v26 }
 0x788   :  { %2073 = vmatprep.subr.bf16.mxu0 %v9827_v56  ;;  %2114 = vmatprep.subr.bf16.mxu1 %v9832_v59 }
 0x78b   :  { %2074 = vmatpush1.bf16.msra.mxu0 %v9837_v0  ;;  %2115 = vmatpush1.bf16.msra.mxu1 %v9842_v2 }
 0x78c   :  { %2075 = vmatprep.subr.bf16.mxu0 %v9851_v5  ;;  %2116 = vmatprep.subr.bf16.mxu1 %v9856_v6 }
 0x78d   :  { %1776 = vmatmul.mubr.bf16.gmra.mrb[52].mxu0 %v1516_v49  ;;  %1849 = vmatmul.mubr.bf16.gmra.mrb[52].mxu1 %v1516_v49 }
 0x78e   :  { %1785 = vmatprep.mubr.bf16.mxu0 %v12779_v17  ;;  %1858 = vmatprep.mubr.bf16.mxu1 %v12779_v17 }
 0x78f   :  { %2076 = vmatpush1.bf16.msra.mxu0 %v9861_v51  ;;  %2117 = vmatpush1.bf16.msra.mxu1 %v9866_v8 }
 0x790   :  { %2077 = vmatprep.subr.bf16.mxu0 %v9875_v52  ;;  %2118 = vmatprep.subr.bf16.mxu1 %v9880_v9 }
 0x793   :  { %2078 = vmatpush1.bf16.msra.mxu0 %v9885_v53  ;;  %2119 = vmatpush1.bf16.msra.mxu1 %v9890_v10 }
 0x794   :  { %2079 = vmatprep.subr.bf16.mxu0 %v9899_v54  ;;  %2120 = vmatprep.subr.bf16.mxu1 %v9904_v11 }
 0x795   :  { %1786 = vmatmul.mubr.bf16.gmra.mrb[56].mxu0 %v1517_v50  ;;  %1859 = vmatmul.mubr.bf16.gmra.mrb[56].mxu1 %v1517_v50 }
 0x796   :  { %1795 = vmatprep.mubr.bf16.mxu0 %v12779_v17  ;;  %1868 = vmatprep.mubr.bf16.mxu1 %v12779_v17 }
 0x797   :  { %2080 = vmatpush1.bf16.msra.mxu0 %v9909_v57  ;;  %2121 = vmatpush1.bf16.msra.mxu1 %v9914_v12 }
 0x798   :  { %2081 = vmatprep.subr.bf16.mxu0 %v9923_v58  ;;  %2122 = vmatprep.subr.bf16.mxu1 %v9928_v13 }
 0x79b   :  { %2082 = vmatpush1.bf16.msra.mxu0 %v9933_v60  ;;  %2123 = vmatpush1.bf16.msra.mxu1 %v9938_v38 }
 0x79c   :  { %2083 = vmatprep.subr.bf16.mxu0 %v9947_v39  ;;  %2124 = vmatprep.subr.bf16.mxu1 %v9952_v62 }
 0x79f   :  { %2084 = vmatpush1.bf16.msra.mxu0 %v9957_v63  ;;  %2125 = vmatpush1.bf16.msra.mxu1 %v9962_v18 }
 0x7a0   :  { %2085 = vmatprep.subr.bf16.mxu0 %v9971_v27  ;;  %2126 = vmatprep.subr.bf16.mxu1 %v9976_v20 }
 0x7a3   :  { %2086 = vmatpush1.bf16.msra.mxu0 %v9981_v28  ;;  %2127 = vmatpush1.bf16.msra.mxu1 %v9986_v31 }
 0x7a4   :  { %2182 = vmatprep.subr.bf16.mxu0 %v9803_v32  ;;  %2223 = vmatprep.subr.bf16.mxu1 %v9808_v1 }
 0x838   :  { %v1439_v33 = vpop.f32.mrb[44].mxu0  ;;  %v1480_v37 = vpop.f32.mrb[44].mxu1 }
 0x839   :  { %v1487_v44 = vadd.f32 %v1439_v33, %v12799_v30  ;;  %v1489_v36 = vadd.f32 %v1480_v37, %v12800_v55  ;;  %v1441_v35 = vpop.f32.mrb[45].mxu0  ;;  %v1482_v4 = vpop.f32.mrb[45].mxu1 }
 0x83a   :  { %v1488_v7 = vadd.f32 %v1441_v35, %v12801_v34  ;;  %v1490_v16 = vadd.f32 %v1482_v4, %v12802_v48  ;;  %v1443_v29 = vpop.f32.mrb[46].mxu0  ;;  %v1484_v19 = vpop.f32.mrb[46].mxu1 }
 0x83b   :  { %v6978_v3 = vmul.f32 -1.442695, %v1487_v44  ;;  %v1444_v21 = vpop.f32.mrb[47].mxu0  ;;  %v1485_v14 = vpop.f32.mrb[47].mxu1 }
 0x83c   :  { %v6979_v23 = vmul.f32 -1.442695, %v1488_v7  ;;  %v6980_v25 = vmul.f32 -1.442695, %v1490_v16 }
 0x83d   :  { %8124 = vpow2.f32 %v6978_v3 }
 0x83e   :  { %8126 = vpow2.f32 %v6979_v23 }
 0x83f   :  { %8128 = vpow2.f32 %v6980_v25 }
 0x840   :  { %8130 = vtanh.f32 %v1489_v36 }
 0x847   :  { %v8125_v24 = vpop.eup %8124 }
 0x848   :  { %v8127_v15 = vpop.eup %8126  ;;  %v1494_v40 = vadd.f32 1.0, %v8125_v24 }
 0x849   :  { %v1500_v41 = vadd.f32 1.0, %v8127_v15  ;;  %v8129_v42 = vpop.eup %8128 }
 0x84a   :  { %8132 = vrcp.f32 %v1494_v40  ;;  %v8131_v43 = vpop.eup %8130  ;;  %v1507_v50 = vadd.f32 1.0, %v8129_v42 }
 0x84b   :  { %8134 = vrcp.f32 %v1500_v41 }
 0x84c   :  { %8136 = vrcp.f32 %v1507_v50  ;;  %v1551_v50 = vld [vmem:[%s12709_s6] sm:$0xf] }
 0x854   :  { %v8133_v46 = vpop.eup %8132 }
 0x855   :  { %v8135_v47 = vpop.eup %8134  ;;  %v1511_v49 = vmul.f32 %v8133_v46, %v8131_v43 }
 0x856   :  { %v1510_v33 = vmul.f32 %v8135_v47, %v9689_v61  ;;  %v8137_v21 = vpop.eup %8136 }
 0x858   :  { %v9999_v37 = vpop.f32.mrb[48].mxu0  ;;  %v10001_v30 = vpop.f32.mrb[48].mxu1  ;;  %v1512_v44 = vadd.f32 %v1511_v49, %v1510_v33 }
 0x859   :  { %v10003_v55 = vpop.f32.mrb[49].mxu0  ;;  %v10005_v36 = vpop.f32.mrb[49].mxu1 }
 0x85a   :  { %v10007_v35 = vpop.f32.mrb[50].mxu0  ;;  %v10009_v4 = vpop.f32.mrb[50].mxu1  ;;  %8138 = vtanh.f32 %v1512_v44 }
 0x85b   :  { %v10011_v34 = vpop.f32.mrb[51].mxu0  ;;  %v10013_v7 = vpop.f32.mrb[51].mxu1 }
 0x860   :  { %v10015_v61 = vpop.f32.mrb[52].mxu0  ;;  %v10017_v48 = vpop.f32.mrb[52].mxu1 }
 0x861   :  { %12803 = vst [vmem:[#allocation7_spill] sm:$0xff] %v10017_v48  ;;  %v10019_v16 = vpop.f32.mrb[53].mxu0  ;;  %v10021_v29 = vpop.f32.mrb[53].mxu1 }
 0x862   :  { %12804 = vst [vmem:[#allocation8_spill] sm:$0xff] %v10019_v16  ;;  %12805 = vst [vmem:[#allocation9_spill] sm:$0xff] %v10021_v29  ;;  %v10023_v19 = vpop.f32.mrb[54].mxu0  ;;  %v10025_v3 = vpop.f32.mrb[54].mxu1 }
 0x863   :  { %12806 = vst [vmem:[#allocation10_spill] sm:$0xff] %v10023_v19  ;;  %12807 = vst [vmem:[#allocation11_spill] sm:$0xff] %v10025_v3  ;;  %v10027_v14 = vpop.f32.mrb[55].mxu0  ;;  %v10029_v23 = vpop.f32.mrb[55].mxu1 }
 0x864   :  { %12808 = vst [vmem:[#allocation12_spill] sm:$0xff] %v10027_v14  ;;  %12809 = vst [vmem:[#allocation13_spill] sm:$0xff] %v10029_v23  ;;  %v8139_v25 = vpop.eup %8138 }
 0x865   :  { %v1514_v24 = vmul.f32 %v8139_v25, %v8137_v21 }
 0x867   :  { %v1518_v15 = vpack.c.bf16 %v1514_v24, %v9692_v45 }
 0x868   :  { %v10032_v40 = vpop.f32.mrb[56].mxu0  ;;  %v10034_v41 = vpop.f32.mrb[56].mxu1 }
 0x869   :  { %12810 = vst [vmem:[#allocation14_spill] sm:$0xff] %v10032_v40  ;;  %12811 = vst [vmem:[#allocation15_spill] sm:$0xff] %v10034_v41  ;;  %v10036_v42 = vpop.f32.mrb[57].mxu0  ;;  %v10038_v43 = vpop.f32.mrb[57].mxu1  ;;  %1796 = vmatmul.mubr.bf16.gmra.mrb[60].mxu0 %v1518_v15  ;;  %1869 = vmatmul.mubr.bf16.gmra.mrb[60].mxu1 %v1518_v15 }
 0x86a   :  { %12812 = vst [vmem:[#allocation16_spill] sm:$0xff] %v10036_v42  ;;  %12813 = vst [vmem:[#allocation17_spill] sm:$0xff] %v10038_v43  ;;  %v10040_v46 = vpop.f32.mrb[58].mxu0  ;;  %v10042_v47 = vpop.f32.mrb[58].mxu1  ;;  %2103 = vmatprep.mubr.bf16.mxu0 %v12779_v17  ;;  %2144 = vmatprep.mubr.bf16.mxu1 %v12779_v17 }
 0x86b   :  { %12814 = vst [vmem:[#allocation18_spill] sm:$0xff] %v10040_v46  ;;  %12815 = vst [vmem:[#allocation19_spill] sm:$0xff] %v10042_v47  ;;  %v10046_v49 = vpop.f32.mrb[59].mxu0  ;;  %v10048_v45 = vpop.f32.mrb[59].mxu1  ;;  %v12825_v47 = vld [vmem:[#allocation3_spill] sm:$0xff] }
 0x86c   :  { %12816 = vst [vmem:[#allocation20_spill] sm:$0xff] %v10046_v49  ;;  %12817 = vst [vmem:[#allocation21_spill] sm:$0xff] %v10048_v45  ;;  %v12824_v45 = vld [vmem:[#allocation5_spill] sm:$0xff]  ;;  %v10105_v46 = vrot.slane %v1551_v50, %v12825_v47 }
 0x86d   :  { %v10102_v49 = vrot.slane %v1551_v50, %v12824_v45 }
 0x86e   :  { %v1841_v45 = vadd.f32 %v10001_v30, %v10105_v46 }
 0x871   :  { %2104 = vmatmul.mubr.bf16.vlgmr.msra.gmra.mrb[64].mxu0 %v12779_v17  ;;  %2145 = vmatmul.mubr.bf16.vlgmr.msra.gmra.mrb[64].mxu1 %v12779_v17 }
 0x872   :  { %2183 = vmatpush1.bf16.msra.mxu0 %v9814_v22  ;;  %2224 = vmatpush1.bf16.msra.mxu1 %v9819_v26 }
 0x873   :  { %2184 = vmatprep.subr.bf16.mxu0 %v9827_v56  ;;  %2225 = vmatprep.subr.bf16.mxu1 %v9832_v59 }
 0x874   :  { %2214 = vmatprep.mubr.bf16.mxu0 %v12779_v17  ;;  %2255 = vmatprep.mubr.bf16.mxu1 %v12779_v17 }
 0x876   :  { %2185 = vmatpush1.bf16.msra.mxu0 %v9837_v0  ;;  %2226 = vmatpush1.bf16.msra.mxu1 %v9842_v2 }
 0x877   :  { %2186 = vmatprep.subr.bf16.mxu0 %v9851_v5  ;;  %2227 = vmatprep.subr.bf16.mxu1 %v9856_v6 }
 0x87a   :  { %2187 = vmatpush1.bf16.msra.mxu0 %v9861_v51  ;;  %2228 = vmatpush1.bf16.msra.mxu1 %v9866_v8 }
 0x87b   :  { %2188 = vmatprep.subr.bf16.mxu0 %v9875_v52  ;;  %2229 = vmatprep.subr.bf16.mxu1 %v9880_v9 }
 0x87e   :  { %2189 = vmatpush1.bf16.msra.mxu0 %v9885_v53  ;;  %2230 = vmatpush1.bf16.msra.mxu1 %v9890_v10 }
 0x87f   :  { %2190 = vmatprep.subr.bf16.mxu0 %v9899_v54  ;;  %2231 = vmatprep.subr.bf16.mxu1 %v9904_v11 }
 0x882   :  { %2191 = vmatpush1.bf16.msra.mxu0 %v9909_v57  ;;  %2232 = vmatpush1.bf16.msra.mxu1 %v9914_v12 }
 0x883   :  { %2192 = vmatprep.subr.bf16.mxu0 %v9923_v58  ;;  %2233 = vmatprep.subr.bf16.mxu1 %v9928_v13 }
 0x886   :  { %2193 = vmatpush1.bf16.msra.mxu0 %v9933_v60  ;;  %2234 = vmatpush1.bf16.msra.mxu1 %v9938_v38 }
 0x887   :  { %2194 = vmatprep.subr.bf16.mxu0 %v9947_v39  ;;  %2235 = vmatprep.subr.bf16.mxu1 %v9952_v62 }
 0x88a   :  { %2195 = vmatpush1.bf16.msra.mxu0 %v9957_v63  ;;  %2236 = vmatpush1.bf16.msra.mxu1 %v9962_v18 }
 0x88b   :  { %2196 = vmatprep.subr.bf16.mxu0 %v9971_v27  ;;  %2237 = vmatprep.subr.bf16.mxu1 %v9976_v20 }
 0x88e   :  { %2197 = vmatpush1.bf16.msra.mxu0 %v9981_v28  ;;  %2238 = vmatpush1.bf16.msra.mxu1 %v9986_v31 }
 0x88f   :  { %2293 = vmatprep.subr.bf16.mxu0 %v9803_v32  ;;  %2334 = vmatprep.subr.bf16.mxu1 %v9808_v1 }
 0x93c   :  { %v10089_v33 = vpop.f32.mrb[60].mxu0  ;;  %v10091_v44 = vpop.f32.mrb[60].mxu1 }
 0x93d   :  { %12818 = vst [vmem:[#allocation22_spill] sm:$0xff] %v10089_v33  ;;  %12819 = vst [vmem:[#allocation23_spill] sm:$0xff] %v10091_v44  ;;  %v10093_v21 = vpop.f32.mrb[61].mxu0  ;;  %v10095_v25 = vpop.f32.mrb[61].mxu1  ;;  %v12828_v33 = vld [vmem:[#allocation6_spill] sm:$0xff] }
 0x93e   :  { %12820 = vst [vmem:[#allocation24_spill] sm:$0xff] %v10093_v21  ;;  %12821 = vst [vmem:[#allocation25_spill] sm:$0xff] %v10095_v25  ;;  %v10097_v24 = vpop.f32.mrb[62].mxu0  ;;  %v10099_v15 = vpop.f32.mrb[62].mxu1  ;;  %v10112_v44 = vrot.slane %v1551_v50, %v12828_v33  ;;  %v12829_v21 = vld [vmem:[#allocation4_spill] sm:$0xff] }
 0x93f   :  { %12822 = vst [vmem:[#allocation26_spill] sm:$0xff] %v10097_v24  ;;  %12823 = vst [vmem:[#allocation27_spill] sm:$0xff] %v10099_v15  ;;  %v10107_v43 = vpop.f32.mrb[63].mxu0  ;;  %v10109_v42 = vpop.f32.mrb[63].mxu1  ;;  %v10115_v41 = vrot.slane %v1551_v50, %v12829_v21  ;;  %v1768_v24 = vadd.f32 %v9999_v37, %v10102_v49 }
 0x940   :  { %12826 = vst [vmem:[#allocation28_spill] sm:$0xff] %v10107_v43  ;;  %12827 = vst [vmem:[#allocation29_spill] sm:$0xff] %v10109_v42  ;;  %v1770_v47 = vadd.f32 %v10003_v55, %v10112_v44 }
 0x941   :  { %v1843_v43 = vadd.f32 %v10005_v36, %v10115_v41 }
 0x944   :  { %v2105_v15 = vpop.f32.mrb[64].mxu0  ;;  %v2146_v42 = vpop.f32.mrb[64].mxu1 }
 0x945   :  { %v2153_v25 = vadd.f32 %v2105_v15, %v1768_v24  ;;  %v2155_v33 = vadd.f32 %v2146_v42, %v1841_v45  ;;  %v2107_v40 = vpop.f32.mrb[65].mxu0  ;;  %v2148_v23 = vpop.f32.mrb[65].mxu1  ;;  %v1847_v15 = vadd.f32 %v10013_v7, %v10115_v41 }
 0x946   :  { %v2154_v50 = vadd.f32 %v2107_v40, %v1770_v47  ;;  %v2156_v21 = vadd.f32 %v2148_v23, %v1843_v43  ;;  %v2109_v14 = vpop.f32.mrb[66].mxu0  ;;  %v2150_v3 = vpop.f32.mrb[66].mxu1 }
 0x947   :  { %v7045_v37 = vmul.f32 -1.442695, %v2153_v25  ;;  %v2110_v19 = vpop.f32.mrb[67].mxu0  ;;  %v2151_v29 = vpop.f32.mrb[67].mxu1  ;;  %v1774_v25 = vadd.f32 %v10011_v34, %v10112_v44 }
 0x948   :  { %v7046_v30 = vmul.f32 -1.442695, %v2154_v50  ;;  %v7047_v55 = vmul.f32 -1.442695, %v2156_v21 }
 0x949   :  { %8140 = vpow2.f32 %v7045_v37 }
 0x94a   :  { %8142 = vpow2.f32 %v7046_v30 }
 0x94b   :  { %8144 = vpow2.f32 %v7047_v55 }
 0x94c   :  { %8146 = vtanh.f32 %v2155_v33  ;;  %v1845_v33 = vadd.f32 %v10009_v4, %v10105_v46 }
 0x953   :  { %v8141_v16 = vpop.eup %8140 }
 0x954   :  { %v8143_v48 = vpop.eup %8142  ;;  %v2160_v36 = vadd.f32 1.0, %v8141_v16 }
 0x955   :  { %v2166_v24 = vadd.f32 1.0, %v8143_v48  ;;  %v8145_v42 = vpop.eup %8144  ;;  %v1772_v48 = vadd.f32 %v10007_v35, %v10102_v49 }
 0x956   :  { %8148 = vrcp.f32 %v2160_v36  ;;  %v8147_v40 = vpop.eup %8146  ;;  %v2173_v43 = vadd.f32 1.0, %v8145_v42 }
 0x957   :  { %8150 = vrcp.f32 %v2166_v24 }
 0x958   :  { %8152 = vrcp.f32 %v2173_v43 }
 0x960   :  { %v8149_v23 = vpop.eup %8148 }
 0x961   :  { %v8151_v14 = vpop.eup %8150  ;;  %v2177_v3 = vmul.f32 %v8149_v23, %v8147_v40 }
 0x962   :  { %v2176_v19 = vmul.f32 0.0, %v8151_v14  ;;  %v8153_v47 = vpop.eup %8152 }
 0x964   :  { %v10125_v29 = vadd.f32 %v2177_v3, %v2176_v19 }
 0x966   :  { %8154 = vtanh.f32 %v10125_v29 }
 0x970   :  { %v8155_v45 = vpop.eup %8154 }
 0x971   :  { %v2180_v16 = vmul.f32 %v8155_v45, %v8153_v47 }
 0x973   :  { %v2181_v21 = vpack.c.bf16 %v2180_v16, %v2180_v16  ;;  %2958 = vst [vmem:[%s12710_s18] sm:$0xff] %v2180_v16 }
 0x975   :  { %2215 = vmatmul.mubr.bf16.vlgmr.msra.gmra.mrb[68].mxu0 %v2181_v21  ;;  %2256 = vmatmul.mubr.bf16.vlgmr.msra.gmra.mrb[68].mxu1 %v2181_v21 }
 0x976   :  { %2294 = vmatpush1.bf16.msra.mxu0 %v9814_v22  ;;  %2335 = vmatpush1.bf16.msra.mxu1 %v9819_v26 }
 0x977   :  { %2295 = vmatprep.subr.bf16.mxu0 %v9827_v56  ;;  %2336 = vmatprep.subr.bf16.mxu1 %v9832_v59 }
 0x978   :  { %2325 = vmatprep.mubr.bf16.mxu0 %v12779_v17  ;;  %2366 = vmatprep.mubr.bf16.mxu1 %v12779_v17 }
 0x97a   :  { %2296 = vmatpush1.bf16.msra.mxu0 %v9837_v0  ;;  %2337 = vmatpush1.bf16.msra.mxu1 %v9842_v2 }
 0x97b   :  { %2297 = vmatprep.subr.bf16.mxu0 %v9851_v5  ;;  %2338 = vmatprep.subr.bf16.mxu1 %v9856_v6 }
 0x97e   :  { %2298 = vmatpush1.bf16.msra.mxu0 %v9861_v51  ;;  %2339 = vmatpush1.bf16.msra.mxu1 %v9866_v8 }
 0x97f   :  { %2299 = vmatprep.subr.bf16.mxu0 %v9875_v52  ;;  %2340 = vmatprep.subr.bf16.mxu1 %v9880_v9 }
 0x982   :  { %2300 = vmatpush1.bf16.msra.mxu0 %v9885_v53  ;;  %2341 = vmatpush1.bf16.msra.mxu1 %v9890_v10 }
 0x983   :  { %2301 = vmatprep.subr.bf16.mxu0 %v9899_v54  ;;  %2342 = vmatprep.subr.bf16.mxu1 %v9904_v11 }
 0x986   :  { %2302 = vmatpush1.bf16.msra.mxu0 %v9909_v57  ;;  %2343 = vmatpush1.bf16.msra.mxu1 %v9914_v12 }
 0x987   :  { %2303 = vmatprep.subr.bf16.mxu0 %v9923_v58  ;;  %2344 = vmatprep.subr.bf16.mxu1 %v9928_v13 }
 0x98a   :  { %2304 = vmatpush1.bf16.msra.mxu0 %v9933_v60  ;;  %2345 = vmatpush1.bf16.msra.mxu1 %v9938_v38 }
 0x98b   :  { %2305 = vmatprep.subr.bf16.mxu0 %v9947_v39  ;;  %2346 = vmatprep.subr.bf16.mxu1 %v9952_v62 }
 0x98e   :  { %2306 = vmatpush1.bf16.msra.mxu0 %v9957_v63  ;;  %2347 = vmatpush1.bf16.msra.mxu1 %v9962_v18 }
 0x98f   :  { %2307 = vmatprep.subr.bf16.mxu0 %v9971_v27  ;;  %2348 = vmatprep.subr.bf16.mxu1 %v9976_v20 }
 0x992   :  { %2308 = vmatpush1.bf16.msra.mxu0 %v9981_v28  ;;  %2349 = vmatpush1.bf16.msra.mxu1 %v9986_v31 }
 0x993   :  { %2404 = vmatprep.subr.bf16.mxu0 %v9803_v32  ;;  %2445 = vmatprep.subr.bf16.mxu1 %v9808_v1 }
 0xa48   :  { %v2216_v50 = vpop.f32.mrb[68].mxu0  ;;  %v2257_v37 = vpop.f32.mrb[68].mxu1 }
 0xa49   :  { %v2264_v30 = vadd.f32 %v2216_v50, %v1772_v48  ;;  %v2266_v55 = vadd.f32 %v2257_v37, %v1845_v33  ;;  %v2218_v36 = vpop.f32.mrb[69].mxu0  ;;  %v2259_v24 = vpop.f32.mrb[69].mxu1 }
 0xa4a   :  { %v2265_v42 = vadd.f32 %v2218_v36, %v1774_v25  ;;  %v2267_v40 = vadd.f32 %v2259_v24, %v1847_v15  ;;  %v2220_v23 = vpop.f32.mrb[70].mxu0  ;;  %v2261_v14 = vpop.f32.mrb[70].mxu1 }
 0xa4b   :  { %v7048_v35 = vmul.f32 -1.442695, %v2264_v30  ;;  %v2221_v3 = vpop.f32.mrb[71].mxu0  ;;  %v2262_v43 = vpop.f32.mrb[71].mxu1  ;;  %v12831_v23 = vld [vmem:[#allocation8_spill] sm:$0xff] }
 0xa4c   :  { %v7049_v4 = vmul.f32 -1.442695, %v2265_v42  ;;  %v7050_v34 = vmul.f32 -1.442695, %v2267_v40  ;;  %v12830_v42 = vld [vmem:[#allocation7_spill] sm:$0xff]  ;;  %v1780_v14 = vadd.f32 %v12831_v23, %v10112_v44 }
 0xa4d   :  { %8156 = vpow2.f32 %v7048_v35  ;;  %v1851_v40 = vadd.f32 %v12830_v42, %v10105_v46  ;;  %v12832_v35 = vld [vmem:[#allocation9_spill] sm:$0xff] }
 0xa4e   :  { %8158 = vpow2.f32 %v7049_v4  ;;  %v1853_v3 = vadd.f32 %v12832_v35, %v10115_v41 }
 0xa4f   :  { %8160 = vpow2.f32 %v7050_v34 }
 0xa50   :  { %8162 = vtanh.f32 %v2266_v55 }
 0xa57   :  { %v8157_v19 = vpop.eup %8156 }
 0xa58   :  { %v8159_v47 = vpop.eup %8158  ;;  %v2271_v7 = vadd.f32 1.0, %v8157_v19 }
 0xa59   :  { %v2277_v45 = vadd.f32 1.0, %v8159_v47  ;;  %v8161_v16 = vpop.eup %8160 }
 0xa5a   :  { %8164 = vrcp.f32 %v2271_v7  ;;  %v8163_v21 = vpop.eup %8162  ;;  %v2284_v15 = vadd.f32 1.0, %v8161_v16 }
 0xa5b   :  { %8166 = vrcp.f32 %v2277_v45 }
 0xa5c   :  { %8168 = vrcp.f32 %v2284_v15 }
 0xa64   :  { %v8165_v48 = vpop.eup %8164 }
 0xa65   :  { %v8167_v33 = vpop.eup %8166  ;;  %v2288_v25 = vmul.f32 %v8165_v48, %v8163_v21 }
 0xa66   :  { %v2287_v50 = vmul.f32 %v8167_v33, %v10125_v29  ;;  %v8169_v30 = vpop.eup %8168  ;;  %v1778_v29 = vadd.f32 %v10015_v61, %v10102_v49 }
 0xa68   :  { %v10174_v37 = vadd.f32 %v2288_v25, %v2287_v50 }
 0xa6a   :  { %8170 = vtanh.f32 %v10174_v37 }
 0xa74   :  { %v8171_v36 = vpop.eup %8170 }
 0xa75   :  { %v10177_v24 = vmul.f32 %v8171_v36, %v8169_v30 }
 0xa77   :  { %v2292_v55 = vpack.c.bf16 %v10177_v24, %v10177_v24  ;;  %2959 = vst [vmem:[%s12710_s18 + $0x8] sm:$0xff] %v10177_v24 }
 0xa79   :  { %2326 = vmatmul.mubr.bf16.vlgmr.msra.gmra.mrb[72].mxu0 %v2292_v55  ;;  %2367 = vmatmul.mubr.bf16.vlgmr.msra.gmra.mrb[72].mxu1 %v2292_v55 }
 0xa7a   :  { %2405 = vmatpush1.bf16.msra.mxu0 %v9814_v22  ;;  %2446 = vmatpush1.bf16.msra.mxu1 %v9819_v26 }
 0xa7b   :  { %2406 = vmatprep.subr.bf16.mxu0 %v9827_v56  ;;  %2447 = vmatprep.subr.bf16.mxu1 %v9832_v59 }
 0xa7c   :  { %2436 = vmatprep.mubr.bf16.mxu0 %v12779_v17  ;;  %2477 = vmatprep.mubr.bf16.mxu1 %v12779_v17 }
 0xa7e   :  { %2407 = vmatpush1.bf16.msra.mxu0 %v9837_v0  ;;  %2448 = vmatpush1.bf16.msra.mxu1 %v9842_v2 }
 0xa7f   :  { %2408 = vmatprep.subr.bf16.mxu0 %v9851_v5  ;;  %2449 = vmatprep.subr.bf16.mxu1 %v9856_v6 }
 0xa82   :  { %2409 = vmatpush1.bf16.msra.mxu0 %v9861_v51  ;;  %2450 = vmatpush1.bf16.msra.mxu1 %v9866_v8 }
 0xa83   :  { %2410 = vmatprep.subr.bf16.mxu0 %v9875_v52  ;;  %2451 = vmatprep.subr.bf16.mxu1 %v9880_v9 }
 0xa86   :  { %2411 = vmatpush1.bf16.msra.mxu0 %v9885_v53  ;;  %2452 = vmatpush1.bf16.msra.mxu1 %v9890_v10 }
 0xa87   :  { %2412 = vmatprep.subr.bf16.mxu0 %v9899_v54  ;;  %2453 = vmatprep.subr.bf16.mxu1 %v9904_v11 }
 0xa8a   :  { %2413 = vmatpush1.bf16.msra.mxu0 %v9909_v57  ;;  %2454 = vmatpush1.bf16.msra.mxu1 %v9914_v12 }
 0xa8b   :  { %2414 = vmatprep.subr.bf16.mxu0 %v9923_v58  ;;  %2455 = vmatprep.subr.bf16.mxu1 %v9928_v13 }
 0xa8e   :  { %2415 = vmatpush1.bf16.msra.mxu0 %v9933_v60  ;;  %2456 = vmatpush1.bf16.msra.mxu1 %v9938_v38 }
 0xa8f   :  { %2416 = vmatprep.subr.bf16.mxu0 %v9947_v39  ;;  %2457 = vmatprep.subr.bf16.mxu1 %v9952_v62 }
 0xa92   :  { %2417 = vmatpush1.bf16.msra.mxu0 %v9957_v63  ;;  %2458 = vmatpush1.bf16.msra.mxu1 %v9962_v18 }
 0xa93   :  { %2418 = vmatprep.subr.bf16.mxu0 %v9971_v27  ;;  %2459 = vmatprep.subr.bf16.mxu1 %v9976_v20 }
 0xa96   :  { %2419 = vmatpush1.bf16.msra.mxu0 %v9981_v28  ;;  %2460 = vmatpush1.bf16.msra.mxu1 %v9986_v31 }
 0xa97   :  { %2515 = vmatprep.subr.bf16.mxu0 %v9803_v32  ;;  %2556 = vmatprep.subr.bf16.mxu1 %v9808_v1 }
 0xb4c   :  { %v2327_v43 = vpop.f32.mrb[72].mxu0  ;;  %v2368_v4 = vpop.f32.mrb[72].mxu1 }
 0xb4d   :  { %v2375_v34 = vadd.f32 %v2327_v43, %v1778_v29  ;;  %v2377_v19 = vadd.f32 %v2368_v4, %v1851_v40  ;;  %v2329_v47 = vpop.f32.mrb[73].mxu0  ;;  %v2370_v7 = vpop.f32.mrb[73].mxu1 }
 0xb4e   :  { %v2376_v45 = vadd.f32 %v2329_v47, %v1780_v14  ;;  %v2378_v16 = vadd.f32 %v2370_v7, %v1853_v3  ;;  %v2331_v21 = vpop.f32.mrb[74].mxu0  ;;  %v2372_v48 = vpop.f32.mrb[74].mxu1 }
 0xb4f   :  { %v7051_v61 = vmul.f32 -1.442695, %v2375_v34  ;;  %v2332_v33 = vpop.f32.mrb[75].mxu0  ;;  %v2373_v25 = vpop.f32.mrb[75].mxu1  ;;  %v12835_v48 = vld [vmem:[#allocation12_spill] sm:$0xff] }
 0xb50   :  { %v7052_v15 = vmul.f32 -1.442695, %v2376_v45  ;;  %v7053_v50 = vmul.f32 -1.442695, %v2378_v16  ;;  %v12834_v16 = vld [vmem:[#allocation11_spill] sm:$0xff]  ;;  %v12836_v33 = vld [vmem:[#allocation13_spill] sm:$0xff] }
 0xb51   :  { %8172 = vpow2.f32 %v7051_v61  ;;  %v1855_v21 = vadd.f32 %v12834_v16, %v10105_v46  ;;  %v1784_v61 = vadd.f32 %v12835_v48, %v10112_v44  ;;  %v1857_v25 = vadd.f32 %v12836_v33, %v10115_v41 }
 0xb52   :  { %8174 = vpow2.f32 %v7052_v15 }
 0xb53   :  { %8176 = vpow2.f32 %v7053_v50 }
 0xb54   :  { %8178 = vtanh.f32 %v2377_v19 }
 0xb5b   :  { %v8173_v30 = vpop.eup %8172 }
 0xb5c   :  { %v8175_v36 = vpop.eup %8174  ;;  %v2382_v55 = vadd.f32 1.0, %v8173_v30 }
 0xb5d   :  { %v2388_v29 = vadd.f32 1.0, %v8175_v36  ;;  %v8177_v42 = vpop.eup %8176 }
 0xb5e   :  { %8180 = vrcp.f32 %v2382_v55  ;;  %v8179_v40 = vpop.eup %8178  ;;  %v2395_v3 = vadd.f32 1.0, %v8177_v42 }
 0xb5f   :  { %8182 = vrcp.f32 %v2388_v29 }
 0xb60   :  { %8184 = vrcp.f32 %v2395_v3 }
 0xb68   :  { %v8181_v23 = vpop.eup %8180 }
 0xb69   :  { %v8183_v14 = vpop.eup %8182  ;;  %v2399_v35 = vmul.f32 %v8181_v23, %v8179_v40 }
 0xb6a   :  { %v2398_v43 = vmul.f32 %v8183_v14, %v10174_v37  ;;  %v8185_v34 = vpop.eup %8184  ;;  %v12833_v37 = vld [vmem:[#allocation10_spill] sm:$0xff] }
 0xb6b   :  { %v1782_v45 = vadd.f32 %v12833_v37, %v10102_v49 }
 0xb6c   :  { %v10228_v4 = vadd.f32 %v2399_v35, %v2398_v43 }
 0xb6e   :  { %8186 = vtanh.f32 %v10228_v4 }
 0xb78   :  { %v8187_v47 = vpop.eup %8186 }
 0xb79   :  { %v10231_v7 = vmul.f32 %v8187_v47, %v8185_v34 }
 0xb7b   :  { %v2403_v19 = vpack.c.bf16 %v10231_v7, %v10231_v7  ;;  %2960 = vst [vmem:[%s12710_s18 + $0x10] sm:$0xff] %v10231_v7 }
 0xb7d   :  { %2437 = vmatmul.mubr.bf16.vlgmr.msra.gmra.mrb[76].mxu0 %v2403_v19  ;;  %2478 = vmatmul.mubr.bf16.vlgmr.msra.gmra.mrb[76].mxu1 %v2403_v19 }
 0xb7e   :  { %2516 = vmatpush1.bf16.msra.mxu0 %v9814_v22  ;;  %2557 = vmatpush1.bf16.msra.mxu1 %v9819_v26 }
 0xb7f   :  { %2517 = vmatprep.subr.bf16.mxu0 %v9827_v56  ;;  %2558 = vmatprep.subr.bf16.mxu1 %v9832_v59 }
 0xb80   :  { %2547 = vmatprep.mubr.bf16.mxu0 %v12779_v17  ;;  %2588 = vmatprep.mubr.bf16.mxu1 %v12779_v17 }
 0xb82   :  { %2518 = vmatpush1.bf16.msra.mxu0 %v9837_v0  ;;  %2559 = vmatpush1.bf16.msra.mxu1 %v9842_v2 }
 0xb83   :  { %2519 = vmatprep.subr.bf16.mxu0 %v9851_v5  ;;  %2560 = vmatprep.subr.bf16.mxu1 %v9856_v6 }
 0xb86   :  { %2520 = vmatpush1.bf16.msra.mxu0 %v9861_v51  ;;  %2561 = vmatpush1.bf16.msra.mxu1 %v9866_v8 }
 0xb87   :  { %2521 = vmatprep.subr.bf16.mxu0 %v9875_v52  ;;  %2562 = vmatprep.subr.bf16.mxu1 %v9880_v9 }
 0xb8a   :  { %2522 = vmatpush1.bf16.msra.mxu0 %v9885_v53  ;;  %2563 = vmatpush1.bf16.msra.mxu1 %v9890_v10 }
 0xb8b   :  { %2523 = vmatprep.subr.bf16.mxu0 %v9899_v54  ;;  %2564 = vmatprep.subr.bf16.mxu1 %v9904_v11 }
 0xb8e   :  { %2524 = vmatpush1.bf16.msra.mxu0 %v9909_v57  ;;  %2565 = vmatpush1.bf16.msra.mxu1 %v9914_v12 }
 0xb8f   :  { %2525 = vmatprep.subr.bf16.mxu0 %v9923_v58  ;;  %2566 = vmatprep.subr.bf16.mxu1 %v9928_v13 }
 0xb92   :  { %2526 = vmatpush1.bf16.msra.mxu0 %v9933_v60  ;;  %2567 = vmatpush1.bf16.msra.mxu1 %v9938_v38 }
 0xb93   :  { %2527 = vmatprep.subr.bf16.mxu0 %v9947_v39  ;;  %2568 = vmatprep.subr.bf16.mxu1 %v9952_v62 }
 0xb96   :  { %2528 = vmatpush1.bf16.msra.mxu0 %v9957_v63  ;;  %2569 = vmatpush1.bf16.msra.mxu1 %v9962_v18 }
 0xb97   :  { %2529 = vmatprep.subr.bf16.mxu0 %v9971_v27  ;;  %2570 = vmatprep.subr.bf16.mxu1 %v9976_v20 }
 0xb9a   :  { %2530 = vmatpush1.bf16.msra.mxu0 %v9981_v28  ;;  %2571 = vmatpush1.bf16.msra.mxu1 %v9986_v31 }
 0xb9b   :  { %2626 = vmatprep.subr.bf16.mxu0 %v9803_v32  ;;  %2667 = vmatprep.subr.bf16.mxu1 %v9808_v1 }
 0xc50   :  { %v2438_v15 = vpop.f32.mrb[76].mxu0  ;;  %v2479_v50 = vpop.f32.mrb[76].mxu1 }
 0xc51   :  { %v2486_v30 = vadd.f32 %v2438_v15, %v1782_v45  ;;  %v2488_v36 = vadd.f32 %v2479_v50, %v1855_v21  ;;  %v2440_v55 = vpop.f32.mrb[77].mxu0  ;;  %v2481_v32 = vpop.f32.mrb[77].mxu1 }
 0xc52   :  { %v2487_v29 = vadd.f32 %v2440_v55, %v1784_v61  ;;  %v2489_v1 = vadd.f32 %v2481_v32, %v1857_v25  ;;  %v2442_v42 = vpop.f32.mrb[78].mxu0  ;;  %v2483_v40 = vpop.f32.mrb[78].mxu1 }
 0xc53   :  { %v7054_v23 = vmul.f32 -1.442695, %v2486_v30  ;;  %v2443_v14 = vpop.f32.mrb[79].mxu0  ;;  %v2484_v35 = vpop.f32.mrb[79].mxu1 }
 0xc54   :  { %v7055_v3 = vmul.f32 -1.442695, %v2487_v29  ;;  %v7056_v43 = vmul.f32 -1.442695, %v2489_v1 }
 0xc55   :  { %8188 = vpow2.f32 %v7054_v23 }
 0xc56   :  { %8190 = vpow2.f32 %v7055_v3 }
 0xc57   :  { %8192 = vpow2.f32 %v7056_v43 }
 0xc58   :  { %8194 = vtanh.f32 %v2488_v36 }
 0xc5f   :  { %v8189_v34 = vpop.eup %8188 }
 0xc60   :  { %v8191_v47 = vpop.eup %8190  ;;  %v2493_v19 = vadd.f32 1.0, %v8189_v34  ;;  %v10360_v34 = vld [vmem:[%s12798_s24] ss:$16 sps:$4 sm:$0xff]  }
 0xc61   :  { %v2499_v37 = vadd.f32 1.0, %v8191_v47  ;;  %v8193_v45 = vpop.eup %8192  ;;  %v10366_v47 = vld [vmem:[%s12798_s24 + $0x8] ss:$16 sps:$4 sm:$0xff]  }
 0xc62   :  { %8196 = vrcp.f32 %v2493_v19  ;;  %v8195_v16 = vpop.eup %8194  ;;  %v2506_v33 = vadd.f32 1.0, %v8193_v45  ;;  %v10372_v19 = vld [vmem:[%s12798_s24 + $0x24] ss:$16 sps:$4 sm:$0xff]   ;;  %v10386_v45 = vld [vmem:[%s12798_s24 + $0x20] ss:$16 sps:$4 sm:$0xff]  }
 0xc63   :  { %8198 = vrcp.f32 %v2499_v37  ;;  %v10378_v37 = vld [vmem:[%s12798_s24 + $0x2c] ss:$16 sps:$4 sm:$0xff]  }
 0xc64   :  { %8200 = vrcp.f32 %v2506_v33  ;;  %v10416_v33 = vld [vmem:[%s12798_s24 + $0x48] ss:$16 sps:$4 sm:$0xff]  }
 0xc6c   :  { %v8197_v21 = vpop.eup %8196 }
 0xc6d   :  { %v8199_v48 = vpop.eup %8198  ;;  %v2510_v61 = vmul.f32 %v8197_v21, %v8195_v16  ;;  %v10392_v16 = vld [vmem:[%s12798_s24 + $0x28] ss:$16 sps:$4 sm:$0xff]   ;;  %v10398_v21 = vld [vmem:[%s12798_s24 + $0x44] ss:$16 sps:$4 sm:$0xff]  }
 0xc6e   :  { %v2509_v25 = vmul.f32 %v8199_v48, %v10228_v4  ;;  %v8201_v50 = vpop.eup %8200  ;;  %v10404_v48 = vld [vmem:[%s12798_s24 + $0x4c] ss:$16 sps:$4 sm:$0xff]  }
 0xc70   :  { %v10282_v15 = vadd.f32 %v2510_v61, %v2509_v25  ;;  %v10410_v61 = vld [vmem:[%s12798_s24 + $0x40] ss:$16 sps:$4 sm:$0xff]   ;;  %v10422_v25 = vld [vmem:[%s12798_s24 + $0x64] ss:$16 sps:$4 sm:$0xff]  }
 0xc72   :  { %8202 = vtanh.f32 %v10282_v15 }
 0xc7c   :  { %v8203_v30 = vpop.eup %8202 }
 0xc7d   :  { %v10285_v55 = vmul.f32 %v8203_v30, %v8201_v50  ;;  %v10434_v50 = vld [vmem:[%s12798_s24 + $0x60] ss:$16 sps:$4 sm:$0xff]   ;;  %v10440_v30 = vld [vmem:[%s12798_s24 + $0x68] ss:$16 sps:$4 sm:$0xff]  }
 0xc7f   :  { %v2514_v36 = vpack.c.bf16 %v10285_v55, %v10285_v55  ;;  %2961 = vst [vmem:[%s12710_s18 + $0x18] sm:$0xff] %v10285_v55 }
 0xc81   :  { %2548 = vmatmul.mubr.bf16.vlgmr.msra.gmra.mrb[80].mxu0 %v2514_v36  ;;  %2589 = vmatmul.mubr.bf16.vlgmr.msra.gmra.mrb[80].mxu1 %v2514_v36  ;;  %v10446_v36 = vld [vmem:[%s12798_s24 + $0x84] ss:$16 sps:$4 sm:$0xff]  }
 0xc82   :  { %2627 = vmatpush1.bf16.msra.mxu0 %v9814_v22  ;;  %2668 = vmatpush1.bf16.msra.mxu1 %v9819_v26  ;;  %v10328_v22 = vld [vmem:[%s12798_s24 + $0x4] ss:$16 sps:$4 sm:$0xff]   ;;  %v10334_v26 = vld [vmem:[%s12798_s24 + $0xc] ss:$16 sps:$4 sm:$0xff]  }
 0xc83   :  { %2628 = vmatprep.subr.bf16.mxu0 %v9827_v56  ;;  %2669 = vmatprep.subr.bf16.mxu1 %v9832_v59  ;;  %v12837_v56 = vld [vmem:[#allocation14_spill] sm:$0xff] }
 0xc84   :  { %2658 = vmatprep.mubr.bf16.mxu0 %v12779_v17  ;;  %2699 = vmatprep.mubr.bf16.mxu1 %v12779_v17  ;;  %v1788_v59 = vadd.f32 %v12837_v56, %v10102_v49  ;;  %v10452_v56 = vld [vmem:[%s12798_s24 + $0x8c] ss:$16 sps:$4 sm:$0xff]  }
 0xc86   :  { %2629 = vmatpush1.bf16.msra.mxu0 %v9837_v0  ;;  %2670 = vmatpush1.bf16.msra.mxu1 %v9842_v2  ;;  %v12838_v0 = vld [vmem:[#allocation15_spill] sm:$0xff] }
 0xc87   :  { %2630 = vmatprep.subr.bf16.mxu0 %v9851_v5  ;;  %2671 = vmatprep.subr.bf16.mxu1 %v9856_v6  ;;  %v1861_v2 = vadd.f32 %v12838_v0, %v10105_v46  ;;  %v12839_v5 = vld [vmem:[#allocation16_spill] sm:$0xff]  ;;  %v10464_v0 = vld [vmem:[%s12798_s24 + $0x88] ss:$16 sps:$4 sm:$0xff]  }
 0xc88   :  { %v1790_v6 = vadd.f32 %v12839_v5, %v10112_v44  ;;  %v10476_v5 = vld [vmem:[%s12798_s24 + $0xac] ss:$16 sps:$4 sm:$0xff]  }
 0xc8a   :  { %2631 = vmatpush1.bf16.msra.mxu0 %v9861_v51  ;;  %2672 = vmatpush1.bf16.msra.mxu1 %v9866_v8  ;;  %v12840_v51 = vld [vmem:[#allocation17_spill] sm:$0xff] }
 0xc8b   :  { %2632 = vmatprep.subr.bf16.mxu0 %v9875_v52  ;;  %2673 = vmatprep.subr.bf16.mxu1 %v9880_v9  ;;  %v1863_v8 = vadd.f32 %v12840_v51, %v10115_v41  ;;  %v10488_v51 = vld [vmem:[%s12798_s24 + $0xa8] ss:$16 sps:$4 sm:$0xff]  }
 0xc8e   :  { %2633 = vmatpush1.bf16.msra.mxu0 %v9885_v53  ;;  %2674 = vmatpush1.bf16.msra.mxu1 %v9890_v10 }
 0xc8f   :  { %2634 = vmatprep.subr.bf16.mxu0 %v9899_v54  ;;  %2675 = vmatprep.subr.bf16.mxu1 %v9904_v11 }
 0xc92   :  { %2635 = vmatpush1.bf16.msra.mxu0 %v9909_v57  ;;  %2676 = vmatpush1.bf16.msra.mxu1 %v9914_v12 }
 0xc93   :  { %2636 = vmatprep.subr.bf16.mxu0 %v9923_v58  ;;  %2677 = vmatprep.subr.bf16.mxu1 %v9928_v13 }
 0xc96   :  { %2637 = vmatpush1.bf16.msra.mxu0 %v9933_v60  ;;  %2678 = vmatpush1.bf16.msra.mxu1 %v9938_v38 }
 0xc97   :  { %2638 = vmatprep.subr.bf16.mxu0 %v9947_v39  ;;  %2679 = vmatprep.subr.bf16.mxu1 %v9952_v62 }
 0xc9a   :  { %2639 = vmatpush1.bf16.msra.mxu0 %v9957_v63  ;;  %2680 = vmatpush1.bf16.msra.mxu1 %v9962_v18 }
 0xc9b   :  { %2640 = vmatprep.subr.bf16.mxu0 %v9971_v27  ;;  %2681 = vmatprep.subr.bf16.mxu1 %v9976_v20 }
 0xc9e   :  { %2641 = vmatpush1.bf16.msra.mxu0 %v9981_v28  ;;  %2682 = vmatpush1.bf16.msra.mxu1 %v9986_v31 }
 0xc9f   :  { %2737 = vmatprep.subr.bf16.mxu0 %v10328_v22  ;;  %2778 = vmatprep.subr.bf16.mxu1 %v10334_v26 }
 0xd54   :  { %v2549_v52 = vpop.f32.mrb[80].mxu0  ;;  %v2590_v9 = vpop.f32.mrb[80].mxu1 }
 0xd55   :  { %v2597_v53 = vadd.f32 %v2549_v52, %v1788_v59  ;;  %v2599_v10 = vadd.f32 %v2590_v9, %v1861_v2  ;;  %v2551_v54 = vpop.f32.mrb[81].mxu0  ;;  %v2592_v11 = vpop.f32.mrb[81].mxu1  ;;  %v10458_v59 = vld [vmem:[%s12798_s24 + $0x80] ss:$16 sps:$4 sm:$0xff]   ;;  %v10470_v2 = vld [vmem:[%s12798_s24 + $0xa4] ss:$16 sps:$4 sm:$0xff]  }
 0xd56   :  { %v2598_v57 = vadd.f32 %v2551_v54, %v1790_v6  ;;  %v2600_v12 = vadd.f32 %v2592_v11, %v1863_v8  ;;  %v2553_v58 = vpop.f32.mrb[82].mxu0  ;;  %v2594_v13 = vpop.f32.mrb[82].mxu1  ;;  %v10482_v6 = vld [vmem:[%s12798_s24 + $0xa0] ss:$16 sps:$4 sm:$0xff]   ;;  %v10494_v8 = vld [vmem:[%s12798_s24 + $0xc4] ss:$16 sps:$4 sm:$0xff]  }
 0xd57   :  { %v7057_v60 = vmul.f32 -1.442695, %v2597_v53  ;;  %v2554_v38 = vpop.f32.mrb[83].mxu0  ;;  %v2595_v39 = vpop.f32.mrb[83].mxu1  ;;  %v10500_v52 = vld [vmem:[%s12798_s24 + $0xcc] ss:$16 sps:$4 sm:$0xff]  }
 0xd58   :  { %v7058_v62 = vmul.f32 -1.442695, %v2598_v57  ;;  %v7059_v63 = vmul.f32 -1.442695, %v2600_v12  ;;  %v10506_v9 = vld [vmem:[%s12798_s24 + $0xc0] ss:$16 sps:$4 sm:$0xff]  }
 0xd59   :  { %8204 = vpow2.f32 %v7057_v60  ;;  %v10512_v53 = vld [vmem:[%s12798_s24 + $0xc8] ss:$16 sps:$4 sm:$0xff]   ;;  %v10524_v54 = vld [vmem:[%s12798_s24 + $0xec] ss:$16 sps:$4 sm:$0xff]   ;;  %v10530_v11 = vld [vmem:[%s12798_s24 + $0xe0] ss:$16 sps:$4 sm:$0xff]  }
 0xd5a   :  { %8206 = vpow2.f32 %v7058_v62  ;;  %v10536_v57 = vld [vmem:[%s12798_s24 + $0xe8] ss:$16 sps:$4 sm:$0xff]   ;;  %v12841_v12 = vld [vmem:[#allocation18_spill] sm:$0xff]  ;;  %v12843_v38 = vld [vmem:[#allocation20_spill] sm:$0xff] }
 0xd5b   :  { %8208 = vpow2.f32 %v7059_v63  ;;  %v1792_v58 = vadd.f32 %v12841_v12, %v10102_v49  ;;  %v12842_v13 = vld [vmem:[#allocation19_spill] sm:$0xff]  ;;  %v1794_v39 = vadd.f32 %v12843_v38, %v10112_v44  ;;  %v12844_v62 = vld [vmem:[#allocation21_spill] sm:$0xff] }
 0xd5c   :  { %8210 = vtanh.f32 %v2599_v10  ;;  %v10518_v10 = vld [vmem:[%s12798_s24 + $0xe4] ss:$16 sps:$4 sm:$0xff]   ;;  %v1865_v60 = vadd.f32 %v12842_v13, %v10105_v46  ;;  %v1867_v63 = vadd.f32 %v12844_v62, %v10115_v41 }
 0xd63   :  { %v8205_v18 = vpop.eup %8204 }
 0xd64   :  { %v8207_v27 = vpop.eup %8206  ;;  %v2604_v20 = vadd.f32 1.0, %v8205_v18 }
 0xd65   :  { %v2610_v28 = vadd.f32 1.0, %v8207_v27  ;;  %v8209_v31 = vpop.eup %8208 }
 0xd66   :  { %8212 = vrcp.f32 %v2604_v20  ;;  %v8211_v4 = vpop.eup %8210  ;;  %v2617_v42 = vadd.f32 1.0, %v8209_v31 }
 0xd67   :  { %8214 = vrcp.f32 %v2610_v28 }
 0xd68   :  { %8216 = vrcp.f32 %v2617_v42 }
 0xd70   :  { %v8213_v32 = vpop.eup %8212 }
 0xd71   :  { %v8215_v29 = vpop.eup %8214  ;;  %v2621_v1 = vmul.f32 %v8213_v32, %v8211_v4 }
 0xd72   :  { %v2620_v40 = vmul.f32 %v8215_v29, %v10282_v15  ;;  %v8217_v14 = vpop.eup %8216  ;;  %v10428_v15 = vld [vmem:[%s12798_s24 + $0x6c] ss:$16 sps:$4 sm:$0xff]  }
 0xd74   :  { %v10346_v23 = vadd.f32 %v2621_v1, %v2620_v40 }
 0xd76   :  { %8218 = vtanh.f32 %v10346_v23 }
 0xd80   :  { %v8219_v35 = vpop.eup %8218 }
 0xd81   :  { %v10349_v3 = vmul.f32 %v8219_v35, %v8217_v14 }
 0xd83   :  { %v2625_v43 = vpack.c.bf16 %v10349_v3, %v10349_v3  ;;  %2962 = vst [vmem:[%s12710_s18 + $0x20] sm:$0xff] %v10349_v3 }
 0xd85   :  { %2659 = vmatmul.mubr.bf16.vlgmr.msra.gmra.mrb[84].mxu0 %v2625_v43  ;;  %2700 = vmatmul.mubr.bf16.vlgmr.msra.gmra.mrb[84].mxu1 %v2625_v43 }
 0xd86   :  { %2738 = vmatpush1.bf16.msra.mxu0 %v10360_v34  ;;  %2779 = vmatpush1.bf16.msra.mxu1 %v10366_v47 }
 0xd87   :  { %2739 = vmatprep.subr.bf16.mxu0 %v10372_v19  ;;  %2780 = vmatprep.subr.bf16.mxu1 %v10378_v37 }
 0xd88   :  { %2769 = vmatprep.mubr.bf16.mxu0 %v12779_v17  ;;  %2810 = vmatprep.mubr.bf16.mxu1 %v12779_v17 }
 0xd8a   :  { %2740 = vmatpush1.bf16.msra.mxu0 %v10386_v45  ;;  %2781 = vmatpush1.bf16.msra.mxu1 %v10392_v16 }
 0xd8b   :  { %2741 = vmatprep.subr.bf16.mxu0 %v10398_v21  ;;  %2782 = vmatprep.subr.bf16.mxu1 %v10404_v48 }
 0xd8e   :  { %2742 = vmatpush1.bf16.msra.mxu0 %v10410_v61  ;;  %2783 = vmatpush1.bf16.msra.mxu1 %v10416_v33 }
 0xd8f   :  { %2743 = vmatprep.subr.bf16.mxu0 %v10422_v25  ;;  %2784 = vmatprep.subr.bf16.mxu1 %v10428_v15 }
 0xd92   :  { %2744 = vmatpush1.bf16.msra.mxu0 %v10434_v50  ;;  %2785 = vmatpush1.bf16.msra.mxu1 %v10440_v30 }
 0xd93   :  { %2745 = vmatprep.subr.bf16.mxu0 %v10446_v36  ;;  %2786 = vmatprep.subr.bf16.mxu1 %v10452_v56 }
 0xd96   :  { %2746 = vmatpush1.bf16.msra.mxu0 %v10458_v59  ;;  %2787 = vmatpush1.bf16.msra.mxu1 %v10464_v0 }
 0xd97   :  { %2747 = vmatprep.subr.bf16.mxu0 %v10470_v2  ;;  %2788 = vmatprep.subr.bf16.mxu1 %v10476_v5 }
 0xd9a   :  { %2748 = vmatpush1.bf16.msra.mxu0 %v10482_v6  ;;  %2789 = vmatpush1.bf16.msra.mxu1 %v10488_v51 }
 0xd9b   :  { %2749 = vmatprep.subr.bf16.mxu0 %v10494_v8  ;;  %2790 = vmatprep.subr.bf16.mxu1 %v10500_v52 }
 0xd9e   :  { %2750 = vmatpush1.bf16.msra.mxu0 %v10506_v9  ;;  %2791 = vmatpush1.bf16.msra.mxu1 %v10512_v53 }
 0xd9f   :  { %2751 = vmatprep.subr.bf16.mxu0 %v10518_v10  ;;  %2792 = vmatprep.subr.bf16.mxu1 %v10524_v54 }
 0xda2   :  { %2752 = vmatpush1.bf16.msra.mxu0 %v10530_v11  ;;  %2793 = vmatpush1.bf16.msra.mxu1 %v10536_v57 }
 0xda3   :  { %2848 = vmatprep.subr.bf16.mxu0 %v10328_v22  ;;  %2889 = vmatprep.subr.bf16.mxu1 %v10334_v26 }
 0xe58   :  { %v2660_v18 = vpop.f32.mrb[84].mxu0  ;;  %v2701_v27 = vpop.f32.mrb[84].mxu1 }
 0xe59   :  { %v2708_v20 = vadd.f32 %v2660_v18, %v1792_v58  ;;  %v2710_v28 = vadd.f32 %v2701_v27, %v1865_v60  ;;  %v2662_v31 = vpop.f32.mrb[85].mxu0  ;;  %v2703_v22 = vpop.f32.mrb[85].mxu1 }
 0xe5a   :  { %v2709_v4 = vadd.f32 %v2662_v31, %v1794_v39  ;;  %v2711_v26 = vadd.f32 %v2703_v22, %v1867_v63  ;;  %v2664_v32 = vpop.f32.mrb[86].mxu0  ;;  %v2705_v29 = vpop.f32.mrb[86].mxu1 }
 0xe5b   :  { %v7060_v1 = vmul.f32 -1.442695, %v2708_v20  ;;  %v2665_v42 = vpop.f32.mrb[87].mxu0  ;;  %v2706_v40 = vpop.f32.mrb[87].mxu1 }
 0xe5c   :  { %v7061_v14 = vmul.f32 -1.442695, %v2709_v4  ;;  %v7062_v35 = vmul.f32 -1.442695, %v2711_v26 }
 0xe5d   :  { %8220 = vpow2.f32 %v7060_v1 }
 0xe5e   :  { %8222 = vpow2.f32 %v7061_v14 }
 0xe5f   :  { %8224 = vpow2.f32 %v7062_v35 }
 0xe60   :  { %8226 = vtanh.f32 %v2710_v28 }
 0xe67   :  { %v8221_v43 = vpop.eup %8220 }
 0xe68   :  { %v8223_v12 = vpop.eup %8222  ;;  %v2715_v13 = vadd.f32 1.0, %v8221_v43 }
 0xe69   :  { %v2721_v58 = vadd.f32 1.0, %v8223_v12  ;;  %v8225_v60 = vpop.eup %8224  ;;  %v7788_v12 = vld [vmem:[%s12711_s7] ss:$16 sps:$4 sm:$0xff]  }
 0xe6a   :  { %8228 = vrcp.f32 %v2715_v13  ;;  %v8227_v38 = vpop.eup %8226  ;;  %v2728_v18 = vadd.f32 1.0, %v8225_v60  ;;  %v7791_v13 = vld [vmem:[%s12711_s7 + $0x8] ss:$16 sps:$4 sm:$0xff]   ;;  %v7796_v60 = vld [vmem:[%s12711_s7 + $0x24] ss:$16 sps:$4 sm:$0xff]  }
 0xe6b   :  { %8230 = vrcp.f32 %v2721_v58 }
 0xe6c   :  { %8232 = vrcp.f32 %v2728_v18  ;;  %v7805_v18 = vld [vmem:[%s12711_s7 + $0x4c] ss:$16 sps:$4 sm:$0xff]  }
 0xe74   :  { %v8229_v39 = vpop.eup %8228 }
 0xe75   :  { %v8231_v62 = vpop.eup %8230  ;;  %v2732_v63 = vmul.f32 %v8229_v39, %v8227_v38  ;;  %v7799_v38 = vld [vmem:[%s12711_s7 + $0x2c] ss:$16 sps:$4 sm:$0xff]   ;;  %v7794_v39 = vld [vmem:[%s12711_s7 + $0x20] ss:$16 sps:$4 sm:$0xff]  }
 0xe76   :  { %v2731_v27 = vmul.f32 %v8231_v62, %v10346_v23  ;;  %v8233_v31 = vpop.eup %8232  ;;  %v7790_v23 = vld [vmem:[%s12711_s7 + $0x4] ss:$16 sps:$4 sm:$0xff]   ;;  %v7797_v62 = vld [vmem:[%s12711_s7 + $0x28] ss:$16 sps:$4 sm:$0xff]  }
 0xe78   :  { %v10550_v20 = vadd.f32 %v2732_v63, %v2731_v27  ;;  %v7802_v63 = vld [vmem:[%s12711_s7 + $0x44] ss:$16 sps:$4 sm:$0xff]   ;;  %v7800_v27 = vld [vmem:[%s12711_s7 + $0x40] ss:$16 sps:$4 sm:$0xff]  }
 0xe7a   :  { %8234 = vtanh.f32 %v10550_v20 }
 0xe84   :  { %v8235_v22 = vpop.eup %8234 }
 0xe85   :  { %v10553_v4 = vmul.f32 %v8235_v22, %v8233_v31  ;;  %v7808_v31 = vld [vmem:[%s12711_s7 + $0x64] ss:$16 sps:$4 sm:$0xff]   ;;  %v7811_v22 = vld [vmem:[%s12711_s7 + $0x6c] ss:$16 sps:$4 sm:$0xff]  }
 0xe87   :  { %v2736_v28 = vpack.c.bf16 %v10553_v4, %v10553_v4  ;;  %2963 = vst [vmem:[%s12710_s18 + $0x28] sm:$0xff] %v10553_v4 }
 0xe89   :  { %2770 = vmatmul.mubr.bf16.vlgmr.msra.gmra.mrb[88].mxu0 %v2736_v28  ;;  %2811 = vmatmul.mubr.bf16.vlgmr.msra.gmra.mrb[88].mxu1 %v2736_v28  ;;  %v7806_v28 = vld [vmem:[%s12711_s7 + $0x60] ss:$16 sps:$4 sm:$0xff]  }
 0xe8a   :  { %2849 = vmatpush1.bf16.msra.mxu0 %v10360_v34  ;;  %2890 = vmatpush1.bf16.msra.mxu1 %v10366_v47  ;;  %v7793_v34 = vld [vmem:[%s12711_s7 + $0xc] ss:$16 sps:$4 sm:$0xff]   ;;  %v12845_v47 = vld [vmem:[#allocation22_spill] sm:$0xff] }
 0xe8b   :  { %2850 = vmatprep.subr.bf16.mxu0 %v10372_v19  ;;  %2891 = vmatprep.subr.bf16.mxu1 %v10378_v37  ;;  %v1798_v19 = vadd.f32 %v12845_v47, %v10102_v49  ;;  %v12846_v37 = vld [vmem:[#allocation23_spill] sm:$0xff] }
 0xe8c   :  { %2880 = vmatprep.mubr.bf16.mxu0 %v12779_v17  ;;  %2921 = vmatprep.mubr.bf16.mxu1 %v12779_v17  ;;  %v7817_v47 = vld [vmem:[%s12711_s7 + $0x8c] ss:$16 sps:$4 sm:$0xff]  }
 0xe8e   :  { %2851 = vmatpush1.bf16.msra.mxu0 %v10386_v45  ;;  %2892 = vmatpush1.bf16.msra.mxu1 %v10392_v16  ;;  %v1871_v45 = vadd.f32 %v12846_v37, %v10105_v46  ;;  %v12847_v16 = vld [vmem:[#allocation24_spill] sm:$0xff]  ;;  %v7815_v37 = vld [vmem:[%s12711_s7 + $0x88] ss:$16 sps:$4 sm:$0xff]  }
 0xe8f   :  { %2852 = vmatprep.subr.bf16.mxu0 %v10398_v21  ;;  %2893 = vmatprep.subr.bf16.mxu1 %v10404_v48  ;;  %v1800_v21 = vadd.f32 %v12847_v16, %v10112_v44  ;;  %v12848_v48 = vld [vmem:[#allocation25_spill] sm:$0xff] }
 0xe90   :  { %v7823_v16 = vld [vmem:[%s12711_s7 + $0xac] ss:$16 sps:$4 sm:$0xff]  }
 0xe92   :  { %2853 = vmatpush1.bf16.msra.mxu0 %v10410_v61  ;;  %2894 = vmatpush1.bf16.msra.mxu1 %v10416_v33  ;;  %v1873_v61 = vadd.f32 %v12848_v48, %v10115_v41  ;;  %v7821_v48 = vld [vmem:[%s12711_s7 + $0xa8] ss:$16 sps:$4 sm:$0xff]  }
 0xe93   :  { %2854 = vmatprep.subr.bf16.mxu0 %v10422_v25  ;;  %2895 = vmatprep.subr.bf16.mxu1 %v10428_v15 }
 0xe96   :  { %2855 = vmatpush1.bf16.msra.mxu0 %v10434_v50  ;;  %2896 = vmatpush1.bf16.msra.mxu1 %v10440_v30 }
 0xe97   :  { %2856 = vmatprep.subr.bf16.mxu0 %v10446_v36  ;;  %2897 = vmatprep.subr.bf16.mxu1 %v10452_v56 }
 0xe9a   :  { %2857 = vmatpush1.bf16.msra.mxu0 %v10458_v59  ;;  %2898 = vmatpush1.bf16.msra.mxu1 %v10464_v0 }
 0xe9b   :  { %2858 = vmatprep.subr.bf16.mxu0 %v10470_v2  ;;  %2899 = vmatprep.subr.bf16.mxu1 %v10476_v5 }
 0xe9e   :  { %2859 = vmatpush1.bf16.msra.mxu0 %v10482_v6  ;;  %2900 = vmatpush1.bf16.msra.mxu1 %v10488_v51 }
 0xe9f   :  { %2860 = vmatprep.subr.bf16.mxu0 %v10494_v8  ;;  %2901 = vmatprep.subr.bf16.mxu1 %v10500_v52 }
 0xea2   :  { %2861 = vmatpush1.bf16.msra.mxu0 %v10506_v9  ;;  %2902 = vmatpush1.bf16.msra.mxu1 %v10512_v53 }
 0xea3   :  { %2862 = vmatprep.subr.bf16.mxu0 %v10518_v10  ;;  %2903 = vmatprep.subr.bf16.mxu1 %v10524_v54 }
 0xea6   :  { %2863 = vmatpush1.bf16.msra.mxu0 %v10530_v11  ;;  %2904 = vmatpush1.bf16.msra.mxu1 %v10536_v57 }
 0xea7   :  { %3184 = vmatprep.subr.bf16.mxu0 %v7790_v23  ;;  %3257 = vmatprep.subr.bf16.mxu1 %v7793_v34  ;;  %v7809_v23 = vld [vmem:[%s12711_s7 + $0x68] ss:$16 sps:$4 sm:$0xff]   ;;  %v7814_v34 = vld [vmem:[%s12711_s7 + $0x84] ss:$16 sps:$4 sm:$0xff]  }
 0xf5c   :  { %v2771_v33 = vpop.f32.mrb[88].mxu0  ;;  %v2812_v25 = vpop.f32.mrb[88].mxu1 }
 0xf5d   :  { %v2819_v15 = vadd.f32 %v2771_v33, %v1798_v19  ;;  %v2821_v50 = vadd.f32 %v2812_v25, %v1871_v45  ;;  %v2773_v30 = vpop.f32.mrb[89].mxu0  ;;  %v2814_v36 = vpop.f32.mrb[89].mxu1  ;;  %v7812_v19 = vld [vmem:[%s12711_s7 + $0x80] ss:$16 sps:$4 sm:$0xff]   ;;  %v7820_v45 = vld [vmem:[%s12711_s7 + $0xa4] ss:$16 sps:$4 sm:$0xff]  }
 0xf5e   :  { %v2820_v56 = vadd.f32 %v2773_v30, %v1800_v21  ;;  %v2822_v59 = vadd.f32 %v2814_v36, %v1873_v61  ;;  %v2775_v0 = vpop.f32.mrb[90].mxu0  ;;  %v2816_v2 = vpop.f32.mrb[90].mxu1  ;;  %v7818_v21 = vld [vmem:[%s12711_s7 + $0xa0] ss:$16 sps:$4 sm:$0xff]   ;;  %v7826_v61 = vld [vmem:[%s12711_s7 + $0xc4] ss:$16 sps:$4 sm:$0xff]  }
 0xf5f   :  { %v7063_v5 = vmul.f32 -1.442695, %v2819_v15  ;;  %v2776_v6 = vpop.f32.mrb[91].mxu0  ;;  %v2817_v51 = vpop.f32.mrb[91].mxu1  ;;  %v7829_v33 = vld [vmem:[%s12711_s7 + $0xcc] ss:$16 sps:$4 sm:$0xff]   ;;  %v2967_v2 = vpack.c.bf16 %v10285_v55, %v10231_v7 }
 0xf60   :  { %v7064_v8 = vmul.f32 -1.442695, %v2820_v56  ;;  %v7065_v52 = vmul.f32 -1.442695, %v2822_v59  ;;  %v7824_v25 = vld [vmem:[%s12711_s7 + $0xc0] ss:$16 sps:$4 sm:$0xff]  }
 0xf61   :  { %8236 = vpow2.f32 %v7063_v5  ;;  %v7827_v15 = vld [vmem:[%s12711_s7 + $0xc8] ss:$16 sps:$4 sm:$0xff]   ;;  %v7835_v30 = vld [vmem:[%s12711_s7 + $0xec] ss:$16 sps:$4 sm:$0xff]   ;;  %v7830_v36 = vld [vmem:[%s12711_s7 + $0xe0] ss:$16 sps:$4 sm:$0xff]   ;;  %v2968_v5 = vpack.c.bf16 %v10553_v4, %v10349_v3 }
 0xf62   :  { %8238 = vpow2.f32 %v7064_v8  ;;  %v7833_v56 = vld [vmem:[%s12711_s7 + $0xe8] ss:$16 sps:$4 sm:$0xff]   ;;  %v8620_v59 = vld [vmem:[%s12710_s18] sm:$0xff]  ;;  %v10733_v7 = vld [vmem:[%s12712_s8 + $0xc] ss:$16 sps:$4 sm:$0xff]  }
 0xf63   :  { %8240 = vpow2.f32 %v7065_v52  ;;  %v2966_v0 = vpack.c.bf16 %v10177_v24, %v8620_v59  ;;  %v10728_v24 = vld [vmem:[%s12712_s8 + $0x4] ss:$16 sps:$4 sm:$0xff]   ;;  %v10739_v55 = vld [vmem:[%s12712_s8] ss:$16 sps:$4 sm:$0xff]   ;;  %v10744_v3 = vld [vmem:[%s12712_s8 + $0x8] ss:$16 sps:$4 sm:$0xff]  }
 0xf64   :  { %8242 = vtanh.f32 %v2821_v50  ;;  %v7832_v50 = vld [vmem:[%s12711_s7 + $0xe4] ss:$16 sps:$4 sm:$0xff]   ;;  %v10757_v6 = vld [vmem:[%s12712_s8 + $0x2c] ss:$16 sps:$4 sm:$0xff]   ;;  %v10762_v51 = vld [vmem:[%s12712_s8 + $0x20] ss:$16 sps:$4 sm:$0xff]  }
 0xf65   :  { %v10752_v4 = vld [vmem:[%s12712_s8 + $0x24] ss:$16 sps:$4 sm:$0xff]   ;;  %v10767_v8 = vld [vmem:[%s12712_s8 + $0x28] ss:$16 sps:$4 sm:$0xff]  }
 0xf66   :  { %v10776_v52 = vld [vmem:[%s12712_s8 + $0x44] ss:$16 sps:$4 sm:$0xff]  }
 0xf6b   :  { %v8237_v9 = vpop.eup %8236 }
 0xf6c   :  { %v8239_v53 = vpop.eup %8238  ;;  %v2826_v10 = vadd.f32 1.0, %v8237_v9  ;;  %v10781_v9 = vld [vmem:[%s12712_s8 + $0x4c] ss:$16 sps:$4 sm:$0xff]  }
 0xf6d   :  { %v2832_v54 = vadd.f32 1.0, %v8239_v53  ;;  %v8241_v11 = vpop.eup %8240  ;;  %v10786_v53 = vld [vmem:[%s12712_s8 + $0x40] ss:$16 sps:$4 sm:$0xff]  }
 0xf6e   :  { %8244 = vrcp.f32 %v2826_v10  ;;  %v8243_v57 = vpop.eup %8242  ;;  %v2839_v1 = vadd.f32 1.0, %v8241_v11  ;;  %v10791_v10 = vld [vmem:[%s12712_s8 + $0x48] ss:$16 sps:$4 sm:$0xff]   ;;  %v10805_v11 = vld [vmem:[%s12712_s8 + $0x6c] ss:$16 sps:$4 sm:$0xff]  }
 0xf6f   :  { %8246 = vrcp.f32 %v2832_v54  ;;  %v10800_v54 = vld [vmem:[%s12712_s8 + $0x64] ss:$16 sps:$4 sm:$0xff]  }
 0xf70   :  { %8248 = vrcp.f32 %v2839_v1  ;;  %v10834_v1 = vld [vmem:[%s12712_s8 + $0x80] ss:$16 sps:$4 sm:$0xff]  }
 0xf78   :  { %v8245_v26 = vpop.eup %8244 }
 0xf79   :  { %v8247_v32 = vpop.eup %8246  ;;  %v2843_v29 = vmul.f32 %v8245_v26, %v8243_v57  ;;  %v10810_v57 = vld [vmem:[%s12712_s8 + $0x60] ss:$16 sps:$4 sm:$0xff]   ;;  %v10815_v26 = vld [vmem:[%s12712_s8 + $0x68] ss:$16 sps:$4 sm:$0xff]  }
 0xf7a   :  { %v2842_v42 = vmul.f32 %v8247_v32, %v10550_v20  ;;  %v8249_v14 = vpop.eup %8248  ;;  %v7803_v20 = vld [vmem:[%s12711_s7 + $0x48] ss:$16 sps:$4 sm:$0xff]   ;;  %v10824_v32 = vld [vmem:[%s12712_s8 + $0x84] ss:$16 sps:$4 sm:$0xff]  }
 0xf7c   :  { %v10608_v40 = vadd.f32 %v2843_v29, %v2842_v42  ;;  %v10829_v29 = vld [vmem:[%s12712_s8 + $0x8c] ss:$16 sps:$4 sm:$0xff]   ;;  %v10839_v42 = vld [vmem:[%s12712_s8 + $0x88] ss:$16 sps:$4 sm:$0xff]  }
 0xf7e   :  { %8250 = vtanh.f32 %v10608_v40 }
 0xf88   :  { %v8251_v35 = vpop.eup %8250 }
 0xf89   :  { %v10611_v43 = vmul.f32 %v8251_v35, %v8249_v14  ;;  %v10848_v14 = vld [vmem:[%s12712_s8 + $0xa4] ss:$16 sps:$4 sm:$0xff]   ;;  %v10853_v35 = vld [vmem:[%s12712_s8 + $0xac] ss:$16 sps:$4 sm:$0xff]  }
 0xf8b   :  { %v2847_v58 = vpack.c.bf16 %v10611_v43, %v10611_v43  ;;  %2964 = vst [vmem:[%s12710_s18 + $0x30] sm:$0xff] %v10611_v43 }
 0xf8d   :  { %2881 = vmatmul.mubr.bf16.vlgmr.msra.gmra.mrb[92].mxu0 %v2847_v58  ;;  %2922 = vmatmul.mubr.bf16.vlgmr.msra.gmra.mrb[92].mxu1 %v2847_v58  ;;  %v10872_v58 = vld [vmem:[%s12712_s8 + $0xc4] ss:$16 sps:$4 sm:$0xff]  }
 0xf8e   :  { %3185 = vmatpush1.bf16.msra.mxu0 %v7788_v12  ;;  %3258 = vmatpush1.bf16.msra.mxu1 %v7791_v13  ;;  %v10858_v12 = vld [vmem:[%s12712_s8 + $0xa0] ss:$16 sps:$4 sm:$0xff]   ;;  %v10863_v13 = vld [vmem:[%s12712_s8 + $0xa8] ss:$16 sps:$4 sm:$0xff]  }
 0xf8f   :  { %3186 = vmatprep.subr.bf16.mxu0 %v7796_v60  ;;  %3259 = vmatprep.subr.bf16.mxu1 %v7799_v38  ;;  %v10877_v60 = vld [vmem:[%s12712_s8 + $0xcc] ss:$16 sps:$4 sm:$0xff]   ;;  %v10882_v38 = vld [vmem:[%s12712_s8 + $0xc0] ss:$16 sps:$4 sm:$0xff]  }
 0xf90   :  { %3216 = vmatprep.mubr.bf16.mxu0 %v12779_v17  ;;  %3289 = vmatprep.mubr.bf16.mxu1 %v12779_v17 }
 0xf92   :  { %3187 = vmatpush1.bf16.msra.mxu0 %v7794_v39  ;;  %3260 = vmatpush1.bf16.msra.mxu1 %v7797_v62  ;;  %v10887_v39 = vld [vmem:[%s12712_s8 + $0xc8] ss:$16 sps:$4 sm:$0xff]   ;;  %v10896_v62 = vld [vmem:[%s12712_s8 + $0xe4] ss:$16 sps:$4 sm:$0xff]  }
 0xf93   :  { %3188 = vmatprep.subr.bf16.mxu0 %v7802_v63  ;;  %3261 = vmatprep.subr.bf16.mxu1 %v7805_v18  ;;  %v10901_v63 = vld [vmem:[%s12712_s8 + $0xec] ss:$16 sps:$4 sm:$0xff]   ;;  %v10906_v18 = vld [vmem:[%s12712_s8 + $0xe0] ss:$16 sps:$4 sm:$0xff]  }
 0xf96   :  { %3189 = vmatpush1.bf16.msra.mxu0 %v7800_v27  ;;  %3262 = vmatpush1.bf16.msra.mxu1 %v7803_v20  ;;  %v10911_v27 = vld [vmem:[%s12712_s8 + $0xe8] ss:$16 sps:$4 sm:$0xff]   ;;  %v12849_v20 = vld [vmem:[#allocation26_spill] sm:$0xff] }
 0xf97   :  { %3190 = vmatprep.subr.bf16.mxu0 %v7808_v31  ;;  %3263 = vmatprep.subr.bf16.mxu1 %v7811_v22  ;;  %v1802_v31 = vadd.f32 %v12849_v20, %v10102_v49  ;;  %v12850_v22 = vld [vmem:[#allocation27_spill] sm:$0xff] }
 0xf9a   :  { %3191 = vmatpush1.bf16.msra.mxu0 %v7806_v28  ;;  %3264 = vmatpush1.bf16.msra.mxu1 %v7809_v23  ;;  %v1875_v28 = vadd.f32 %v12850_v22, %v10105_v46  ;;  %v12851_v23 = vld [vmem:[#allocation28_spill] sm:$0xff] }
 0xf9b   :  { %3192 = vmatprep.subr.bf16.mxu0 %v7814_v34  ;;  %3265 = vmatprep.subr.bf16.mxu1 %v7817_v47  ;;  %v1804_v34 = vadd.f32 %v12851_v23, %v10112_v44  ;;  %v12852_v47 = vld [vmem:[#allocation29_spill] sm:$0xff] }
 0xf9e   :  { %3193 = vmatpush1.bf16.msra.mxu0 %v7812_v19  ;;  %3266 = vmatpush1.bf16.msra.mxu1 %v7815_v37  ;;  %v1877_v19 = vadd.f32 %v12852_v47, %v10115_v41 }
 0xf9f   :  { %3194 = vmatprep.subr.bf16.mxu0 %v7820_v45  ;;  %3267 = vmatprep.subr.bf16.mxu1 %v7823_v16 }
 0xfa2   :  { %3195 = vmatpush1.bf16.msra.mxu0 %v7818_v21  ;;  %3268 = vmatpush1.bf16.msra.mxu1 %v7821_v48 }
 0xfa3   :  { %3196 = vmatprep.subr.bf16.mxu0 %v7826_v61  ;;  %3269 = vmatprep.subr.bf16.mxu1 %v7829_v33 }
 0xfa6   :  { %3197 = vmatpush1.bf16.msra.mxu0 %v7824_v25  ;;  %3270 = vmatpush1.bf16.msra.mxu1 %v7827_v15 }
 0xfa7   :  { %3198 = vmatprep.subr.bf16.mxu0 %v7832_v50  ;;  %3271 = vmatprep.subr.bf16.mxu1 %v7835_v30 }
 0xfaa   :  { %3199 = vmatpush1.bf16.msra.mxu0 %v7830_v36  ;;  %3272 = vmatpush1.bf16.msra.mxu1 %v7833_v56 }
 0xfab   :  { %3522 = vmatprep.subr.bf16.mxu0 %v10728_v24  ;;  %3563 = vmatprep.subr.bf16.mxu1 %v10733_v7 }
 0xfad   :  { %3217 = vmatmul.mubr.bf16.vlgmr.msra.gmra.mrb[96].mxu0 %v2966_v0  ;;  %3290 = vmatmul.mubr.bf16.vlgmr.msra.gmra.mrb[96].mxu1 %v2966_v0 }
 0xfae   :  { %3226 = vmatprep.mubr.bf16.mxu0 %v12779_v17  ;;  %3299 = vmatprep.mubr.bf16.mxu1 %v12779_v17 }
 0xfaf   :  { %3523 = vmatpush1.bf16.msra.mxu0 %v10739_v55  ;;  %3564 = vmatpush1.bf16.msra.mxu1 %v10744_v3 }
 0xfb0   :  { %3524 = vmatprep.subr.bf16.mxu0 %v10752_v4  ;;  %3565 = vmatprep.subr.bf16.mxu1 %v10757_v6 }
 0xfb3   :  { %3525 = vmatpush1.bf16.msra.mxu0 %v10762_v51  ;;  %3566 = vmatpush1.bf16.msra.mxu1 %v10767_v8 }
 0xfb4   :  { %3526 = vmatprep.subr.bf16.mxu0 %v10776_v52  ;;  %3567 = vmatprep.subr.bf16.mxu1 %v10781_v9 }
 0xfb5   :  { %3227 = vmatmul.mubr.bf16.gmra.mrb[100].mxu0 %v2967_v2  ;;  %3300 = vmatmul.mubr.bf16.gmra.mrb[100].mxu1 %v2967_v2 }
 0xfb6   :  { %3236 = vmatprep.mubr.bf16.mxu0 %v12779_v17  ;;  %3309 = vmatprep.mubr.bf16.mxu1 %v12779_v17 }
 0xfb7   :  { %3527 = vmatpush1.bf16.msra.mxu0 %v10786_v53  ;;  %3568 = vmatpush1.bf16.msra.mxu1 %v10791_v10 }
 0xfb8   :  { %3528 = vmatprep.subr.bf16.mxu0 %v10800_v54  ;;  %3569 = vmatprep.subr.bf16.mxu1 %v10805_v11 }
 0xfbb   :  { %3529 = vmatpush1.bf16.msra.mxu0 %v10810_v57  ;;  %3570 = vmatpush1.bf16.msra.mxu1 %v10815_v26 }
 0xfbc   :  { %3530 = vmatprep.subr.bf16.mxu0 %v10824_v32  ;;  %3571 = vmatprep.subr.bf16.mxu1 %v10829_v29 }
 0xfbd   :  { %3237 = vmatmul.mubr.bf16.gmra.mrb[104].mxu0 %v2968_v5  ;;  %3310 = vmatmul.mubr.bf16.gmra.mrb[104].mxu1 %v2968_v5 }
 0xfbe   :  { %3246 = vmatprep.mubr.bf16.mxu0 %v12779_v17  ;;  %3319 = vmatprep.mubr.bf16.mxu1 %v12779_v17 }
 0xfbf   :  { %3531 = vmatpush1.bf16.msra.mxu0 %v10834_v1  ;;  %3572 = vmatpush1.bf16.msra.mxu1 %v10839_v42 }
 0xfc0   :  { %3532 = vmatprep.subr.bf16.mxu0 %v10848_v14  ;;  %3573 = vmatprep.subr.bf16.mxu1 %v10853_v35 }
 0xfc3   :  { %3533 = vmatpush1.bf16.msra.mxu0 %v10858_v12  ;;  %3574 = vmatpush1.bf16.msra.mxu1 %v10863_v13 }
 0xfc4   :  { %3534 = vmatprep.subr.bf16.mxu0 %v10872_v58  ;;  %3575 = vmatprep.subr.bf16.mxu1 %v10877_v60 }
 0xfc7   :  { %3535 = vmatpush1.bf16.msra.mxu0 %v10882_v38  ;;  %3576 = vmatpush1.bf16.msra.mxu1 %v10887_v39 }
 0xfc8   :  { %3536 = vmatprep.subr.bf16.mxu0 %v10896_v62  ;;  %3577 = vmatprep.subr.bf16.mxu1 %v10901_v63 }
 0xfcb   :  { %3537 = vmatpush1.bf16.msra.mxu0 %v10906_v18  ;;  %3578 = vmatpush1.bf16.msra.mxu1 %v10911_v27 }
 0xfcc   :  { %3633 = vmatprep.subr.bf16.mxu0 %v10728_v24  ;;  %3674 = vmatprep.subr.bf16.mxu1 %v10733_v7 }
0x1060   :  { %v2882_v37 = vpop.f32.mrb[92].mxu0  ;;  %v2923_v45 = vpop.f32.mrb[92].mxu1 }
0x1061   :  { %v2930_v16 = vadd.f32 %v2882_v37, %v1802_v31  ;;  %v2932_v21 = vadd.f32 %v2923_v45, %v1875_v28  ;;  %v2884_v48 = vpop.f32.mrb[93].mxu0  ;;  %v2925_v61 = vpop.f32.mrb[93].mxu1 }
0x1062   :  { %v2931_v33 = vadd.f32 %v2884_v48, %v1804_v34  ;;  %v2933_v25 = vadd.f32 %v2925_v61, %v1877_v19  ;;  %v2886_v15 = vpop.f32.mrb[94].mxu0  ;;  %v2927_v50 = vpop.f32.mrb[94].mxu1 }
0x1063   :  { %v7066_v49 = vmul.f32 -1.442695, %v2930_v16  ;;  %v2887_v30 = vpop.f32.mrb[95].mxu0  ;;  %v2928_v36 = vpop.f32.mrb[95].mxu1 }
0x1064   :  { %v7067_v46 = vmul.f32 -1.442695, %v2931_v33  ;;  %v7068_v44 = vmul.f32 -1.442695, %v2933_v25 }
0x1065   :  { %8252 = vpow2.f32 %v7066_v49 }
0x1066   :  { %8254 = vpow2.f32 %v7067_v46 }
0x1067   :  { %8256 = vpow2.f32 %v7068_v44 }
0x1068   :  { %8258 = vtanh.f32 %v2932_v21 }
0x106f   :  { %v8253_v56 = vpop.eup %8252 }
0x1070   :  { %v8255_v59 = vpop.eup %8254  ;;  %v2937_v41 = vadd.f32 1.0, %v8253_v56 }
0x1071   :  { %v2943_v0 = vadd.f32 1.0, %v8255_v59  ;;  %v8257_v2 = vpop.eup %8256 }
0x1072   :  { %8260 = vrcp.f32 %v2937_v41  ;;  %v8259_v5 = vpop.eup %8258  ;;  %v2950_v28 = vadd.f32 1.0, %v8257_v2 }
0x1073   :  { %8262 = vrcp.f32 %v2943_v0 }
0x1074   :  { %8264 = vrcp.f32 %v2950_v28  ;;  %v3002_v28 = vld [vmem:[%s12713_s9] sm:$0xf] }
0x107c   :  { %v8261_v20 = vpop.eup %8260 }
0x107d   :  { %v8263_v31 = vpop.eup %8262  ;;  %v2954_v22 = vmul.f32 %v8261_v20, %v8259_v5 }
0x107e   :  { %v2953_v23 = vmul.f32 %v8263_v31, %v10608_v40  ;;  %v8265_v30 = vpop.eup %8264 }
0x1080   :  { %v2955_v34 = vadd.f32 %v2954_v22, %v2953_v23  ;;  %v10928_v47 = vpop.f32.mrb[96].mxu0  ;;  %v10930_v19 = vpop.f32.mrb[96].mxu1 }
0x1081   :  { %v10932_v37 = vpop.f32.mrb[97].mxu0  ;;  %v10934_v45 = vpop.f32.mrb[97].mxu1 }
0x1082   :  { %8266 = vtanh.f32 %v2955_v34  ;;  %v10936_v16 = vpop.f32.mrb[98].mxu0  ;;  %v10938_v21 = vpop.f32.mrb[98].mxu1 }
0x1083   :  { %v10940_v48 = vpop.f32.mrb[99].mxu0  ;;  %v10942_v61 = vpop.f32.mrb[99].mxu1 }
0x1088   :  { %v10944_v40 = vpop.f32.mrb[100].mxu0  ;;  %v10946_v33 = vpop.f32.mrb[100].mxu1 }
0x1089   :  { %12853 = vst [vmem:[#allocation7_spill] sm:$0xff] %v10946_v33  ;;  %v10948_v25 = vpop.f32.mrb[101].mxu0  ;;  %v10950_v15 = vpop.f32.mrb[101].mxu1 }
0x108a   :  { %12854 = vst [vmem:[#allocation8_spill] sm:$0xff] %v10948_v25  ;;  %12855 = vst [vmem:[#allocation9_spill] sm:$0xff] %v10950_v15  ;;  %v10952_v50 = vpop.f32.mrb[102].mxu0  ;;  %v10954_v49 = vpop.f32.mrb[102].mxu1 }
0x108b   :  { %12856 = vst [vmem:[#allocation10_spill] sm:$0xff] %v10952_v50  ;;  %12857 = vst [vmem:[#allocation11_spill] sm:$0xff] %v10954_v49  ;;  %v10956_v36 = vpop.f32.mrb[103].mxu0  ;;  %v10958_v46 = vpop.f32.mrb[103].mxu1 }
0x108c   :  { %12858 = vst [vmem:[#allocation12_spill] sm:$0xff] %v10956_v36  ;;  %12859 = vst [vmem:[#allocation13_spill] sm:$0xff] %v10958_v46  ;;  %v8267_v44 = vpop.eup %8266 }
0x108d   :  { %v2957_v56 = vmul.f32 %v8267_v44, %v8265_v30 }
0x108f   :  { %2965 = vst [vmem:[%s12710_s18 + $0x38] sm:$0xff] %v2957_v56  ;;  %v2969_v59 = vpack.c.bf16 %v2957_v56, %v10611_v43 }
0x1090   :  { %v10964_v41 = vpop.f32.mrb[104].mxu0  ;;  %v10966_v0 = vpop.f32.mrb[104].mxu1 }
0x1091   :  { %12860 = vst [vmem:[#allocation14_spill] sm:$0xff] %v10964_v41  ;;  %12861 = vst [vmem:[#allocation15_spill] sm:$0xff] %v10966_v0  ;;  %v10968_v2 = vpop.f32.mrb[105].mxu0  ;;  %v10970_v5 = vpop.f32.mrb[105].mxu1  ;;  %3247 = vmatmul.mubr.bf16.gmra.mrb[108].mxu0 %v2969_v59  ;;  %3320 = vmatmul.mubr.bf16.gmra.mrb[108].mxu1 %v2969_v59 }
0x1092   :  { %12862 = vst [vmem:[#allocation16_spill] sm:$0xff] %v10968_v2  ;;  %12863 = vst [vmem:[#allocation17_spill] sm:$0xff] %v10970_v5  ;;  %v10972_v20 = vpop.f32.mrb[106].mxu0  ;;  %v10974_v31 = vpop.f32.mrb[106].mxu1  ;;  %3554 = vmatprep.mubr.bf16.mxu0 %v12779_v17  ;;  %3595 = vmatprep.mubr.bf16.mxu1 %v12779_v17 }
0x1093   :  { %12864 = vst [vmem:[#allocation18_spill] sm:$0xff] %v10972_v20  ;;  %12865 = vst [vmem:[#allocation19_spill] sm:$0xff] %v10974_v31  ;;  %v10978_v22 = vpop.f32.mrb[107].mxu0  ;;  %v10980_v43 = vpop.f32.mrb[107].mxu1  ;;  %v12875_v31 = vld [vmem:[#allocation3_spill] sm:$0xff] }
0x1094   :  { %12866 = vst [vmem:[#allocation20_spill] sm:$0xff] %v10978_v22  ;;  %12867 = vst [vmem:[#allocation21_spill] sm:$0xff] %v10980_v43  ;;  %v12874_v43 = vld [vmem:[#allocation5_spill] sm:$0xff]  ;;  %v11037_v20 = vrot.slane %v3002_v28, %v12875_v31 }
0x1095   :  { %v11034_v22 = vrot.slane %v3002_v28, %v12874_v43 }
0x1096   :  { %v3292_v43 = vadd.f32 %v10930_v19, %v11037_v20 }
0x1099   :  { %3555 = vmatmul.mubr.bf16.vlgmr.msra.gmra.mrb[112].mxu0 %v12779_v17  ;;  %3596 = vmatmul.mubr.bf16.vlgmr.msra.gmra.mrb[112].mxu1 %v12779_v17 }
0x109a   :  { %3634 = vmatpush1.bf16.msra.mxu0 %v10739_v55  ;;  %3675 = vmatpush1.bf16.msra.mxu1 %v10744_v3 }
0x109b   :  { %3635 = vmatprep.subr.bf16.mxu0 %v10752_v4  ;;  %3676 = vmatprep.subr.bf16.mxu1 %v10757_v6 }
0x109c   :  { %3665 = vmatprep.mubr.bf16.mxu0 %v12779_v17  ;;  %3706 = vmatprep.mubr.bf16.mxu1 %v12779_v17 }
0x109e   :  { %3636 = vmatpush1.bf16.msra.mxu0 %v10762_v51  ;;  %3677 = vmatpush1.bf16.msra.mxu1 %v10767_v8 }
0x109f   :  { %3637 = vmatprep.subr.bf16.mxu0 %v10776_v52  ;;  %3678 = vmatprep.subr.bf16.mxu1 %v10781_v9 }
0x10a2   :  { %3638 = vmatpush1.bf16.msra.mxu0 %v10786_v53  ;;  %3679 = vmatpush1.bf16.msra.mxu1 %v10791_v10 }
0x10a3   :  { %3639 = vmatprep.subr.bf16.mxu0 %v10800_v54  ;;  %3680 = vmatprep.subr.bf16.mxu1 %v10805_v11 }
0x10a6   :  { %3640 = vmatpush1.bf16.msra.mxu0 %v10810_v57  ;;  %3681 = vmatpush1.bf16.msra.mxu1 %v10815_v26 }
0x10a7   :  { %3641 = vmatprep.subr.bf16.mxu0 %v10824_v32  ;;  %3682 = vmatprep.subr.bf16.mxu1 %v10829_v29 }
0x10aa   :  { %3642 = vmatpush1.bf16.msra.mxu0 %v10834_v1  ;;  %3683 = vmatpush1.bf16.msra.mxu1 %v10839_v42 }
0x10ab   :  { %3643 = vmatprep.subr.bf16.mxu0 %v10848_v14  ;;  %3684 = vmatprep.subr.bf16.mxu1 %v10853_v35 }
0x10ae   :  { %3644 = vmatpush1.bf16.msra.mxu0 %v10858_v12  ;;  %3685 = vmatpush1.bf16.msra.mxu1 %v10863_v13 }
0x10af   :  { %3645 = vmatprep.subr.bf16.mxu0 %v10872_v58  ;;  %3686 = vmatprep.subr.bf16.mxu1 %v10877_v60 }
0x10b2   :  { %3646 = vmatpush1.bf16.msra.mxu0 %v10882_v38  ;;  %3687 = vmatpush1.bf16.msra.mxu1 %v10887_v39 }
0x10b3   :  { %3647 = vmatprep.subr.bf16.mxu0 %v10896_v62  ;;  %3688 = vmatprep.subr.bf16.mxu1 %v10901_v63 }
0x10b6   :  { %3648 = vmatpush1.bf16.msra.mxu0 %v10906_v18  ;;  %3689 = vmatpush1.bf16.msra.mxu1 %v10911_v27 }
0x10b7   :  { %3744 = vmatprep.subr.bf16.mxu0 %v10728_v24  ;;  %3785 = vmatprep.subr.bf16.mxu1 %v10733_v7 }
0x1164   :  { %v11021_v23 = vpop.f32.mrb[108].mxu0  ;;  %v11023_v34 = vpop.f32.mrb[108].mxu1 }
0x1165   :  { %12868 = vst [vmem:[#allocation22_spill] sm:$0xff] %v11021_v23  ;;  %12869 = vst [vmem:[#allocation23_spill] sm:$0xff] %v11023_v34  ;;  %v11025_v30 = vpop.f32.mrb[109].mxu0  ;;  %v11027_v44 = vpop.f32.mrb[109].mxu1  ;;  %v12878_v23 = vld [vmem:[#allocation6_spill] sm:$0xff] }
0x1166   :  { %12870 = vst [vmem:[#allocation24_spill] sm:$0xff] %v11025_v30  ;;  %12871 = vst [vmem:[#allocation25_spill] sm:$0xff] %v11027_v44  ;;  %v11029_v56 = vpop.f32.mrb[110].mxu0  ;;  %v11031_v59 = vpop.f32.mrb[110].mxu1  ;;  %v11044_v34 = vrot.slane %v3002_v28, %v12878_v23  ;;  %v12879_v30 = vld [vmem:[#allocation4_spill] sm:$0xff] }
0x1167   :  { %12872 = vst [vmem:[#allocation26_spill] sm:$0xff] %v11029_v56  ;;  %12873 = vst [vmem:[#allocation27_spill] sm:$0xff] %v11031_v59  ;;  %v11039_v5 = vpop.f32.mrb[111].mxu0  ;;  %v11041_v2 = vpop.f32.mrb[111].mxu1  ;;  %v11047_v0 = vrot.slane %v3002_v28, %v12879_v30  ;;  %v3219_v56 = vadd.f32 %v10928_v47, %v11034_v22 }
0x1168   :  { %12876 = vst [vmem:[#allocation28_spill] sm:$0xff] %v11039_v5  ;;  %12877 = vst [vmem:[#allocation29_spill] sm:$0xff] %v11041_v2  ;;  %v3221_v31 = vadd.f32 %v10932_v37, %v11044_v34 }
0x1169   :  { %v3294_v5 = vadd.f32 %v10934_v45, %v11047_v0 }
0x116c   :  { %v3556_v59 = vpop.f32.mrb[112].mxu0  ;;  %v3597_v2 = vpop.f32.mrb[112].mxu1 }
0x116d   :  { %v3604_v44 = vadd.f32 %v3556_v59, %v3219_v56  ;;  %v3606_v23 = vadd.f32 %v3597_v2, %v3292_v43  ;;  %v3558_v41 = vpop.f32.mrb[113].mxu0  ;;  %v3599_v46 = vpop.f32.mrb[113].mxu1  ;;  %v3298_v59 = vadd.f32 %v10942_v61, %v11047_v0 }
0x116e   :  { %v3605_v28 = vadd.f32 %v3558_v41, %v3221_v31  ;;  %v3607_v30 = vadd.f32 %v3599_v46, %v3294_v5  ;;  %v3560_v36 = vpop.f32.mrb[114].mxu0  ;;  %v3601_v49 = vpop.f32.mrb[114].mxu1 }
0x116f   :  { %v7133_v47 = vmul.f32 -1.442695, %v3604_v44  ;;  %v3561_v50 = vpop.f32.mrb[115].mxu0  ;;  %v3602_v15 = vpop.f32.mrb[115].mxu1  ;;  %v3225_v44 = vadd.f32 %v10940_v48, %v11044_v34 }
0x1170   :  { %v7134_v19 = vmul.f32 -1.442695, %v3605_v28  ;;  %v7135_v37 = vmul.f32 -1.442695, %v3607_v30  ;;  %v3296_v30 = vadd.f32 %v10938_v21, %v11037_v20 }
0x1171   :  { %8268 = vpow2.f32 %v7133_v47 }
0x1172   :  { %8270 = vpow2.f32 %v7134_v19 }
0x1173   :  { %8272 = vpow2.f32 %v7135_v37 }
0x1174   :  { %8274 = vtanh.f32 %v3606_v23  ;;  %v3223_v23 = vadd.f32 %v10936_v16, %v11034_v22 }
0x117b   :  { %v8269_v25 = vpop.eup %8268 }
0x117c   :  { %v8271_v33 = vpop.eup %8270  ;;  %v3611_v45 = vadd.f32 1.0, %v8269_v25 }
0x117d   :  { %v3617_v56 = vadd.f32 1.0, %v8271_v33  ;;  %v8273_v2 = vpop.eup %8272 }
0x117e   :  { %8276 = vrcp.f32 %v3611_v45  ;;  %v8275_v41 = vpop.eup %8274  ;;  %v3624_v5 = vadd.f32 1.0, %v8273_v2 }
0x117f   :  { %8278 = vrcp.f32 %v3617_v56 }
0x1180   :  { %8280 = vrcp.f32 %v3624_v5 }
0x1188   :  { %v8277_v46 = vpop.eup %8276 }
0x1189   :  { %v8279_v36 = vpop.eup %8278  ;;  %v3628_v49 = vmul.f32 %v8277_v46, %v8275_v41 }
0x118a   :  { %v3627_v50 = vmul.f32 0.0, %v8279_v36  ;;  %v8281_v31 = vpop.eup %8280 }
0x118c   :  { %v11057_v15 = vadd.f32 %v3628_v49, %v3627_v50 }
0x118e   :  { %8282 = vtanh.f32 %v11057_v15 }
0x1198   :  { %v8283_v43 = vpop.eup %8282 }
0x1199   :  { %v11060_v25 = vmul.f32 %v8283_v43, %v8281_v31 }
0x119b   :  { %v3632_v33 = vpack.c.bf16 %v11060_v25, %v11060_v25 }
0x119d   :  { %3666 = vmatmul.mubr.bf16.vlgmr.msra.gmra.mrb[116].mxu0 %v3632_v33  ;;  %3707 = vmatmul.mubr.bf16.vlgmr.msra.gmra.mrb[116].mxu1 %v3632_v33 }
0x119e   :  { %3745 = vmatpush1.bf16.msra.mxu0 %v10739_v55  ;;  %3786 = vmatpush1.bf16.msra.mxu1 %v10744_v3 }
0x119f   :  { %3746 = vmatprep.subr.bf16.mxu0 %v10752_v4  ;;  %3787 = vmatprep.subr.bf16.mxu1 %v10757_v6 }
0x11a0   :  { %3776 = vmatprep.mubr.bf16.mxu0 %v12779_v17  ;;  %3817 = vmatprep.mubr.bf16.mxu1 %v12779_v17 }
0x11a2   :  { %3747 = vmatpush1.bf16.msra.mxu0 %v10762_v51  ;;  %3788 = vmatpush1.bf16.msra.mxu1 %v10767_v8 }
0x11a3   :  { %3748 = vmatprep.subr.bf16.mxu0 %v10776_v52  ;;  %3789 = vmatprep.subr.bf16.mxu1 %v10781_v9 }
0x11a6   :  { %3749 = vmatpush1.bf16.msra.mxu0 %v10786_v53  ;;  %3790 = vmatpush1.bf16.msra.mxu1 %v10791_v10 }
0x11a7   :  { %3750 = vmatprep.subr.bf16.mxu0 %v10800_v54  ;;  %3791 = vmatprep.subr.bf16.mxu1 %v10805_v11 }
0x11aa   :  { %3751 = vmatpush1.bf16.msra.mxu0 %v10810_v57  ;;  %3792 = vmatpush1.bf16.msra.mxu1 %v10815_v26 }
0x11ab   :  { %3752 = vmatprep.subr.bf16.mxu0 %v10824_v32  ;;  %3793 = vmatprep.subr.bf16.mxu1 %v10829_v29 }
0x11ae   :  { %3753 = vmatpush1.bf16.msra.mxu0 %v10834_v1  ;;  %3794 = vmatpush1.bf16.msra.mxu1 %v10839_v42 }
0x11af   :  { %3754 = vmatprep.subr.bf16.mxu0 %v10848_v14  ;;  %3795 = vmatprep.subr.bf16.mxu1 %v10853_v35 }
0x11b2   :  { %3755 = vmatpush1.bf16.msra.mxu0 %v10858_v12  ;;  %3796 = vmatpush1.bf16.msra.mxu1 %v10863_v13 }
0x11b3   :  { %3756 = vmatprep.subr.bf16.mxu0 %v10872_v58  ;;  %3797 = vmatprep.subr.bf16.mxu1 %v10877_v60 }
0x11b6   :  { %3757 = vmatpush1.bf16.msra.mxu0 %v10882_v38  ;;  %3798 = vmatpush1.bf16.msra.mxu1 %v10887_v39 }
0x11b7   :  { %3758 = vmatprep.subr.bf16.mxu0 %v10896_v62  ;;  %3799 = vmatprep.subr.bf16.mxu1 %v10901_v63 }
0x11ba   :  { %3759 = vmatpush1.bf16.msra.mxu0 %v10906_v18  ;;  %3800 = vmatpush1.bf16.msra.mxu1 %v10911_v27 }
0x11bb   :  { %3855 = vmatprep.subr.bf16.mxu0 %v10728_v24  ;;  %3896 = vmatprep.subr.bf16.mxu1 %v10733_v7 }
0x1270   :  { %v3667_v28 = vpop.f32.mrb[116].mxu0  ;;  %v3708_v47 = vpop.f32.mrb[116].mxu1 }
0x1271   :  { %v3715_v19 = vadd.f32 %v3667_v28, %v3223_v23  ;;  %v3717_v37 = vadd.f32 %v3708_v47, %v3296_v30  ;;  %v3669_v45 = vpop.f32.mrb[117].mxu0  ;;  %v3710_v56 = vpop.f32.mrb[117].mxu1 }
0x1272   :  { %v3716_v2 = vadd.f32 %v3669_v45, %v3225_v44  ;;  %v3718_v41 = vadd.f32 %v3710_v56, %v3298_v59  ;;  %v3671_v46 = vpop.f32.mrb[118].mxu0  ;;  %v3712_v36 = vpop.f32.mrb[118].mxu1 }
0x1273   :  { %v7136_v16 = vmul.f32 -1.442695, %v3715_v19  ;;  %v3672_v49 = vpop.f32.mrb[119].mxu0  ;;  %v3713_v5 = vpop.f32.mrb[119].mxu1  ;;  %v12881_v36 = vld [vmem:[#allocation8_spill] sm:$0xff] }
0x1274   :  { %v7137_v21 = vmul.f32 -1.442695, %v3716_v2  ;;  %v7138_v48 = vmul.f32 -1.442695, %v3718_v41  ;;  %v12880_v41 = vld [vmem:[#allocation7_spill] sm:$0xff]  ;;  %v12882_v49 = vld [vmem:[#allocation9_spill] sm:$0xff] }
0x1275   :  { %8284 = vpow2.f32 %v7136_v16  ;;  %v3302_v46 = vadd.f32 %v12880_v41, %v11037_v20  ;;  %v3231_v16 = vadd.f32 %v12881_v36, %v11044_v34  ;;  %v3304_v5 = vadd.f32 %v12882_v49, %v11047_v0 }
0x1276   :  { %8286 = vpow2.f32 %v7137_v21 }
0x1277   :  { %8288 = vpow2.f32 %v7138_v48 }
0x1278   :  { %8290 = vtanh.f32 %v3717_v37 }
0x127f   :  { %v8285_v50 = vpop.eup %8284 }
0x1280   :  { %v8287_v31 = vpop.eup %8286  ;;  %v3722_v61 = vadd.f32 1.0, %v8285_v50 }
0x1281   :  { %v3728_v43 = vadd.f32 1.0, %v8287_v31  ;;  %v8289_v33 = vpop.eup %8288 }
0x1282   :  { %8292 = vrcp.f32 %v3722_v61  ;;  %v8291_v23 = vpop.eup %8290  ;;  %v3735_v28 = vadd.f32 1.0, %v8289_v33 }
0x1283   :  { %8294 = vrcp.f32 %v3728_v43 }
0x1284   :  { %8296 = vrcp.f32 %v3735_v28 }
0x128c   :  { %v8293_v30 = vpop.eup %8292 }
0x128d   :  { %v8295_v44 = vpop.eup %8294  ;;  %v3739_v59 = vmul.f32 %v8293_v30, %v8291_v23 }
0x128e   :  { %v3738_v47 = vmul.f32 %v8295_v44, %v11057_v15  ;;  %v8297_v45 = vpop.eup %8296  ;;  %v3229_v15 = vadd.f32 %v10944_v40, %v11034_v22 }
0x1290   :  { %v11107_v19 = vadd.f32 %v3739_v59, %v3738_v47 }
0x1292   :  { %8298 = vtanh.f32 %v11107_v19 }
0x129c   :  { %v8299_v56 = vpop.eup %8298 }
0x129d   :  { %v11110_v2 = vmul.f32 %v8299_v56, %v8297_v45 }
0x129f   :  { %v3743_v37 = vpack.c.bf16 %v11110_v2, %v11110_v2 }
0x12a1   :  { %3777 = vmatmul.mubr.bf16.vlgmr.msra.gmra.mrb[120].mxu0 %v3743_v37  ;;  %3818 = vmatmul.mubr.bf16.vlgmr.msra.gmra.mrb[120].mxu1 %v3743_v37 }
0x12a2   :  { %3856 = vmatpush1.bf16.msra.mxu0 %v10739_v55  ;;  %3897 = vmatpush1.bf16.msra.mxu1 %v10744_v3 }
0x12a3   :  { %3857 = vmatprep.subr.bf16.mxu0 %v10752_v4  ;;  %3898 = vmatprep.subr.bf16.mxu1 %v10757_v6 }
0x12a4   :  { %3887 = vmatprep.mubr.bf16.mxu0 %v12779_v17  ;;  %3928 = vmatprep.mubr.bf16.mxu1 %v12779_v17 }
0x12a6   :  { %3858 = vmatpush1.bf16.msra.mxu0 %v10762_v51  ;;  %3899 = vmatpush1.bf16.msra.mxu1 %v10767_v8 }
0x12a7   :  { %3859 = vmatprep.subr.bf16.mxu0 %v10776_v52  ;;  %3900 = vmatprep.subr.bf16.mxu1 %v10781_v9 }
0x12aa   :  { %3860 = vmatpush1.bf16.msra.mxu0 %v10786_v53  ;;  %3901 = vmatpush1.bf16.msra.mxu1 %v10791_v10 }
0x12ab   :  { %3861 = vmatprep.subr.bf16.mxu0 %v10800_v54  ;;  %3902 = vmatprep.subr.bf16.mxu1 %v10805_v11 }
0x12ae   :  { %3862 = vmatpush1.bf16.msra.mxu0 %v10810_v57  ;;  %3903 = vmatpush1.bf16.msra.mxu1 %v10815_v26 }
0x12af   :  { %3863 = vmatprep.subr.bf16.mxu0 %v10824_v32  ;;  %3904 = vmatprep.subr.bf16.mxu1 %v10829_v29 }
0x12b2   :  { %3864 = vmatpush1.bf16.msra.mxu0 %v10834_v1  ;;  %3905 = vmatpush1.bf16.msra.mxu1 %v10839_v42 }
0x12b3   :  { %3865 = vmatprep.subr.bf16.mxu0 %v10848_v14  ;;  %3906 = vmatprep.subr.bf16.mxu1 %v10853_v35 }
0x12b6   :  { %3866 = vmatpush1.bf16.msra.mxu0 %v10858_v12  ;;  %3907 = vmatpush1.bf16.msra.mxu1 %v10863_v13 }
0x12b7   :  { %3867 = vmatprep.subr.bf16.mxu0 %v10872_v58  ;;  %3908 = vmatprep.subr.bf16.mxu1 %v10877_v60 }
0x12ba   :  { %3868 = vmatpush1.bf16.msra.mxu0 %v10882_v38  ;;  %3909 = vmatpush1.bf16.msra.mxu1 %v10887_v39 }
0x12bb   :  { %3869 = vmatprep.subr.bf16.mxu0 %v10896_v62  ;;  %3910 = vmatprep.subr.bf16.mxu1 %v10901_v63 }
0x12be   :  { %3870 = vmatpush1.bf16.msra.mxu0 %v10906_v18  ;;  %3911 = vmatpush1.bf16.msra.mxu1 %v10911_v27 }
0x12bf   :  { %3966 = vmatprep.subr.bf16.mxu0 %v10728_v24  ;;  %4007 = vmatprep.subr.bf16.mxu1 %v10733_v7 }
0x1374   :  { %v3778_v21 = vpop.f32.mrb[120].mxu0  ;;  %v3819_v48 = vpop.f32.mrb[120].mxu1 }
0x1375   :  { %v3826_v50 = vadd.f32 %v3778_v21, %v3229_v15  ;;  %v3828_v31 = vadd.f32 %v3819_v48, %v3302_v46  ;;  %v3780_v61 = vpop.f32.mrb[121].mxu0  ;;  %v3821_v43 = vpop.f32.mrb[121].mxu1 }
0x1376   :  { %v3827_v33 = vadd.f32 %v3780_v61, %v3231_v16  ;;  %v3829_v23 = vadd.f32 %v3821_v43, %v3304_v5  ;;  %v3782_v30 = vpop.f32.mrb[122].mxu0  ;;  %v3823_v44 = vpop.f32.mrb[122].mxu1 }
0x1377   :  { %v7139_v40 = vmul.f32 -1.442695, %v3826_v50  ;;  %v3783_v59 = vpop.f32.mrb[123].mxu0  ;;  %v3824_v28 = vpop.f32.mrb[123].mxu1  ;;  %v12884_v30 = vld [vmem:[#allocation11_spill] sm:$0xff] }
0x1378   :  { %v7140_v47 = vmul.f32 -1.442695, %v3827_v33  ;;  %v7141_v45 = vmul.f32 -1.442695, %v3829_v23  ;;  %v3306_v44 = vadd.f32 %v12884_v30, %v11037_v20  ;;  %v12886_v28 = vld [vmem:[#allocation13_spill] sm:$0xff] }
0x1379   :  { %8300 = vpow2.f32 %v7139_v40  ;;  %v12885_v40 = vld [vmem:[#allocation12_spill] sm:$0xff] }
0x137a   :  { %8302 = vpow2.f32 %v7140_v47  ;;  %v3235_v59 = vadd.f32 %v12885_v40, %v11044_v34  ;;  %v3308_v47 = vadd.f32 %v12886_v28, %v11047_v0 }
0x137b   :  { %8304 = vpow2.f32 %v7141_v45 }
0x137c   :  { %8306 = vtanh.f32 %v3828_v31 }
0x1383   :  { %v8301_v56 = vpop.eup %8300 }
0x1384   :  { %v8303_v37 = vpop.eup %8302  ;;  %v3833_v41 = vadd.f32 1.0, %v8301_v56 }
0x1385   :  { %v3839_v15 = vadd.f32 1.0, %v8303_v37  ;;  %v8305_v46 = vpop.eup %8304 }
0x1386   :  { %8308 = vrcp.f32 %v3833_v41  ;;  %v8307_v36 = vpop.eup %8306  ;;  %v3846_v21 = vadd.f32 1.0, %v8305_v46 }
0x1387   :  { %8310 = vrcp.f32 %v3839_v15 }
0x1388   :  { %8312 = vrcp.f32 %v3846_v21 }
0x1390   :  { %v8309_v16 = vpop.eup %8308 }
0x1391   :  { %v8311_v49 = vpop.eup %8310  ;;  %v3850_v5 = vmul.f32 %v8309_v16, %v8307_v36 }
0x1392   :  { %v3849_v48 = vmul.f32 %v8311_v49, %v11107_v19  ;;  %v8313_v61 = vpop.eup %8312  ;;  %v12883_v19 = vld [vmem:[#allocation10_spill] sm:$0xff] }
0x1393   :  { %v3233_v23 = vadd.f32 %v12883_v19, %v11034_v22 }
0x1394   :  { %v11157_v50 = vadd.f32 %v3850_v5, %v3849_v48 }
0x1396   :  { %8314 = vtanh.f32 %v11157_v50 }
0x13a0   :  { %v8315_v43 = vpop.eup %8314 }
0x13a1   :  { %v11160_v33 = vmul.f32 %v8315_v43, %v8313_v61 }
0x13a3   :  { %v3854_v31 = vpack.c.bf16 %v11160_v33, %v11160_v33 }
0x13a5   :  { %3888 = vmatmul.mubr.bf16.vlgmr.msra.gmra.mrb[124].mxu0 %v3854_v31  ;;  %3929 = vmatmul.mubr.bf16.vlgmr.msra.gmra.mrb[124].mxu1 %v3854_v31 }
0x13a6   :  { %3967 = vmatpush1.bf16.msra.mxu0 %v10739_v55  ;;  %4008 = vmatpush1.bf16.msra.mxu1 %v10744_v3 }
0x13a7   :  { %3968 = vmatprep.subr.bf16.mxu0 %v10752_v4  ;;  %4009 = vmatprep.subr.bf16.mxu1 %v10757_v6 }
0x13a8   :  { %3998 = vmatprep.mubr.bf16.mxu0 %v12779_v17  ;;  %4039 = vmatprep.mubr.bf16.mxu1 %v12779_v17 }
0x13aa   :  { %3969 = vmatpush1.bf16.msra.mxu0 %v10762_v51  ;;  %4010 = vmatpush1.bf16.msra.mxu1 %v10767_v8 }
0x13ab   :  { %3970 = vmatprep.subr.bf16.mxu0 %v10776_v52  ;;  %4011 = vmatprep.subr.bf16.mxu1 %v10781_v9 }
0x13ae   :  { %3971 = vmatpush1.bf16.msra.mxu0 %v10786_v53  ;;  %4012 = vmatpush1.bf16.msra.mxu1 %v10791_v10 }
0x13af   :  { %3972 = vmatprep.subr.bf16.mxu0 %v10800_v54  ;;  %4013 = vmatprep.subr.bf16.mxu1 %v10805_v11 }
0x13b2   :  { %3973 = vmatpush1.bf16.msra.mxu0 %v10810_v57  ;;  %4014 = vmatpush1.bf16.msra.mxu1 %v10815_v26 }
0x13b3   :  { %3974 = vmatprep.subr.bf16.mxu0 %v10824_v32  ;;  %4015 = vmatprep.subr.bf16.mxu1 %v10829_v29 }
0x13b6   :  { %3975 = vmatpush1.bf16.msra.mxu0 %v10834_v1  ;;  %4016 = vmatpush1.bf16.msra.mxu1 %v10839_v42 }
0x13b7   :  { %3976 = vmatprep.subr.bf16.mxu0 %v10848_v14  ;;  %4017 = vmatprep.subr.bf16.mxu1 %v10853_v35 }
0x13ba   :  { %3977 = vmatpush1.bf16.msra.mxu0 %v10858_v12  ;;  %4018 = vmatpush1.bf16.msra.mxu1 %v10863_v13 }
0x13bb   :  { %3978 = vmatprep.subr.bf16.mxu0 %v10872_v58  ;;  %4019 = vmatprep.subr.bf16.mxu1 %v10877_v60 }
0x13be   :  { %3979 = vmatpush1.bf16.msra.mxu0 %v10882_v38  ;;  %4020 = vmatpush1.bf16.msra.mxu1 %v10887_v39 }
0x13bf   :  { %3980 = vmatprep.subr.bf16.mxu0 %v10896_v62  ;;  %4021 = vmatprep.subr.bf16.mxu1 %v10901_v63 }
0x13c2   :  { %3981 = vmatpush1.bf16.msra.mxu0 %v10906_v18  ;;  %4022 = vmatpush1.bf16.msra.mxu1 %v10911_v27 }
0x13c3   :  { %4077 = vmatprep.subr.bf16.mxu0 %v10728_v24  ;;  %4118 = vmatprep.subr.bf16.mxu1 %v10733_v7 }
0x1478   :  { %v3889_v45 = vpop.f32.mrb[124].mxu0  ;;  %v3930_v56 = vpop.f32.mrb[124].mxu1 }
0x1479   :  { %v3937_v37 = vadd.f32 %v3889_v45, %v3233_v23  ;;  %v3939_v41 = vadd.f32 %v3930_v56, %v3306_v44  ;;  %v3891_v15 = vpop.f32.mrb[125].mxu0  ;;  %v3932_v24 = vpop.f32.mrb[125].mxu1 }
0x147a   :  { %v3938_v46 = vadd.f32 %v3891_v15, %v3235_v59  ;;  %v3940_v7 = vadd.f32 %v3932_v24, %v3308_v47  ;;  %v3893_v36 = vpop.f32.mrb[126].mxu0  ;;  %v3934_v16 = vpop.f32.mrb[126].mxu1 }
0x147b   :  { %v7142_v49 = vmul.f32 -1.442695, %v3937_v37  ;;  %v3894_v5 = vpop.f32.mrb[127].mxu0  ;;  %v3935_v21 = vpop.f32.mrb[127].mxu1 }
0x147c   :  { %v7143_v48 = vmul.f32 -1.442695, %v3938_v46  ;;  %v7144_v61 = vmul.f32 -1.442695, %v3940_v7 }
0x147d   :  { %8316 = vpow2.f32 %v7142_v49 }
0x147e   :  { %8318 = vpow2.f32 %v7143_v48 }
0x147f   :  { %8320 = vpow2.f32 %v7144_v61 }
0x1480   :  { %8322 = vtanh.f32 %v3939_v41 }
0x1487   :  { %v8317_v43 = vpop.eup %8316 }
0x1488   :  { %v8319_v31 = vpop.eup %8318  ;;  %v3944_v19 = vadd.f32 1.0, %v8317_v43 }
0x1489   :  { %v3950_v23 = vadd.f32 1.0, %v8319_v31  ;;  %v8321_v30 = vpop.eup %8320  ;;  %v11277_v31 = vld [vmem:[%s12712_s8] ss:$16 sps:$4 sm:$0xff]  }
0x148a   :  { %8324 = vrcp.f32 %v3944_v19  ;;  %v8323_v44 = vpop.eup %8322  ;;  %v3957_v47 = vadd.f32 1.0, %v8321_v30  ;;  %v11283_v19 = vld [vmem:[%s12712_s8 + $0x8] ss:$16 sps:$4 sm:$0xff]   ;;  %v11295_v30 = vld [vmem:[%s12712_s8 + $0x2c] ss:$16 sps:$4 sm:$0xff]  }
0x148b   :  { %8326 = vrcp.f32 %v3950_v23  ;;  %v11289_v23 = vld [vmem:[%s12712_s8 + $0x24] ss:$16 sps:$4 sm:$0xff]  }
0x148c   :  { %8328 = vrcp.f32 %v3957_v47  ;;  %v11327_v47 = vld [vmem:[%s12712_s8 + $0x40] ss:$16 sps:$4 sm:$0xff]  }
0x1494   :  { %v8325_v40 = vpop.eup %8324 }
0x1495   :  { %v8327_v59 = vpop.eup %8326  ;;  %v3961_v28 = vmul.f32 %v8325_v40, %v8323_v44  ;;  %v11303_v44 = vld [vmem:[%s12712_s8 + $0x20] ss:$16 sps:$4 sm:$0xff]   ;;  %v11309_v40 = vld [vmem:[%s12712_s8 + $0x28] ss:$16 sps:$4 sm:$0xff]  }
0x1496   :  { %v3960_v45 = vmul.f32 %v8327_v59, %v11157_v50  ;;  %v8329_v37 = vpop.eup %8328  ;;  %v11315_v59 = vld [vmem:[%s12712_s8 + $0x44] ss:$16 sps:$4 sm:$0xff]  }
0x1498   :  { %v11207_v56 = vadd.f32 %v3961_v28, %v3960_v45  ;;  %v11321_v28 = vld [vmem:[%s12712_s8 + $0x4c] ss:$16 sps:$4 sm:$0xff]   ;;  %v11333_v45 = vld [vmem:[%s12712_s8 + $0x48] ss:$16 sps:$4 sm:$0xff]  }
0x149a   :  { %8330 = vtanh.f32 %v11207_v56 }
0x14a4   :  { %v8331_v15 = vpop.eup %8330 }
0x14a5   :  { %v11210_v24 = vmul.f32 %v8331_v15, %v8329_v37  ;;  %v11345_v37 = vld [vmem:[%s12712_s8 + $0x6c] ss:$16 sps:$4 sm:$0xff]   ;;  %v11351_v15 = vld [vmem:[%s12712_s8 + $0x60] ss:$16 sps:$4 sm:$0xff]  }
0x14a7   :  { %v3965_v41 = vpack.c.bf16 %v11210_v24, %v11210_v24 }
0x14a9   :  { %3999 = vmatmul.mubr.bf16.vlgmr.msra.gmra.mrb[128].mxu0 %v3965_v41  ;;  %4040 = vmatmul.mubr.bf16.vlgmr.msra.gmra.mrb[128].mxu1 %v3965_v41  ;;  %v11357_v41 = vld [vmem:[%s12712_s8 + $0x68] ss:$16 sps:$4 sm:$0xff]  }
0x14aa   :  { %4078 = vmatpush1.bf16.msra.mxu0 %v10739_v55  ;;  %4119 = vmatpush1.bf16.msra.mxu1 %v10744_v3  ;;  %v11249_v55 = vld [vmem:[%s12712_s8 + $0x4] ss:$16 sps:$4 sm:$0xff]   ;;  %v11255_v3 = vld [vmem:[%s12712_s8 + $0xc] ss:$16 sps:$4 sm:$0xff]  }
0x14ab   :  { %4079 = vmatprep.subr.bf16.mxu0 %v10752_v4  ;;  %4120 = vmatprep.subr.bf16.mxu1 %v10757_v6  ;;  %v12887_v4 = vld [vmem:[#allocation14_spill] sm:$0xff] }
0x14ac   :  { %4109 = vmatprep.mubr.bf16.mxu0 %v12779_v17  ;;  %4150 = vmatprep.mubr.bf16.mxu1 %v12779_v17  ;;  %v3239_v6 = vadd.f32 %v12887_v4, %v11034_v22  ;;  %v11363_v4 = vld [vmem:[%s12712_s8 + $0x84] ss:$16 sps:$4 sm:$0xff]  }
0x14ae   :  { %4080 = vmatpush1.bf16.msra.mxu0 %v10762_v51  ;;  %4121 = vmatpush1.bf16.msra.mxu1 %v10767_v8  ;;  %v12888_v51 = vld [vmem:[#allocation15_spill] sm:$0xff] }
0x14af   :  { %4081 = vmatprep.subr.bf16.mxu0 %v10776_v52  ;;  %4122 = vmatprep.subr.bf16.mxu1 %v10781_v9  ;;  %v3312_v8 = vadd.f32 %v12888_v51, %v11037_v20  ;;  %v12889_v52 = vld [vmem:[#allocation16_spill] sm:$0xff] }
0x14b0   :  { %v3241_v9 = vadd.f32 %v12889_v52, %v11044_v34  ;;  %v11375_v51 = vld [vmem:[%s12712_s8 + $0x80] ss:$16 sps:$4 sm:$0xff]   ;;  %v11387_v52 = vld [vmem:[%s12712_s8 + $0xa4] ss:$16 sps:$4 sm:$0xff]  }
0x14b2   :  { %4082 = vmatpush1.bf16.msra.mxu0 %v10786_v53  ;;  %4123 = vmatpush1.bf16.msra.mxu1 %v10791_v10  ;;  %v12890_v53 = vld [vmem:[#allocation17_spill] sm:$0xff] }
0x14b3   :  { %4083 = vmatprep.subr.bf16.mxu0 %v10800_v54  ;;  %4124 = vmatprep.subr.bf16.mxu1 %v10805_v11  ;;  %v3314_v10 = vadd.f32 %v12890_v53, %v11047_v0  ;;  %v11399_v53 = vld [vmem:[%s12712_s8 + $0xa0] ss:$16 sps:$4 sm:$0xff]  }
0x14b6   :  { %4084 = vmatpush1.bf16.msra.mxu0 %v10810_v57  ;;  %4125 = vmatpush1.bf16.msra.mxu1 %v10815_v26 }
0x14b7   :  { %4085 = vmatprep.subr.bf16.mxu0 %v10824_v32  ;;  %4126 = vmatprep.subr.bf16.mxu1 %v10829_v29 }
0x14ba   :  { %4086 = vmatpush1.bf16.msra.mxu0 %v10834_v1  ;;  %4127 = vmatpush1.bf16.msra.mxu1 %v10839_v42 }
0x14bb   :  { %4087 = vmatprep.subr.bf16.mxu0 %v10848_v14  ;;  %4128 = vmatprep.subr.bf16.mxu1 %v10853_v35 }
0x14be   :  { %4088 = vmatpush1.bf16.msra.mxu0 %v10858_v12  ;;  %4129 = vmatpush1.bf16.msra.mxu1 %v10863_v13 }
0x14bf   :  { %4089 = vmatprep.subr.bf16.mxu0 %v10872_v58  ;;  %4130 = vmatprep.subr.bf16.mxu1 %v10877_v60 }
0x14c2   :  { %4090 = vmatpush1.bf16.msra.mxu0 %v10882_v38  ;;  %4131 = vmatpush1.bf16.msra.mxu1 %v10887_v39 }
0x14c3   :  { %4091 = vmatprep.subr.bf16.mxu0 %v10896_v62  ;;  %4132 = vmatprep.subr.bf16.mxu1 %v10901_v63 }
0x14c6   :  { %4092 = vmatpush1.bf16.msra.mxu0 %v10906_v18  ;;  %4133 = vmatpush1.bf16.msra.mxu1 %v10911_v27 }
0x14c7   :  { %4188 = vmatprep.subr.bf16.mxu0 %v11249_v55  ;;  %4229 = vmatprep.subr.bf16.mxu1 %v11255_v3 }
0x157c   :  { %v4000_v54 = vpop.f32.mrb[128].mxu0  ;;  %v4041_v11 = vpop.f32.mrb[128].mxu1 }
0x157d   :  { %v4048_v57 = vadd.f32 %v4000_v54, %v3239_v6  ;;  %v4050_v26 = vadd.f32 %v4041_v11, %v3312_v8  ;;  %v4002_v32 = vpop.f32.mrb[129].mxu0  ;;  %v4043_v29 = vpop.f32.mrb[129].mxu1  ;;  %v11369_v6 = vld [vmem:[%s12712_s8 + $0x8c] ss:$16 sps:$4 sm:$0xff]   ;;  %v11381_v8 = vld [vmem:[%s12712_s8 + $0x88] ss:$16 sps:$4 sm:$0xff]  }
0x157e   :  { %v4049_v1 = vadd.f32 %v4002_v32, %v3241_v9  ;;  %v4051_v42 = vadd.f32 %v4043_v29, %v3314_v10  ;;  %v4004_v14 = vpop.f32.mrb[130].mxu0  ;;  %v4045_v35 = vpop.f32.mrb[130].mxu1  ;;  %v11393_v9 = vld [vmem:[%s12712_s8 + $0xac] ss:$16 sps:$4 sm:$0xff]   ;;  %v11405_v10 = vld [vmem:[%s12712_s8 + $0xa8] ss:$16 sps:$4 sm:$0xff]  }
0x157f   :  { %v7145_v12 = vmul.f32 -1.442695, %v4048_v57  ;;  %v4005_v13 = vpop.f32.mrb[131].mxu0  ;;  %v4046_v58 = vpop.f32.mrb[131].mxu1  ;;  %v11411_v54 = vld [vmem:[%s12712_s8 + $0xc4] ss:$16 sps:$4 sm:$0xff]  }
0x1580   :  { %v7146_v60 = vmul.f32 -1.442695, %v4049_v1  ;;  %v7147_v38 = vmul.f32 -1.442695, %v4051_v42  ;;  %v11417_v11 = vld [vmem:[%s12712_s8 + $0xcc] ss:$16 sps:$4 sm:$0xff]  }
0x1581   :  { %8332 = vpow2.f32 %v7145_v12  ;;  %v11423_v57 = vld [vmem:[%s12712_s8 + $0xc0] ss:$16 sps:$4 sm:$0xff]   ;;  %v11435_v32 = vld [vmem:[%s12712_s8 + $0xe4] ss:$16 sps:$4 sm:$0xff]   ;;  %v11441_v29 = vld [vmem:[%s12712_s8 + $0xec] ss:$16 sps:$4 sm:$0xff]  }
0x1582   :  { %8334 = vpow2.f32 %v7146_v60  ;;  %v11447_v1 = vld [vmem:[%s12712_s8 + $0xe0] ss:$16 sps:$4 sm:$0xff]   ;;  %v11453_v42 = vld [vmem:[%s12712_s8 + $0xe8] ss:$16 sps:$4 sm:$0xff]  }
0x1583   :  { %8336 = vpow2.f32 %v7147_v38  ;;  %v12891_v14 = vld [vmem:[#allocation18_spill] sm:$0xff]  ;;  %v12892_v12 = vld [vmem:[#allocation19_spill] sm:$0xff]  ;;  %v12893_v58 = vld [vmem:[#allocation20_spill] sm:$0xff] }
0x1584   :  { %8338 = vtanh.f32 %v4050_v26  ;;  %v11429_v26 = vld [vmem:[%s12712_s8 + $0xc8] ss:$16 sps:$4 sm:$0xff]   ;;  %v3243_v35 = vadd.f32 %v12891_v14, %v11034_v22  ;;  %v3316_v13 = vadd.f32 %v12892_v12, %v11037_v20  ;;  %v3245_v60 = vadd.f32 %v12893_v58, %v11044_v34 }
0x1585   :  { %v12894_v38 = vld [vmem:[#allocation21_spill] sm:$0xff] }
0x158b   :  { %v8333_v39 = vpop.eup %8332 }
0x158c   :  { %v8335_v62 = vpop.eup %8334  ;;  %v4055_v63 = vadd.f32 1.0, %v8333_v39  ;;  %v3318_v39 = vadd.f32 %v12894_v38, %v11047_v0 }
0x158d   :  { %v4061_v18 = vadd.f32 1.0, %v8335_v62  ;;  %v8337_v27 = vpop.eup %8336 }
0x158e   :  { %8340 = vrcp.f32 %v4055_v63  ;;  %v8339_v50 = vpop.eup %8338  ;;  %v4068_v16 = vadd.f32 1.0, %v8337_v27 }
0x158f   :  { %8342 = vrcp.f32 %v4061_v18 }
0x1590   :  { %8344 = vrcp.f32 %v4068_v16 }
0x1598   :  { %v8341_v46 = vpop.eup %8340 }
0x1599   :  { %v8343_v7 = vpop.eup %8342  ;;  %v4072_v36 = vmul.f32 %v8341_v46, %v8339_v50 }
0x159a   :  { %v4071_v49 = vmul.f32 %v8343_v7, %v11207_v56  ;;  %v8345_v21 = vpop.eup %8344  ;;  %v11339_v56 = vld [vmem:[%s12712_s8 + $0x64] ss:$16 sps:$4 sm:$0xff]  }
0x159c   :  { %v11267_v5 = vadd.f32 %v4072_v36, %v4071_v49 }
0x159e   :  { %8346 = vtanh.f32 %v11267_v5 }
0x15a8   :  { %v8347_v48 = vpop.eup %8346 }
0x15a9   :  { %v11270_v61 = vmul.f32 %v8347_v48, %v8345_v21 }
0x15ab   :  { %v4076_v43 = vpack.c.bf16 %v11270_v61, %v11270_v61 }
0x15ad   :  { %4110 = vmatmul.mubr.bf16.vlgmr.msra.gmra.mrb[132].mxu0 %v4076_v43  ;;  %4151 = vmatmul.mubr.bf16.vlgmr.msra.gmra.mrb[132].mxu1 %v4076_v43 }
0x15ae   :  { %4189 = vmatpush1.bf16.msra.mxu0 %v11277_v31  ;;  %4230 = vmatpush1.bf16.msra.mxu1 %v11283_v19 }
0x15af   :  { %4190 = vmatprep.subr.bf16.mxu0 %v11289_v23  ;;  %4231 = vmatprep.subr.bf16.mxu1 %v11295_v30 }
0x15b0   :  { %4220 = vmatprep.mubr.bf16.mxu0 %v12779_v17  ;;  %4261 = vmatprep.mubr.bf16.mxu1 %v12779_v17 }
0x15b2   :  { %4191 = vmatpush1.bf16.msra.mxu0 %v11303_v44  ;;  %4232 = vmatpush1.bf16.msra.mxu1 %v11309_v40 }
0x15b3   :  { %4192 = vmatprep.subr.bf16.mxu0 %v11315_v59  ;;  %4233 = vmatprep.subr.bf16.mxu1 %v11321_v28 }
0x15b6   :  { %4193 = vmatpush1.bf16.msra.mxu0 %v11327_v47  ;;  %4234 = vmatpush1.bf16.msra.mxu1 %v11333_v45 }
0x15b7   :  { %4194 = vmatprep.subr.bf16.mxu0 %v11339_v56  ;;  %4235 = vmatprep.subr.bf16.mxu1 %v11345_v37 }
0x15ba   :  { %4195 = vmatpush1.bf16.msra.mxu0 %v11351_v15  ;;  %4236 = vmatpush1.bf16.msra.mxu1 %v11357_v41 }
0x15bb   :  { %4196 = vmatprep.subr.bf16.mxu0 %v11363_v4  ;;  %4237 = vmatprep.subr.bf16.mxu1 %v11369_v6 }
0x15be   :  { %4197 = vmatpush1.bf16.msra.mxu0 %v11375_v51  ;;  %4238 = vmatpush1.bf16.msra.mxu1 %v11381_v8 }
0x15bf   :  { %4198 = vmatprep.subr.bf16.mxu0 %v11387_v52  ;;  %4239 = vmatprep.subr.bf16.mxu1 %v11393_v9 }
0x15c2   :  { %4199 = vmatpush1.bf16.msra.mxu0 %v11399_v53  ;;  %4240 = vmatpush1.bf16.msra.mxu1 %v11405_v10 }
0x15c3   :  { %4200 = vmatprep.subr.bf16.mxu0 %v11411_v54  ;;  %4241 = vmatprep.subr.bf16.mxu1 %v11417_v11 }
0x15c6   :  { %4201 = vmatpush1.bf16.msra.mxu0 %v11423_v57  ;;  %4242 = vmatpush1.bf16.msra.mxu1 %v11429_v26 }
0x15c7   :  { %4202 = vmatprep.subr.bf16.mxu0 %v11435_v32  ;;  %4243 = vmatprep.subr.bf16.mxu1 %v11441_v29 }
0x15ca   :  { %4203 = vmatpush1.bf16.msra.mxu0 %v11447_v1  ;;  %4244 = vmatpush1.bf16.msra.mxu1 %v11453_v42 }
0x15cb   :  { %4299 = vmatprep.subr.bf16.mxu0 %v11249_v55  ;;  %4340 = vmatprep.subr.bf16.mxu1 %v11255_v3 }
0x1680   :  { %v4111_v62 = vpop.f32.mrb[132].mxu0  ;;  %v4152_v63 = vpop.f32.mrb[132].mxu1 }
0x1681   :  { %v4159_v18 = vadd.f32 %v4111_v62, %v3243_v35  ;;  %v4161_v27 = vadd.f32 %v4152_v63, %v3316_v13  ;;  %v4113_v50 = vpop.f32.mrb[133].mxu0  ;;  %v4154_v55 = vpop.f32.mrb[133].mxu1 }
0x1682   :  { %v4160_v46 = vadd.f32 %v4113_v50, %v3245_v60  ;;  %v4162_v3 = vadd.f32 %v4154_v55, %v3318_v39  ;;  %v4115_v7 = vpop.f32.mrb[134].mxu0  ;;  %v4156_v36 = vpop.f32.mrb[134].mxu1 }
0x1683   :  { %v7148_v16 = vmul.f32 -1.442695, %v4159_v18  ;;  %v4116_v49 = vpop.f32.mrb[135].mxu0  ;;  %v4157_v21 = vpop.f32.mrb[135].mxu1 }
0x1684   :  { %v7149_v48 = vmul.f32 -1.442695, %v4160_v46  ;;  %v7150_v43 = vmul.f32 -1.442695, %v4162_v3 }
0x1685   :  { %8348 = vpow2.f32 %v7148_v16 }
0x1686   :  { %8350 = vpow2.f32 %v7149_v48 }
0x1687   :  { %8352 = vpow2.f32 %v7150_v43 }
0x1688   :  { %8354 = vtanh.f32 %v4161_v27 }
0x168f   :  { %v8349_v14 = vpop.eup %8348 }
0x1690   :  { %v8351_v12 = vpop.eup %8350  ;;  %v4166_v58 = vadd.f32 1.0, %v8349_v14 }
0x1691   :  { %v4172_v35 = vadd.f32 1.0, %v8351_v12  ;;  %v8353_v13 = vpop.eup %8352 }
0x1692   :  { %8356 = vrcp.f32 %v4166_v58  ;;  %v8355_v60 = vpop.eup %8354  ;;  %v4179_v63 = vadd.f32 1.0, %v8353_v13  ;;  %v7884_v58 = vld [vmem:[%s12714_s10] ss:$16 sps:$4 sm:$0xff]  }
0x1693   :  { %8358 = vrcp.f32 %v4172_v35  ;;  %v7887_v35 = vld [vmem:[%s12714_s10 + $0x8] ss:$16 sps:$4 sm:$0xff]  }
0x1694   :  { %8360 = vrcp.f32 %v4179_v63  ;;  %v7898_v63 = vld [vmem:[%s12714_s10 + $0x44] ss:$16 sps:$4 sm:$0xff]  }
0x169c   :  { %v8357_v38 = vpop.eup %8356 }
0x169d   :  { %v8359_v39 = vpop.eup %8358  ;;  %v4183_v62 = vmul.f32 %v8357_v38, %v8355_v60  ;;  %v7892_v60 = vld [vmem:[%s12714_s10 + $0x24] ss:$16 sps:$4 sm:$0xff]   ;;  %v7895_v38 = vld [vmem:[%s12714_s10 + $0x2c] ss:$16 sps:$4 sm:$0xff]  }
0x169e   :  { %v4182_v18 = vmul.f32 %v8359_v39, %v11267_v5  ;;  %v8361_v55 = vpop.eup %8360  ;;  %v7886_v5 = vld [vmem:[%s12714_s10 + $0x4] ss:$16 sps:$4 sm:$0xff]   ;;  %v7890_v39 = vld [vmem:[%s12714_s10 + $0x20] ss:$16 sps:$4 sm:$0xff]  }
0x16a0   :  { %v11467_v50 = vadd.f32 %v4183_v62, %v4182_v18  ;;  %v7893_v62 = vld [vmem:[%s12714_s10 + $0x28] ss:$16 sps:$4 sm:$0xff]   ;;  %v7901_v18 = vld [vmem:[%s12714_s10 + $0x4c] ss:$16 sps:$4 sm:$0xff]  }
0x16a2   :  { %8362 = vtanh.f32 %v11467_v50 }
0x16ac   :  { %v8363_v46 = vpop.eup %8362 }
0x16ad   :  { %v11470_v3 = vmul.f32 %v8363_v46, %v8361_v55  ;;  %v7899_v55 = vld [vmem:[%s12714_s10 + $0x48] ss:$16 sps:$4 sm:$0xff]   ;;  %v7904_v46 = vld [vmem:[%s12714_s10 + $0x64] ss:$16 sps:$4 sm:$0xff]  }
0x16af   :  { %v4187_v27 = vpack.c.bf16 %v11470_v3, %v11470_v3 }
0x16b1   :  { %4221 = vmatmul.mubr.bf16.vlgmr.msra.gmra.mrb[136].mxu0 %v4187_v27  ;;  %4262 = vmatmul.mubr.bf16.vlgmr.msra.gmra.mrb[136].mxu1 %v4187_v27  ;;  %v7907_v27 = vld [vmem:[%s12714_s10 + $0x6c] ss:$16 sps:$4 sm:$0xff]  }
0x16b2   :  { %4300 = vmatpush1.bf16.msra.mxu0 %v11277_v31  ;;  %4341 = vmatpush1.bf16.msra.mxu1 %v11283_v19  ;;  %v7889_v31 = vld [vmem:[%s12714_s10 + $0xc] ss:$16 sps:$4 sm:$0xff]   ;;  %v12895_v19 = vld [vmem:[#allocation22_spill] sm:$0xff] }
0x16b3   :  { %4301 = vmatprep.subr.bf16.mxu0 %v11289_v23  ;;  %4342 = vmatprep.subr.bf16.mxu1 %v11295_v30  ;;  %v3249_v23 = vadd.f32 %v12895_v19, %v11034_v22  ;;  %v12896_v30 = vld [vmem:[#allocation23_spill] sm:$0xff]  ;;  %v7910_v19 = vld [vmem:[%s12714_s10 + $0x84] ss:$16 sps:$4 sm:$0xff]  }
0x16b4   :  { %4331 = vmatprep.mubr.bf16.mxu0 %v12779_v17  ;;  %4372 = vmatprep.mubr.bf16.mxu1 %v12779_v17 }
0x16b6   :  { %4302 = vmatpush1.bf16.msra.mxu0 %v11303_v44  ;;  %4343 = vmatpush1.bf16.msra.mxu1 %v11309_v40  ;;  %v3322_v44 = vadd.f32 %v12896_v30, %v11037_v20  ;;  %v12897_v40 = vld [vmem:[#allocation24_spill] sm:$0xff] }
0x16b7   :  { %4303 = vmatprep.subr.bf16.mxu0 %v11315_v59  ;;  %4344 = vmatprep.subr.bf16.mxu1 %v11321_v28  ;;  %v3251_v59 = vadd.f32 %v12897_v40, %v11044_v34  ;;  %v12898_v28 = vld [vmem:[#allocation25_spill] sm:$0xff]  ;;  %v7908_v30 = vld [vmem:[%s12714_s10 + $0x80] ss:$16 sps:$4 sm:$0xff]   ;;  %v7916_v40 = vld [vmem:[%s12714_s10 + $0xa4] ss:$16 sps:$4 sm:$0xff]  }
0x16ba   :  { %4304 = vmatpush1.bf16.msra.mxu0 %v11327_v47  ;;  %4345 = vmatpush1.bf16.msra.mxu1 %v11333_v45  ;;  %v3324_v47 = vadd.f32 %v12898_v28, %v11047_v0  ;;  %v7914_v28 = vld [vmem:[%s12714_s10 + $0xa0] ss:$16 sps:$4 sm:$0xff]  }
0x16bb   :  { %4305 = vmatprep.subr.bf16.mxu0 %v11339_v56  ;;  %4346 = vmatprep.subr.bf16.mxu1 %v11345_v37 }
0x16be   :  { %4306 = vmatpush1.bf16.msra.mxu0 %v11351_v15  ;;  %4347 = vmatpush1.bf16.msra.mxu1 %v11357_v41 }
0x16bf   :  { %4307 = vmatprep.subr.bf16.mxu0 %v11363_v4  ;;  %4348 = vmatprep.subr.bf16.mxu1 %v11369_v6 }
0x16c2   :  { %4308 = vmatpush1.bf16.msra.mxu0 %v11375_v51  ;;  %4349 = vmatpush1.bf16.msra.mxu1 %v11381_v8 }
0x16c3   :  { %4309 = vmatprep.subr.bf16.mxu0 %v11387_v52  ;;  %4350 = vmatprep.subr.bf16.mxu1 %v11393_v9 }
0x16c6   :  { %4310 = vmatpush1.bf16.msra.mxu0 %v11399_v53  ;;  %4351 = vmatpush1.bf16.msra.mxu1 %v11405_v10 }
0x16c7   :  { %4311 = vmatprep.subr.bf16.mxu0 %v11411_v54  ;;  %4352 = vmatprep.subr.bf16.mxu1 %v11417_v11 }
0x16ca   :  { %4312 = vmatpush1.bf16.msra.mxu0 %v11423_v57  ;;  %4353 = vmatpush1.bf16.msra.mxu1 %v11429_v26 }
0x16cb   :  { %4313 = vmatprep.subr.bf16.mxu0 %v11435_v32  ;;  %4354 = vmatprep.subr.bf16.mxu1 %v11441_v29 }
0x16ce   :  { %4314 = vmatpush1.bf16.msra.mxu0 %v11447_v1  ;;  %4355 = vmatpush1.bf16.msra.mxu1 %v11453_v42 }
0x16cf   :  { %4627 = vmatprep.subr.bf16.mxu0 %v7886_v5  ;;  %4700 = vmatprep.subr.bf16.mxu1 %v7889_v31  ;;  %v7902_v5 = vld [vmem:[%s12714_s10 + $0x60] ss:$16 sps:$4 sm:$0xff]   ;;  %v7905_v31 = vld [vmem:[%s12714_s10 + $0x68] ss:$16 sps:$4 sm:$0xff]  }
0x1784   :  { %v4222_v45 = vpop.f32.mrb[136].mxu0  ;;  %v4263_v56 = vpop.f32.mrb[136].mxu1 }
0x1785   :  { %v4270_v37 = vadd.f32 %v4222_v45, %v3249_v23  ;;  %v4272_v15 = vadd.f32 %v4263_v56, %v3322_v44  ;;  %v4224_v41 = vpop.f32.mrb[137].mxu0  ;;  %v4265_v4 = vpop.f32.mrb[137].mxu1  ;;  %v7913_v23 = vld [vmem:[%s12714_s10 + $0x8c] ss:$16 sps:$4 sm:$0xff]   ;;  %v7911_v44 = vld [vmem:[%s12714_s10 + $0x88] ss:$16 sps:$4 sm:$0xff]  }
0x1786   :  { %v4271_v6 = vadd.f32 %v4224_v41, %v3251_v59  ;;  %v4273_v51 = vadd.f32 %v4265_v4, %v3324_v47  ;;  %v4226_v8 = vpop.f32.mrb[138].mxu0  ;;  %v4267_v52 = vpop.f32.mrb[138].mxu1  ;;  %v7919_v59 = vld [vmem:[%s12714_s10 + $0xac] ss:$16 sps:$4 sm:$0xff]   ;;  %v7917_v47 = vld [vmem:[%s12714_s10 + $0xa8] ss:$16 sps:$4 sm:$0xff]  }
0x1787   :  { %v7151_v9 = vmul.f32 -1.442695, %v4270_v37  ;;  %v4227_v53 = vpop.f32.mrb[139].mxu0  ;;  %v4268_v10 = vpop.f32.mrb[139].mxu1  ;;  %v7922_v45 = vld [vmem:[%s12714_s10 + $0xc4] ss:$16 sps:$4 sm:$0xff]   ;;  %v4409_v8 = vpack.c.bf16 %v11110_v2, %v11060_v25  ;;  %v4410_v52 = vpack.c.bf16 %v11210_v24, %v11160_v33 }
0x1788   :  { %v7152_v54 = vmul.f32 -1.442695, %v4271_v6  ;;  %v7153_v11 = vmul.f32 -1.442695, %v4273_v51  ;;  %v7925_v56 = vld [vmem:[%s12714_s10 + $0xcc] ss:$16 sps:$4 sm:$0xff]  }
0x1789   :  { %8364 = vpow2.f32 %v7151_v9  ;;  %v7920_v37 = vld [vmem:[%s12714_s10 + $0xc0] ss:$16 sps:$4 sm:$0xff]   ;;  %v7928_v41 = vld [vmem:[%s12714_s10 + $0xe4] ss:$16 sps:$4 sm:$0xff]   ;;  %v7931_v4 = vld [vmem:[%s12714_s10 + $0xec] ss:$16 sps:$4 sm:$0xff]   ;;  %v4411_v9 = vpack.c.bf16 %v11470_v3, %v11270_v61 }
0x178a   :  { %8366 = vpow2.f32 %v7152_v54  ;;  %v7926_v6 = vld [vmem:[%s12714_s10 + $0xe0] ss:$16 sps:$4 sm:$0xff]   ;;  %v7929_v51 = vld [vmem:[%s12714_s10 + $0xe8] ss:$16 sps:$4 sm:$0xff]   ;;  %v11635_v25 = vld [vmem:[%s12715_s11 + $0x4] ss:$16 sps:$4 sm:$0xff]  }
0x178b   :  { %8368 = vpow2.f32 %v7153_v11  ;;  %v11640_v2 = vld [vmem:[%s12715_s11 + $0xc] ss:$16 sps:$4 sm:$0xff]   ;;  %v11646_v33 = vld [vmem:[%s12715_s11] ss:$16 sps:$4 sm:$0xff]   ;;  %v11651_v24 = vld [vmem:[%s12715_s11 + $0x8] ss:$16 sps:$4 sm:$0xff]  }
0x178c   :  { %8370 = vtanh.f32 %v4272_v15  ;;  %v7923_v15 = vld [vmem:[%s12714_s10 + $0xc8] ss:$16 sps:$4 sm:$0xff]   ;;  %v11659_v61 = vld [vmem:[%s12715_s11 + $0x24] ss:$16 sps:$4 sm:$0xff]   ;;  %v11664_v3 = vld [vmem:[%s12715_s11 + $0x2c] ss:$16 sps:$4 sm:$0xff]  }
0x178d   :  { %v11669_v53 = vld [vmem:[%s12715_s11 + $0x20] ss:$16 sps:$4 sm:$0xff]   ;;  %v11674_v10 = vld [vmem:[%s12715_s11 + $0x28] ss:$16 sps:$4 sm:$0xff]   ;;  %v11683_v54 = vld [vmem:[%s12715_s11 + $0x44] ss:$16 sps:$4 sm:$0xff]  }
0x178e   :  { %v11688_v11 = vld [vmem:[%s12715_s11 + $0x4c] ss:$16 sps:$4 sm:$0xff]  }
0x1793   :  { %v8365_v57 = vpop.eup %8364 }
0x1794   :  { %v8367_v26 = vpop.eup %8366  ;;  %v4277_v32 = vadd.f32 1.0, %v8365_v57  ;;  %v11693_v57 = vld [vmem:[%s12715_s11 + $0x40] ss:$16 sps:$4 sm:$0xff]  }
0x1795   :  { %v4283_v29 = vadd.f32 1.0, %v8367_v26  ;;  %v8369_v1 = vpop.eup %8368  ;;  %v11698_v26 = vld [vmem:[%s12715_s11 + $0x48] ss:$16 sps:$4 sm:$0xff]  }
0x1796   :  { %8372 = vrcp.f32 %v4277_v32  ;;  %v8371_v42 = vpop.eup %8370  ;;  %v4290_v49 = vadd.f32 1.0, %v8369_v1  ;;  %v11707_v32 = vld [vmem:[%s12715_s11 + $0x64] ss:$16 sps:$4 sm:$0xff]   ;;  %v11717_v1 = vld [vmem:[%s12715_s11 + $0x60] ss:$16 sps:$4 sm:$0xff]  }
0x1797   :  { %8374 = vrcp.f32 %v4283_v29  ;;  %v11712_v29 = vld [vmem:[%s12715_s11 + $0x6c] ss:$16 sps:$4 sm:$0xff]  }
0x1798   :  { %8376 = vrcp.f32 %v4290_v49  ;;  %v11746_v49 = vld [vmem:[%s12715_s11 + $0x88] ss:$16 sps:$4 sm:$0xff]  }
0x17a0   :  { %v8373_v7 = vpop.eup %8372 }
0x17a1   :  { %v8375_v36 = vpop.eup %8374  ;;  %v4294_v16 = vmul.f32 %v8373_v7, %v8371_v42  ;;  %v11722_v42 = vld [vmem:[%s12715_s11 + $0x68] ss:$16 sps:$4 sm:$0xff]   ;;  %v11731_v7 = vld [vmem:[%s12715_s11 + $0x84] ss:$16 sps:$4 sm:$0xff]  }
0x17a2   :  { %v4293_v21 = vmul.f32 %v8375_v36, %v11467_v50  ;;  %v8377_v43 = vpop.eup %8376  ;;  %v7896_v50 = vld [vmem:[%s12714_s10 + $0x40] ss:$16 sps:$4 sm:$0xff]   ;;  %v11736_v36 = vld [vmem:[%s12715_s11 + $0x8c] ss:$16 sps:$4 sm:$0xff]  }
0x17a4   :  { %v11521_v48 = vadd.f32 %v4294_v16, %v4293_v21  ;;  %v11741_v16 = vld [vmem:[%s12715_s11 + $0x80] ss:$16 sps:$4 sm:$0xff]   ;;  %v11755_v21 = vld [vmem:[%s12715_s11 + $0xa4] ss:$16 sps:$4 sm:$0xff]  }
0x17a6   :  { %8378 = vtanh.f32 %v11521_v48 }
0x17b0   :  { %v8379_v14 = vpop.eup %8378 }
0x17b1   :  { %v11524_v12 = vmul.f32 %v8379_v14, %v8377_v43  ;;  %v11760_v43 = vld [vmem:[%s12715_s11 + $0xac] ss:$16 sps:$4 sm:$0xff]   ;;  %v11765_v14 = vld [vmem:[%s12715_s11 + $0xa0] ss:$16 sps:$4 sm:$0xff]  }
0x17b3   :  { %v4298_v13 = vpack.c.bf16 %v11524_v12, %v11524_v12 }
0x17b5   :  { %4332 = vmatmul.mubr.bf16.vlgmr.msra.gmra.mrb[140].mxu0 %v4298_v13  ;;  %4373 = vmatmul.mubr.bf16.vlgmr.msra.gmra.mrb[140].mxu1 %v4298_v13  ;;  %v11784_v13 = vld [vmem:[%s12715_s11 + $0xcc] ss:$16 sps:$4 sm:$0xff]  }
0x17b6   :  { %4628 = vmatpush1.bf16.msra.mxu0 %v7884_v58  ;;  %4701 = vmatpush1.bf16.msra.mxu1 %v7887_v35  ;;  %v11770_v58 = vld [vmem:[%s12715_s11 + $0xa8] ss:$16 sps:$4 sm:$0xff]   ;;  %v11779_v35 = vld [vmem:[%s12715_s11 + $0xc4] ss:$16 sps:$4 sm:$0xff]  }
0x17b7   :  { %4629 = vmatprep.subr.bf16.mxu0 %v7892_v60  ;;  %4702 = vmatprep.subr.bf16.mxu1 %v7895_v38  ;;  %v11789_v60 = vld [vmem:[%s12715_s11 + $0xc0] ss:$16 sps:$4 sm:$0xff]   ;;  %v11794_v38 = vld [vmem:[%s12715_s11 + $0xc8] ss:$16 sps:$4 sm:$0xff]  }
0x17b8   :  { %4659 = vmatprep.mubr.bf16.mxu0 %v12779_v17  ;;  %4732 = vmatprep.mubr.bf16.mxu1 %v12779_v17 }
0x17ba   :  { %4630 = vmatpush1.bf16.msra.mxu0 %v7890_v39  ;;  %4703 = vmatpush1.bf16.msra.mxu1 %v7893_v62  ;;  %v11803_v39 = vld [vmem:[%s12715_s11 + $0xe4] ss:$16 sps:$4 sm:$0xff]   ;;  %v11808_v62 = vld [vmem:[%s12715_s11 + $0xec] ss:$16 sps:$4 sm:$0xff]  }
0x17bb   :  { %4631 = vmatprep.subr.bf16.mxu0 %v7898_v63  ;;  %4704 = vmatprep.subr.bf16.mxu1 %v7901_v18  ;;  %v11813_v63 = vld [vmem:[%s12715_s11 + $0xe0] ss:$16 sps:$4 sm:$0xff]   ;;  %v11818_v18 = vld [vmem:[%s12715_s11 + $0xe8] ss:$16 sps:$4 sm:$0xff]  }
0x17be   :  { %4632 = vmatpush1.bf16.msra.mxu0 %v7896_v50  ;;  %4705 = vmatpush1.bf16.msra.mxu1 %v7899_v55  ;;  %v12899_v50 = vld [vmem:[#allocation26_spill] sm:$0xff] }
0x17bf   :  { %4633 = vmatprep.subr.bf16.mxu0 %v7904_v46  ;;  %4706 = vmatprep.subr.bf16.mxu1 %v7907_v27  ;;  %v3253_v55 = vadd.f32 %v12899_v50, %v11034_v22  ;;  %v12900_v46 = vld [vmem:[#allocation27_spill] sm:$0xff] }
0x17c0   :  { %v3326_v27 = vadd.f32 %v12900_v46, %v11037_v20 }
0x17c2   :  { %4634 = vmatpush1.bf16.msra.mxu0 %v7902_v5  ;;  %4707 = vmatpush1.bf16.msra.mxu1 %v7905_v31  ;;  %v12901_v5 = vld [vmem:[#allocation28_spill] sm:$0xff] }
0x17c3   :  { %4635 = vmatprep.subr.bf16.mxu0 %v7910_v19  ;;  %4708 = vmatprep.subr.bf16.mxu1 %v7913_v23  ;;  %v3255_v31 = vadd.f32 %v12901_v5, %v11044_v34  ;;  %v12902_v19 = vld [vmem:[#allocation29_spill] sm:$0xff] }
0x17c4   :  { %v3328_v23 = vadd.f32 %v12902_v19, %v11047_v0 }
0x17c6   :  { %4636 = vmatpush1.bf16.msra.mxu0 %v7908_v30  ;;  %4709 = vmatpush1.bf16.msra.mxu1 %v7911_v44 }
0x17c7   :  { %4637 = vmatprep.subr.bf16.mxu0 %v7916_v40  ;;  %4710 = vmatprep.subr.bf16.mxu1 %v7919_v59 }
0x17ca   :  { %4638 = vmatpush1.bf16.msra.mxu0 %v7914_v28  ;;  %4711 = vmatpush1.bf16.msra.mxu1 %v7917_v47 }
0x17cb   :  { %4639 = vmatprep.subr.bf16.mxu0 %v7922_v45  ;;  %4712 = vmatprep.subr.bf16.mxu1 %v7925_v56 }
0x17ce   :  { %4640 = vmatpush1.bf16.msra.mxu0 %v7920_v37  ;;  %4713 = vmatpush1.bf16.msra.mxu1 %v7923_v15 }
0x17cf   :  { %4641 = vmatprep.subr.bf16.mxu0 %v7928_v41  ;;  %4714 = vmatprep.subr.bf16.mxu1 %v7931_v4 }
0x17d2   :  { %4642 = vmatpush1.bf16.msra.mxu0 %v7926_v6  ;;  %4715 = vmatpush1.bf16.msra.mxu1 %v7929_v51 }
0x17d3   :  { %4965 = vmatprep.subr.bf16.mxu0 %v11635_v25  ;;  %5006 = vmatprep.subr.bf16.mxu1 %v11640_v2 }
0x17d5   :  { %4660 = vmatmul.mubr.bf16.vlgmr.msra.gmra.mrb[144].mxu0 %v4409_v8  ;;  %4733 = vmatmul.mubr.bf16.vlgmr.msra.gmra.mrb[144].mxu1 %v4409_v8 }
0x17d6   :  { %4669 = vmatprep.mubr.bf16.mxu0 %v12779_v17  ;;  %4742 = vmatprep.mubr.bf16.mxu1 %v12779_v17 }
0x17d7   :  { %4966 = vmatpush1.bf16.msra.mxu0 %v11646_v33  ;;  %5007 = vmatpush1.bf16.msra.mxu1 %v11651_v24 }
0x17d8   :  { %4967 = vmatprep.subr.bf16.mxu0 %v11659_v61  ;;  %5008 = vmatprep.subr.bf16.mxu1 %v11664_v3 }
0x17db   :  { %4968 = vmatpush1.bf16.msra.mxu0 %v11669_v53  ;;  %5009 = vmatpush1.bf16.msra.mxu1 %v11674_v10 }
0x17dc   :  { %4969 = vmatprep.subr.bf16.mxu0 %v11683_v54  ;;  %5010 = vmatprep.subr.bf16.mxu1 %v11688_v11 }
0x17dd   :  { %4670 = vmatmul.mubr.bf16.gmra.mrb[148].mxu0 %v4410_v52  ;;  %4743 = vmatmul.mubr.bf16.gmra.mrb[148].mxu1 %v4410_v52 }
0x17de   :  { %4679 = vmatprep.mubr.bf16.mxu0 %v12779_v17  ;;  %4752 = vmatprep.mubr.bf16.mxu1 %v12779_v17 }
0x17df   :  { %4970 = vmatpush1.bf16.msra.mxu0 %v11693_v57  ;;  %5011 = vmatpush1.bf16.msra.mxu1 %v11698_v26 }
0x17e0   :  { %4971 = vmatprep.subr.bf16.mxu0 %v11707_v32  ;;  %5012 = vmatprep.subr.bf16.mxu1 %v11712_v29 }
0x17e3   :  { %4972 = vmatpush1.bf16.msra.mxu0 %v11717_v1  ;;  %5013 = vmatpush1.bf16.msra.mxu1 %v11722_v42 }
0x17e4   :  { %4973 = vmatprep.subr.bf16.mxu0 %v11731_v7  ;;  %5014 = vmatprep.subr.bf16.mxu1 %v11736_v36 }
0x17e5   :  { %4680 = vmatmul.mubr.bf16.gmra.mrb[152].mxu0 %v4411_v9  ;;  %4753 = vmatmul.mubr.bf16.gmra.mrb[152].mxu1 %v4411_v9 }
0x17e6   :  { %4689 = vmatprep.mubr.bf16.mxu0 %v12779_v17  ;;  %4762 = vmatprep.mubr.bf16.mxu1 %v12779_v17 }
0x17e7   :  { %4974 = vmatpush1.bf16.msra.mxu0 %v11741_v16  ;;  %5015 = vmatpush1.bf16.msra.mxu1 %v11746_v49 }
0x17e8   :  { %4975 = vmatprep.subr.bf16.mxu0 %v11755_v21  ;;  %5016 = vmatprep.subr.bf16.mxu1 %v11760_v43 }
0x17eb   :  { %4976 = vmatpush1.bf16.msra.mxu0 %v11765_v14  ;;  %5017 = vmatpush1.bf16.msra.mxu1 %v11770_v58 }
0x17ec   :  { %4977 = vmatprep.subr.bf16.mxu0 %v11779_v35  ;;  %5018 = vmatprep.subr.bf16.mxu1 %v11784_v13 }
0x17ef   :  { %4978 = vmatpush1.bf16.msra.mxu0 %v11789_v60  ;;  %5019 = vmatpush1.bf16.msra.mxu1 %v11794_v38 }
0x17f0   :  { %4979 = vmatprep.subr.bf16.mxu0 %v11803_v39  ;;  %5020 = vmatprep.subr.bf16.mxu1 %v11808_v62 }
0x17f3   :  { %4980 = vmatpush1.bf16.msra.mxu0 %v11813_v63  ;;  %5021 = vmatpush1.bf16.msra.mxu1 %v11818_v18 }
0x17f4   :  { %5076 = vmatprep.subr.bf16.mxu0 %v11635_v25  ;;  %5117 = vmatprep.subr.bf16.mxu1 %v11640_v2 }
0x1888   :  { %v4333_v30 = vpop.f32.mrb[140].mxu0  ;;  %v4374_v44 = vpop.f32.mrb[140].mxu1 }
0x1889   :  { %v4381_v40 = vadd.f32 %v4333_v30, %v3253_v55  ;;  %v4383_v59 = vadd.f32 %v4374_v44, %v3326_v27  ;;  %v4335_v28 = vpop.f32.mrb[141].mxu0  ;;  %v4376_v47 = vpop.f32.mrb[141].mxu1 }
0x188a   :  { %v4382_v45 = vadd.f32 %v4335_v28, %v3255_v31  ;;  %v4384_v56 = vadd.f32 %v4376_v47, %v3328_v23  ;;  %v4337_v37 = vpop.f32.mrb[142].mxu0  ;;  %v4378_v15 = vpop.f32.mrb[142].mxu1 }
0x188b   :  { %v7154_v22 = vmul.f32 -1.442695, %v4381_v40  ;;  %v4338_v41 = vpop.f32.mrb[143].mxu0  ;;  %v4379_v4 = vpop.f32.mrb[143].mxu1 }
0x188c   :  { %v7155_v20 = vmul.f32 -1.442695, %v4382_v45  ;;  %v7156_v34 = vmul.f32 -1.442695, %v4384_v56 }
0x188d   :  { %8380 = vpow2.f32 %v7154_v22 }
0x188e   :  { %8382 = vpow2.f32 %v7155_v20 }
0x188f   :  { %8384 = vpow2.f32 %v7156_v34 }
0x1890   :  { %8386 = vtanh.f32 %v4383_v59 }
0x1897   :  { %v8381_v6 = vpop.eup %8380 }
0x1898   :  { %v8383_v51 = vpop.eup %8382  ;;  %v4388_v0 = vadd.f32 1.0, %v8381_v6 }
0x1899   :  { %v4394_v8 = vadd.f32 1.0, %v8383_v51  ;;  %v8385_v52 = vpop.eup %8384 }
0x189a   :  { %8388 = vrcp.f32 %v4388_v0  ;;  %v8387_v9 = vpop.eup %8386  ;;  %v4401_v27 = vadd.f32 1.0, %v8385_v52 }
0x189b   :  { %8390 = vrcp.f32 %v4394_v8 }
0x189c   :  { %8392 = vrcp.f32 %v4401_v27  ;;  %v4445_v27 = vld [vmem:[%s12716_s12] sm:$0xf] }
0x18a4   :  { %v8389_v50 = vpop.eup %8388 }
0x18a5   :  { %v8391_v55 = vpop.eup %8390  ;;  %v4405_v46 = vmul.f32 %v8389_v50, %v8387_v9 }
0x18a6   :  { %v4404_v5 = vmul.f32 %v8391_v55, %v11521_v48  ;;  %v8393_v41 = vpop.eup %8392 }
0x18a8   :  { %v11835_v31 = vpop.f32.mrb[144].mxu0  ;;  %v11837_v19 = vpop.f32.mrb[144].mxu1  ;;  %v4406_v23 = vadd.f32 %v4405_v46, %v4404_v5 }
0x18a9   :  { %v11839_v30 = vpop.f32.mrb[145].mxu0  ;;  %v11841_v44 = vpop.f32.mrb[145].mxu1 }
0x18aa   :  { %v11843_v40 = vpop.f32.mrb[146].mxu0  ;;  %v11845_v59 = vpop.f32.mrb[146].mxu1  ;;  %8394 = vtanh.f32 %v4406_v23 }
0x18ab   :  { %v11847_v28 = vpop.f32.mrb[147].mxu0  ;;  %v11849_v47 = vpop.f32.mrb[147].mxu1 }
0x18b0   :  { %v11851_v48 = vpop.f32.mrb[148].mxu0  ;;  %v11853_v45 = vpop.f32.mrb[148].mxu1 }
0x18b1   :  { %12903 = vst [vmem:[#allocation7_spill] sm:$0xff] %v11853_v45  ;;  %v11855_v56 = vpop.f32.mrb[149].mxu0  ;;  %v11857_v37 = vpop.f32.mrb[149].mxu1 }
0x18b2   :  { %12904 = vst [vmem:[#allocation8_spill] sm:$0xff] %v11855_v56  ;;  %12905 = vst [vmem:[#allocation9_spill] sm:$0xff] %v11857_v37  ;;  %v11859_v15 = vpop.f32.mrb[150].mxu0  ;;  %v11861_v22 = vpop.f32.mrb[150].mxu1 }
0x18b3   :  { %12906 = vst [vmem:[#allocation10_spill] sm:$0xff] %v11859_v15  ;;  %12907 = vst [vmem:[#allocation11_spill] sm:$0xff] %v11861_v22  ;;  %v11863_v4 = vpop.f32.mrb[151].mxu0  ;;  %v11865_v20 = vpop.f32.mrb[151].mxu1 }
0x18b4   :  { %12908 = vst [vmem:[#allocation12_spill] sm:$0xff] %v11863_v4  ;;  %12909 = vst [vmem:[#allocation13_spill] sm:$0xff] %v11865_v20  ;;  %v8395_v34 = vpop.eup %8394 }
0x18b5   :  { %v4408_v6 = vmul.f32 %v8395_v34, %v8393_v41 }
0x18b7   :  { %v4412_v51 = vpack.c.bf16 %v4408_v6, %v11524_v12 }
0x18b8   :  { %v11868_v0 = vpop.f32.mrb[152].mxu0  ;;  %v11870_v8 = vpop.f32.mrb[152].mxu1 }
0x18b9   :  { %12910 = vst [vmem:[#allocation14_spill] sm:$0xff] %v11868_v0  ;;  %12911 = vst [vmem:[#allocation15_spill] sm:$0xff] %v11870_v8  ;;  %v11872_v52 = vpop.f32.mrb[153].mxu0  ;;  %v11874_v9 = vpop.f32.mrb[153].mxu1  ;;  %4690 = vmatmul.mubr.bf16.gmra.mrb[156].mxu0 %v4412_v51  ;;  %4763 = vmatmul.mubr.bf16.gmra.mrb[156].mxu1 %v4412_v51 }
0x18ba   :  { %12912 = vst [vmem:[#allocation16_spill] sm:$0xff] %v11872_v52  ;;  %12913 = vst [vmem:[#allocation17_spill] sm:$0xff] %v11874_v9  ;;  %v11876_v50 = vpop.f32.mrb[154].mxu0  ;;  %v11878_v55 = vpop.f32.mrb[154].mxu1  ;;  %4997 = vmatprep.mubr.bf16.mxu0 %v12779_v17  ;;  %5038 = vmatprep.mubr.bf16.mxu1 %v12779_v17 }
0x18bb   :  { %12914 = vst [vmem:[#allocation18_spill] sm:$0xff] %v11876_v50  ;;  %12915 = vst [vmem:[#allocation19_spill] sm:$0xff] %v11878_v55  ;;  %v11882_v46 = vpop.f32.mrb[155].mxu0  ;;  %v11884_v12 = vpop.f32.mrb[155].mxu1  ;;  %v12925_v55 = vld [vmem:[#allocation3_spill] sm:$0xff] }
0x18bc   :  { %12916 = vst [vmem:[#allocation20_spill] sm:$0xff] %v11882_v46  ;;  %12917 = vst [vmem:[#allocation21_spill] sm:$0xff] %v11884_v12  ;;  %v12924_v12 = vld [vmem:[#allocation5_spill] sm:$0xff]  ;;  %v11941_v50 = vrot.slane %v4445_v27, %v12925_v55 }
0x18bd   :  { %v11938_v46 = vrot.slane %v4445_v27, %v12924_v12 }
0x18be   :  { %v4735_v12 = vadd.f32 %v11837_v19, %v11941_v50 }
0x18c1   :  { %4998 = vmatmul.mubr.bf16.vlgmr.msra.gmra.mrb[160].mxu0 %v12779_v17  ;;  %5039 = vmatmul.mubr.bf16.vlgmr.msra.gmra.mrb[160].mxu1 %v12779_v17 }
0x18c2   :  { %5077 = vmatpush1.bf16.msra.mxu0 %v11646_v33  ;;  %5118 = vmatpush1.bf16.msra.mxu1 %v11651_v24 }
0x18c3   :  { %5078 = vmatprep.subr.bf16.mxu0 %v11659_v61  ;;  %5119 = vmatprep.subr.bf16.mxu1 %v11664_v3 }
0x18c4   :  { %5108 = vmatprep.mubr.bf16.mxu0 %v12779_v17  ;;  %5149 = vmatprep.mubr.bf16.mxu1 %v12779_v17 }
0x18c6   :  { %5079 = vmatpush1.bf16.msra.mxu0 %v11669_v53  ;;  %5120 = vmatpush1.bf16.msra.mxu1 %v11674_v10 }
0x18c7   :  { %5080 = vmatprep.subr.bf16.mxu0 %v11683_v54  ;;  %5121 = vmatprep.subr.bf16.mxu1 %v11688_v11 }
0x18ca   :  { %5081 = vmatpush1.bf16.msra.mxu0 %v11693_v57  ;;  %5122 = vmatpush1.bf16.msra.mxu1 %v11698_v26 }
0x18cb   :  { %5082 = vmatprep.subr.bf16.mxu0 %v11707_v32  ;;  %5123 = vmatprep.subr.bf16.mxu1 %v11712_v29 }
0x18ce   :  { %5083 = vmatpush1.bf16.msra.mxu0 %v11717_v1  ;;  %5124 = vmatpush1.bf16.msra.mxu1 %v11722_v42 }
0x18cf   :  { %5084 = vmatprep.subr.bf16.mxu0 %v11731_v7  ;;  %5125 = vmatprep.subr.bf16.mxu1 %v11736_v36 }
0x18d2   :  { %5085 = vmatpush1.bf16.msra.mxu0 %v11741_v16  ;;  %5126 = vmatpush1.bf16.msra.mxu1 %v11746_v49 }
0x18d3   :  { %5086 = vmatprep.subr.bf16.mxu0 %v11755_v21  ;;  %5127 = vmatprep.subr.bf16.mxu1 %v11760_v43 }
0x18d6   :  { %5087 = vmatpush1.bf16.msra.mxu0 %v11765_v14  ;;  %5128 = vmatpush1.bf16.msra.mxu1 %v11770_v58 }
0x18d7   :  { %5088 = vmatprep.subr.bf16.mxu0 %v11779_v35  ;;  %5129 = vmatprep.subr.bf16.mxu1 %v11784_v13 }
0x18da   :  { %5089 = vmatpush1.bf16.msra.mxu0 %v11789_v60  ;;  %5130 = vmatpush1.bf16.msra.mxu1 %v11794_v38 }
0x18db   :  { %5090 = vmatprep.subr.bf16.mxu0 %v11803_v39  ;;  %5131 = vmatprep.subr.bf16.mxu1 %v11808_v62 }
0x18de   :  { %5091 = vmatpush1.bf16.msra.mxu0 %v11813_v63  ;;  %5132 = vmatpush1.bf16.msra.mxu1 %v11818_v18 }
0x18df   :  { %5187 = vmatprep.subr.bf16.mxu0 %v11635_v25  ;;  %5228 = vmatprep.subr.bf16.mxu1 %v11640_v2 }
0x198c   :  { %v11925_v5 = vpop.f32.mrb[156].mxu0  ;;  %v11927_v23 = vpop.f32.mrb[156].mxu1 }
0x198d   :  { %12918 = vst [vmem:[#allocation22_spill] sm:$0xff] %v11925_v5  ;;  %12919 = vst [vmem:[#allocation23_spill] sm:$0xff] %v11927_v23  ;;  %v11929_v41 = vpop.f32.mrb[157].mxu0  ;;  %v11931_v34 = vpop.f32.mrb[157].mxu1  ;;  %v12928_v5 = vld [vmem:[#allocation6_spill] sm:$0xff] }
0x198e   :  { %12920 = vst [vmem:[#allocation24_spill] sm:$0xff] %v11929_v41  ;;  %12921 = vst [vmem:[#allocation25_spill] sm:$0xff] %v11931_v34  ;;  %v11933_v6 = vpop.f32.mrb[158].mxu0  ;;  %v11935_v51 = vpop.f32.mrb[158].mxu1  ;;  %v11948_v23 = vrot.slane %v4445_v27, %v12928_v5  ;;  %v12929_v41 = vld [vmem:[#allocation4_spill] sm:$0xff] }
0x198f   :  { %12922 = vst [vmem:[#allocation26_spill] sm:$0xff] %v11933_v6  ;;  %12923 = vst [vmem:[#allocation27_spill] sm:$0xff] %v11935_v51  ;;  %v11943_v9 = vpop.f32.mrb[159].mxu0  ;;  %v11945_v52 = vpop.f32.mrb[159].mxu1  ;;  %v11951_v8 = vrot.slane %v4445_v27, %v12929_v41  ;;  %v4662_v6 = vadd.f32 %v11835_v31, %v11938_v46 }
0x1990   :  { %12926 = vst [vmem:[#allocation28_spill] sm:$0xff] %v11943_v9  ;;  %12927 = vst [vmem:[#allocation29_spill] sm:$0xff] %v11945_v52  ;;  %v4664_v55 = vadd.f32 %v11839_v30, %v11948_v23 }
0x1991   :  { %v4737_v9 = vadd.f32 %v11841_v44, %v11951_v8 }
0x1994   :  { %v4999_v51 = vpop.f32.mrb[160].mxu0  ;;  %v5040_v52 = vpop.f32.mrb[160].mxu1 }
0x1995   :  { %v5047_v34 = vadd.f32 %v4999_v51, %v4662_v6  ;;  %v5049_v5 = vadd.f32 %v5040_v52, %v4735_v12  ;;  %v5001_v0 = vpop.f32.mrb[161].mxu0  ;;  %v5042_v20 = vpop.f32.mrb[161].mxu1  ;;  %v4666_v12 = vadd.f32 %v11843_v40, %v11938_v46 }
0x1996   :  { %v5048_v27 = vadd.f32 %v5001_v0, %v4664_v55  ;;  %v5050_v41 = vadd.f32 %v5042_v20, %v4737_v9  ;;  %v5003_v4 = vpop.f32.mrb[162].mxu0  ;;  %v5044_v22 = vpop.f32.mrb[162].mxu1  ;;  %v4739_v55 = vadd.f32 %v11845_v59, %v11941_v50 }
0x1997   :  { %v7221_v31 = vmul.f32 -1.442695, %v5047_v34  ;;  %v5004_v15 = vpop.f32.mrb[163].mxu0  ;;  %v5045_v37 = vpop.f32.mrb[163].mxu1 }
0x1998   :  { %v7222_v19 = vmul.f32 -1.442695, %v5048_v27  ;;  %v7223_v30 = vmul.f32 -1.442695, %v5050_v41  ;;  %v4741_v27 = vadd.f32 %v11849_v47, %v11951_v8 }
0x1999   :  { %8396 = vpow2.f32 %v7221_v31 }
0x199a   :  { %8398 = vpow2.f32 %v7222_v19 }
0x199b   :  { %8400 = vpow2.f32 %v7223_v30 }
0x199c   :  { %8402 = vtanh.f32 %v5049_v5  ;;  %v4668_v5 = vadd.f32 %v11847_v28, %v11948_v23 }
0x19a3   :  { %v8397_v56 = vpop.eup %8396 }
0x19a4   :  { %v8399_v45 = vpop.eup %8398  ;;  %v5054_v44 = vadd.f32 1.0, %v8397_v56 }
0x19a5   :  { %v5060_v6 = vadd.f32 1.0, %v8399_v45  ;;  %v8401_v52 = vpop.eup %8400 }
0x19a6   :  { %8404 = vrcp.f32 %v5054_v44  ;;  %v8403_v0 = vpop.eup %8402  ;;  %v5067_v9 = vadd.f32 1.0, %v8401_v52 }
0x19a7   :  { %8406 = vrcp.f32 %v5060_v6 }
0x19a8   :  { %8408 = vrcp.f32 %v5067_v9 }
0x19b0   :  { %v8405_v20 = vpop.eup %8404 }
0x19b1   :  { %v8407_v4 = vpop.eup %8406  ;;  %v5071_v22 = vmul.f32 %v8405_v20, %v8403_v0 }
0x19b2   :  { %v5070_v15 = vmul.f32 0.0, %v8407_v4  ;;  %v8409_v34 = vpop.eup %8408 }
0x19b4   :  { %v11961_v37 = vadd.f32 %v5071_v22, %v5070_v15 }
0x19b6   :  { %8410 = vtanh.f32 %v11961_v37 }
0x19c0   :  { %v8411_v51 = vpop.eup %8410 }
0x19c1   :  { %v11964_v56 = vmul.f32 %v8411_v51, %v8409_v34 }
0x19c3   :  { %v5075_v45 = vpack.c.bf16 %v11964_v56, %v11964_v56  ;;  %5852 = vst [vmem:[%s12717_s19] sm:$0xff] %v11964_v56 }
0x19c5   :  { %5109 = vmatmul.mubr.bf16.vlgmr.msra.gmra.mrb[164].mxu0 %v5075_v45  ;;  %5150 = vmatmul.mubr.bf16.vlgmr.msra.gmra.mrb[164].mxu1 %v5075_v45 }
0x19c6   :  { %5188 = vmatpush1.bf16.msra.mxu0 %v11646_v33  ;;  %5229 = vmatpush1.bf16.msra.mxu1 %v11651_v24 }
0x19c7   :  { %5189 = vmatprep.subr.bf16.mxu0 %v11659_v61  ;;  %5230 = vmatprep.subr.bf16.mxu1 %v11664_v3 }
0x19c8   :  { %5219 = vmatprep.mubr.bf16.mxu0 %v12779_v17  ;;  %5260 = vmatprep.mubr.bf16.mxu1 %v12779_v17 }
0x19ca   :  { %5190 = vmatpush1.bf16.msra.mxu0 %v11669_v53  ;;  %5231 = vmatpush1.bf16.msra.mxu1 %v11674_v10 }
0x19cb   :  { %5191 = vmatprep.subr.bf16.mxu0 %v11683_v54  ;;  %5232 = vmatprep.subr.bf16.mxu1 %v11688_v11 }
0x19ce   :  { %5192 = vmatpush1.bf16.msra.mxu0 %v11693_v57  ;;  %5233 = vmatpush1.bf16.msra.mxu1 %v11698_v26 }
0x19cf   :  { %5193 = vmatprep.subr.bf16.mxu0 %v11707_v32  ;;  %5234 = vmatprep.subr.bf16.mxu1 %v11712_v29 }
0x19d2   :  { %5194 = vmatpush1.bf16.msra.mxu0 %v11717_v1  ;;  %5235 = vmatpush1.bf16.msra.mxu1 %v11722_v42 }
0x19d3   :  { %5195 = vmatprep.subr.bf16.mxu0 %v11731_v7  ;;  %5236 = vmatprep.subr.bf16.mxu1 %v11736_v36 }
0x19d6   :  { %5196 = vmatpush1.bf16.msra.mxu0 %v11741_v16  ;;  %5237 = vmatpush1.bf16.msra.mxu1 %v11746_v49 }
0x19d7   :  { %5197 = vmatprep.subr.bf16.mxu0 %v11755_v21  ;;  %5238 = vmatprep.subr.bf16.mxu1 %v11760_v43 }
0x19da   :  { %5198 = vmatpush1.bf16.msra.mxu0 %v11765_v14  ;;  %5239 = vmatpush1.bf16.msra.mxu1 %v11770_v58 }
0x19db   :  { %5199 = vmatprep.subr.bf16.mxu0 %v11779_v35  ;;  %5240 = vmatprep.subr.bf16.mxu1 %v11784_v13 }
0x19de   :  { %5200 = vmatpush1.bf16.msra.mxu0 %v11789_v60  ;;  %5241 = vmatpush1.bf16.msra.mxu1 %v11794_v38 }
0x19df   :  { %5201 = vmatprep.subr.bf16.mxu0 %v11803_v39  ;;  %5242 = vmatprep.subr.bf16.mxu1 %v11808_v62 }
0x19e2   :  { %5202 = vmatpush1.bf16.msra.mxu0 %v11813_v63  ;;  %5243 = vmatpush1.bf16.msra.mxu1 %v11818_v18 }
0x19e3   :  { %5298 = vmatprep.subr.bf16.mxu0 %v11635_v25  ;;  %5339 = vmatprep.subr.bf16.mxu1 %v11640_v2 }
0x1a98   :  { %v5110_v41 = vpop.f32.mrb[164].mxu0  ;;  %v5151_v31 = vpop.f32.mrb[164].mxu1 }
0x1a99   :  { %v5158_v19 = vadd.f32 %v5110_v41, %v4666_v12  ;;  %v5160_v30 = vadd.f32 %v5151_v31, %v4739_v55  ;;  %v5112_v44 = vpop.f32.mrb[165].mxu0  ;;  %v5153_v6 = vpop.f32.mrb[165].mxu1 }
0x1a9a   :  { %v5159_v52 = vadd.f32 %v5112_v44, %v4668_v5  ;;  %v5161_v0 = vadd.f32 %v5153_v6, %v4741_v27  ;;  %v5114_v20 = vpop.f32.mrb[166].mxu0  ;;  %v5155_v4 = vpop.f32.mrb[166].mxu1 }
0x1a9b   :  { %v7224_v40 = vmul.f32 -1.442695, %v5158_v19  ;;  %v5115_v22 = vpop.f32.mrb[167].mxu0  ;;  %v5156_v9 = vpop.f32.mrb[167].mxu1 }
0x1a9c   :  { %v7225_v59 = vmul.f32 -1.442695, %v5159_v52  ;;  %v7226_v28 = vmul.f32 -1.442695, %v5161_v0  ;;  %v8653_v0 = vld [vmem:[%s12710_s18] sm:$0xff]  ;;  %v12930_v22 = vld [vmem:[#allocation7_spill] sm:$0xff] }
0x1a9d   :  { %8412 = vpow2.f32 %v7224_v40  ;;  %v5860_v20 = vadd.f32 %v8653_v0, %v11964_v56  ;;  %v4672_v56 = vadd.f32 %v11851_v48, %v11938_v46  ;;  %v4745_v9 = vadd.f32 %v12930_v22, %v11941_v50 }
0x1a9e   :  { %8414 = vpow2.f32 %v7225_v59  ;;  %v12931_v59 = vld [vmem:[#allocation8_spill] sm:$0xff] }
0x1a9f   :  { %8416 = vpow2.f32 %v7226_v28  ;;  %v4674_v28 = vadd.f32 %v12931_v59, %v11948_v23 }
0x1aa0   :  { %8418 = vtanh.f32 %v5160_v30 }
0x1aa7   :  { %v8413_v15 = vpop.eup %8412 }
0x1aa8   :  { %v8415_v34 = vpop.eup %8414  ;;  %v5165_v47 = vadd.f32 1.0, %v8413_v15  ;;  %v12932_v15 = vld [vmem:[#allocation9_spill] sm:$0xff] }
0x1aa9   :  { %v5171_v51 = vadd.f32 1.0, %v8415_v34  ;;  %v8417_v45 = vpop.eup %8416  ;;  %v4747_v34 = vadd.f32 %v12932_v15, %v11951_v8 }
0x1aaa   :  { %8420 = vrcp.f32 %v5165_v47  ;;  %v8419_v12 = vpop.eup %8418  ;;  %v5178_v41 = vadd.f32 1.0, %v8417_v45 }
0x1aab   :  { %8422 = vrcp.f32 %v5171_v51 }
0x1aac   :  { %8424 = vrcp.f32 %v5178_v41 }
0x1ab4   :  { %v8421_v55 = vpop.eup %8420 }
0x1ab5   :  { %v8423_v5 = vpop.eup %8422  ;;  %v5182_v27 = vmul.f32 %v8421_v55, %v8419_v12 }
0x1ab6   :  { %v5181_v31 = vmul.f32 %v8423_v5, %v11961_v37  ;;  %v8425_v44 = vpop.eup %8424  ;;  %v8654_v37 = vld [vmem:[%s12710_s18 + $0x8] sm:$0xff] }
0x1ab8   :  { %v12015_v19 = vadd.f32 %v5182_v27, %v5181_v31 }
0x1aba   :  { %8426 = vtanh.f32 %v12015_v19 }
0x1ac4   :  { %v8427_v6 = vpop.eup %8426 }
0x1ac5   :  { %v5185_v52 = vmul.f32 %v8427_v6, %v8425_v44 }
0x1ac7   :  { %v5186_v30 = vpack.c.bf16 %v5185_v52, %v5185_v52  ;;  %5853 = vst [vmem:[%s12717_s19 + $0x8] sm:$0xff] %v5185_v52  ;;  %v5861_v4 = vadd.f32 %v8654_v37, %v5185_v52 }
0x1ac9   :  { %5220 = vmatmul.mubr.bf16.vlgmr.msra.gmra.mrb[168].mxu0 %v5186_v30  ;;  %5261 = vmatmul.mubr.bf16.vlgmr.msra.gmra.mrb[168].mxu1 %v5186_v30  ;;  %v12028_v40 = vpack.c.bf16 %v5861_v4, %v5860_v20 }
0x1aca   :  { %5299 = vmatpush1.bf16.msra.mxu0 %v11646_v33  ;;  %5340 = vmatpush1.bf16.msra.mxu1 %v11651_v24 }
0x1acb   :  { %5300 = vmatprep.subr.bf16.mxu0 %v11659_v61  ;;  %5341 = vmatprep.subr.bf16.mxu1 %v11664_v3 }
0x1acc   :  { %5330 = vmatprep.mubr.bf16.mxu0 %v12779_v17  ;;  %5371 = vmatprep.mubr.bf16.mxu1 %v12779_v17 }
0x1ace   :  { %5301 = vmatpush1.bf16.msra.mxu0 %v11669_v53  ;;  %5342 = vmatpush1.bf16.msra.mxu1 %v11674_v10 }
0x1acf   :  { %5302 = vmatprep.subr.bf16.mxu0 %v11683_v54  ;;  %5343 = vmatprep.subr.bf16.mxu1 %v11688_v11 }
0x1ad2   :  { %5303 = vmatpush1.bf16.msra.mxu0 %v11693_v57  ;;  %5344 = vmatpush1.bf16.msra.mxu1 %v11698_v26 }
0x1ad3   :  { %5304 = vmatprep.subr.bf16.mxu0 %v11707_v32  ;;  %5345 = vmatprep.subr.bf16.mxu1 %v11712_v29 }
0x1ad6   :  { %5305 = vmatpush1.bf16.msra.mxu0 %v11717_v1  ;;  %5346 = vmatpush1.bf16.msra.mxu1 %v11722_v42 }
0x1ad7   :  { %5306 = vmatprep.subr.bf16.mxu0 %v11731_v7  ;;  %5347 = vmatprep.subr.bf16.mxu1 %v11736_v36 }
0x1ada   :  { %5307 = vmatpush1.bf16.msra.mxu0 %v11741_v16  ;;  %5348 = vmatpush1.bf16.msra.mxu1 %v11746_v49 }
0x1adb   :  { %5308 = vmatprep.subr.bf16.mxu0 %v11755_v21  ;;  %5349 = vmatprep.subr.bf16.mxu1 %v11760_v43 }
0x1ade   :  { %5309 = vmatpush1.bf16.msra.mxu0 %v11765_v14  ;;  %5350 = vmatpush1.bf16.msra.mxu1 %v11770_v58 }
0x1adf   :  { %5310 = vmatprep.subr.bf16.mxu0 %v11779_v35  ;;  %5351 = vmatprep.subr.bf16.mxu1 %v11784_v13 }
0x1ae2   :  { %5311 = vmatpush1.bf16.msra.mxu0 %v11789_v60  ;;  %5352 = vmatpush1.bf16.msra.mxu1 %v11794_v38 }
0x1ae3   :  { %5312 = vmatprep.subr.bf16.mxu0 %v11803_v39  ;;  %5353 = vmatprep.subr.bf16.mxu1 %v11808_v62 }
0x1ae6   :  { %5313 = vmatpush1.bf16.msra.mxu0 %v11813_v63  ;;  %5354 = vmatpush1.bf16.msra.mxu1 %v11818_v18 }
0x1ae7   :  { %5409 = vmatprep.subr.bf16.mxu0 %v11635_v25  ;;  %5450 = vmatprep.subr.bf16.mxu1 %v11640_v2 }
0x1b9c   :  { %v5221_v47 = vpop.f32.mrb[168].mxu0  ;;  %v5262_v51 = vpop.f32.mrb[168].mxu1 }
0x1b9d   :  { %v5269_v45 = vadd.f32 %v5221_v47, %v4672_v56  ;;  %v5271_v12 = vadd.f32 %v5262_v51, %v4745_v9  ;;  %v5223_v55 = vpop.f32.mrb[169].mxu0  ;;  %v5264_v5 = vpop.f32.mrb[169].mxu1 }
0x1b9e   :  { %v5270_v27 = vadd.f32 %v5223_v55, %v4674_v28  ;;  %v5272_v41 = vadd.f32 %v5264_v5, %v4747_v34  ;;  %v5225_v31 = vpop.f32.mrb[170].mxu0  ;;  %v5266_v44 = vpop.f32.mrb[170].mxu1 }
0x1b9f   :  { %v7227_v48 = vmul.f32 -1.442695, %v5269_v45  ;;  %v5226_v6 = vpop.f32.mrb[171].mxu0  ;;  %v5267_v52 = vpop.f32.mrb[171].mxu1  ;;  %v12935_v44 = vld [vmem:[#allocation12_spill] sm:$0xff] }
0x1ba0   :  { %v7228_v30 = vmul.f32 -1.442695, %v5270_v27  ;;  %v7229_v0 = vmul.f32 -1.442695, %v5272_v41  ;;  %v12934_v41 = vld [vmem:[#allocation11_spill] sm:$0xff]  ;;  %v12936_v6 = vld [vmem:[#allocation13_spill] sm:$0xff] }
0x1ba1   :  { %8428 = vpow2.f32 %v7227_v48  ;;  %v4749_v31 = vadd.f32 %v12934_v41, %v11941_v50  ;;  %v4678_v48 = vadd.f32 %v12935_v44, %v11948_v23  ;;  %v4751_v52 = vadd.f32 %v12936_v6, %v11951_v8 }
0x1ba2   :  { %8430 = vpow2.f32 %v7228_v30 }
0x1ba3   :  { %8432 = vpow2.f32 %v7229_v0 }
0x1ba4   :  { %8434 = vtanh.f32 %v5271_v12 }
0x1bab   :  { %v8429_v20 = vpop.eup %8428 }
0x1bac   :  { %v8431_v37 = vpop.eup %8430  ;;  %v5276_v4 = vadd.f32 1.0, %v8429_v20 }
0x1bad   :  { %v5282_v56 = vadd.f32 1.0, %v8431_v37  ;;  %v8433_v22 = vpop.eup %8432 }
0x1bae   :  { %8436 = vrcp.f32 %v5276_v4  ;;  %v8435_v9 = vpop.eup %8434  ;;  %v5289_v34 = vadd.f32 1.0, %v8433_v22 }
0x1baf   :  { %8438 = vrcp.f32 %v5282_v56 }
0x1bb0   :  { %8440 = vrcp.f32 %v5289_v34 }
0x1bb8   :  { %v8437_v59 = vpop.eup %8436 }
0x1bb9   :  { %v8439_v28 = vpop.eup %8438  ;;  %v5293_v15 = vmul.f32 %v8437_v59, %v8435_v9 }
0x1bba   :  { %v5292_v47 = vmul.f32 %v8439_v28, %v12015_v19  ;;  %v8441_v45 = vpop.eup %8440  ;;  %v12933_v19 = vld [vmem:[#allocation10_spill] sm:$0xff] }
0x1bbb   :  { %v4676_v27 = vadd.f32 %v12933_v19, %v11938_v46 }
0x1bbc   :  { %v12073_v51 = vadd.f32 %v5293_v15, %v5292_v47 }
0x1bbe   :  { %8442 = vtanh.f32 %v12073_v51 }
0x1bc8   :  { %v8443_v55 = vpop.eup %8442 }
0x1bc9   :  { %v12076_v5 = vmul.f32 %v8443_v55, %v8441_v45 }
0x1bcb   :  { %v5297_v12 = vpack.c.bf16 %v12076_v5, %v12076_v5  ;;  %5854 = vst [vmem:[%s12717_s19 + $0x10] sm:$0xff] %v12076_v5 }
0x1bcd   :  { %5331 = vmatmul.mubr.bf16.vlgmr.msra.gmra.mrb[172].mxu0 %v5297_v12  ;;  %5372 = vmatmul.mubr.bf16.vlgmr.msra.gmra.mrb[172].mxu1 %v5297_v12 }
0x1bce   :  { %5410 = vmatpush1.bf16.msra.mxu0 %v11646_v33  ;;  %5451 = vmatpush1.bf16.msra.mxu1 %v11651_v24 }
0x1bcf   :  { %5411 = vmatprep.subr.bf16.mxu0 %v11659_v61  ;;  %5452 = vmatprep.subr.bf16.mxu1 %v11664_v3 }
0x1bd0   :  { %5441 = vmatprep.mubr.bf16.mxu0 %v12779_v17  ;;  %5482 = vmatprep.mubr.bf16.mxu1 %v12779_v17 }
0x1bd2   :  { %5412 = vmatpush1.bf16.msra.mxu0 %v11669_v53  ;;  %5453 = vmatpush1.bf16.msra.mxu1 %v11674_v10 }
0x1bd3   :  { %5413 = vmatprep.subr.bf16.mxu0 %v11683_v54  ;;  %5454 = vmatprep.subr.bf16.mxu1 %v11688_v11 }
0x1bd6   :  { %5414 = vmatpush1.bf16.msra.mxu0 %v11693_v57  ;;  %5455 = vmatpush1.bf16.msra.mxu1 %v11698_v26 }
0x1bd7   :  { %5415 = vmatprep.subr.bf16.mxu0 %v11707_v32  ;;  %5456 = vmatprep.subr.bf16.mxu1 %v11712_v29 }
0x1bda   :  { %5416 = vmatpush1.bf16.msra.mxu0 %v11717_v1  ;;  %5457 = vmatpush1.bf16.msra.mxu1 %v11722_v42 }
0x1bdb   :  { %5417 = vmatprep.subr.bf16.mxu0 %v11731_v7  ;;  %5458 = vmatprep.subr.bf16.mxu1 %v11736_v36 }
0x1bde   :  { %5418 = vmatpush1.bf16.msra.mxu0 %v11741_v16  ;;  %5459 = vmatpush1.bf16.msra.mxu1 %v11746_v49 }
0x1bdf   :  { %5419 = vmatprep.subr.bf16.mxu0 %v11755_v21  ;;  %5460 = vmatprep.subr.bf16.mxu1 %v11760_v43 }
0x1be2   :  { %5420 = vmatpush1.bf16.msra.mxu0 %v11765_v14  ;;  %5461 = vmatpush1.bf16.msra.mxu1 %v11770_v58 }
0x1be3   :  { %5421 = vmatprep.subr.bf16.mxu0 %v11779_v35  ;;  %5462 = vmatprep.subr.bf16.mxu1 %v11784_v13 }
0x1be6   :  { %5422 = vmatpush1.bf16.msra.mxu0 %v11789_v60  ;;  %5463 = vmatpush1.bf16.msra.mxu1 %v11794_v38 }
0x1be7   :  { %5423 = vmatprep.subr.bf16.mxu0 %v11803_v39  ;;  %5464 = vmatprep.subr.bf16.mxu1 %v11808_v62 }
0x1bea   :  { %5424 = vmatpush1.bf16.msra.mxu0 %v11813_v63  ;;  %5465 = vmatpush1.bf16.msra.mxu1 %v11818_v18 }
0x1beb   :  { %5520 = vmatprep.subr.bf16.mxu0 %v11635_v25  ;;  %5561 = vmatprep.subr.bf16.mxu1 %v11640_v2 }
0x1ca0   :  { %v5332_v30 = vpop.f32.mrb[172].mxu0  ;;  %v5373_v0 = vpop.f32.mrb[172].mxu1 }
0x1ca1   :  { %v5380_v20 = vadd.f32 %v5332_v30, %v4676_v27  ;;  %v5382_v37 = vadd.f32 %v5373_v0, %v4749_v31  ;;  %v5334_v4 = vpop.f32.mrb[173].mxu0  ;;  %v5375_v25 = vpop.f32.mrb[173].mxu1 }
0x1ca2   :  { %v5381_v56 = vadd.f32 %v5334_v4, %v4678_v48  ;;  %v5383_v2 = vadd.f32 %v5375_v25, %v4751_v52  ;;  %v5336_v22 = vpop.f32.mrb[174].mxu0  ;;  %v5377_v9 = vpop.f32.mrb[174].mxu1  ;;  %v8655_v25 = vld [vmem:[%s12710_s18 + $0x10] sm:$0xff] }
0x1ca3   :  { %v7230_v59 = vmul.f32 -1.442695, %v5380_v20  ;;  %v5337_v28 = vpop.f32.mrb[175].mxu0  ;;  %v5378_v15 = vpop.f32.mrb[175].mxu1 }
0x1ca4   :  { %v7231_v34 = vmul.f32 -1.442695, %v5381_v56  ;;  %v7232_v47 = vmul.f32 -1.442695, %v5383_v2  ;;  %v5862_v56 = vadd.f32 %v8655_v25, %v12076_v5  ;;  %v12283_v25 = vld [vmem:[%s12715_s11 + $0x60] ss:$16 sps:$4 sm:$0xff]  }
0x1ca5   :  { %8444 = vpow2.f32 %v7230_v59 }
0x1ca6   :  { %8446 = vpow2.f32 %v7231_v34 }
0x1ca7   :  { %8448 = vpow2.f32 %v7232_v47 }
0x1ca8   :  { %8450 = vtanh.f32 %v5382_v37 }
0x1caf   :  { %v8445_v45 = vpop.eup %8444 }
0x1cb0   :  { %v8447_v55 = vpop.eup %8446  ;;  %v5387_v12 = vadd.f32 1.0, %v8445_v45 }
0x1cb1   :  { %v5393_v19 = vadd.f32 1.0, %v8447_v55  ;;  %v8449_v27 = vpop.eup %8448 }
0x1cb2   :  { %8452 = vrcp.f32 %v5387_v12  ;;  %v8451_v41 = vpop.eup %8450  ;;  %v5400_v6 = vadd.f32 1.0, %v8449_v27  ;;  %v12209_v27 = vld [vmem:[%s12715_s11] ss:$16 sps:$4 sm:$0xff]  }
0x1cb3   :  { %8454 = vrcp.f32 %v5393_v19 }
0x1cb4   :  { %8456 = vrcp.f32 %v5400_v6  ;;  %v12241_v6 = vld [vmem:[%s12715_s11 + $0x28] ss:$16 sps:$4 sm:$0xff]  }
0x1cbc   :  { %v8453_v31 = vpop.eup %8452 }
0x1cbd   :  { %v8455_v44 = vpop.eup %8454  ;;  %v5404_v48 = vmul.f32 %v8453_v31, %v8451_v41  ;;  %v12215_v41 = vld [vmem:[%s12715_s11 + $0x8] ss:$16 sps:$4 sm:$0xff]   ;;  %v12221_v31 = vld [vmem:[%s12715_s11 + $0x24] ss:$16 sps:$4 sm:$0xff]  }
0x1cbe   :  { %v5403_v52 = vmul.f32 %v8455_v44, %v12073_v51  ;;  %v8457_v0 = vpop.eup %8456  ;;  %v8656_v51 = vld [vmem:[%s12710_s18 + $0x18] sm:$0xff] }
0x1cbf   :  { %v12227_v44 = vld [vmem:[%s12715_s11 + $0x2c] ss:$16 sps:$4 sm:$0xff]  }
0x1cc0   :  { %v12127_v30 = vadd.f32 %v5404_v48, %v5403_v52  ;;  %v12235_v48 = vld [vmem:[%s12715_s11 + $0x20] ss:$16 sps:$4 sm:$0xff]   ;;  %v12247_v52 = vld [vmem:[%s12715_s11 + $0x44] ss:$16 sps:$4 sm:$0xff]  }
0x1cc2   :  { %8458 = vtanh.f32 %v12127_v30 }
0x1ccc   :  { %v8459_v20 = vpop.eup %8458 }
0x1ccd   :  { %v5407_v4 = vmul.f32 %v8459_v20, %v8457_v0  ;;  %v12259_v0 = vld [vmem:[%s12715_s11 + $0x40] ss:$16 sps:$4 sm:$0xff]   ;;  %v12265_v20 = vld [vmem:[%s12715_s11 + $0x48] ss:$16 sps:$4 sm:$0xff]  }
0x1ccf   :  { %v5408_v37 = vpack.c.bf16 %v5407_v4, %v5407_v4  ;;  %5855 = vst [vmem:[%s12717_s19 + $0x18] sm:$0xff] %v5407_v4  ;;  %v5863_v2 = vadd.f32 %v8656_v51, %v5407_v4  ;;  %v12271_v4 = vld [vmem:[%s12715_s11 + $0x64] ss:$16 sps:$4 sm:$0xff]  }
0x1cd0   :  { %v12295_v51 = vld [vmem:[%s12715_s11 + $0x84] ss:$16 sps:$4 sm:$0xff]  }
0x1cd1   :  { %5442 = vmatmul.mubr.bf16.vlgmr.msra.gmra.mrb[176].mxu0 %v5408_v37  ;;  %5483 = vmatmul.mubr.bf16.vlgmr.msra.gmra.mrb[176].mxu1 %v5408_v37  ;;  %v12140_v22 = vpack.c.bf16 %v5863_v2, %v5862_v56  ;;  %v12277_v37 = vld [vmem:[%s12715_s11 + $0x6c] ss:$16 sps:$4 sm:$0xff]   ;;  %v12289_v56 = vld [vmem:[%s12715_s11 + $0x68] ss:$16 sps:$4 sm:$0xff]  }
0x1cd2   :  { %5521 = vmatpush1.bf16.msra.mxu0 %v11646_v33  ;;  %5562 = vmatpush1.bf16.msra.mxu1 %v11651_v24  ;;  %v12177_v33 = vld [vmem:[%s12715_s11 + $0x4] ss:$16 sps:$4 sm:$0xff]   ;;  %v12183_v24 = vld [vmem:[%s12715_s11 + $0xc] ss:$16 sps:$4 sm:$0xff]  }
0x1cd3   :  { %5522 = vmatprep.subr.bf16.mxu0 %v11659_v61  ;;  %5563 = vmatprep.subr.bf16.mxu1 %v11664_v3  ;;  %v12937_v61 = vld [vmem:[#allocation14_spill] sm:$0xff]  ;;  %v12301_v2 = vld [vmem:[%s12715_s11 + $0x8c] ss:$16 sps:$4 sm:$0xff]  }
0x1cd4   :  { %5552 = vmatprep.mubr.bf16.mxu0 %v12779_v17  ;;  %5593 = vmatprep.mubr.bf16.mxu1 %v12779_v17  ;;  %v4682_v3 = vadd.f32 %v12937_v61, %v11938_v46  ;;  %v12307_v61 = vld [vmem:[%s12715_s11 + $0x80] ss:$16 sps:$4 sm:$0xff]  }
0x1cd6   :  { %5523 = vmatpush1.bf16.msra.mxu0 %v11669_v53  ;;  %5564 = vmatpush1.bf16.msra.mxu1 %v11674_v10  ;;  %v12938_v53 = vld [vmem:[#allocation15_spill] sm:$0xff] }
0x1cd7   :  { %5524 = vmatprep.subr.bf16.mxu0 %v11683_v54  ;;  %5565 = vmatprep.subr.bf16.mxu1 %v11688_v11  ;;  %v4755_v10 = vadd.f32 %v12938_v53, %v11941_v50  ;;  %v12939_v54 = vld [vmem:[#allocation16_spill] sm:$0xff] }
0x1cd8   :  { %v4684_v11 = vadd.f32 %v12939_v54, %v11948_v23  ;;  %v12319_v53 = vld [vmem:[%s12715_s11 + $0xa4] ss:$16 sps:$4 sm:$0xff]   ;;  %v12331_v54 = vld [vmem:[%s12715_s11 + $0xa0] ss:$16 sps:$4 sm:$0xff]  }
0x1cda   :  { %5525 = vmatpush1.bf16.msra.mxu0 %v11693_v57  ;;  %5566 = vmatpush1.bf16.msra.mxu1 %v11698_v26  ;;  %v12940_v57 = vld [vmem:[#allocation17_spill] sm:$0xff] }
0x1cdb   :  { %5526 = vmatprep.subr.bf16.mxu0 %v11707_v32  ;;  %5567 = vmatprep.subr.bf16.mxu1 %v11712_v29  ;;  %v4757_v26 = vadd.f32 %v12940_v57, %v11951_v8  ;;  %v12343_v57 = vld [vmem:[%s12715_s11 + $0xc4] ss:$16 sps:$4 sm:$0xff]  }
0x1cde   :  { %5527 = vmatpush1.bf16.msra.mxu0 %v11717_v1  ;;  %5568 = vmatpush1.bf16.msra.mxu1 %v11722_v42 }
0x1cdf   :  { %5528 = vmatprep.subr.bf16.mxu0 %v11731_v7  ;;  %5569 = vmatprep.subr.bf16.mxu1 %v11736_v36 }
0x1ce2   :  { %5529 = vmatpush1.bf16.msra.mxu0 %v11741_v16  ;;  %5570 = vmatpush1.bf16.msra.mxu1 %v11746_v49 }
0x1ce3   :  { %5530 = vmatprep.subr.bf16.mxu0 %v11755_v21  ;;  %5571 = vmatprep.subr.bf16.mxu1 %v11760_v43 }
0x1ce6   :  { %5531 = vmatpush1.bf16.msra.mxu0 %v11765_v14  ;;  %5572 = vmatpush1.bf16.msra.mxu1 %v11770_v58 }
0x1ce7   :  { %5532 = vmatprep.subr.bf16.mxu0 %v11779_v35  ;;  %5573 = vmatprep.subr.bf16.mxu1 %v11784_v13 }
0x1cea   :  { %5533 = vmatpush1.bf16.msra.mxu0 %v11789_v60  ;;  %5574 = vmatpush1.bf16.msra.mxu1 %v11794_v38 }
0x1ceb   :  { %5534 = vmatprep.subr.bf16.mxu0 %v11803_v39  ;;  %5575 = vmatprep.subr.bf16.mxu1 %v11808_v62 }
0x1cee   :  { %5535 = vmatpush1.bf16.msra.mxu0 %v11813_v63  ;;  %5576 = vmatpush1.bf16.msra.mxu1 %v11818_v18 }
0x1cef   :  { %5631 = vmatprep.subr.bf16.mxu0 %v12177_v33  ;;  %5672 = vmatprep.subr.bf16.mxu1 %v12183_v24 }
0x1da4   :  { %v5443_v32 = vpop.f32.mrb[176].mxu0  ;;  %v5484_v29 = vpop.f32.mrb[176].mxu1 }
0x1da5   :  { %v5491_v1 = vadd.f32 %v5443_v32, %v4682_v3  ;;  %v5493_v42 = vadd.f32 %v5484_v29, %v4755_v10  ;;  %v5445_v7 = vpop.f32.mrb[177].mxu0  ;;  %v5486_v36 = vpop.f32.mrb[177].mxu1  ;;  %v12313_v3 = vld [vmem:[%s12715_s11 + $0x88] ss:$16 sps:$4 sm:$0xff]   ;;  %v12325_v10 = vld [vmem:[%s12715_s11 + $0xac] ss:$16 sps:$4 sm:$0xff]  }
0x1da6   :  { %v5492_v16 = vadd.f32 %v5445_v7, %v4684_v11  ;;  %v5494_v49 = vadd.f32 %v5486_v36, %v4757_v26  ;;  %v5447_v21 = vpop.f32.mrb[178].mxu0  ;;  %v5488_v43 = vpop.f32.mrb[178].mxu1  ;;  %v12337_v11 = vld [vmem:[%s12715_s11 + $0xa8] ss:$16 sps:$4 sm:$0xff]   ;;  %v12349_v26 = vld [vmem:[%s12715_s11 + $0xcc] ss:$16 sps:$4 sm:$0xff]  }
0x1da7   :  { %v7233_v14 = vmul.f32 -1.442695, %v5491_v1  ;;  %v5448_v58 = vpop.f32.mrb[179].mxu0  ;;  %v5489_v35 = vpop.f32.mrb[179].mxu1  ;;  %v12355_v32 = vld [vmem:[%s12715_s11 + $0xc0] ss:$16 sps:$4 sm:$0xff]  }
0x1da8   :  { %v7234_v13 = vmul.f32 -1.442695, %v5492_v16  ;;  %v7235_v60 = vmul.f32 -1.442695, %v5494_v49  ;;  %v12361_v29 = vld [vmem:[%s12715_s11 + $0xc8] ss:$16 sps:$4 sm:$0xff]  }
0x1da9   :  { %8460 = vpow2.f32 %v7233_v14  ;;  %v12367_v1 = vld [vmem:[%s12715_s11 + $0xe4] ss:$16 sps:$4 sm:$0xff]   ;;  %v12379_v7 = vld [vmem:[%s12715_s11 + $0xe0] ss:$16 sps:$4 sm:$0xff]   ;;  %v12385_v36 = vld [vmem:[%s12715_s11 + $0xe8] ss:$16 sps:$4 sm:$0xff]  }
0x1daa   :  { %8462 = vpow2.f32 %v7234_v13  ;;  %v12941_v16 = vld [vmem:[#allocation18_spill] sm:$0xff]  ;;  %v12942_v21 = vld [vmem:[#allocation19_spill] sm:$0xff]  ;;  %v12943_v14 = vld [vmem:[#allocation20_spill] sm:$0xff] }
0x1dab   :  { %8464 = vpow2.f32 %v7235_v60  ;;  %v4686_v49 = vadd.f32 %v12941_v16, %v11938_v46  ;;  %v4759_v43 = vadd.f32 %v12942_v21, %v11941_v50  ;;  %v4688_v58 = vadd.f32 %v12943_v14, %v11948_v23  ;;  %v12944_v35 = vld [vmem:[#allocation21_spill] sm:$0xff] }
0x1dac   :  { %8466 = vtanh.f32 %v5493_v42  ;;  %v12373_v42 = vld [vmem:[%s12715_s11 + $0xec] ss:$16 sps:$4 sm:$0xff]   ;;  %v4761_v13 = vadd.f32 %v12944_v35, %v11951_v8 }
0x1db3   :  { %v8461_v38 = vpop.eup %8460 }
0x1db4   :  { %v8463_v39 = vpop.eup %8462  ;;  %v5498_v62 = vadd.f32 1.0, %v8461_v38 }
0x1db5   :  { %v5504_v63 = vadd.f32 1.0, %v8463_v39  ;;  %v8465_v18 = vpop.eup %8464 }
0x1db6   :  { %8468 = vrcp.f32 %v5498_v62  ;;  %v8467_v5 = vpop.eup %8466  ;;  %v5511_v15 = vadd.f32 1.0, %v8465_v18 }
0x1db7   :  { %8470 = vrcp.f32 %v5504_v63 }
0x1db8   :  { %8472 = vrcp.f32 %v5511_v15 }
0x1dc0   :  { %v8469_v9 = vpop.eup %8468 }
0x1dc1   :  { %v8471_v59 = vpop.eup %8470  ;;  %v5515_v28 = vmul.f32 %v8469_v9, %v8467_v5 }
0x1dc2   :  { %v5514_v34 = vmul.f32 %v8471_v59, %v12127_v30  ;;  %v8473_v45 = vpop.eup %8472  ;;  %v12253_v30 = vld [vmem:[%s12715_s11 + $0x4c] ss:$16 sps:$4 sm:$0xff]  }
0x1dc4   :  { %v12195_v47 = vadd.f32 %v5515_v28, %v5514_v34 }
0x1dc6   :  { %8474 = vtanh.f32 %v12195_v47 }
0x1dd0   :  { %v8475_v55 = vpop.eup %8474 }
0x1dd1   :  { %v12198_v12 = vmul.f32 %v8475_v55, %v8473_v45 }
0x1dd3   :  { %v5519_v19 = vpack.c.bf16 %v12198_v12, %v12198_v12  ;;  %5856 = vst [vmem:[%s12717_s19 + $0x20] sm:$0xff] %v12198_v12 }
0x1dd5   :  { %5553 = vmatmul.mubr.bf16.vlgmr.msra.gmra.mrb[180].mxu0 %v5519_v19  ;;  %5594 = vmatmul.mubr.bf16.vlgmr.msra.gmra.mrb[180].mxu1 %v5519_v19 }
0x1dd6   :  { %5632 = vmatpush1.bf16.msra.mxu0 %v12209_v27  ;;  %5673 = vmatpush1.bf16.msra.mxu1 %v12215_v41 }
0x1dd7   :  { %5633 = vmatprep.subr.bf16.mxu0 %v12221_v31  ;;  %5674 = vmatprep.subr.bf16.mxu1 %v12227_v44 }
0x1dd8   :  { %5663 = vmatprep.mubr.bf16.mxu0 %v12779_v17  ;;  %5704 = vmatprep.mubr.bf16.mxu1 %v12779_v17 }
0x1dda   :  { %5634 = vmatpush1.bf16.msra.mxu0 %v12235_v48  ;;  %5675 = vmatpush1.bf16.msra.mxu1 %v12241_v6 }
0x1ddb   :  { %5635 = vmatprep.subr.bf16.mxu0 %v12247_v52  ;;  %5676 = vmatprep.subr.bf16.mxu1 %v12253_v30 }
0x1dde   :  { %5636 = vmatpush1.bf16.msra.mxu0 %v12259_v0  ;;  %5677 = vmatpush1.bf16.msra.mxu1 %v12265_v20 }
0x1ddf   :  { %5637 = vmatprep.subr.bf16.mxu0 %v12271_v4  ;;  %5678 = vmatprep.subr.bf16.mxu1 %v12277_v37 }
0x1de2   :  { %5638 = vmatpush1.bf16.msra.mxu0 %v12283_v25  ;;  %5679 = vmatpush1.bf16.msra.mxu1 %v12289_v56 }
0x1de3   :  { %5639 = vmatprep.subr.bf16.mxu0 %v12295_v51  ;;  %5680 = vmatprep.subr.bf16.mxu1 %v12301_v2 }
0x1de6   :  { %5640 = vmatpush1.bf16.msra.mxu0 %v12307_v61  ;;  %5681 = vmatpush1.bf16.msra.mxu1 %v12313_v3 }
0x1de7   :  { %5641 = vmatprep.subr.bf16.mxu0 %v12319_v53  ;;  %5682 = vmatprep.subr.bf16.mxu1 %v12325_v10 }
0x1dea   :  { %5642 = vmatpush1.bf16.msra.mxu0 %v12331_v54  ;;  %5683 = vmatpush1.bf16.msra.mxu1 %v12337_v11 }
0x1deb   :  { %5643 = vmatprep.subr.bf16.mxu0 %v12343_v57  ;;  %5684 = vmatprep.subr.bf16.mxu1 %v12349_v26 }
0x1dee   :  { %5644 = vmatpush1.bf16.msra.mxu0 %v12355_v32  ;;  %5685 = vmatpush1.bf16.msra.mxu1 %v12361_v29 }
0x1def   :  { %5645 = vmatprep.subr.bf16.mxu0 %v12367_v1  ;;  %5686 = vmatprep.subr.bf16.mxu1 %v12373_v42 }
0x1df2   :  { %5646 = vmatpush1.bf16.msra.mxu0 %v12379_v7  ;;  %5687 = vmatpush1.bf16.msra.mxu1 %v12385_v36 }
0x1df3   :  { %5742 = vmatprep.subr.bf16.mxu0 %v12177_v33  ;;  %5783 = vmatprep.subr.bf16.mxu1 %v12183_v24 }
0x1ea8   :  { %v5554_v60 = vpop.f32.mrb[180].mxu0  ;;  %v5595_v38 = vpop.f32.mrb[180].mxu1 }
0x1ea9   :  { %v5602_v39 = vadd.f32 %v5554_v60, %v4686_v49  ;;  %v5604_v62 = vadd.f32 %v5595_v38, %v4759_v43  ;;  %v5556_v63 = vpop.f32.mrb[181].mxu0  ;;  %v5597_v33 = vpop.f32.mrb[181].mxu1 }
0x1eaa   :  { %v5603_v18 = vadd.f32 %v5556_v63, %v4688_v58  ;;  %v5605_v24 = vadd.f32 %v5597_v33, %v4761_v13  ;;  %v5558_v5 = vpop.f32.mrb[182].mxu0  ;;  %v5599_v9 = vpop.f32.mrb[182].mxu1 }
0x1eab   :  { %v7236_v59 = vmul.f32 -1.442695, %v5602_v39  ;;  %v5559_v28 = vpop.f32.mrb[183].mxu0  ;;  %v5600_v15 = vpop.f32.mrb[183].mxu1 }
0x1eac   :  { %v7237_v34 = vmul.f32 -1.442695, %v5603_v18  ;;  %v7238_v45 = vmul.f32 -1.442695, %v5605_v24  ;;  %v8689_v18 = vld [vmem:[%s12710_s18 + $0x20] sm:$0xff] }
0x1ead   :  { %8476 = vpow2.f32 %v7236_v59  ;;  %v5864_v24 = vadd.f32 %v8689_v18, %v12198_v12  ;;  %v7981_v12 = vld [vmem:[%s12719_s14] sm:$0xff]   ;;  %v7994_v18 = vld [vmem:[%s12718_s13 + $0x38] sm:$0xff]  }
0x1eae   :  { %8478 = vpow2.f32 %v7237_v34 }
0x1eaf   :  { %8480 = vpow2.f32 %v7238_v45 }
0x1eb0   :  { %8482 = vtanh.f32 %v5604_v62 }
0x1eb7   :  { %v8477_v55 = vpop.eup %8476 }
0x1eb8   :  { %v8479_v19 = vpop.eup %8478  ;;  %v5609_v16 = vadd.f32 1.0, %v8477_v55 }
0x1eb9   :  { %v5615_v49 = vadd.f32 1.0, %v8479_v19  ;;  %v8481_v21 = vpop.eup %8480 }
0x1eba   :  { %8484 = vrcp.f32 %v5609_v16  ;;  %v8483_v43 = vpop.eup %8482  ;;  %v5622_v13 = vadd.f32 1.0, %v8481_v21  ;;  %v7982_v21 = vld [vmem:[%s12718_s13 + $0x8] sm:$0xff]  }
0x1ebb   :  { %8486 = vrcp.f32 %v5615_v49 }
0x1ebc   :  { %8488 = vrcp.f32 %v5622_v13  ;;  %v7987_v13 = vld [vmem:[%s12719_s14 + $0x18] sm:$0xff]  }
0x1ec4   :  { %v8485_v14 = vpop.eup %8484 }
0x1ec5   :  { %v8487_v58 = vpop.eup %8486  ;;  %v5626_v35 = vmul.f32 %v8485_v14, %v8483_v43  ;;  %v7983_v43 = vld [vmem:[%s12719_s14 + $0x8] sm:$0xff]   ;;  %v7984_v14 = vld [vmem:[%s12718_s13 + $0x10] sm:$0xff]  }
0x1ec6   :  { %v5625_v60 = vmul.f32 %v8487_v58, %v12195_v47  ;;  %v8489_v39 = vpop.eup %8488  ;;  %v8690_v47 = vld [vmem:[%s12710_s18 + $0x28] sm:$0xff]  ;;  %v7985_v58 = vld [vmem:[%s12719_s14 + $0x10] sm:$0xff]  }
0x1ec8   :  { %v12399_v38 = vadd.f32 %v5626_v35, %v5625_v60  ;;  %v7986_v35 = vld [vmem:[%s12718_s13 + $0x18] sm:$0xff]   ;;  %v7988_v60 = vld [vmem:[%s12718_s13 + $0x20] sm:$0xff]  }
0x1eca   :  { %8490 = vtanh.f32 %v12399_v38 }
0x1ed4   :  { %v8491_v63 = vpop.eup %8490 }
0x1ed5   :  { %v5629_v33 = vmul.f32 %v8491_v63, %v8489_v39  ;;  %v7990_v39 = vld [vmem:[%s12718_s13 + $0x28] sm:$0xff]  }
0x1ed6   :  { %v7991_v63 = vld [vmem:[%s12719_s14 + $0x28] sm:$0xff]  }
0x1ed7   :  { %v5630_v62 = vpack.c.bf16 %v5629_v33, %v5629_v33  ;;  %5857 = vst [vmem:[%s12717_s19 + $0x28] sm:$0xff] %v5629_v33  ;;  %v5865_v5 = vadd.f32 %v8690_v47, %v5629_v33  ;;  %v7992_v33 = vld [vmem:[%s12718_s13 + $0x30] sm:$0xff]   ;;  %v7996_v47 = vld [vmem:[%s12720_s15] sm:$0xff]  }
0x1ed9   :  { %5664 = vmatmul.mubr.bf16.vlgmr.msra.gmra.mrb[184].mxu0 %v5630_v62  ;;  %5705 = vmatmul.mubr.bf16.vlgmr.msra.gmra.mrb[184].mxu1 %v5630_v62  ;;  %v12412_v9 = vpack.c.bf16 %v5865_v5, %v5864_v24  ;;  %v7993_v62 = vld [vmem:[%s12719_s14 + $0x30] sm:$0xff]   ;;  %v7995_v24 = vld [vmem:[%s12719_s14 + $0x38] sm:$0xff]   ;;  %v7997_v5 = vld [vmem:[%s12720_s15 + $0x8] sm:$0xff]  }
0x1eda   :  { %5743 = vmatpush1.bf16.msra.mxu0 %v12209_v27  ;;  %5784 = vmatpush1.bf16.msra.mxu1 %v12215_v41  ;;  %v12945_v27 = vld [vmem:[#allocation22_spill] sm:$0xff] }
0x1edb   :  { %5744 = vmatprep.subr.bf16.mxu0 %v12221_v31  ;;  %5785 = vmatprep.subr.bf16.mxu1 %v12227_v44  ;;  %v4692_v41 = vadd.f32 %v12945_v27, %v11938_v46  ;;  %v12946_v31 = vld [vmem:[#allocation23_spill] sm:$0xff]  ;;  %v8000_v27 = vld [vmem:[%s12720_s15 + $0x20] sm:$0xff]  }
0x1edc   :  { %5774 = vmatprep.mubr.bf16.mxu0 %v12779_v17  ;;  %5815 = vmatprep.mubr.bf16.mxu1 %v12779_v17  ;;  %v7980_v17 = vld [vmem:[%s12718_s13] sm:$0xff]   ;;  %v4765_v44 = vadd.f32 %v12946_v31, %v11941_v50  ;;  %v8002_v31 = vld [vmem:[%s12720_s15 + $0x30] sm:$0xff]  }
0x1ede   :  { %5745 = vmatpush1.bf16.msra.mxu0 %v12235_v48  ;;  %5786 = vmatpush1.bf16.msra.mxu1 %v12241_v6  ;;  %v12947_v48 = vld [vmem:[#allocation24_spill] sm:$0xff] }
0x1edf   :  { %5746 = vmatprep.subr.bf16.mxu0 %v12247_v52  ;;  %5787 = vmatprep.subr.bf16.mxu1 %v12253_v30  ;;  %v4694_v6 = vadd.f32 %v12947_v48, %v11948_v23  ;;  %v12948_v52 = vld [vmem:[#allocation25_spill] sm:$0xff]  ;;  %v12949_v48 = vld [vmem:[#allocation26_spill] sm:$0xff] }
0x1ee0   :  { %v4767_v30 = vadd.f32 %v12948_v52, %v11951_v8  ;;  %v12950_v52 = vld [vmem:[#allocation27_spill] sm:$0xff] }
0x1ee2   :  { %5747 = vmatpush1.bf16.msra.mxu0 %v12259_v0  ;;  %5788 = vmatpush1.bf16.msra.mxu1 %v12265_v20 }
0x1ee3   :  { %5748 = vmatprep.subr.bf16.mxu0 %v12271_v4  ;;  %5789 = vmatprep.subr.bf16.mxu1 %v12277_v37 }
0x1ee6   :  { %5749 = vmatpush1.bf16.msra.mxu0 %v12283_v25  ;;  %5790 = vmatpush1.bf16.msra.mxu1 %v12289_v56 }
0x1ee7   :  { %5750 = vmatprep.subr.bf16.mxu0 %v12295_v51  ;;  %5791 = vmatprep.subr.bf16.mxu1 %v12301_v2 }
0x1eea   :  { %5751 = vmatpush1.bf16.msra.mxu0 %v12307_v61  ;;  %5792 = vmatpush1.bf16.msra.mxu1 %v12313_v3 }
0x1eeb   :  { %5752 = vmatprep.subr.bf16.mxu0 %v12319_v53  ;;  %5793 = vmatprep.subr.bf16.mxu1 %v12325_v10 }
0x1eee   :  { %5753 = vmatpush1.bf16.msra.mxu0 %v12331_v54  ;;  %5794 = vmatpush1.bf16.msra.mxu1 %v12337_v11 }
0x1eef   :  { %5754 = vmatprep.subr.bf16.mxu0 %v12343_v57  ;;  %5795 = vmatprep.subr.bf16.mxu1 %v12349_v26 }
0x1ef2   :  { %5755 = vmatpush1.bf16.msra.mxu0 %v12355_v32  ;;  %5796 = vmatpush1.bf16.msra.mxu1 %v12361_v29 }
0x1ef3   :  { %5756 = vmatprep.subr.bf16.mxu0 %v12367_v1  ;;  %5797 = vmatprep.subr.bf16.mxu1 %v12373_v42 }
0x1ef6   :  { %5757 = vmatpush1.bf16.msra.mxu0 %v12379_v7  ;;  %5798 = vmatpush1.bf16.msra.mxu1 %v12385_v36 }
0x1ef7   :  { %7377 = vmatprep.subr.bf16.mxu0 %v7980_v17  ;;  %7401 = vmatprep.subr.bf16.mxu1 %v7981_v12 }
0x1fac   :  { %v5665_v0 = vpop.f32.mrb[184].mxu0  ;;  %v5706_v20 = vpop.f32.mrb[184].mxu1 }
0x1fad   :  { %v5713_v4 = vadd.f32 %v5665_v0, %v4692_v41  ;;  %v5715_v37 = vadd.f32 %v5706_v20, %v4765_v44  ;;  %v5667_v25 = vpop.f32.mrb[185].mxu0  ;;  %v5708_v56 = vpop.f32.mrb[185].mxu1  ;;  %v8001_v41 = vld [vmem:[%s12720_s15 + $0x28] sm:$0xff]   ;;  %v8003_v44 = vld [vmem:[%s12720_s15 + $0x38] sm:$0xff]   ;;  %v12951_v0 = vld [vmem:[#allocation28_spill] sm:$0xff] }
0x1fae   :  { %v5714_v51 = vadd.f32 %v5667_v25, %v4694_v6  ;;  %v5716_v2 = vadd.f32 %v5708_v56, %v4767_v30  ;;  %v5669_v61 = vpop.f32.mrb[186].mxu0  ;;  %v5710_v3 = vpop.f32.mrb[186].mxu1  ;;  %v4696_v6 = vadd.f32 %v12949_v48, %v11938_v46  ;;  %v4769_v30 = vadd.f32 %v12950_v52, %v11941_v50 }
0x1faf   :  { %v7239_v53 = vmul.f32 -1.442695, %v5713_v4  ;;  %v5670_v10 = vpop.f32.mrb[187].mxu0  ;;  %v5711_v54 = vpop.f32.mrb[187].mxu1  ;;  %v4698_v20 = vadd.f32 %v12951_v0, %v11948_v23  ;;  %v12952_v4 = vld [vmem:[#allocation29_spill] sm:$0xff] }
0x1fb0   :  { %v7240_v11 = vmul.f32 -1.442695, %v5714_v51  ;;  %v7241_v57 = vmul.f32 -1.442695, %v5716_v2 }
0x1fb1   :  { %8492 = vpow2.f32 %v7239_v53 }
0x1fb2   :  { %8494 = vpow2.f32 %v7240_v11 }
0x1fb3   :  { %8496 = vpow2.f32 %v7241_v57 }
0x1fb4   :  { %8498 = vtanh.f32 %v5715_v37  ;;  %v4771_v37 = vadd.f32 %v12952_v4, %v11951_v8 }
0x1fbb   :  { %v8493_v26 = vpop.eup %8492 }
0x1fbc   :  { %v8495_v32 = vpop.eup %8494  ;;  %v5720_v29 = vadd.f32 1.0, %v8493_v26 }
0x1fbd   :  { %v5726_v1 = vadd.f32 1.0, %v8495_v32  ;;  %v8497_v42 = vpop.eup %8496 }
0x1fbe   :  { %8500 = vrcp.f32 %v5720_v29  ;;  %v8499_v7 = vpop.eup %8498  ;;  %v5733_v15 = vadd.f32 1.0, %v8497_v42 }
0x1fbf   :  { %8502 = vrcp.f32 %v5726_v1 }
0x1fc0   :  { %8504 = vrcp.f32 %v5733_v15 }
0x1fc8   :  { %v8501_v36 = vpop.eup %8500 }
0x1fc9   :  { %v8503_v59 = vpop.eup %8502  ;;  %v5737_v28 = vmul.f32 %v8501_v36, %v8499_v7 }
0x1fca   :  { %v5736_v34 = vmul.f32 %v8503_v59, %v12399_v38  ;;  %v8505_v55 = vpop.eup %8504  ;;  %v7989_v38 = vld [vmem:[%s12719_s14 + $0x20] sm:$0xff]  }
0x1fcc   :  { %v12461_v45 = vadd.f32 %v5737_v28, %v5736_v34 }
0x1fce   :  { %8506 = vtanh.f32 %v12461_v45 }
0x1fd8   :  { %v8507_v19 = vpop.eup %8506 }
0x1fd9   :  { %v12464_v16 = vmul.f32 %v8507_v19, %v8505_v55 }
0x1fdb   :  { %v5741_v49 = vpack.c.bf16 %v12464_v16, %v12464_v16  ;;  %5858 = vst [vmem:[%s12717_s19 + $0x30] sm:$0xff] %v12464_v16 }
0x1fdd   :  { %5775 = vmatmul.mubr.bf16.vlgmr.msra.gmra.mrb[188].mxu0 %v5741_v49  ;;  %5816 = vmatmul.mubr.bf16.vlgmr.msra.gmra.mrb[188].mxu1 %v5741_v49 }
0x1fde   :  { %7378 = vmatpush3.bf16.msra.mxu0 %v7980_v17  ;;  %7402 = vmatpush3.bf16.msra.mxu1 %v7981_v12  ;;  %v7998_v17 = vld [vmem:[%s12720_s15 + $0x10] sm:$0xff]   ;;  %v7999_v12 = vld [vmem:[%s12720_s15 + $0x18] sm:$0xff]  }
0x1fdf   :  { %7393 = vmatprep.mubr.bf16.mxu0 %v12028_v40  ;;  %7417 = vmatprep.mubr.bf16.mxu1 %v12028_v40 }
0x1fe0   :  { %7379 = vmatprep.subr.bf16.mxu0 %v7982_v21  ;;  %7403 = vmatprep.subr.bf16.mxu1 %v7983_v43 }
0x1fe2   :  { %7380 = vmatpush3.bf16.msra.mxu0 %v7982_v21  ;;  %7404 = vmatpush3.bf16.msra.mxu1 %v7983_v43 }
0x1fe3   :  { %7381 = vmatprep.subr.bf16.mxu0 %v7984_v14  ;;  %7405 = vmatprep.subr.bf16.mxu1 %v7985_v58 }
0x1fe6   :  { %7382 = vmatpush3.bf16.msra.mxu0 %v7984_v14  ;;  %7406 = vmatpush3.bf16.msra.mxu1 %v7985_v58 }
0x1fe7   :  { %7383 = vmatprep.subr.bf16.mxu0 %v7986_v35  ;;  %7407 = vmatprep.subr.bf16.mxu1 %v7987_v13 }
0x1fea   :  { %7384 = vmatpush3.bf16.msra.mxu0 %v7986_v35  ;;  %7408 = vmatpush3.bf16.msra.mxu1 %v7987_v13 }
0x1feb   :  { %7385 = vmatprep.subr.bf16.mxu0 %v7988_v60  ;;  %7409 = vmatprep.subr.bf16.mxu1 %v7989_v38 }
0x1fee   :  { %7386 = vmatpush3.bf16.msra.mxu0 %v7988_v60  ;;  %7410 = vmatpush3.bf16.msra.mxu1 %v7989_v38 }
0x1fef   :  { %7387 = vmatprep.subr.bf16.mxu0 %v7990_v39  ;;  %7411 = vmatprep.subr.bf16.mxu1 %v7991_v63 }
0x1ff2   :  { %7388 = vmatpush3.bf16.msra.mxu0 %v7990_v39  ;;  %7412 = vmatpush3.bf16.msra.mxu1 %v7991_v63 }
0x1ff3   :  { %7389 = vmatprep.subr.bf16.mxu0 %v7992_v33  ;;  %7413 = vmatprep.subr.bf16.mxu1 %v7993_v62 }
0x1ff6   :  { %7390 = vmatpush3.bf16.msra.mxu0 %v7992_v33  ;;  %7414 = vmatpush3.bf16.msra.mxu1 %v7993_v62  ;;  %v8691_v33 = vld [vmem:[%s12710_s18 + $0x30] sm:$0xff] }
0x1ff7   :  { %7391 = vmatprep.subr.bf16.mxu0 %v7994_v18  ;;  %7415 = vmatprep.subr.bf16.mxu1 %v7995_v24  ;;  %v5866_v62 = vadd.f32 %v8691_v33, %v12464_v16 }
0x1ffa   :  { %7392 = vmatpush3.bf16.msra.mxu0 %v7994_v18  ;;  %7416 = vmatpush3.bf16.msra.mxu1 %v7995_v24  ;;  %v8692_v18 = vld [vmem:[%s12710_s18 + $0x38] sm:$0xff] }
0x1ffb   :  { %7425 = vmatprep.subr.bf16.mxu0 %v7996_v47 }
0x1ffd   :  { %7394 = vmatmul.mubr.bf16.vlgmr.msra.gmra.mrb[192].mxu0 %v12140_v22  ;;  %7418 = vmatmul.mubr.bf16.vlgmr.msra.gmra.mrb[192].mxu1 %v12140_v22 }
0x1ffe   :  { %7397 = vmatprep.mubr.bf16.mxu0 %v12412_v9  ;;  %7421 = vmatprep.mubr.bf16.mxu1 %v12412_v9 }
0x1fff   :  { %7426 = vmatpush3.bf16.msra.mxu0 %v7996_v47 }
0x2000   :  { %7427 = vmatprep.subr.bf16.mxu0 %v7997_v5 }
0x2003   :  { %7428 = vmatpush3.bf16.msra.mxu0 %v7997_v5 }
0x2004   :  { %7429 = vmatprep.subr.bf16.mxu0 %v7998_v17 }
0x2007   :  { %7430 = vmatpush3.bf16.msra.mxu0 %v7998_v17 }
0x2008   :  { %7431 = vmatprep.subr.bf16.mxu0 %v7999_v12 }
0x200b   :  { %7432 = vmatpush3.bf16.msra.mxu0 %v7999_v12 }
0x200c   :  { %7433 = vmatprep.subr.bf16.mxu0 %v8000_v27 }
0x200f   :  { %7434 = vmatpush3.bf16.msra.mxu0 %v8000_v27 }
0x2010   :  { %7435 = vmatprep.subr.bf16.mxu0 %v8001_v41 }
0x2013   :  { %7436 = vmatpush3.bf16.msra.mxu0 %v8001_v41 }
0x2014   :  { %7437 = vmatprep.subr.bf16.mxu0 %v8002_v31 }
0x2017   :  { %7438 = vmatpush3.bf16.msra.mxu0 %v8002_v31 }
0x2018   :  { %7439 = vmatprep.subr.bf16.mxu0 %v8003_v44 }
0x201b   :  { %7440 = vmatpush3.bf16.msra.mxu0 %v8003_v44 }
0x20b0   :  { %v5776_v25 = vpop.f32.mrb[188].mxu0  ;;  %v5817_v56 = vpop.f32.mrb[188].mxu1 }
0x20b1   :  { %v5824_v51 = vadd.f32 %v5776_v25, %v4696_v6  ;;  %v5826_v2 = vadd.f32 %v5817_v56, %v4769_v30  ;;  %v5778_v61 = vpop.f32.mrb[189].mxu0  ;;  %v5819_v3 = vpop.f32.mrb[189].mxu1 }
0x20b2   :  { %v5825_v53 = vadd.f32 %v5778_v61, %v4698_v20  ;;  %v5827_v10 = vadd.f32 %v5819_v3, %v4771_v37  ;;  %v5780_v54 = vpop.f32.mrb[190].mxu0  ;;  %v5821_v11 = vpop.f32.mrb[190].mxu1  ;;  %v12954_v3 = vld [vmem:[#allocation2_spill] sm:$0xff] }
0x20b3   :  { %v7242_v46 = vmul.f32 -1.442695, %v5824_v51  ;;  %v5781_v57 = vpop.f32.mrb[191].mxu0  ;;  %v5822_v26 = vpop.f32.mrb[191].mxu1  ;;  %v6375_v54 = vand.u32 7, %v12954_v3  ;;  %v6367_v11 = vadd.s32 16, %v12954_v3 }
0x20b4   :  { %v7243_v50 = vmul.f32 -1.442695, %v5825_v53  ;;  %v7244_v23 = vmul.f32 -1.442695, %v5827_v10  ;;  %v6366_v53 = vadd.s32 8, %v12954_v3  ;;  %v6368_v57 = vadd.s32 24, %v12954_v3 }
0x20b5   :  { %8508 = vpow2.f32 %v7242_v46  ;;  %v6377_v26 = vand.u32 7, %v6367_v11 }
0x20b6   :  { %8510 = vpow2.f32 %v7243_v50  ;;  %v6376_v46 = vand.u32 7, %v6366_v53  ;;  %v6369_v50 = vadd.s32 32, %v12954_v3 }
0x20b7   :  { %8512 = vpow2.f32 %v7244_v23 }
0x20b8   :  { %8514 = vtanh.f32 %v5826_v2  ;;  %v12953_v2 = vlaneseq }
0x20ba   :  { %v6374_v61 = vand.u32 127, %v12953_v2 }
0x20bc   :  { %v12571_v10 = vand.u32 7, %v6374_v61 }
0x20be   :  { %vm6384_vm0 = vcmp.eq.s32.totalorder %v6375_v54, %v12571_v10  ;;  %vm6385_vm2 = vcmp.eq.s32.totalorder %v6376_v46, %v12571_v10  ;;  %vm6386_vm3 = vcmp.eq.s32.totalorder %v6377_v26, %v12571_v10  ;;  %vm6798_vm10 = vcmp.eq.s32.totalorder %v12954_v3, %v12571_v10 }
0x20bf   :  { %v8509_v32 = vpop.eup %8508 }
0x20c0   :  { %v8511_v29 = vpop.eup %8510  ;;  %v5831_v8 = vadd.f32 1.0, %v8509_v32 }
0x20c1   :  { %v5837_v1 = vadd.f32 1.0, %v8511_v29  ;;  %v8513_v42 = vpop.eup %8512  ;;  %v6378_v29 = vand.u32 7, %v6368_v57 }
0x20c2   :  { %8516 = vrcp.f32 %v5831_v8  ;;  %v8515_v7 = vpop.eup %8514  ;;  %v5844_v15 = vadd.f32 1.0, %v8513_v42  ;;  %v6370_v8 = vadd.s32 40, %v12954_v3 }
0x20c3   :  { %8518 = vrcp.f32 %v5837_v1  ;;  %vm6387_vm4 = vcmp.eq.s32.totalorder %v6378_v29, %v12571_v10 }
0x20c4   :  { %8520 = vrcp.f32 %v5844_v15 }
0x20cc   :  { %v8517_v36 = vpop.eup %8516 }
0x20cd   :  { %v8519_v59 = vpop.eup %8518  ;;  %v5848_v28 = vmul.f32 %v8517_v36, %v8515_v7  ;;  %v6379_v7 = vand.u32 7, %v6369_v50  ;;  %v6371_v36 = vadd.s32 48, %v12954_v3 }
0x20ce   :  { %v5847_v34 = vmul.f32 %v8519_v59, %v12461_v45  ;;  %v8521_v39 = vpop.eup %8520 }
0x20cf   :  { %vm6388_vm5 = vcmp.eq.s32.totalorder %v6379_v7, %v12571_v10 }
0x20d0   :  { %v5849_v55 = vadd.f32 %v5848_v28, %v5847_v34  ;;  %v12553_v19 = vpop.f32.mrb[192].mxu0  ;;  %v7419_v49 = vpop.f32.mrb[192].mxu1  ;;  %v6380_v34 = vand.u32 7, %v6370_v8 }
0x20d1   :  { %v5970_v21 = vpop.f32.mrb[193].mxu0  ;;  %v6099_v43 = vpop.f32.mrb[193].mxu1 }
0x20d2   :  { %8522 = vtanh.f32 %v5849_v55  ;;  %v7396_v14 = vpop.f32.mrb[194].mxu0  ;;  %v7420_v58 = vpop.f32.mrb[194].mxu1  ;;  %v6372_v55 = vadd.s32 56, %v12954_v3  ;;  %vm6389_vm6 = vcmp.eq.s32.totalorder %v6380_v34, %v12571_v10  ;;  %v8005_v34 = vld [vmem:[%s12721_s16 + $0x8] sm:$0xff]  }
0x20d3   :  { %v7552_v35 = vpack.c.bf16 %v7420_v58, %v7419_v49  ;;  %v5973_v13 = vpop.f32.mrb[195].mxu0  ;;  %v6102_v60 = vpop.f32.mrb[195].mxu1 }
0x20d4   :  { %v7548_v38 = vpack.c.bf16 %v6102_v60, %v6099_v43  ;;  %v6381_v43 = vand.u32 7, %v6371_v36 }
0x20d6   :  { %7549 = vmatprep.subr.bf16.mxu1 %v7548_v38  ;;  %vm6390_vm7 = vcmp.eq.s32.totalorder %v6381_v43, %v12571_v10 }
0x20d7   :  { %7551 = vmatpush3.bf16.xpose.msra.mxu1 %v7548_v38 }
0x20d8   :  { %7553 = vmatprep.subr.bf16.mxu1 %v7552_v35 }
0x20dc   :  { %v8523_v63 = vpop.eup %8522 }
0x20dd   :  { %v5851_v45 = vmul.f32 %v8523_v63, %v8521_v39 }
0x20df   :  { %7555 = vmatpush3.bf16.xpose.msra.mxu1 %v7552_v35  ;;  %5859 = vst [vmem:[%s12717_s19 + $0x38] sm:$0xff] %v5851_v45  ;;  %v5867_v24 = vadd.f32 %v8692_v18, %v5851_v45 }
0x20e1   :  { %v5871_v47 = vpack.c.bf16 %v5867_v24, %v5866_v62 }
0x20e3   :  { %7398 = vmatmul.mubr.bf16.gmra.mrb[196].mxu0 %v5871_v47  ;;  %7422 = vmatmul.mubr.bf16.gmra.mrb[196].mxu1 %v5871_v47 }
0x20e4   :  { %7441 = vmatprep.mubr.bf16.mxu0 %v12028_v40  ;;  %7465 = vmatprep.mubr.f32.mxu1 %v5970_v21 }
0x20eb   :  { %7442 = vmatmul.mubr.bf16.vlgmr.msra.gmra.mrb[200].mxu0 %v12140_v22 }
0x20ec   :  { %7445 = vmatprep.mubr.bf16.mxu0 %v12412_v9 }
0x20f3   :  { %7446 = vmatmul.mubr.bf16.gmra.mrb[204].mxu0 %v5871_v47 }
0x21b6   :  { %v7399_v5 = vpop.f32.mrb[196].mxu0  ;;  %v7423_v17 = vpop.f32.mrb[196].mxu1 }
0x21b7   :  { %v5986_v12 = vpop.f32.mrb[197].mxu0  ;;  %v6115_v16 = vpop.f32.mrb[197].mxu1 }
0x21b8   :  { %v7400_v27 = vpop.f32.mrb[198].mxu0  ;;  %v7424_v41 = vpop.f32.mrb[198].mxu1 }
0x21b9   :  { %v7560_v31 = vpack.c.bf16 %v7424_v41, %v7423_v17  ;;  %v5989_v44 = vpop.f32.mrb[199].mxu0  ;;  %v6118_v48 = vpop.f32.mrb[199].mxu1 }
0x21ba   :  { %v7556_v6 = vpack.c.bf16 %v6118_v48, %v6115_v16 }
0x21bc   :  { %7557 = vmatprep.subr.bf16.mxu1 %v7556_v6 }
0x21bd   :  { %7559 = vmatpush3.bf16.xpose.msra.mxu1 %v7556_v6 }
0x21be   :  { %v7443_v52 = vpop.f32.mrb[200].mxu0  ;;  %7561 = vmatprep.subr.bf16.mxu1 %v7560_v31 }
0x21bf   :  { %v6228_v40 = vpop.f32.mrb[201].mxu0 }
0x21c0   :  { %v7444_v30 = vpop.f32.mrb[202].mxu0 }
0x21c1   :  { %v7568_v22 = vpack.c.bf16 %v7444_v30, %v7443_v52  ;;  %v6231_v0 = vpop.f32.mrb[203].mxu0 }
0x21c2   :  { %v7564_v9 = vpack.c.bf16 %v6231_v0, %v6228_v40 }
0x21c4   :  { %7565 = vmatprep.subr.bf16.mxu0 %v7564_v9 }
0x21c5   :  { %7563 = vmatpush3.bf16.xpose.msra.mxu1 %v7560_v31  ;;  %7567 = vmatpush3.bf16.msra.mxu0 %v7564_v9 }
0x21c6   :  { %v7447_v20 = vpop.f32.mrb[204].mxu0  ;;  %7569 = vmatprep.subr.bf16.mxu0 %v7568_v22 }
0x21c7   :  { %v6244_v4 = vpop.f32.mrb[205].mxu0 }
0x21c8   :  { %v7448_v37 = vpop.f32.mrb[206].mxu0 }
0x21c9   :  { %v7576_v25 = vpack.c.bf16 %v7448_v37, %v7447_v20  ;;  %v6247_v56 = vpop.f32.mrb[207].mxu0  ;;  %7571 = vmatpush3.bf16.msra.mxu0 %v7568_v22 }
0x21ca   :  { %v7572_v51 = vpack.c.bf16 %v6247_v56, %v6244_v4 }
0x21cc   :  { %7466 = vmatmul.mubr.f32.vlgmr.msra.gmra.mrb[200].mxu1 %v5973_v13  ;;  %7573 = vmatprep.subr.bf16.mxu0 %v7572_v51  ;;  %v6382_v13 = vand.u32 7, %v6372_v55  ;;  %v8006_v55 = vld [vmem:[%s12721_s16 + $0x10] sm:$0xff]  }
0x21cd   :  { %7468 = vmatprep.mubr.f32.mxu1 %v12553_v19  ;;  %7575 = vmatpush3.bf16.msra.mxu0 %v7572_v51 }
0x21ce   :  { %7577 = vmatprep.subr.bf16.mxu0 %v7576_v25  ;;  %vm6391_vm8 = vcmp.eq.s32.totalorder %v6382_v13, %v12571_v10 }
0x21d0   :  { %7469 = vmatmul.mubr.f32.gmra.mrb[202].mxu1 %v7396_v14 }
0x21d1   :  { %7471 = vmatprep.mubr.f32.mxu1 %v5986_v12  ;;  %7579 = vmatpush3.bf16.msra.mxu0 %v7576_v25 }
0x21d4   :  { %7472 = vmatmul.mubr.f32.gmra.mrb[204].mxu1 %v5989_v44 }
0x21d5   :  { %7474 = vmatprep.mubr.f32.mxu1 %v7399_v5 }
0x21d8   :  { %7475 = vmatmul.mubr.f32.gmra.mrb[206].mxu1 %v7400_v27 }
0x229f   :  { %v7467_v23 = vpop.f32.mrb[200].mxu1 }
0x22a0   :  { %v6325_v32 = vpop.f32.mrb[201].mxu1  ;;  %v6393_v59 = vsel %vm6385_vm2, %v7467_v23, -1e+30 }
0x22a1   :  { %v6392_v1 = vsel %vm6384_vm0, %v6325_v32, -1e+30  ;;  %v6404_v49 = vsel %vm6400_vm1, %v6393_v59, -inf }
0x22a2   :  { %v6401_v42 = vsel %vm6400_vm1, %v6392_v1, -inf }
0x22a3   :  { %6402 = vmax.xlane.f32.xlu0 %v6401_v42  ;;  %v7470_v28 = vpop.f32.mrb[202].mxu1 }
0x22a4   :  { %v6335_v15 = vpop.f32.mrb[203].mxu1  ;;  %v6395_v14 = vsel %vm6387_vm4, %v7470_v28, -1e+30 }
0x22a5   :  { %v6394_v19 = vsel %vm6386_vm3, %v6335_v15, -1e+30  ;;  %v6410_v38 = vsel %vm6400_vm1, %v6395_v14, -inf  ;;  %v8004_v15 = vld [vmem:[%s12721_s16] sm:$0xff]  }
0x22a6   :  { %v6407_v21 = vsel %vm6400_vm1, %v6394_v19, -inf  ;;  %7505 = vmatprep.subr.bf16.mxu1 %v8004_v15 }
0x22a7   :  { %6405 = vmax.xlane.f32.xlu0 %v6404_v49  ;;  %6408 = vmax.xlane.f32.xlu1 %v6407_v21  ;;  %v7473_v58 = vpop.f32.mrb[204].mxu1  ;;  %v8008_v49 = vld [vmem:[%s12721_s16 + $0x20] sm:$0xff]   ;;  %v8009_v21 = vld [vmem:[%s12721_s16 + $0x28] sm:$0xff]  }
0x22a8   :  { %v6345_v35 = vpop.f32.mrb[205].mxu1  ;;  %v6397_v63 = vsel %vm6389_vm6, %v7473_v58, -1e+30  ;;  %7506 = vmatpush3.bf16.msra.mxu1 %v8004_v15 }
0x22a9   :  { %v6396_v60 = vsel %vm6388_vm5, %v6345_v35, -1e+30  ;;  %v6416_v18 = vsel %vm6400_vm1, %v6397_v63, -inf  ;;  %7507 = vmatprep.subr.bf16.mxu1 %v8005_v34 }
0x22aa   :  { %v6413_v39 = vsel %vm6400_vm1, %v6396_v60, -inf }
0x22ab   :  { %6411 = vmax.xlane.f32.xlu1 %v6410_v38  ;;  %6414 = vmax.xlane.f32.xlu0 %v6413_v39  ;;  %v7476_v45 = vpop.f32.mrb[206].mxu1 }
0x22ac   :  { %v6355_v33 = vpop.f32.mrb[207].mxu1  ;;  %v6399_v47 = vsel %vm6391_vm8, %v7476_v45, -1e+30  ;;  %7508 = vmatpush3.bf16.msra.mxu1 %v8005_v34 }
0x22ad   :  { %v6398_v62 = vsel %vm6390_vm7, %v6355_v33, -1e+30  ;;  %v6422_v5 = vsel %vm6400_vm1, %v6399_v47, -inf  ;;  %7509 = vmatprep.subr.bf16.mxu1 %v8006_v55 }
0x22ae   :  { %v6419_v24 = vsel %vm6400_vm1, %v6398_v62, -inf }
0x22af   :  { %6417 = vmax.xlane.f32.xlu1 %v6416_v18  ;;  %6420 = vmax.xlane.f32.xlu0 %v6419_v24 }
0x22b0   :  { %7510 = vmatpush3.bf16.msra.mxu1 %v8006_v55 }
0x22b3   :  { %6423 = vmax.xlane.f32.xlu1 %v6422_v5 }
0x2330   :  { %v6403_v17 = vpop.xlane.xlu0 %6402 }
0x2331   :  { %v6425_v12 = vsub.f32 %v6392_v1, %v6403_v17 }
0x2333   :  { %v6433_v16 = vmul.f32 1.442695, %v6425_v12 }
0x2334   :  { %v6406_v27 = vpop.xlane.xlu0 %6405  ;;  %v6409_v41 = vpop.xlane.xlu1 %6408 }
0x2335   :  { %8524 = vpow2.f32 %v6433_v16  ;;  %v6426_v31 = vsub.f32 %v6393_v59, %v6406_v27  ;;  %v6427_v44 = vsub.f32 %v6394_v19, %v6409_v41  ;;  %v8007_v19 = vld [vmem:[%s12721_s16 + $0x18] sm:$0xff]  }
0x2336   :  { %7511 = vmatprep.subr.bf16.mxu1 %v8007_v19 }
0x2337   :  { %v6435_v48 = vmul.f32 1.442695, %v6426_v31  ;;  %v6437_v6 = vmul.f32 1.442695, %v6427_v44  ;;  %7512 = vmatpush3.bf16.msra.mxu1 %v8007_v19 }
0x2338   :  { %v6412_v52 = vpop.xlane.xlu1 %6411  ;;  %v6415_v40 = vpop.xlane.xlu0 %6414  ;;  %7513 = vmatprep.subr.bf16.mxu1 %v8008_v49 }
0x2339   :  { %8526 = vpow2.f32 %v6435_v48  ;;  %v6428_v30 = vsub.f32 %v6395_v14, %v6412_v52  ;;  %v6429_v22 = vsub.f32 %v6396_v60, %v6415_v40  ;;  %v8011_v52 = vld [vmem:[%s12721_s16 + $0x38] sm:$0xff]  }
0x233a   :  { %8528 = vpow2.f32 %v6437_v6  ;;  %v8010_v6 = vld [vmem:[%s12721_s16 + $0x30] sm:$0xff]  }
0x233b   :  { %v6439_v0 = vmul.f32 1.442695, %v6428_v30  ;;  %v6441_v9 = vmul.f32 1.442695, %v6429_v22  ;;  %7514 = vmatpush3.bf16.msra.mxu1 %v8008_v49 }
0x233c   :  { %v6418_v20 = vpop.xlane.xlu1 %6417  ;;  %v6421_v4 = vpop.xlane.xlu0 %6420  ;;  %7515 = vmatprep.subr.bf16.mxu1 %v8009_v21 }
0x233d   :  { %8530 = vpow2.f32 %v6439_v0  ;;  %v6430_v37 = vsub.f32 %v6397_v63, %v6418_v20  ;;  %v6431_v25 = vsub.f32 %v6398_v62, %v6421_v4 }
0x233e   :  { %8532 = vpow2.f32 %v6441_v9 }
0x233f   :  { %v12596_v56 = vpop.eup %8524  ;;  %v6443_v51 = vmul.f32 1.442695, %v6430_v37  ;;  %v6445_v2 = vmul.f32 1.442695, %v6431_v25  ;;  %7516 = vmatpush3.bf16.msra.mxu1 %v8009_v21 }
0x2340   :  { %v6424_v61 = vpop.xlane.xlu1 %6423  ;;  %v6449_v53 = vsel %vm6400_vm1, %v12596_v56, 0.0  ;;  %7517 = vmatprep.subr.bf16.mxu1 %v8010_v6 }
0x2341   :  { %8534 = vpow2.f32 %v6443_v51  ;;  %v6432_v54 = vsub.f32 %v6399_v47, %v6424_v61  ;;  %6450 = vadd.xlane.f32.xlu0 %v6449_v53  ;;  %v8702_v61 = vmov 0.0|0.0   ;;  %v8704_v53 = vmov 0.0  }
0x2342   :  { %8536 = vpow2.f32 %v6445_v2  ;;  %7580 = vmatprep.subr.bf16.mxu0 %v8702_v61 }
0x2343   :  { %v8527_v11 = vpop.eup %8526  ;;  %v6447_v46 = vmul.f32 1.442695, %v6432_v54  ;;  %7518 = vmatpush3.bf16.msra.mxu1 %v8010_v6  ;;  %v7277_v54 = vld [vmem:[%s12722_s17] ss:$0 sm:$0xff] }
0x2344   :  { %v8529_v57 = vpop.eup %8528  ;;  %v6452_v26 = vsel %vm6400_vm1, %v8527_v11, 0.0  ;;  %7519 = vmatprep.subr.bf16.mxu1 %v8011_v52 }
0x2345   :  { %8538 = vpow2.f32 %v6447_v46  ;;  %6453 = vadd.xlane.f32.xlu1 %v6452_v26  ;;  %v6455_v50 = vsel %vm6400_vm1, %v8529_v57, 0.0  ;;  %v8693_v46 = vld [vmem:[%s12750_s22 + $0x10] sm:$0xff] }
0x2346   :  { %6456 = vadd.xlane.f32.xlu0 %v6455_v50 }
0x2347   :  { %v8531_v23 = vpop.eup %8530  ;;  %7520 = vmatpush3.bf16.msra.mxu1 %v8011_v52 }
0x2348   :  { %v8533_v32 = vpop.eup %8532  ;;  %v6458_v29 = vsel %vm6400_vm1, %v8531_v23, 0.0 }
0x2349   :  { %6459 = vadd.xlane.f32.xlu1 %v6458_v29  ;;  %v6461_v8 = vsel %vm6400_vm1, %v8533_v32, 0.0 }
0x234a   :  { %6462 = vadd.xlane.f32.xlu0 %v6461_v8 }
0x234b   :  { %v8535_v1 = vpop.eup %8534 }
0x234c   :  { %v8537_v42 = vpop.eup %8536  ;;  %v6464_v7 = vsel %vm6400_vm1, %v8535_v1, 0.0 }
0x234d   :  { %6465 = vadd.xlane.f32.xlu1 %v6464_v7  ;;  %v6467_v36 = vsel %vm6400_vm1, %v8537_v42, 0.0 }
0x234e   :  { %6468 = vadd.xlane.f32.xlu0 %v6467_v36 }
0x234f   :  { %v8539_v59 = vpop.eup %8538 }
0x2350   :  { %v6470_v28 = vsel %vm6400_vm1, %v8539_v59, 0.0 }
0x2351   :  { %6471 = vadd.xlane.f32.xlu1 %v6470_v28  ;;  %v8696_v28 = vld [vmem:[%s12750_s22 + $0x8] sm:$0xff] }
0x2352   :  { %v6775_v15 = vmul.f32 %v8696_v28, %v8696_v28 }
0x23ce   :  { %v6451_v43 = vpop.xlane.xlu0 %6450 }
0x23cf   :  { %8540 = vrcp.f32 %v6451_v43 }
0x23d2   :  { %v6454_v14 = vpop.xlane.xlu1 %6453 }
0x23d3   :  { %8542 = vrcp.f32 %v6454_v14  ;;  %v6457_v58 = vpop.xlane.xlu0 %6456 }
0x23d4   :  { %8544 = vrcp.f32 %v6457_v58 }
0x23d6   :  { %v6460_v35 = vpop.xlane.xlu1 %6459 }
0x23d7   :  { %8546 = vrcp.f32 %v6460_v35  ;;  %v6463_v13 = vpop.xlane.xlu0 %6462 }
0x23d8   :  { %8548 = vrcp.f32 %v6463_v13  ;;  %v8697_v13 = vld [vmem:[%s12750_s22 + $0x30] sm:$0xff] }
0x23d9   :  { %v8541_v60 = vpop.eup %8540 }
0x23da   :  { %v6466_v38 = vpop.xlane.xlu1 %6465  ;;  %v6481_v39 = vmul.f32 %v8541_v60, %v12596_v56  ;;  %v6780_v60 = vmul.f32 %v8697_v13, %v8697_v13 }
0x23db   :  { %8550 = vrcp.f32 %v6466_v38  ;;  %v6469_v63 = vpop.xlane.xlu0 %6468 }
0x23dc   :  { %8552 = vrcp.f32 %v6469_v63  ;;  %7493 = vmatprep.mubr.msk.f32.mxu0 %vm6400_vm1, %v6481_v39 }
0x23dd   :  { %v8543_v45 = vpop.eup %8542 }
0x23de   :  { %v8545_v33 = vpop.eup %8544  ;;  %v6482_v62 = vmul.f32 %v8543_v45, %v8527_v11  ;;  %v6472_v18 = vpop.xlane.xlu1 %6471 }
0x23df   :  { %8554 = vrcp.f32 %v6472_v18  ;;  %v6483_v24 = vmul.f32 %v8545_v33, %v8529_v57  ;;  %v6776_v57 = vmul.f32 %v8693_v46, %v8693_v46  ;;  %v8698_v33 = vld [vmem:[%s12750_s22 + $0x20] sm:$0xff] }
0x23e0   :  { %7494 = vmatmul.mubr.msk.f32.vlgmr.msra.gmra.mrb[208].mxu0 %vm6400_vm1, %v6482_v62  ;;  %v6778_v62 = vmul.f32 %v8698_v33, %v8698_v33 }
0x23e1   :  { %v8547_v47 = vpop.eup %8546  ;;  %7496 = vmatprep.mubr.msk.f32.mxu0 %vm6400_vm1, %v6483_v24 }
0x23e2   :  { %v8549_v5 = vpop.eup %8548  ;;  %v6484_v17 = vmul.f32 %v8547_v47, %v8531_v23  ;;  %v8694_v23 = vld [vmem:[%s12750_s22] sm:$0xff] }
0x23e3   :  { %v6485_v12 = vmul.f32 %v8549_v5, %v8533_v32  ;;  %v6774_v32 = vmul.f32 %v8694_v23, %v8694_v23 }
0x23e4   :  { %7497 = vmatmul.mubr.msk.f32.gmra.mrb[210].mxu0 %vm6400_vm1, %v6484_v17  ;;  %v8699_v17 = vld [vmem:[%s12750_s22 + $0x38] sm:$0xff] }
0x23e5   :  { %v8551_v16 = vpop.eup %8550  ;;  %7499 = vmatprep.mubr.msk.f32.mxu0 %vm6400_vm1, %v6485_v12  ;;  %v6781_v12 = vmul.f32 %v8699_v17, %v8699_v17 }
0x23e6   :  { %v8553_v27 = vpop.eup %8552  ;;  %v6486_v41 = vmul.f32 %v8551_v16, %v8535_v1  ;;  %v8695_v1 = vld [vmem:[%s12750_s22 + $0x18] sm:$0xff] }
0x23e7   :  { %v6487_v31 = vmul.f32 %v8553_v27, %v8537_v42  ;;  %v6777_v42 = vmul.f32 %v8695_v1, %v8695_v1 }
0x23e8   :  { %7500 = vmatmul.mubr.msk.f32.gmra.mrb[212].mxu0 %vm6400_vm1, %v6486_v41 }
0x23e9   :  { %v8555_v44 = vpop.eup %8554  ;;  %7502 = vmatprep.mubr.msk.f32.mxu0 %vm6400_vm1, %v6487_v31 }
0x23ea   :  { %v6488_v48 = vmul.f32 %v8555_v44, %v8539_v59  ;;  %v8700_v44 = vld [vmem:[%s12750_s22 + $0x28] sm:$0xff] }
0x23ec   :  { %7503 = vmatmul.mubr.msk.f32.gmra.mrb[214].mxu0 %vm6400_vm1, %v6488_v48  ;;  %v6779_v48 = vmul.f32 %v8700_v44, %v8700_v44 }
0x23ed   :  { %7545 = vmatprep.mubr.msk.f32.mxu0 %vm8703_vm9, %v8704_v53 }
0x24b3   :  { %v7495_v40 = vpop.f32.mrb[208].mxu0 }
0x24b4   :  { %v6579_v30 = vpop.f32.mrb[209].mxu0 }
0x24b5   :  { %v6618_v22 = vpack.c.bf16 %v7495_v40, %v6579_v30 }
0x24b7   :  { %v7498_v0 = vpop.f32.mrb[210].mxu0  ;;  %7521 = vmatprep.mubr.bf16.mxu1 %v6618_v22 }
0x24b8   :  { %v6589_v9 = vpop.f32.mrb[211].mxu0 }
0x24b9   :  { %v6619_v20 = vpack.c.bf16 %v7498_v0, %v6589_v9 }
0x24bb   :  { %v7501_v4 = vpop.f32.mrb[212].mxu0  ;;  %7522 = vmatmul.mubr.bf16.vlgmr.msra.gmra.mrb[208].mxu1 %v6619_v20 }
0x24bc   :  { %v6599_v37 = vpop.f32.mrb[213].mxu0 }
0x24bd   :  { %v6620_v25 = vpack.c.bf16 %v7501_v4, %v6599_v37 }
0x24bf   :  { %v7504_v56 = vpop.f32.mrb[214].mxu0  ;;  %7525 = vmatprep.mubr.bf16.mxu1 %v6620_v25 }
0x24c0   :  { %v6609_v51 = vpop.f32.mrb[215].mxu0 }
0x24c1   :  { %v6621_v2 = vpack.c.bf16 %v7504_v56, %v6609_v51 }
0x24c3   :  { %7526 = vmatmul.mubr.bf16.gmra.mrb[212].mxu1 %v6621_v2 }
0x258e   :  { %v7523_v11 = vpop.f32.mrb[208].mxu1 }
0x258f   :  { %v6736_v26 = vadd.f32 %v7523_v11, %v7277_v54  ;;  %v6727_v50 = vpop.f32.mrb[209].mxu1  ;;  %v7286_v11 = vsel %vm6798_vm10, 1.0, %v8704_v53 }
0x2590   :  { %v6728_v29 = vadd.f32 %v7277_v54, %v6727_v50  ;;  %v7524_v8 = vpop.f32.mrb[210].mxu1 }
0x2591   :  { %6760 = vst [vmem:[%s12723_s20 + $0x10] sm:$0xff] %v6736_v26  ;;  %v6768_v7 = vmul.f32 %v6736_v26, %v6736_v26  ;;  %v6739_v36 = vadd.f32 %v7524_v8, %v7277_v54  ;;  %v6730_v59 = vpop.f32.mrb[211].mxu1 }
0x2592   :  { %6758 = vst [vmem:[%s12723_s20] sm:$0xff] %v6728_v29  ;;  %v6766_v34 = vmul.f32 %v6728_v29, %v6728_v29  ;;  %v6731_v55 = vadd.f32 %v7277_v54, %v6730_v59 }
0x2593   :  { %v6784_v19 = vsub.f32 %v6768_v7, %v6776_v57  ;;  %6761 = vst [vmem:[%s12723_s20 + $0x18] sm:$0xff] %v6739_v36  ;;  %v6769_v49 = vmul.f32 %v6739_v36, %v6739_v36 }
0x2594   :  { %v6782_v21 = vsub.f32 %v6766_v34, %v6774_v32  ;;  %6759 = vst [vmem:[%s12723_s20 + $0x8] sm:$0xff] %v6731_v55  ;;  %v6767_v43 = vmul.f32 %v6731_v55, %v6731_v55 }
0x2595   :  { %v6785_v14 = vsub.f32 %v6769_v49, %v6777_v42  ;;  %v6792_v38 = vand.u32 2147483647, %v6784_v19 }
0x2596   :  { %v6783_v58 = vsub.f32 %v6767_v43, %v6775_v15  ;;  %v7527_v35 = vpop.f32.mrb[212].mxu1  ;;  %v6790_v18 = vand.u32 2147483647, %v6782_v21 }
0x2597   :  { %v6793_v39 = vand.u32 2147483647, %v6785_v14  ;;  %v6752_v63 = vadd.f32 %v7527_v35, %v7277_v54  ;;  %v6743_v45 = vpop.f32.mrb[213].mxu1 }
0x2598   :  { %v6791_v24 = vand.u32 2147483647, %v6783_v58  ;;  %v6744_v47 = vadd.f32 %v7277_v54, %v6743_v45  ;;  %v7528_v5 = vpop.f32.mrb[214].mxu1 }
0x2599   :  { %v7584_v16 = vpack.c.bf16 %v6793_v39, %v6792_v38  ;;  %6764 = vst [vmem:[%s12723_s20 + $0x30] sm:$0xff] %v6752_v63  ;;  %v6772_v27 = vmul.f32 %v6752_v63, %v6752_v63  ;;  %v6755_v41 = vadd.f32 %v7528_v5, %v7277_v54  ;;  %v6746_v31 = vpop.f32.mrb[215].mxu1 }
0x259a   :  { %v7581_v6 = vpack.c.bf16 %v6791_v24, %v6790_v18  ;;  %6762 = vst [vmem:[%s12723_s20 + $0x20] sm:$0xff] %v6744_v47  ;;  %v6770_v52 = vmul.f32 %v6744_v47, %v6744_v47  ;;  %v6747_v40 = vadd.f32 %v7277_v54, %v6746_v31 }
0x259b   :  { %v6788_v30 = vsub.f32 %v6772_v27, %v6780_v60  ;;  %6765 = vst [vmem:[%s12723_s20 + $0x38] sm:$0xff] %v6755_v41  ;;  %v6773_v22 = vmul.f32 %v6755_v41, %v6755_v41 }
0x259c   :  { %v6786_v0 = vsub.f32 %v6770_v52, %v6778_v62  ;;  %6763 = vst [vmem:[%s12723_s20 + $0x28] sm:$0xff] %v6747_v40  ;;  %v6771_v9 = vmul.f32 %v6747_v40, %v6747_v40  ;;  %7582 = vmatpush3.bf16.msra.mxu0 %v7581_v6 }
0x259d   :  { %v6789_v20 = vsub.f32 %v6773_v22, %v6781_v12  ;;  %7583 = vmatprep.subr.bf16.mxu0 %v8702_v61  ;;  %v6796_v37 = vand.u32 2147483647, %v6788_v30 }
0x259e   :  { %v6787_v4 = vsub.f32 %v6771_v9, %v6779_v48  ;;  %v6794_v56 = vand.u32 2147483647, %v6786_v0 }
0x259f   :  { %v6797_v25 = vand.u32 2147483647, %v6789_v20 }
0x25a0   :  { %v6795_v51 = vand.u32 2147483647, %v6787_v4  ;;  %7585 = vmatpush3.bf16.msra.mxu0 %v7584_v16 }
0x25a1   :  { %v7590_v2 = vpack.c.bf16 %v6797_v25, %v6796_v37  ;;  %7586 = vmatprep.subr.bf16.mxu0 %v8702_v61 }
0x25a2   :  { %v7587_v54 = vpack.c.bf16 %v6795_v51, %v6794_v56 }
0x25a4   :  { %7588 = vmatpush3.bf16.msra.mxu0 %v7587_v54 }
0x25a5   :  { %7589 = vmatprep.subr.bf16.mxu0 %v8702_v61 }
0x25a8   :  { %7591 = vmatpush3.bf16.msra.mxu0 %v7590_v2 }
0x25ab   :  { %7546 = vmatmul.mubr.msk.f32.vlgmr.msra.gmra.mrb[216].mxu0 %vm6400_vm1, %v7286_v11 }
0x267e   :  { %v6870_v46 = vpop.f32.mrb[216].mxu0 }
0x267f   :  { %v7547_v57 = vpop.f32.mrb[217].mxu0  ;;  %6874 = vadd.xlane.f32.xlu0 %v6870_v46 }
0x270c   :  { %v6875_v26 = vpop.xlane.xlu0 %6874 }
0x270d   :  { %6876 = vst [vmem:[%s12724_s21] sm:$0xff] %v6875_v26 }

</bundles_post_ra>
